<compile_context>
chip_gen: v7x
topology: tpu7x:2x2x1
jax: 0.10.0
libtpu: 0.0.40
codegen_flags: <defaults>
</compile_context>

<pallas_src>
import jax
import jax.numpy as jnp
from jax.experimental import pallas as pl
from jax.experimental.pallas import tpu as pltpu


# ----------------------------- Pallas kernel --------------------------------

def _net_kernel(p1_ref, w1_ref, b1_ref, w2_ref, b2_ref,
                fc1_ref, fb1_ref, fc2_ref, fb2_ref, fc3_ref, fb3_ref,
                o_ref):
    """Whole forward pass for one batch block, entirely in VMEM.

    p1_ref : (16, bb*64, 75) conv1 im2col patches.  Leading axis enumerates
             (qr, qc, py, px): (qr, qc) = parity of the 14x14 pooled conv1
             grid (the grid conv2 reads), (py, px) = conv1's own pool phase.
             Rows are (b, u, v) with u, v in [0, 8) (7x7 real + zero pad),
             features ordered (dy, dx, cin).
    w1_ref : (75, 20)        conv1 weight as a matmul matrix
    b1_ref : (1, 20)
    w2_ref : (20, 400)       conv2 weight, columns ordered (dy, dx, cout)
    b2_ref : (1, 16)
    fc1_ref: (25, 16, 200)   fc1 split per conv2 spatial position (e, f)
    fb1_ref: (1, 200)
    fc2_ref: (200, 84)   fb2_ref: (1, 84)
    fc3_ref: (84, 10)    fb3_ref: (1, 10)
    o_ref  : (1, bb, 10)
    """
    f32 = jnp.float32
    bb = o_ref.shape[1]
    w1 = w1_ref[...]
    w2 = w2_ref[...]

    # --- conv1 + bias + ReLU + 2x2/2 max-pool (phase max folded as we go),
    #     immediately followed by the conv2 "wide" matmul on each parity grid:
    #     z[qr][qc][b, u, v, t*16 + n] = sum_c y1[b, 2u+qr, 2v+qc, c] * W2[t, c, n]
    z = [[None, None], [None, None]]
    for qr in range(2):
        for qc in range(2):
            acc = None
            for ph in range(4):
                g = jnp.dot(p1_ref[(qr * 2 + qc) * 4 + ph], w1,
                            preferred_element_type=f32)
                acc = g if acc is None else jnp.maximum(acc, g)
            # bias/ReLU commute with the phase max (same bias on every phase)
            y1 = jnp.maximum(acc + b1_ref[...], 0.0)                 # (bb*64, 20)
            zz = jnp.dot(y1, w2, preferred_element_type=f32)         # (bb*64, 400)
            z[qr][qc] = zz.reshape(bb, 8, 8, 400)                    # 8-aligned

    # --- conv2 + bias + ReLU + 2x2/2 max-pool via shifted-tap accumulation.
    pooled = None
    for py in range(2):
        for px in range(2):
            acc2 = None
            for dy in range(5):
                for dx in range(5):
                    r, c = py + dy, px + dx
                    qr, ar = r % 2, r // 2
                    qc, ac = c % 2, c // 2
                    t = dy * 5 + dx
                    piece = z[qr][qc][:, ar:ar + 5, ac:ac + 5,
                                      t * 16:(t + 1) * 16]           # (bb,5,5,16)
                    acc2 = piece if acc2 is None else acc2 + piece
            pooled = acc2 if pooled is None else jnp.maximum(pooled, acc2)
    y2 = jnp.maximum(pooled + b2_ref[...], 0.0)                      # (bb,5,5,16)

    # --- fc1 factored over the 25 spatial positions (no flatten/relayout),
    #     then relu -> fc2 -> relu -> fc3, all in VMEM.
    h = None
    for e in range(5):
        for f in range(5):
            contrib = jnp.dot(y2[:, e, f, :], fc1_ref[e * 5 + f],
                              preferred_element_type=f32)            # (bb, 200)
            h = contrib if h is None else h + contrib
    h = jnp.maximum(h + fb1_ref[...], 0.0)
    h = jnp.maximum(jnp.dot(h, fc2_ref[...], preferred_element_type=f32)
                    + fb2_ref[...], 0.0)
    out = jnp.dot(h, fc3_ref[...], preferred_element_type=f32) + fb3_ref[...]
    o_ref[0] = out.astype(o_ref.dtype)


# ------------------------------ glue / wrapper -------------------------------

def _conv1_patches(x_nhwc):
    """conv1 im2col, grouped by both conv1's pool phase (py,px) and the
    row/col parity (qr,qc) of the resulting 14x14 pooled map (so the kernel's
    conv1 output lands directly on the grids conv2 needs).  Pure XLA glue on
    the tiny raw input: 25 unit-stride slices + one transpose/pad."""
    B = x_nhwc.shape[0]
    taps = [x_nhwc[:, dy:dy + 28, dx:dx + 28, :]
            for dy in range(5) for dx in range(5)]
    t = jnp.stack(taps, axis=3).reshape(B, 28, 28, 75)    # features (dy,dx,cin)
    # conv-output row a = 4u + 2qr + py ; col = 4v + 2qc + px
    t = t.reshape(B, 7, 2, 2, 7, 2, 2, 75)                # (b,u,qr,py,v,qc,px,K)
    t = t.transpose(2, 5, 3, 6, 0, 1, 4, 7)               # (qr,qc,py,px,b,u,v,K)
    t = jnp.pad(t, ((0, 0),) * 5 + ((0, 1), (0, 1), (0, 0)))   # pad u,v: 7 -> 8
    return t.reshape(16, B * 64, 75)


def net_forward(params, x_nchw, *, block_b=1):
    """Full forward pass in a single pallas_call.  x: (B, 3, 32, 32) -> (B, 10).

    The grid iterates over batch blocks of `block_b` images (marked parallel
    so v7x's two TensorCores split the work); per-step VMEM use is ~2-3 MB
    regardless of batch size."""
    B = x_nchw.shape[0]
    assert B % block_b == 0, "block_b must divide the batch (no silent fallback)"
    n_blk = B // block_b

    x = jnp.transpose(x_nchw, (0, 2, 3, 1)).astype(jnp.float32)   # NCHW -> NHWC
    p1 = _conv1_patches(x)                                        # (16, B*64, 75)

    in_specs = [
        pl.BlockSpec((16, block_b * 64, 75), lambda i: (0, i, 0)),
        pl.BlockSpec((75, 20), lambda i: (0, 0)),
        pl.BlockSpec((1, 20), lambda i: (0, 0)),
        pl.BlockSpec((20, 400), lambda i: (0, 0)),
        pl.BlockSpec((1, 16), lambda i: (0, 0)),
        pl.BlockSpec((25, 16, 200), lambda i: (0, 0, 0)),
        pl.BlockSpec((1, 200), lambda i: (0, 0)),
        pl.BlockSpec((200, 84), lambda i: (0, 0)),
        pl.BlockSpec((1, 84), lambda i: (0, 0)),
        pl.BlockSpec((84, 10), lambda i: (0, 0)),
        pl.BlockSpec((1, 10), lambda i: (0, 0)),
    ]
    out = pl.pallas_call(
        _net_kernel,
        out_shape=jax.ShapeDtypeStruct((n_blk, block_b, 10), jnp.float32),
        grid=(n_blk,),
        in_specs=in_specs,
        out_specs=pl.BlockSpec((1, block_b, 10), lambda i: (i, 0, 0)),
        compiler_params=pltpu.CompilerParams(
            dimension_semantics=("parallel",)),
    )(p1, params["w1"], params["b1"], params["w2"], params["b2"],
      params["fc1"], params["fb1"], params["fc2"], params["fb2"],
      params["fc3"], params["fb3"])
    return out.reshape(B, 10)


# ------------------------------ parameters -----------------------------------

def init_params(key):
    """Deterministic init (PyTorch-style U(-1/sqrt(fan_in), 1/sqrt(fan_in))),
    stored in torch layouts (conv: OIHW; fc1 rows in NCHW-flatten order)."""
    def uniform(k, shape, fan_in):
        bound = 1.0 / jnp.sqrt(jnp.float32(fan_in))
        return jax.random.uniform(k, shape, jnp.float32, -bound, bound)

    ks = jax.random.split(key, 10)
    return {
        "conv1_w": uniform(ks[0], (20, 3, 5, 5), 3 * 5 * 5),
        "conv1_b": uniform(ks[1], (20,), 3 * 5 * 5),
        "conv2_w": uniform(ks[2], (16, 20, 5, 5), 20 * 5 * 5),
        "conv2_b": uniform(ks[3], (16,), 20 * 5 * 5),
        "fc1_w": uniform(ks[4], (400, 200), 400),
        "fc1_b": uniform(ks[5], (200,), 400),
        "fc2_w": uniform(ks[6], (200, 84), 200),
        "fc2_b": uniform(ks[7], (84,), 200),
        "fc3_w": uniform(ks[8], (84, 10), 84),
        "fc3_b": uniform(ks[9], (10,), 84),
    }


def prepare_params(p):
    """One-time layout transforms (outside the hot path):
      * conv1 OIHW -> (dy,dx,cin, cout) matmul matrix (75, 20)
      * conv2 OIHW -> "wide" matrix (cin, (dy,dx,cout)) = (20, 400)
      * fc1 rows regrouped from torch's NCHW flatten (c,e,f) into one
        (16, 200) block per conv2 spatial position (e,f)
      * biases reshaped to (1, N) rows for in-kernel broadcast.
    """
    w1 = jnp.transpose(p["conv1_w"], (2, 3, 1, 0)).reshape(75, 20)
    w2 = jnp.transpose(p["conv2_w"], (1, 2, 3, 0)).reshape(20, 400)
    fc1 = (p["fc1_w"].reshape(16, 5, 5, 200)
           .transpose(1, 2, 0, 3).reshape(25, 16, 200))
    return {
        "w1": w1, "b1": p["conv1_b"].reshape(1, 20),
        "w2": w2, "b2": p["conv2_b"].reshape(1, 16),
        "fc1": fc1, "fb1": p["fc1_b"].reshape(1, 200),
        "fc2": p["fc2_w"], "fb2": p["fc2_b"].reshape(1, 84),
        "fc3": p["fc3_w"], "fb3": p["fc3_b"].reshape(1, 10),
    }


# ------------------------------ reference ------------------------------------

def net_reference(p, x):
    """Pure-JAX/XLA reference using the original torch-layout params."""
    dn = ("NCHW", "OIHW", "NCHW")
    hi = jax.lax.Precision.HIGHEST
    y = jax.lax.conv_general_dilated(x, p["conv1_w"], (1, 1), "VALID",
                                     dimension_numbers=dn, precision=hi)
    y = jnp.maximum(y + p["conv1_b"][None, :, None, None], 0.0)
    B, C, H, W = y.shape
    y = y.reshape(B, C, H // 2, 2, W // 2, 2).max(axis=(3, 5))
    y = jax.lax.conv_general_dilated(y, p["conv2_w"], (1, 1), "VALID",
                                     dimension_numbers=dn, precision=hi)
    y = jnp.maximum(y + p["conv2_b"][None, :, None, None], 0.0)
    B, C, H, W = y.shape
    y = y.reshape(B, C, H // 2, 2, W // 2, 2).max(axis=(3, 5))
    y = y.reshape(B, -1)                                            # (c,h,w) order
    y = jnp.maximum(jnp.dot(y, p["fc1_w"], precision=hi) + p["fc1_b"], 0.0)
    y = jnp.maximum(jnp.dot(y, p["fc2_w"], precision=hi) + p["fc2_b"], 0.0)
    return jnp.dot(y, p["fc3_w"], precision=hi) + p["fc3_b"]


if __name__ == "__main__":
    key = jax.random.PRNGKey(0)
    pkey, xkey = jax.random.split(key)
    raw_params = init_params(pkey)
    params = prepare_params(raw_params)          # one-time layout work
    # 32x32 spatial is required by the module (16*5*5 flatten).
    x = jax.random.normal(xkey, (2, 3, 32, 32), jnp.float32)

    out = jax.jit(net_forward)(params, x)
    out = jax.block_until_ready(out)
    assert out.shape == (2, 10) and out.dtype == jnp.float32

    ref = net_reference(raw_params, x)
    assert jnp.allclose(out, ref, rtol=2e-2, atol=2e-2), \
        float(jnp.max(jnp.abs(out - ref)))
    print("KERNEL_OK")
</pallas_src>

<mosaic_0001>
module attributes {stable_mosaic.version = 11 : i64} {
  func.func @_net_kernel(%arg0: i32, %arg1: memref<16x64x75xf32, #tpu.memory_space<vmem>>, %arg2: memref<75x20xf32, #tpu.memory_space<vmem>>, %arg3: memref<1x20xf32, #tpu.memory_space<vmem>>, %arg4: memref<20x400xf32, #tpu.memory_space<vmem>>, %arg5: memref<1x16xf32, #tpu.memory_space<vmem>>, %arg6: memref<25x16x200xf32, #tpu.memory_space<vmem>>, %arg7: memref<1x200xf32, #tpu.memory_space<vmem>>, %arg8: memref<200x84xf32, #tpu.memory_space<vmem>>, %arg9: memref<1x84xf32, #tpu.memory_space<vmem>>, %arg10: memref<84x10xf32, #tpu.memory_space<vmem>>, %arg11: memref<1x10xf32, #tpu.memory_space<vmem>>, %arg12: memref<1x1x10xf32, #tpu.memory_space<vmem>>) attributes {dimension_semantics = [#tpu.dimension_semantics<parallel>], iteration_bounds = array<i64: 2>, scalar_prefetch = 0 : i64, scratch_operands = 0 : i64, tpu.core_type = #tpu.core_type<tc>, window_params = [{transform_indices = @transform_0, window_bounds = array<i64: 16, 64, 75>}, {pipeline_mode = #tpu.pipeline_mode<synchronous>, transform_indices = @transform_1, window_bounds = array<i64: 75, 20>}, {pipeline_mode = #tpu.pipeline_mode<synchronous>, transform_indices = @transform_2, window_bounds = array<i64: 1, 20>}, {pipeline_mode = #tpu.pipeline_mode<synchronous>, transform_indices = @transform_3, window_bounds = array<i64: 20, 400>}, {pipeline_mode = #tpu.pipeline_mode<synchronous>, transform_indices = @transform_4, window_bounds = array<i64: 1, 16>}, {pipeline_mode = #tpu.pipeline_mode<synchronous>, transform_indices = @transform_5, window_bounds = array<i64: 25, 16, 200>}, {pipeline_mode = #tpu.pipeline_mode<synchronous>, transform_indices = @transform_6, window_bounds = array<i64: 1, 200>}, {pipeline_mode = #tpu.pipeline_mode<synchronous>, transform_indices = @transform_7, window_bounds = array<i64: 200, 84>}, {pipeline_mode = #tpu.pipeline_mode<synchronous>, transform_indices = @transform_8, window_bounds = array<i64: 1, 84>}, {pipeline_mode = #tpu.pipeline_mode<synchronous>, transform_indices = @transform_9, window_bounds = array<i64: 84, 10>}, {pipeline_mode = #tpu.pipeline_mode<synchronous>, transform_indices = @transform_10, window_bounds = array<i64: 1, 10>}, {transform_indices = @transform_11, window_bounds = array<i64: 1, 1, 10>}]} {
    %c0 = arith.constant 0 : index
    %c0_0 = arith.constant 0 : index
    %0 = vector.load %arg2[%c0, %c0_0] : memref<75x20xf32, #tpu.memory_space<vmem>>, vector<75x20xf32>
    %c0_1 = arith.constant 0 : index
    %c0_2 = arith.constant 0 : index
    %1 = vector.load %arg4[%c0_1, %c0_2] : memref<20x400xf32, #tpu.memory_space<vmem>>, vector<20x400xf32>
    %c0_3 = arith.constant 0 : index
    %c0_4 = arith.constant 0 : index
    %c0_5 = arith.constant 0 : index
    %2 = vector.load %arg1[%c0_3, %c0_4, %c0_5] : memref<16x64x75xf32, #tpu.memory_space<vmem>>, vector<1x64x75xf32>
    %3 = vector.shape_cast %2 : vector<1x64x75xf32> to vector<64x75xf32>
    %cst = arith.constant dense<0.000000e+00> : vector<64x20xf32>
    %4 = tpu.matmul %3, %0, %cst {dimension_numbers = #tpu.dot_dimension_numbers<[1], [0], [0], [1], [0, 0, 1, 1], [], []>} : vector<64x75xf32>, vector<75x20xf32>, vector<64x20xf32> -> vector<64x20xf32>
    %c1 = arith.constant 1 : index
    %c0_6 = arith.constant 0 : index
    %c0_7 = arith.constant 0 : index
    %5 = vector.load %arg1[%c1, %c0_6, %c0_7] : memref<16x64x75xf32, #tpu.memory_space<vmem>>, vector<1x64x75xf32>
    %6 = vector.shape_cast %5 : vector<1x64x75xf32> to vector<64x75xf32>
    %cst_8 = arith.constant dense<0.000000e+00> : vector<64x20xf32>
    %7 = tpu.matmul %6, %0, %cst_8 {dimension_numbers = #tpu.dot_dimension_numbers<[1], [0], [0], [1], [0, 0, 1, 1], [], []>} : vector<64x75xf32>, vector<75x20xf32>, vector<64x20xf32> -> vector<64x20xf32>
    %8 = arith.maximumf %4, %7 : vector<64x20xf32>
    %c2 = arith.constant 2 : index
    %c0_9 = arith.constant 0 : index
    %c0_10 = arith.constant 0 : index
    %9 = vector.load %arg1[%c2, %c0_9, %c0_10] : memref<16x64x75xf32, #tpu.memory_space<vmem>>, vector<1x64x75xf32>
    %10 = vector.shape_cast %9 : vector<1x64x75xf32> to vector<64x75xf32>
    %cst_11 = arith.constant dense<0.000000e+00> : vector<64x20xf32>
    %11 = tpu.matmul %10, %0, %cst_11 {dimension_numbers = #tpu.dot_dimension_numbers<[1], [0], [0], [1], [0, 0, 1, 1], [], []>} : vector<64x75xf32>, vector<75x20xf32>, vector<64x20xf32> -> vector<64x20xf32>
    %12 = arith.maximumf %8, %11 : vector<64x20xf32>
    %c3 = arith.constant 3 : index
    %c0_12 = arith.constant 0 : index
    %c0_13 = arith.constant 0 : index
    %13 = vector.load %arg1[%c3, %c0_12, %c0_13] : memref<16x64x75xf32, #tpu.memory_space<vmem>>, vector<1x64x75xf32>
    %14 = vector.shape_cast %13 : vector<1x64x75xf32> to vector<64x75xf32>
    %cst_14 = arith.constant dense<0.000000e+00> : vector<64x20xf32>
    %15 = tpu.matmul %14, %0, %cst_14 {dimension_numbers = #tpu.dot_dimension_numbers<[1], [0], [0], [1], [0, 0, 1, 1], [], []>} : vector<64x75xf32>, vector<75x20xf32>, vector<64x20xf32> -> vector<64x20xf32>
    %16 = arith.maximumf %12, %15 : vector<64x20xf32>
    %c0_15 = arith.constant 0 : index
    %c0_16 = arith.constant 0 : index
    %17 = vector.load %arg3[%c0_15, %c0_16] : memref<1x20xf32, #tpu.memory_space<vmem>>, vector<1x20xf32>
    %18 = vector.broadcast %17 : vector<1x20xf32> to vector<64x20xf32>
    %19 = arith.addf %16, %18 : vector<64x20xf32>
    %cst_17 = arith.constant 0.000000e+00 : f32
    %20 = vector.broadcast %cst_17 : f32 to vector<64x20xf32>
    %21 = arith.maximumf %19, %20 : vector<64x20xf32>
    %cst_18 = arith.constant dense<0.000000e+00> : vector<64x400xf32>
    %22 = tpu.matmul %21, %1, %cst_18 {dimension_numbers = #tpu.dot_dimension_numbers<[1], [0], [0], [1], [0, 0, 1, 1], [], []>} : vector<64x20xf32>, vector<20x400xf32>, vector<64x400xf32> -> vector<64x400xf32>
    %23 = vector.shape_cast %22 : vector<64x400xf32> to vector<1x8x8x400xf32>
    %c4 = arith.constant 4 : index
    %c0_19 = arith.constant 0 : index
    %c0_20 = arith.constant 0 : index
    %24 = vector.load %arg1[%c4, %c0_19, %c0_20] : memref<16x64x75xf32, #tpu.memory_space<vmem>>, vector<1x64x75xf32>
    %25 = vector.shape_cast %24 : vector<1x64x75xf32> to vector<64x75xf32>
    %cst_21 = arith.constant dense<0.000000e+00> : vector<64x20xf32>
    %26 = tpu.matmul %25, %0, %cst_21 {dimension_numbers = #tpu.dot_dimension_numbers<[1], [0], [0], [1], [0, 0, 1, 1], [], []>} : vector<64x75xf32>, vector<75x20xf32>, vector<64x20xf32> -> vector<64x20xf32>
    %c5 = arith.constant 5 : index
    %c0_22 = arith.constant 0 : index
    %c0_23 = arith.constant 0 : index
    %27 = vector.load %arg1[%c5, %c0_22, %c0_23] : memref<16x64x75xf32, #tpu.memory_space<vmem>>, vector<1x64x75xf32>
    %28 = vector.shape_cast %27 : vector<1x64x75xf32> to vector<64x75xf32>
    %cst_24 = arith.constant dense<0.000000e+00> : vector<64x20xf32>
    %29 = tpu.matmul %28, %0, %cst_24 {dimension_numbers = #tpu.dot_dimension_numbers<[1], [0], [0], [1], [0, 0, 1, 1], [], []>} : vector<64x75xf32>, vector<75x20xf32>, vector<64x20xf32> -> vector<64x20xf32>
    %30 = arith.maximumf %26, %29 : vector<64x20xf32>
    %c6 = arith.constant 6 : index
    %c0_25 = arith.constant 0 : index
    %c0_26 = arith.constant 0 : index
    %31 = vector.load %arg1[%c6, %c0_25, %c0_26] : memref<16x64x75xf32, #tpu.memory_space<vmem>>, vector<1x64x75xf32>
    %32 = vector.shape_cast %31 : vector<1x64x75xf32> to vector<64x75xf32>
    %cst_27 = arith.constant dense<0.000000e+00> : vector<64x20xf32>
    %33 = tpu.matmul %32, %0, %cst_27 {dimension_numbers = #tpu.dot_dimension_numbers<[1], [0], [0], [1], [0, 0, 1, 1], [], []>} : vector<64x75xf32>, vector<75x20xf32>, vector<64x20xf32> -> vector<64x20xf32>
    %34 = arith.maximumf %30, %33 : vector<64x20xf32>
    %c7 = arith.constant 7 : index
    %c0_28 = arith.constant 0 : index
    %c0_29 = arith.constant 0 : index
    %35 = vector.load %arg1[%c7, %c0_28, %c0_29] : memref<16x64x75xf32, #tpu.memory_space<vmem>>, vector<1x64x75xf32>
    %36 = vector.shape_cast %35 : vector<1x64x75xf32> to vector<64x75xf32>
    %cst_30 = arith.constant dense<0.000000e+00> : vector<64x20xf32>
    %37 = tpu.matmul %36, %0, %cst_30 {dimension_numbers = #tpu.dot_dimension_numbers<[1], [0], [0], [1], [0, 0, 1, 1], [], []>} : vector<64x75xf32>, vector<75x20xf32>, vector<64x20xf32> -> vector<64x20xf32>
    %38 = arith.maximumf %34, %37 : vector<64x20xf32>
    %c0_31 = arith.constant 0 : index
    %c0_32 = arith.constant 0 : index
    %39 = vector.load %arg3[%c0_31, %c0_32] : memref<1x20xf32, #tpu.memory_space<vmem>>, vector<1x20xf32>
    %40 = vector.broadcast %39 : vector<1x20xf32> to vector<64x20xf32>
    %41 = arith.addf %38, %40 : vector<64x20xf32>
    %cst_33 = arith.constant 0.000000e+00 : f32
    %42 = vector.broadcast %cst_33 : f32 to vector<64x20xf32>
    %43 = arith.maximumf %41, %42 : vector<64x20xf32>
    %cst_34 = arith.constant dense<0.000000e+00> : vector<64x400xf32>
    %44 = tpu.matmul %43, %1, %cst_34 {dimension_numbers = #tpu.dot_dimension_numbers<[1], [0], [0], [1], [0, 0, 1, 1], [], []>} : vector<64x20xf32>, vector<20x400xf32>, vector<64x400xf32> -> vector<64x400xf32>
    %45 = vector.shape_cast %44 : vector<64x400xf32> to vector<1x8x8x400xf32>
    %c8 = arith.constant 8 : index
    %c0_35 = arith.constant 0 : index
    %c0_36 = arith.constant 0 : index
    %46 = vector.load %arg1[%c8, %c0_35, %c0_36] : memref<16x64x75xf32, #tpu.memory_space<vmem>>, vector<1x64x75xf32>
    %47 = vector.shape_cast %46 : vector<1x64x75xf32> to vector<64x75xf32>
    %cst_37 = arith.constant dense<0.000000e+00> : vector<64x20xf32>
    %48 = tpu.matmul %47, %0, %cst_37 {dimension_numbers = #tpu.dot_dimension_numbers<[1], [0], [0], [1], [0, 0, 1, 1], [], []>} : vector<64x75xf32>, vector<75x20xf32>, vector<64x20xf32> -> vector<64x20xf32>
    %c9 = arith.constant 9 : index
    %c0_38 = arith.constant 0 : index
    %c0_39 = arith.constant 0 : index
    %49 = vector.load %arg1[%c9, %c0_38, %c0_39] : memref<16x64x75xf32, #tpu.memory_space<vmem>>, vector<1x64x75xf32>
    %50 = vector.shape_cast %49 : vector<1x64x75xf32> to vector<64x75xf32>
    %cst_40 = arith.constant dense<0.000000e+00> : vector<64x20xf32>
    %51 = tpu.matmul %50, %0, %cst_40 {dimension_numbers = #tpu.dot_dimension_numbers<[1], [0], [0], [1], [0, 0, 1, 1], [], []>} : vector<64x75xf32>, vector<75x20xf32>, vector<64x20xf32> -> vector<64x20xf32>
    %52 = arith.maximumf %48, %51 : vector<64x20xf32>
    %c10 = arith.constant 10 : index
    %c0_41 = arith.constant 0 : index
    %c0_42 = arith.constant 0 : index
    %53 = vector.load %arg1[%c10, %c0_41, %c0_42] : memref<16x64x75xf32, #tpu.memory_space<vmem>>, vector<1x64x75xf32>
    %54 = vector.shape_cast %53 : vector<1x64x75xf32> to vector<64x75xf32>
    %cst_43 = arith.constant dense<0.000000e+00> : vector<64x20xf32>
    %55 = tpu.matmul %54, %0, %cst_43 {dimension_numbers = #tpu.dot_dimension_numbers<[1], [0], [0], [1], [0, 0, 1, 1], [], []>} : vector<64x75xf32>, vector<75x20xf32>, vector<64x20xf32> -> vector<64x20xf32>
    %56 = arith.maximumf %52, %55 : vector<64x20xf32>
    %c11 = arith.constant 11 : index
    %c0_44 = arith.constant 0 : index
    %c0_45 = arith.constant 0 : index
    %57 = vector.load %arg1[%c11, %c0_44, %c0_45] : memref<16x64x75xf32, #tpu.memory_space<vmem>>, vector<1x64x75xf32>
    %58 = vector.shape_cast %57 : vector<1x64x75xf32> to vector<64x75xf32>
    %cst_46 = arith.constant dense<0.000000e+00> : vector<64x20xf32>
    %59 = tpu.matmul %58, %0, %cst_46 {dimension_numbers = #tpu.dot_dimension_numbers<[1], [0], [0], [1], [0, 0, 1, 1], [], []>} : vector<64x75xf32>, vector<75x20xf32>, vector<64x20xf32> -> vector<64x20xf32>
    %60 = arith.maximumf %56, %59 : vector<64x20xf32>
    %c0_47 = arith.constant 0 : index
    %c0_48 = arith.constant 0 : index
    %61 = vector.load %arg3[%c0_47, %c0_48] : memref<1x20xf32, #tpu.memory_space<vmem>>, vector<1x20xf32>
    %62 = vector.broadcast %61 : vector<1x20xf32> to vector<64x20xf32>
    %63 = arith.addf %60, %62 : vector<64x20xf32>
    %cst_49 = arith.constant 0.000000e+00 : f32
    %64 = vector.broadcast %cst_49 : f32 to vector<64x20xf32>
    %65 = arith.maximumf %63, %64 : vector<64x20xf32>
    %cst_50 = arith.constant dense<0.000000e+00> : vector<64x400xf32>
    %66 = tpu.matmul %65, %1, %cst_50 {dimension_numbers = #tpu.dot_dimension_numbers<[1], [0], [0], [1], [0, 0, 1, 1], [], []>} : vector<64x20xf32>, vector<20x400xf32>, vector<64x400xf32> -> vector<64x400xf32>
    %67 = vector.shape_cast %66 : vector<64x400xf32> to vector<1x8x8x400xf32>
    %c12 = arith.constant 12 : index
    %c0_51 = arith.constant 0 : index
    %c0_52 = arith.constant 0 : index
    %68 = vector.load %arg1[%c12, %c0_51, %c0_52] : memref<16x64x75xf32, #tpu.memory_space<vmem>>, vector<1x64x75xf32>
    %69 = vector.shape_cast %68 : vector<1x64x75xf32> to vector<64x75xf32>
    %cst_53 = arith.constant dense<0.000000e+00> : vector<64x20xf32>
    %70 = tpu.matmul %69, %0, %cst_53 {dimension_numbers = #tpu.dot_dimension_numbers<[1], [0], [0], [1], [0, 0, 1, 1], [], []>} : vector<64x75xf32>, vector<75x20xf32>, vector<64x20xf32> -> vector<64x20xf32>
    %c13 = arith.constant 13 : index
    %c0_54 = arith.constant 0 : index
    %c0_55 = arith.constant 0 : index
    %71 = vector.load %arg1[%c13, %c0_54, %c0_55] : memref<16x64x75xf32, #tpu.memory_space<vmem>>, vector<1x64x75xf32>
    %72 = vector.shape_cast %71 : vector<1x64x75xf32> to vector<64x75xf32>
    %cst_56 = arith.constant dense<0.000000e+00> : vector<64x20xf32>
    %73 = tpu.matmul %72, %0, %cst_56 {dimension_numbers = #tpu.dot_dimension_numbers<[1], [0], [0], [1], [0, 0, 1, 1], [], []>} : vector<64x75xf32>, vector<75x20xf32>, vector<64x20xf32> -> vector<64x20xf32>
    %74 = arith.maximumf %70, %73 : vector<64x20xf32>
    %c14 = arith.constant 14 : index
    %c0_57 = arith.constant 0 : index
    %c0_58 = arith.constant 0 : index
    %75 = vector.load %arg1[%c14, %c0_57, %c0_58] : memref<16x64x75xf32, #tpu.memory_space<vmem>>, vector<1x64x75xf32>
    %76 = vector.shape_cast %75 : vector<1x64x75xf32> to vector<64x75xf32>
    %cst_59 = arith.constant dense<0.000000e+00> : vector<64x20xf32>
    %77 = tpu.matmul %76, %0, %cst_59 {dimension_numbers = #tpu.dot_dimension_numbers<[1], [0], [0], [1], [0, 0, 1, 1], [], []>} : vector<64x75xf32>, vector<75x20xf32>, vector<64x20xf32> -> vector<64x20xf32>
    %78 = arith.maximumf %74, %77 : vector<64x20xf32>
    %c15 = arith.constant 15 : index
    %c0_60 = arith.constant 0 : index
    %c0_61 = arith.constant 0 : index
    %79 = vector.load %arg1[%c15, %c0_60, %c0_61] : memref<16x64x75xf32, #tpu.memory_space<vmem>>, vector<1x64x75xf32>
    %80 = vector.shape_cast %79 : vector<1x64x75xf32> to vector<64x75xf32>
    %cst_62 = arith.constant dense<0.000000e+00> : vector<64x20xf32>
    %81 = tpu.matmul %80, %0, %cst_62 {dimension_numbers = #tpu.dot_dimension_numbers<[1], [0], [0], [1], [0, 0, 1, 1], [], []>} : vector<64x75xf32>, vector<75x20xf32>, vector<64x20xf32> -> vector<64x20xf32>
    %82 = arith.maximumf %78, %81 : vector<64x20xf32>
    %c0_63 = arith.constant 0 : index
    %c0_64 = arith.constant 0 : index
    %83 = vector.load %arg3[%c0_63, %c0_64] : memref<1x20xf32, #tpu.memory_space<vmem>>, vector<1x20xf32>
    %84 = vector.broadcast %83 : vector<1x20xf32> to vector<64x20xf32>
    %85 = arith.addf %82, %84 : vector<64x20xf32>
    %cst_65 = arith.constant 0.000000e+00 : f32
    %86 = vector.broadcast %cst_65 : f32 to vector<64x20xf32>
    %87 = arith.maximumf %85, %86 : vector<64x20xf32>
    %cst_66 = arith.constant dense<0.000000e+00> : vector<64x400xf32>
    %88 = tpu.matmul %87, %1, %cst_66 {dimension_numbers = #tpu.dot_dimension_numbers<[1], [0], [0], [1], [0, 0, 1, 1], [], []>} : vector<64x20xf32>, vector<20x400xf32>, vector<64x400xf32> -> vector<64x400xf32>
    %89 = vector.shape_cast %88 : vector<64x400xf32> to vector<1x8x8x400xf32>
    %90 = vector.extract_strided_slice %23 {offsets = [0, 0, 0, 0], sizes = [1, 5, 5, 16], strides = [1, 1, 1, 1]} : vector<1x8x8x400xf32> to vector<1x5x5x16xf32>
    %91 = vector.extract_strided_slice %45 {offsets = [0, 0, 0, 16], sizes = [1, 5, 5, 16], strides = [1, 1, 1, 1]} : vector<1x8x8x400xf32> to vector<1x5x5x16xf32>
    %92 = arith.addf %90, %91 : vector<1x5x5x16xf32>
    %93 = vector.extract_strided_slice %23 {offsets = [0, 0, 1, 32], sizes = [1, 5, 5, 16], strides = [1, 1, 1, 1]} : vector<1x8x8x400xf32> to vector<1x5x5x16xf32>
    %94 = arith.addf %92, %93 : vector<1x5x5x16xf32>
    %95 = vector.extract_strided_slice %45 {offsets = [0, 0, 1, 48], sizes = [1, 5, 5, 16], strides = [1, 1, 1, 1]} : vector<1x8x8x400xf32> to vector<1x5x5x16xf32>
    %96 = arith.addf %94, %95 : vector<1x5x5x16xf32>
    %97 = vector.extract_strided_slice %23 {offsets = [0, 0, 2, 64], sizes = [1, 5, 5, 16], strides = [1, 1, 1, 1]} : vector<1x8x8x400xf32> to vector<1x5x5x16xf32>
    %98 = arith.addf %96, %97 : vector<1x5x5x16xf32>
    %99 = vector.extract_strided_slice %67 {offsets = [0, 0, 0, 80], sizes = [1, 5, 5, 16], strides = [1, 1, 1, 1]} : vector<1x8x8x400xf32> to vector<1x5x5x16xf32>
    %100 = arith.addf %98, %99 : vector<1x5x5x16xf32>
    %101 = vector.extract_strided_slice %89 {offsets = [0, 0, 0, 96], sizes = [1, 5, 5, 16], strides = [1, 1, 1, 1]} : vector<1x8x8x400xf32> to vector<1x5x5x16xf32>
    %102 = arith.addf %100, %101 : vector<1x5x5x16xf32>
    %103 = vector.extract_strided_slice %67 {offsets = [0, 0, 1, 112], sizes = [1, 5, 5, 16], strides = [1, 1, 1, 1]} : vector<1x8x8x400xf32> to vector<1x5x5x16xf32>
    %104 = arith.addf %102, %103 : vector<1x5x5x16xf32>
    %105 = vector.extract_strided_slice %89 {offsets = [0, 0, 1, 128], sizes = [1, 5, 5, 16], strides = [1, 1, 1, 1]} : vector<1x8x8x400xf32> to vector<1x5x5x16xf32>
    %106 = arith.addf %104, %105 : vector<1x5x5x16xf32>
    %107 = vector.extract_strided_slice %67 {offsets = [0, 0, 2, 144], sizes = [1, 5, 5, 16], strides = [1, 1, 1, 1]} : vector<1x8x8x400xf32> to vector<1x5x5x16xf32>
    %108 = arith.addf %106, %107 : vector<1x5x5x16xf32>
    %109 = vector.extract_strided_slice %23 {offsets = [0, 1, 0, 160], sizes = [1, 5, 5, 16], strides = [1, 1, 1, 1]} : vector<1x8x8x400xf32> to vector<1x5x5x16xf32>
    %110 = arith.addf %108, %109 : vector<1x5x5x16xf32>
    %111 = vector.extract_strided_slice %45 {offsets = [0, 1, 0, 176], sizes = [1, 5, 5, 16], strides = [1, 1, 1, 1]} : vector<1x8x8x400xf32> to vector<1x5x5x16xf32>
    %112 = arith.addf %110, %111 : vector<1x5x5x16xf32>
    %113 = vector.extract_strided_slice %23 {offsets = [0, 1, 1, 192], sizes = [1, 5, 5, 16], strides = [1, 1, 1, 1]} : vector<1x8x8x400xf32> to vector<1x5x5x16xf32>
    %114 = arith.addf %112, %113 : vector<1x5x5x16xf32>
    %115 = vector.extract_strided_slice %45 {offsets = [0, 1, 1, 208], sizes = [1, 5, 5, 16], strides = [1, 1, 1, 1]} : vector<1x8x8x400xf32> to vector<1x5x5x16xf32>
    %116 = arith.addf %114, %115 : vector<1x5x5x16xf32>
    %117 = vector.extract_strided_slice %23 {offsets = [0, 1, 2, 224], sizes = [1, 5, 5, 16], strides = [1, 1, 1, 1]} : vector<1x8x8x400xf32> to vector<1x5x5x16xf32>
    %118 = arith.addf %116, %117 : vector<1x5x5x16xf32>
    %119 = vector.extract_strided_slice %67 {offsets = [0, 1, 0, 240], sizes = [1, 5, 5, 16], strides = [1, 1, 1, 1]} : vector<1x8x8x400xf32> to vector<1x5x5x16xf32>
    %120 = arith.addf %118, %119 : vector<1x5x5x16xf32>
    %121 = vector.extract_strided_slice %89 {offsets = [0, 1, 0, 256], sizes = [1, 5, 5, 16], strides = [1, 1, 1, 1]} : vector<1x8x8x400xf32> to vector<1x5x5x16xf32>
    %122 = arith.addf %120, %121 : vector<1x5x5x16xf32>
    %123 = vector.extract_strided_slice %67 {offsets = [0, 1, 1, 272], sizes = [1, 5, 5, 16], strides = [1, 1, 1, 1]} : vector<1x8x8x400xf32> to vector<1x5x5x16xf32>
    %124 = arith.addf %122, %123 : vector<1x5x5x16xf32>
    %125 = vector.extract_strided_slice %89 {offsets = [0, 1, 1, 288], sizes = [1, 5, 5, 16], strides = [1, 1, 1, 1]} : vector<1x8x8x400xf32> to vector<1x5x5x16xf32>
    %126 = arith.addf %124, %125 : vector<1x5x5x16xf32>
    %127 = vector.extract_strided_slice %67 {offsets = [0, 1, 2, 304], sizes = [1, 5, 5, 16], strides = [1, 1, 1, 1]} : vector<1x8x8x400xf32> to vector<1x5x5x16xf32>
    %128 = arith.addf %126, %127 : vector<1x5x5x16xf32>
    %129 = vector.extract_strided_slice %23 {offsets = [0, 2, 0, 320], sizes = [1, 5, 5, 16], strides = [1, 1, 1, 1]} : vector<1x8x8x400xf32> to vector<1x5x5x16xf32>
    %130 = arith.addf %128, %129 : vector<1x5x5x16xf32>
    %131 = vector.extract_strided_slice %45 {offsets = [0, 2, 0, 336], sizes = [1, 5, 5, 16], strides = [1, 1, 1, 1]} : vector<1x8x8x400xf32> to vector<1x5x5x16xf32>
    %132 = arith.addf %130, %131 : vector<1x5x5x16xf32>
    %133 = vector.extract_strided_slice %23 {offsets = [0, 2, 1, 352], sizes = [1, 5, 5, 16], strides = [1, 1, 1, 1]} : vector<1x8x8x400xf32> to vector<1x5x5x16xf32>
    %134 = arith.addf %132, %133 : vector<1x5x5x16xf32>
    %135 = vector.extract_strided_slice %45 {offsets = [0, 2, 1, 368], sizes = [1, 5, 5, 16], strides = [1, 1, 1, 1]} : vector<1x8x8x400xf32> to vector<1x5x5x16xf32>
    %136 = arith.addf %134, %135 : vector<1x5x5x16xf32>
    %137 = vector.extract_strided_slice %23 {offsets = [0, 2, 2, 384], sizes = [1, 5, 5, 16], strides = [1, 1, 1, 1]} : vector<1x8x8x400xf32> to vector<1x5x5x16xf32>
    %138 = arith.addf %136, %137 : vector<1x5x5x16xf32>
    %139 = vector.extract_strided_slice %45 {offsets = [0, 0, 0, 0], sizes = [1, 5, 5, 16], strides = [1, 1, 1, 1]} : vector<1x8x8x400xf32> to vector<1x5x5x16xf32>
    %140 = vector.extract_strided_slice %23 {offsets = [0, 0, 1, 16], sizes = [1, 5, 5, 16], strides = [1, 1, 1, 1]} : vector<1x8x8x400xf32> to vector<1x5x5x16xf32>
    %141 = arith.addf %139, %140 : vector<1x5x5x16xf32>
    %142 = vector.extract_strided_slice %45 {offsets = [0, 0, 1, 32], sizes = [1, 5, 5, 16], strides = [1, 1, 1, 1]} : vector<1x8x8x400xf32> to vector<1x5x5x16xf32>
    %143 = arith.addf %141, %142 : vector<1x5x5x16xf32>
    %144 = vector.extract_strided_slice %23 {offsets = [0, 0, 2, 48], sizes = [1, 5, 5, 16], strides = [1, 1, 1, 1]} : vector<1x8x8x400xf32> to vector<1x5x5x16xf32>
    %145 = arith.addf %143, %144 : vector<1x5x5x16xf32>
    %146 = vector.extract_strided_slice %45 {offsets = [0, 0, 2, 64], sizes = [1, 5, 5, 16], strides = [1, 1, 1, 1]} : vector<1x8x8x400xf32> to vector<1x5x5x16xf32>
    %147 = arith.addf %145, %146 : vector<1x5x5x16xf32>
    %148 = vector.extract_strided_slice %89 {offsets = [0, 0, 0, 80], sizes = [1, 5, 5, 16], strides = [1, 1, 1, 1]} : vector<1x8x8x400xf32> to vector<1x5x5x16xf32>
    %149 = arith.addf %147, %148 : vector<1x5x5x16xf32>
    %150 = vector.extract_strided_slice %67 {offsets = [0, 0, 1, 96], sizes = [1, 5, 5, 16], strides = [1, 1, 1, 1]} : vector<1x8x8x400xf32> to vector<1x5x5x16xf32>
    %151 = arith.addf %149, %150 : vector<1x5x5x16xf32>
    %152 = vector.extract_strided_slice %89 {offsets = [0, 0, 1, 112], sizes = [1, 5, 5, 16], strides = [1, 1, 1, 1]} : vector<1x8x8x400xf32> to vector<1x5x5x16xf32>
    %153 = arith.addf %151, %152 : vector<1x5x5x16xf32>
    %154 = vector.extract_strided_slice %67 {offsets = [0, 0, 2, 128], sizes = [1, 5, 5, 16], strides = [1, 1, 1, 1]} : vector<1x8x8x400xf32> to vector<1x5x5x16xf32>
    %155 = arith.addf %153, %154 : vector<1x5x5x16xf32>
    %156 = vector.extract_strided_slice %89 {offsets = [0, 0, 2, 144], sizes = [1, 5, 5, 16], strides = [1, 1, 1, 1]} : vector<1x8x8x400xf32> to vector<1x5x5x16xf32>
    %157 = arith.addf %155, %156 : vector<1x5x5x16xf32>
    %158 = vector.extract_strided_slice %45 {offsets = [0, 1, 0, 160], sizes = [1, 5, 5, 16], strides = [1, 1, 1, 1]} : vector<1x8x8x400xf32> to vector<1x5x5x16xf32>
    %159 = arith.addf %157, %158 : vector<1x5x5x16xf32>
    %160 = vector.extract_strided_slice %23 {offsets = [0, 1, 1, 176], sizes = [1, 5, 5, 16], strides = [1, 1, 1, 1]} : vector<1x8x8x400xf32> to vector<1x5x5x16xf32>
    %161 = arith.addf %159, %160 : vector<1x5x5x16xf32>
    %162 = vector.extract_strided_slice %45 {offsets = [0, 1, 1, 192], sizes = [1, 5, 5, 16], strides = [1, 1, 1, 1]} : vector<1x8x8x400xf32> to vector<1x5x5x16xf32>
    %163 = arith.addf %161, %162 : vector<1x5x5x16xf32>
    %164 = vector.extract_strided_slice %23 {offsets = [0, 1, 2, 208], sizes = [1, 5, 5, 16], strides = [1, 1, 1, 1]} : vector<1x8x8x400xf32> to vector<1x5x5x16xf32>
    %165 = arith.addf %163, %164 : vector<1x5x5x16xf32>
    %166 = vector.extract_strided_slice %45 {offsets = [0, 1, 2, 224], sizes = [1, 5, 5, 16], strides = [1, 1, 1, 1]} : vector<1x8x8x400xf32> to vector<1x5x5x16xf32>
    %167 = arith.addf %165, %166 : vector<1x5x5x16xf32>
    %168 = vector.extract_strided_slice %89 {offsets = [0, 1, 0, 240], sizes = [1, 5, 5, 16], strides = [1, 1, 1, 1]} : vector<1x8x8x400xf32> to vector<1x5x5x16xf32>
    %169 = arith.addf %167, %168 : vector<1x5x5x16xf32>
    %170 = vector.extract_strided_slice %67 {offsets = [0, 1, 1, 256], sizes = [1, 5, 5, 16], strides = [1, 1, 1, 1]} : vector<1x8x8x400xf32> to vector<1x5x5x16xf32>
    %171 = arith.addf %169, %170 : vector<1x5x5x16xf32>
    %172 = vector.extract_strided_slice %89 {offsets = [0, 1, 1, 272], sizes = [1, 5, 5, 16], strides = [1, 1, 1, 1]} : vector<1x8x8x400xf32> to vector<1x5x5x16xf32>
    %173 = arith.addf %171, %172 : vector<1x5x5x16xf32>
    %174 = vector.extract_strided_slice %67 {offsets = [0, 1, 2, 288], sizes = [1, 5, 5, 16], strides = [1, 1, 1, 1]} : vector<1x8x8x400xf32> to vector<1x5x5x16xf32>
    %175 = arith.addf %173, %174 : vector<1x5x5x16xf32>
    %176 = vector.extract_strided_slice %89 {offsets = [0, 1, 2, 304], sizes = [1, 5, 5, 16], strides = [1, 1, 1, 1]} : vector<1x8x8x400xf32> to vector<1x5x5x16xf32>
    %177 = arith.addf %175, %176 : vector<1x5x5x16xf32>
    %178 = vector.extract_strided_slice %45 {offsets = [0, 2, 0, 320], sizes = [1, 5, 5, 16], strides = [1, 1, 1, 1]} : vector<1x8x8x400xf32> to vector<1x5x5x16xf32>
    %179 = arith.addf %177, %178 : vector<1x5x5x16xf32>
    %180 = vector.extract_strided_slice %23 {offsets = [0, 2, 1, 336], sizes = [1, 5, 5, 16], strides = [1, 1, 1, 1]} : vector<1x8x8x400xf32> to vector<1x5x5x16xf32>
    %181 = arith.addf %179, %180 : vector<1x5x5x16xf32>
    %182 = vector.extract_strided_slice %45 {offsets = [0, 2, 1, 352], sizes = [1, 5, 5, 16], strides = [1, 1, 1, 1]} : vector<1x8x8x400xf32> to vector<1x5x5x16xf32>
    %183 = arith.addf %181, %182 : vector<1x5x5x16xf32>
    %184 = vector.extract_strided_slice %23 {offsets = [0, 2, 2, 368], sizes = [1, 5, 5, 16], strides = [1, 1, 1, 1]} : vector<1x8x8x400xf32> to vector<1x5x5x16xf32>
    %185 = arith.addf %183, %184 : vector<1x5x5x16xf32>
    %186 = vector.extract_strided_slice %45 {offsets = [0, 2, 2, 384], sizes = [1, 5, 5, 16], strides = [1, 1, 1, 1]} : vector<1x8x8x400xf32> to vector<1x5x5x16xf32>
    %187 = arith.addf %185, %186 : vector<1x5x5x16xf32>
    %188 = arith.maximumf %138, %187 : vector<1x5x5x16xf32>
    %189 = vector.extract_strided_slice %67 {offsets = [0, 0, 0, 0], sizes = [1, 5, 5, 16], strides = [1, 1, 1, 1]} : vector<1x8x8x400xf32> to vector<1x5x5x16xf32>
    %190 = vector.extract_strided_slice %89 {offsets = [0, 0, 0, 16], sizes = [1, 5, 5, 16], strides = [1, 1, 1, 1]} : vector<1x8x8x400xf32> to vector<1x5x5x16xf32>
    %191 = arith.addf %189, %190 : vector<1x5x5x16xf32>
    %192 = vector.extract_strided_slice %67 {offsets = [0, 0, 1, 32], sizes = [1, 5, 5, 16], strides = [1, 1, 1, 1]} : vector<1x8x8x400xf32> to vector<1x5x5x16xf32>
    %193 = arith.addf %191, %192 : vector<1x5x5x16xf32>
    %194 = vector.extract_strided_slice %89 {offsets = [0, 0, 1, 48], sizes = [1, 5, 5, 16], strides = [1, 1, 1, 1]} : vector<1x8x8x400xf32> to vector<1x5x5x16xf32>
    %195 = arith.addf %193, %194 : vector<1x5x5x16xf32>
    %196 = vector.extract_strided_slice %67 {offsets = [0, 0, 2, 64], sizes = [1, 5, 5, 16], strides = [1, 1, 1, 1]} : vector<1x8x8x400xf32> to vector<1x5x5x16xf32>
    %197 = arith.addf %195, %196 : vector<1x5x5x16xf32>
    %198 = vector.extract_strided_slice %23 {offsets = [0, 1, 0, 80], sizes = [1, 5, 5, 16], strides = [1, 1, 1, 1]} : vector<1x8x8x400xf32> to vector<1x5x5x16xf32>
    %199 = arith.addf %197, %198 : vector<1x5x5x16xf32>
    %200 = vector.extract_strided_slice %45 {offsets = [0, 1, 0, 96], sizes = [1, 5, 5, 16], strides = [1, 1, 1, 1]} : vector<1x8x8x400xf32> to vector<1x5x5x16xf32>
    %201 = arith.addf %199, %200 : vector<1x5x5x16xf32>
    %202 = vector.extract_strided_slice %23 {offsets = [0, 1, 1, 112], sizes = [1, 5, 5, 16], strides = [1, 1, 1, 1]} : vector<1x8x8x400xf32> to vector<1x5x5x16xf32>
    %203 = arith.addf %201, %202 : vector<1x5x5x16xf32>
    %204 = vector.extract_strided_slice %45 {offsets = [0, 1, 1, 128], sizes = [1, 5, 5, 16], strides = [1, 1, 1, 1]} : vector<1x8x8x400xf32> to vector<1x5x5x16xf32>
    %205 = arith.addf %203, %204 : vector<1x5x5x16xf32>
    %206 = vector.extract_strided_slice %23 {offsets = [0, 1, 2, 144], sizes = [1, 5, 5, 16], strides = [1, 1, 1, 1]} : vector<1x8x8x400xf32> to vector<1x5x5x16xf32>
    %207 = arith.addf %205, %206 : vector<1x5x5x16xf32>
    %208 = vector.extract_strided_slice %67 {offsets = [0, 1, 0, 160], sizes = [1, 5, 5, 16], strides = [1, 1, 1, 1]} : vector<1x8x8x400xf32> to vector<1x5x5x16xf32>
    %209 = arith.addf %207, %208 : vector<1x5x5x16xf32>
    %210 = vector.extract_strided_slice %89 {offsets = [0, 1, 0, 176], sizes = [1, 5, 5, 16], strides = [1, 1, 1, 1]} : vector<1x8x8x400xf32> to vector<1x5x5x16xf32>
    %211 = arith.addf %209, %210 : vector<1x5x5x16xf32>
    %212 = vector.extract_strided_slice %67 {offsets = [0, 1, 1, 192], sizes = [1, 5, 5, 16], strides = [1, 1, 1, 1]} : vector<1x8x8x400xf32> to vector<1x5x5x16xf32>
    %213 = arith.addf %211, %212 : vector<1x5x5x16xf32>
    %214 = vector.extract_strided_slice %89 {offsets = [0, 1, 1, 208], sizes = [1, 5, 5, 16], strides = [1, 1, 1, 1]} : vector<1x8x8x400xf32> to vector<1x5x5x16xf32>
    %215 = arith.addf %213, %214 : vector<1x5x5x16xf32>
    %216 = vector.extract_strided_slice %67 {offsets = [0, 1, 2, 224], sizes = [1, 5, 5, 16], strides = [1, 1, 1, 1]} : vector<1x8x8x400xf32> to vector<1x5x5x16xf32>
    %217 = arith.addf %215, %216 : vector<1x5x5x16xf32>
    %218 = vector.extract_strided_slice %23 {offsets = [0, 2, 0, 240], sizes = [1, 5, 5, 16], strides = [1, 1, 1, 1]} : vector<1x8x8x400xf32> to vector<1x5x5x16xf32>
    %219 = arith.addf %217, %218 : vector<1x5x5x16xf32>
    %220 = vector.extract_strided_slice %45 {offsets = [0, 2, 0, 256], sizes = [1, 5, 5, 16], strides = [1, 1, 1, 1]} : vector<1x8x8x400xf32> to vector<1x5x5x16xf32>
    %221 = arith.addf %219, %220 : vector<1x5x5x16xf32>
    %222 = vector.extract_strided_slice %23 {offsets = [0, 2, 1, 272], sizes = [1, 5, 5, 16], strides = [1, 1, 1, 1]} : vector<1x8x8x400xf32> to vector<1x5x5x16xf32>
    %223 = arith.addf %221, %222 : vector<1x5x5x16xf32>
    %224 = vector.extract_strided_slice %45 {offsets = [0, 2, 1, 288], sizes = [1, 5, 5, 16], strides = [1, 1, 1, 1]} : vector<1x8x8x400xf32> to vector<1x5x5x16xf32>
    %225 = arith.addf %223, %224 : vector<1x5x5x16xf32>
    %226 = vector.extract_strided_slice %23 {offsets = [0, 2, 2, 304], sizes = [1, 5, 5, 16], strides = [1, 1, 1, 1]} : vector<1x8x8x400xf32> to vector<1x5x5x16xf32>
    %227 = arith.addf %225, %226 : vector<1x5x5x16xf32>
    %228 = vector.extract_strided_slice %67 {offsets = [0, 2, 0, 320], sizes = [1, 5, 5, 16], strides = [1, 1, 1, 1]} : vector<1x8x8x400xf32> to vector<1x5x5x16xf32>
    %229 = arith.addf %227, %228 : vector<1x5x5x16xf32>
    %230 = vector.extract_strided_slice %89 {offsets = [0, 2, 0, 336], sizes = [1, 5, 5, 16], strides = [1, 1, 1, 1]} : vector<1x8x8x400xf32> to vector<1x5x5x16xf32>
    %231 = arith.addf %229, %230 : vector<1x5x5x16xf32>
    %232 = vector.extract_strided_slice %67 {offsets = [0, 2, 1, 352], sizes = [1, 5, 5, 16], strides = [1, 1, 1, 1]} : vector<1x8x8x400xf32> to vector<1x5x5x16xf32>
    %233 = arith.addf %231, %232 : vector<1x5x5x16xf32>
    %234 = vector.extract_strided_slice %89 {offsets = [0, 2, 1, 368], sizes = [1, 5, 5, 16], strides = [1, 1, 1, 1]} : vector<1x8x8x400xf32> to vector<1x5x5x16xf32>
    %235 = arith.addf %233, %234 : vector<1x5x5x16xf32>
    %236 = vector.extract_strided_slice %67 {offsets = [0, 2, 2, 384], sizes = [1, 5, 5, 16], strides = [1, 1, 1, 1]} : vector<1x8x8x400xf32> to vector<1x5x5x16xf32>
    %237 = arith.addf %235, %236 : vector<1x5x5x16xf32>
    %238 = arith.maximumf %188, %237 : vector<1x5x5x16xf32>
    %239 = vector.extract_strided_slice %89 {offsets = [0, 0, 0, 0], sizes = [1, 5, 5, 16], strides = [1, 1, 1, 1]} : vector<1x8x8x400xf32> to vector<1x5x5x16xf32>
    %240 = vector.extract_strided_slice %67 {offsets = [0, 0, 1, 16], sizes = [1, 5, 5, 16], strides = [1, 1, 1, 1]} : vector<1x8x8x400xf32> to vector<1x5x5x16xf32>
    %241 = arith.addf %239, %240 : vector<1x5x5x16xf32>
    %242 = vector.extract_strided_slice %89 {offsets = [0, 0, 1, 32], sizes = [1, 5, 5, 16], strides = [1, 1, 1, 1]} : vector<1x8x8x400xf32> to vector<1x5x5x16xf32>
    %243 = arith.addf %241, %242 : vector<1x5x5x16xf32>
    %244 = vector.extract_strided_slice %67 {offsets = [0, 0, 2, 48], sizes = [1, 5, 5, 16], strides = [1, 1, 1, 1]} : vector<1x8x8x400xf32> to vector<1x5x5x16xf32>
    %245 = arith.addf %243, %244 : vector<1x5x5x16xf32>
    %246 = vector.extract_strided_slice %89 {offsets = [0, 0, 2, 64], sizes = [1, 5, 5, 16], strides = [1, 1, 1, 1]} : vector<1x8x8x400xf32> to vector<1x5x5x16xf32>
    %247 = arith.addf %245, %246 : vector<1x5x5x16xf32>
    %248 = vector.extract_strided_slice %45 {offsets = [0, 1, 0, 80], sizes = [1, 5, 5, 16], strides = [1, 1, 1, 1]} : vector<1x8x8x400xf32> to vector<1x5x5x16xf32>
    %249 = arith.addf %247, %248 : vector<1x5x5x16xf32>
    %250 = vector.extract_strided_slice %23 {offsets = [0, 1, 1, 96], sizes = [1, 5, 5, 16], strides = [1, 1, 1, 1]} : vector<1x8x8x400xf32> to vector<1x5x5x16xf32>
    %251 = arith.addf %249, %250 : vector<1x5x5x16xf32>
    %252 = vector.extract_strided_slice %45 {offsets = [0, 1, 1, 112], sizes = [1, 5, 5, 16], strides = [1, 1, 1, 1]} : vector<1x8x8x400xf32> to vector<1x5x5x16xf32>
    %253 = arith.addf %251, %252 : vector<1x5x5x16xf32>
    %254 = vector.extract_strided_slice %23 {offsets = [0, 1, 2, 128], sizes = [1, 5, 5, 16], strides = [1, 1, 1, 1]} : vector<1x8x8x400xf32> to vector<1x5x5x16xf32>
    %255 = arith.addf %253, %254 : vector<1x5x5x16xf32>
    %256 = vector.extract_strided_slice %45 {offsets = [0, 1, 2, 144], sizes = [1, 5, 5, 16], strides = [1, 1, 1, 1]} : vector<1x8x8x400xf32> to vector<1x5x5x16xf32>
    %257 = arith.addf %255, %256 : vector<1x5x5x16xf32>
    %258 = vector.extract_strided_slice %89 {offsets = [0, 1, 0, 160], sizes = [1, 5, 5, 16], strides = [1, 1, 1, 1]} : vector<1x8x8x400xf32> to vector<1x5x5x16xf32>
    %259 = arith.addf %257, %258 : vector<1x5x5x16xf32>
    %260 = vector.extract_strided_slice %67 {offsets = [0, 1, 1, 176], sizes = [1, 5, 5, 16], strides = [1, 1, 1, 1]} : vector<1x8x8x400xf32> to vector<1x5x5x16xf32>
    %261 = arith.addf %259, %260 : vector<1x5x5x16xf32>
    %262 = vector.extract_strided_slice %89 {offsets = [0, 1, 1, 192], sizes = [1, 5, 5, 16], strides = [1, 1, 1, 1]} : vector<1x8x8x400xf32> to vector<1x5x5x16xf32>
    %263 = arith.addf %261, %262 : vector<1x5x5x16xf32>
    %264 = vector.extract_strided_slice %67 {offsets = [0, 1, 2, 208], sizes = [1, 5, 5, 16], strides = [1, 1, 1, 1]} : vector<1x8x8x400xf32> to vector<1x5x5x16xf32>
    %265 = arith.addf %263, %264 : vector<1x5x5x16xf32>
    %266 = vector.extract_strided_slice %89 {offsets = [0, 1, 2, 224], sizes = [1, 5, 5, 16], strides = [1, 1, 1, 1]} : vector<1x8x8x400xf32> to vector<1x5x5x16xf32>
    %267 = arith.addf %265, %266 : vector<1x5x5x16xf32>
    %268 = vector.extract_strided_slice %45 {offsets = [0, 2, 0, 240], sizes = [1, 5, 5, 16], strides = [1, 1, 1, 1]} : vector<1x8x8x400xf32> to vector<1x5x5x16xf32>
    %269 = arith.addf %267, %268 : vector<1x5x5x16xf32>
    %270 = vector.extract_strided_slice %23 {offsets = [0, 2, 1, 256], sizes = [1, 5, 5, 16], strides = [1, 1, 1, 1]} : vector<1x8x8x400xf32> to vector<1x5x5x16xf32>
    %271 = arith.addf %269, %270 : vector<1x5x5x16xf32>
    %272 = vector.extract_strided_slice %45 {offsets = [0, 2, 1, 272], sizes = [1, 5, 5, 16], strides = [1, 1, 1, 1]} : vector<1x8x8x400xf32> to vector<1x5x5x16xf32>
    %273 = arith.addf %271, %272 : vector<1x5x5x16xf32>
    %274 = vector.extract_strided_slice %23 {offsets = [0, 2, 2, 288], sizes = [1, 5, 5, 16], strides = [1, 1, 1, 1]} : vector<1x8x8x400xf32> to vector<1x5x5x16xf32>
    %275 = arith.addf %273, %274 : vector<1x5x5x16xf32>
    %276 = vector.extract_strided_slice %45 {offsets = [0, 2, 2, 304], sizes = [1, 5, 5, 16], strides = [1, 1, 1, 1]} : vector<1x8x8x400xf32> to vector<1x5x5x16xf32>
    %277 = arith.addf %275, %276 : vector<1x5x5x16xf32>
    %278 = vector.extract_strided_slice %89 {offsets = [0, 2, 0, 320], sizes = [1, 5, 5, 16], strides = [1, 1, 1, 1]} : vector<1x8x8x400xf32> to vector<1x5x5x16xf32>
    %279 = arith.addf %277, %278 : vector<1x5x5x16xf32>
    %280 = vector.extract_strided_slice %67 {offsets = [0, 2, 1, 336], sizes = [1, 5, 5, 16], strides = [1, 1, 1, 1]} : vector<1x8x8x400xf32> to vector<1x5x5x16xf32>
    %281 = arith.addf %279, %280 : vector<1x5x5x16xf32>
    %282 = vector.extract_strided_slice %89 {offsets = [0, 2, 1, 352], sizes = [1, 5, 5, 16], strides = [1, 1, 1, 1]} : vector<1x8x8x400xf32> to vector<1x5x5x16xf32>
    %283 = arith.addf %281, %282 : vector<1x5x5x16xf32>
    %284 = vector.extract_strided_slice %67 {offsets = [0, 2, 2, 368], sizes = [1, 5, 5, 16], strides = [1, 1, 1, 1]} : vector<1x8x8x400xf32> to vector<1x5x5x16xf32>
    %285 = arith.addf %283, %284 : vector<1x5x5x16xf32>
    %286 = vector.extract_strided_slice %89 {offsets = [0, 2, 2, 384], sizes = [1, 5, 5, 16], strides = [1, 1, 1, 1]} : vector<1x8x8x400xf32> to vector<1x5x5x16xf32>
    %287 = arith.addf %285, %286 : vector<1x5x5x16xf32>
    %288 = arith.maximumf %238, %287 : vector<1x5x5x16xf32>
    %c0_67 = arith.constant 0 : index
    %c0_68 = arith.constant 0 : index
    %289 = vector.load %arg5[%c0_67, %c0_68] : memref<1x16xf32, #tpu.memory_space<vmem>>, vector<1x16xf32>
    %290 = vector.shape_cast %289 : vector<1x16xf32> to vector<1x1x1x16xf32>
    %291 = vector.broadcast %290 : vector<1x1x1x16xf32> to vector<1x5x5x16xf32>
    %292 = arith.addf %288, %291 : vector<1x5x5x16xf32>
    %cst_69 = arith.constant 0.000000e+00 : f32
    %293 = vector.broadcast %cst_69 : f32 to vector<1x5x5x16xf32>
    %294 = arith.maximumf %292, %293 : vector<1x5x5x16xf32>
    %295 = vector.extract_strided_slice %294 {offsets = [0, 0, 0, 0], sizes = [1, 1, 1, 16], strides = [1, 1, 1, 1]} : vector<1x5x5x16xf32> to vector<1x1x1x16xf32>
    %296 = vector.shape_cast %295 : vector<1x1x1x16xf32> to vector<1x16xf32>
    %c0_70 = arith.constant 0 : index
    %c0_71 = arith.constant 0 : index
    %c0_72 = arith.constant 0 : index
    %297 = vector.load %arg6[%c0_70, %c0_71, %c0_72] : memref<25x16x200xf32, #tpu.memory_space<vmem>>, vector<1x16x200xf32>
    %298 = vector.shape_cast %297 : vector<1x16x200xf32> to vector<16x200xf32>
    %cst_73 = arith.constant dense<0.000000e+00> : vector<1x200xf32>
    %299 = tpu.matmul %296, %298, %cst_73 {dimension_numbers = #tpu.dot_dimension_numbers<[1], [0], [0], [1], [0, 0, 1, 1], [], []>} : vector<1x16xf32>, vector<16x200xf32>, vector<1x200xf32> -> vector<1x200xf32>
    %300 = vector.extract_strided_slice %294 {offsets = [0, 0, 1, 0], sizes = [1, 1, 1, 16], strides = [1, 1, 1, 1]} : vector<1x5x5x16xf32> to vector<1x1x1x16xf32>
    %301 = vector.shape_cast %300 : vector<1x1x1x16xf32> to vector<1x16xf32>
    %c1_74 = arith.constant 1 : index
    %c0_75 = arith.constant 0 : index
    %c0_76 = arith.constant 0 : index
    %302 = vector.load %arg6[%c1_74, %c0_75, %c0_76] : memref<25x16x200xf32, #tpu.memory_space<vmem>>, vector<1x16x200xf32>
    %303 = vector.shape_cast %302 : vector<1x16x200xf32> to vector<16x200xf32>
    %cst_77 = arith.constant dense<0.000000e+00> : vector<1x200xf32>
    %304 = tpu.matmul %301, %303, %cst_77 {dimension_numbers = #tpu.dot_dimension_numbers<[1], [0], [0], [1], [0, 0, 1, 1], [], []>} : vector<1x16xf32>, vector<16x200xf32>, vector<1x200xf32> -> vector<1x200xf32>
    %305 = arith.addf %299, %304 : vector<1x200xf32>
    %306 = vector.extract_strided_slice %294 {offsets = [0, 0, 2, 0], sizes = [1, 1, 1, 16], strides = [1, 1, 1, 1]} : vector<1x5x5x16xf32> to vector<1x1x1x16xf32>
    %307 = vector.shape_cast %306 : vector<1x1x1x16xf32> to vector<1x16xf32>
    %c2_78 = arith.constant 2 : index
    %c0_79 = arith.constant 0 : index
    %c0_80 = arith.constant 0 : index
    %308 = vector.load %arg6[%c2_78, %c0_79, %c0_80] : memref<25x16x200xf32, #tpu.memory_space<vmem>>, vector<1x16x200xf32>
    %309 = vector.shape_cast %308 : vector<1x16x200xf32> to vector<16x200xf32>
    %cst_81 = arith.constant dense<0.000000e+00> : vector<1x200xf32>
    %310 = tpu.matmul %307, %309, %cst_81 {dimension_numbers = #tpu.dot_dimension_numbers<[1], [0], [0], [1], [0, 0, 1, 1], [], []>} : vector<1x16xf32>, vector<16x200xf32>, vector<1x200xf32> -> vector<1x200xf32>
    %311 = arith.addf %305, %310 : vector<1x200xf32>
    %312 = vector.extract_strided_slice %294 {offsets = [0, 0, 3, 0], sizes = [1, 1, 1, 16], strides = [1, 1, 1, 1]} : vector<1x5x5x16xf32> to vector<1x1x1x16xf32>
    %313 = vector.shape_cast %312 : vector<1x1x1x16xf32> to vector<1x16xf32>
    %c3_82 = arith.constant 3 : index
    %c0_83 = arith.constant 0 : index
    %c0_84 = arith.constant 0 : index
    %314 = vector.load %arg6[%c3_82, %c0_83, %c0_84] : memref<25x16x200xf32, #tpu.memory_space<vmem>>, vector<1x16x200xf32>
    %315 = vector.shape_cast %314 : vector<1x16x200xf32> to vector<16x200xf32>
    %cst_85 = arith.constant dense<0.000000e+00> : vector<1x200xf32>
    %316 = tpu.matmul %313, %315, %cst_85 {dimension_numbers = #tpu.dot_dimension_numbers<[1], [0], [0], [1], [0, 0, 1, 1], [], []>} : vector<1x16xf32>, vector<16x200xf32>, vector<1x200xf32> -> vector<1x200xf32>
    %317 = arith.addf %311, %316 : vector<1x200xf32>
    %318 = vector.extract_strided_slice %294 {offsets = [0, 0, 4, 0], sizes = [1, 1, 1, 16], strides = [1, 1, 1, 1]} : vector<1x5x5x16xf32> to vector<1x1x1x16xf32>
    %319 = vector.shape_cast %318 : vector<1x1x1x16xf32> to vector<1x16xf32>
    %c4_86 = arith.constant 4 : index
    %c0_87 = arith.constant 0 : index
    %c0_88 = arith.constant 0 : index
    %320 = vector.load %arg6[%c4_86, %c0_87, %c0_88] : memref<25x16x200xf32, #tpu.memory_space<vmem>>, vector<1x16x200xf32>
    %321 = vector.shape_cast %320 : vector<1x16x200xf32> to vector<16x200xf32>
    %cst_89 = arith.constant dense<0.000000e+00> : vector<1x200xf32>
    %322 = tpu.matmul %319, %321, %cst_89 {dimension_numbers = #tpu.dot_dimension_numbers<[1], [0], [0], [1], [0, 0, 1, 1], [], []>} : vector<1x16xf32>, vector<16x200xf32>, vector<1x200xf32> -> vector<1x200xf32>
    %323 = arith.addf %317, %322 : vector<1x200xf32>
    %324 = vector.extract_strided_slice %294 {offsets = [0, 1, 0, 0], sizes = [1, 1, 1, 16], strides = [1, 1, 1, 1]} : vector<1x5x5x16xf32> to vector<1x1x1x16xf32>
    %325 = vector.shape_cast %324 : vector<1x1x1x16xf32> to vector<1x16xf32>
    %c5_90 = arith.constant 5 : index
    %c0_91 = arith.constant 0 : index
    %c0_92 = arith.constant 0 : index
    %326 = vector.load %arg6[%c5_90, %c0_91, %c0_92] : memref<25x16x200xf32, #tpu.memory_space<vmem>>, vector<1x16x200xf32>
    %327 = vector.shape_cast %326 : vector<1x16x200xf32> to vector<16x200xf32>
    %cst_93 = arith.constant dense<0.000000e+00> : vector<1x200xf32>
    %328 = tpu.matmul %325, %327, %cst_93 {dimension_numbers = #tpu.dot_dimension_numbers<[1], [0], [0], [1], [0, 0, 1, 1], [], []>} : vector<1x16xf32>, vector<16x200xf32>, vector<1x200xf32> -> vector<1x200xf32>
    %329 = arith.addf %323, %328 : vector<1x200xf32>
    %330 = vector.extract_strided_slice %294 {offsets = [0, 1, 1, 0], sizes = [1, 1, 1, 16], strides = [1, 1, 1, 1]} : vector<1x5x5x16xf32> to vector<1x1x1x16xf32>
    %331 = vector.shape_cast %330 : vector<1x1x1x16xf32> to vector<1x16xf32>
    %c6_94 = arith.constant 6 : index
    %c0_95 = arith.constant 0 : index
    %c0_96 = arith.constant 0 : index
    %332 = vector.load %arg6[%c6_94, %c0_95, %c0_96] : memref<25x16x200xf32, #tpu.memory_space<vmem>>, vector<1x16x200xf32>
    %333 = vector.shape_cast %332 : vector<1x16x200xf32> to vector<16x200xf32>
    %cst_97 = arith.constant dense<0.000000e+00> : vector<1x200xf32>
    %334 = tpu.matmul %331, %333, %cst_97 {dimension_numbers = #tpu.dot_dimension_numbers<[1], [0], [0], [1], [0, 0, 1, 1], [], []>} : vector<1x16xf32>, vector<16x200xf32>, vector<1x200xf32> -> vector<1x200xf32>
    %335 = arith.addf %329, %334 : vector<1x200xf32>
    %336 = vector.extract_strided_slice %294 {offsets = [0, 1, 2, 0], sizes = [1, 1, 1, 16], strides = [1, 1, 1, 1]} : vector<1x5x5x16xf32> to vector<1x1x1x16xf32>
    %337 = vector.shape_cast %336 : vector<1x1x1x16xf32> to vector<1x16xf32>
    %c7_98 = arith.constant 7 : index
    %c0_99 = arith.constant 0 : index
    %c0_100 = arith.constant 0 : index
    %338 = vector.load %arg6[%c7_98, %c0_99, %c0_100] : memref<25x16x200xf32, #tpu.memory_space<vmem>>, vector<1x16x200xf32>
    %339 = vector.shape_cast %338 : vector<1x16x200xf32> to vector<16x200xf32>
    %cst_101 = arith.constant dense<0.000000e+00> : vector<1x200xf32>
    %340 = tpu.matmul %337, %339, %cst_101 {dimension_numbers = #tpu.dot_dimension_numbers<[1], [0], [0], [1], [0, 0, 1, 1], [], []>} : vector<1x16xf32>, vector<16x200xf32>, vector<1x200xf32> -> vector<1x200xf32>
    %341 = arith.addf %335, %340 : vector<1x200xf32>
    %342 = vector.extract_strided_slice %294 {offsets = [0, 1, 3, 0], sizes = [1, 1, 1, 16], strides = [1, 1, 1, 1]} : vector<1x5x5x16xf32> to vector<1x1x1x16xf32>
    %343 = vector.shape_cast %342 : vector<1x1x1x16xf32> to vector<1x16xf32>
    %c8_102 = arith.constant 8 : index
    %c0_103 = arith.constant 0 : index
    %c0_104 = arith.constant 0 : index
    %344 = vector.load %arg6[%c8_102, %c0_103, %c0_104] : memref<25x16x200xf32, #tpu.memory_space<vmem>>, vector<1x16x200xf32>
    %345 = vector.shape_cast %344 : vector<1x16x200xf32> to vector<16x200xf32>
    %cst_105 = arith.constant dense<0.000000e+00> : vector<1x200xf32>
    %346 = tpu.matmul %343, %345, %cst_105 {dimension_numbers = #tpu.dot_dimension_numbers<[1], [0], [0], [1], [0, 0, 1, 1], [], []>} : vector<1x16xf32>, vector<16x200xf32>, vector<1x200xf32> -> vector<1x200xf32>
    %347 = arith.addf %341, %346 : vector<1x200xf32>
    %348 = vector.extract_strided_slice %294 {offsets = [0, 1, 4, 0], sizes = [1, 1, 1, 16], strides = [1, 1, 1, 1]} : vector<1x5x5x16xf32> to vector<1x1x1x16xf32>
    %349 = vector.shape_cast %348 : vector<1x1x1x16xf32> to vector<1x16xf32>
    %c9_106 = arith.constant 9 : index
    %c0_107 = arith.constant 0 : index
    %c0_108 = arith.constant 0 : index
    %350 = vector.load %arg6[%c9_106, %c0_107, %c0_108] : memref<25x16x200xf32, #tpu.memory_space<vmem>>, vector<1x16x200xf32>
    %351 = vector.shape_cast %350 : vector<1x16x200xf32> to vector<16x200xf32>
    %cst_109 = arith.constant dense<0.000000e+00> : vector<1x200xf32>
    %352 = tpu.matmul %349, %351, %cst_109 {dimension_numbers = #tpu.dot_dimension_numbers<[1], [0], [0], [1], [0, 0, 1, 1], [], []>} : vector<1x16xf32>, vector<16x200xf32>, vector<1x200xf32> -> vector<1x200xf32>
    %353 = arith.addf %347, %352 : vector<1x200xf32>
    %354 = vector.extract_strided_slice %294 {offsets = [0, 2, 0, 0], sizes = [1, 1, 1, 16], strides = [1, 1, 1, 1]} : vector<1x5x5x16xf32> to vector<1x1x1x16xf32>
    %355 = vector.shape_cast %354 : vector<1x1x1x16xf32> to vector<1x16xf32>
    %c10_110 = arith.constant 10 : index
    %c0_111 = arith.constant 0 : index
    %c0_112 = arith.constant 0 : index
    %356 = vector.load %arg6[%c10_110, %c0_111, %c0_112] : memref<25x16x200xf32, #tpu.memory_space<vmem>>, vector<1x16x200xf32>
    %357 = vector.shape_cast %356 : vector<1x16x200xf32> to vector<16x200xf32>
    %cst_113 = arith.constant dense<0.000000e+00> : vector<1x200xf32>
    %358 = tpu.matmul %355, %357, %cst_113 {dimension_numbers = #tpu.dot_dimension_numbers<[1], [0], [0], [1], [0, 0, 1, 1], [], []>} : vector<1x16xf32>, vector<16x200xf32>, vector<1x200xf32> -> vector<1x200xf32>
    %359 = arith.addf %353, %358 : vector<1x200xf32>
    %360 = vector.extract_strided_slice %294 {offsets = [0, 2, 1, 0], sizes = [1, 1, 1, 16], strides = [1, 1, 1, 1]} : vector<1x5x5x16xf32> to vector<1x1x1x16xf32>
    %361 = vector.shape_cast %360 : vector<1x1x1x16xf32> to vector<1x16xf32>
    %c11_114 = arith.constant 11 : index
    %c0_115 = arith.constant 0 : index
    %c0_116 = arith.constant 0 : index
    %362 = vector.load %arg6[%c11_114, %c0_115, %c0_116] : memref<25x16x200xf32, #tpu.memory_space<vmem>>, vector<1x16x200xf32>
    %363 = vector.shape_cast %362 : vector<1x16x200xf32> to vector<16x200xf32>
    %cst_117 = arith.constant dense<0.000000e+00> : vector<1x200xf32>
    %364 = tpu.matmul %361, %363, %cst_117 {dimension_numbers = #tpu.dot_dimension_numbers<[1], [0], [0], [1], [0, 0, 1, 1], [], []>} : vector<1x16xf32>, vector<16x200xf32>, vector<1x200xf32> -> vector<1x200xf32>
    %365 = arith.addf %359, %364 : vector<1x200xf32>
    %366 = vector.extract_strided_slice %294 {offsets = [0, 2, 2, 0], sizes = [1, 1, 1, 16], strides = [1, 1, 1, 1]} : vector<1x5x5x16xf32> to vector<1x1x1x16xf32>
    %367 = vector.shape_cast %366 : vector<1x1x1x16xf32> to vector<1x16xf32>
    %c12_118 = arith.constant 12 : index
    %c0_119 = arith.constant 0 : index
    %c0_120 = arith.constant 0 : index
    %368 = vector.load %arg6[%c12_118, %c0_119, %c0_120] : memref<25x16x200xf32, #tpu.memory_space<vmem>>, vector<1x16x200xf32>
    %369 = vector.shape_cast %368 : vector<1x16x200xf32> to vector<16x200xf32>
    %cst_121 = arith.constant dense<0.000000e+00> : vector<1x200xf32>
    %370 = tpu.matmul %367, %369, %cst_121 {dimension_numbers = #tpu.dot_dimension_numbers<[1], [0], [0], [1], [0, 0, 1, 1], [], []>} : vector<1x16xf32>, vector<16x200xf32>, vector<1x200xf32> -> vector<1x200xf32>
    %371 = arith.addf %365, %370 : vector<1x200xf32>
    %372 = vector.extract_strided_slice %294 {offsets = [0, 2, 3, 0], sizes = [1, 1, 1, 16], strides = [1, 1, 1, 1]} : vector<1x5x5x16xf32> to vector<1x1x1x16xf32>
    %373 = vector.shape_cast %372 : vector<1x1x1x16xf32> to vector<1x16xf32>
    %c13_122 = arith.constant 13 : index
    %c0_123 = arith.constant 0 : index
    %c0_124 = arith.constant 0 : index
    %374 = vector.load %arg6[%c13_122, %c0_123, %c0_124] : memref<25x16x200xf32, #tpu.memory_space<vmem>>, vector<1x16x200xf32>
    %375 = vector.shape_cast %374 : vector<1x16x200xf32> to vector<16x200xf32>
    %cst_125 = arith.constant dense<0.000000e+00> : vector<1x200xf32>
    %376 = tpu.matmul %373, %375, %cst_125 {dimension_numbers = #tpu.dot_dimension_numbers<[1], [0], [0], [1], [0, 0, 1, 1], [], []>} : vector<1x16xf32>, vector<16x200xf32>, vector<1x200xf32> -> vector<1x200xf32>
    %377 = arith.addf %371, %376 : vector<1x200xf32>
    %378 = vector.extract_strided_slice %294 {offsets = [0, 2, 4, 0], sizes = [1, 1, 1, 16], strides = [1, 1, 1, 1]} : vector<1x5x5x16xf32> to vector<1x1x1x16xf32>
    %379 = vector.shape_cast %378 : vector<1x1x1x16xf32> to vector<1x16xf32>
    %c14_126 = arith.constant 14 : index
    %c0_127 = arith.constant 0 : index
    %c0_128 = arith.constant 0 : index
    %380 = vector.load %arg6[%c14_126, %c0_127, %c0_128] : memref<25x16x200xf32, #tpu.memory_space<vmem>>, vector<1x16x200xf32>
    %381 = vector.shape_cast %380 : vector<1x16x200xf32> to vector<16x200xf32>
    %cst_129 = arith.constant dense<0.000000e+00> : vector<1x200xf32>
    %382 = tpu.matmul %379, %381, %cst_129 {dimension_numbers = #tpu.dot_dimension_numbers<[1], [0], [0], [1], [0, 0, 1, 1], [], []>} : vector<1x16xf32>, vector<16x200xf32>, vector<1x200xf32> -> vector<1x200xf32>
    %383 = arith.addf %377, %382 : vector<1x200xf32>
    %384 = vector.extract_strided_slice %294 {offsets = [0, 3, 0, 0], sizes = [1, 1, 1, 16], strides = [1, 1, 1, 1]} : vector<1x5x5x16xf32> to vector<1x1x1x16xf32>
    %385 = vector.shape_cast %384 : vector<1x1x1x16xf32> to vector<1x16xf32>
    %c15_130 = arith.constant 15 : index
    %c0_131 = arith.constant 0 : index
    %c0_132 = arith.constant 0 : index
    %386 = vector.load %arg6[%c15_130, %c0_131, %c0_132] : memref<25x16x200xf32, #tpu.memory_space<vmem>>, vector<1x16x200xf32>
    %387 = vector.shape_cast %386 : vector<1x16x200xf32> to vector<16x200xf32>
    %cst_133 = arith.constant dense<0.000000e+00> : vector<1x200xf32>
    %388 = tpu.matmul %385, %387, %cst_133 {dimension_numbers = #tpu.dot_dimension_numbers<[1], [0], [0], [1], [0, 0, 1, 1], [], []>} : vector<1x16xf32>, vector<16x200xf32>, vector<1x200xf32> -> vector<1x200xf32>
    %389 = arith.addf %383, %388 : vector<1x200xf32>
    %390 = vector.extract_strided_slice %294 {offsets = [0, 3, 1, 0], sizes = [1, 1, 1, 16], strides = [1, 1, 1, 1]} : vector<1x5x5x16xf32> to vector<1x1x1x16xf32>
    %391 = vector.shape_cast %390 : vector<1x1x1x16xf32> to vector<1x16xf32>
    %c16 = arith.constant 16 : index
    %c0_134 = arith.constant 0 : index
    %c0_135 = arith.constant 0 : index
    %392 = vector.load %arg6[%c16, %c0_134, %c0_135] : memref<25x16x200xf32, #tpu.memory_space<vmem>>, vector<1x16x200xf32>
    %393 = vector.shape_cast %392 : vector<1x16x200xf32> to vector<16x200xf32>
    %cst_136 = arith.constant dense<0.000000e+00> : vector<1x200xf32>
    %394 = tpu.matmul %391, %393, %cst_136 {dimension_numbers = #tpu.dot_dimension_numbers<[1], [0], [0], [1], [0, 0, 1, 1], [], []>} : vector<1x16xf32>, vector<16x200xf32>, vector<1x200xf32> -> vector<1x200xf32>
    %395 = arith.addf %389, %394 : vector<1x200xf32>
    %396 = vector.extract_strided_slice %294 {offsets = [0, 3, 2, 0], sizes = [1, 1, 1, 16], strides = [1, 1, 1, 1]} : vector<1x5x5x16xf32> to vector<1x1x1x16xf32>
    %397 = vector.shape_cast %396 : vector<1x1x1x16xf32> to vector<1x16xf32>
    %c17 = arith.constant 17 : index
    %c0_137 = arith.constant 0 : index
    %c0_138 = arith.constant 0 : index
    %398 = vector.load %arg6[%c17, %c0_137, %c0_138] : memref<25x16x200xf32, #tpu.memory_space<vmem>>, vector<1x16x200xf32>
    %399 = vector.shape_cast %398 : vector<1x16x200xf32> to vector<16x200xf32>
    %cst_139 = arith.constant dense<0.000000e+00> : vector<1x200xf32>
    %400 = tpu.matmul %397, %399, %cst_139 {dimension_numbers = #tpu.dot_dimension_numbers<[1], [0], [0], [1], [0, 0, 1, 1], [], []>} : vector<1x16xf32>, vector<16x200xf32>, vector<1x200xf32> -> vector<1x200xf32>
    %401 = arith.addf %395, %400 : vector<1x200xf32>
    %402 = vector.extract_strided_slice %294 {offsets = [0, 3, 3, 0], sizes = [1, 1, 1, 16], strides = [1, 1, 1, 1]} : vector<1x5x5x16xf32> to vector<1x1x1x16xf32>
    %403 = vector.shape_cast %402 : vector<1x1x1x16xf32> to vector<1x16xf32>
    %c18 = arith.constant 18 : index
    %c0_140 = arith.constant 0 : index
    %c0_141 = arith.constant 0 : index
    %404 = vector.load %arg6[%c18, %c0_140, %c0_141] : memref<25x16x200xf32, #tpu.memory_space<vmem>>, vector<1x16x200xf32>
    %405 = vector.shape_cast %404 : vector<1x16x200xf32> to vector<16x200xf32>
    %cst_142 = arith.constant dense<0.000000e+00> : vector<1x200xf32>
    %406 = tpu.matmul %403, %405, %cst_142 {dimension_numbers = #tpu.dot_dimension_numbers<[1], [0], [0], [1], [0, 0, 1, 1], [], []>} : vector<1x16xf32>, vector<16x200xf32>, vector<1x200xf32> -> vector<1x200xf32>
    %407 = arith.addf %401, %406 : vector<1x200xf32>
    %408 = vector.extract_strided_slice %294 {offsets = [0, 3, 4, 0], sizes = [1, 1, 1, 16], strides = [1, 1, 1, 1]} : vector<1x5x5x16xf32> to vector<1x1x1x16xf32>
    %409 = vector.shape_cast %408 : vector<1x1x1x16xf32> to vector<1x16xf32>
    %c19 = arith.constant 19 : index
    %c0_143 = arith.constant 0 : index
    %c0_144 = arith.constant 0 : index
    %410 = vector.load %arg6[%c19, %c0_143, %c0_144] : memref<25x16x200xf32, #tpu.memory_space<vmem>>, vector<1x16x200xf32>
    %411 = vector.shape_cast %410 : vector<1x16x200xf32> to vector<16x200xf32>
    %cst_145 = arith.constant dense<0.000000e+00> : vector<1x200xf32>
    %412 = tpu.matmul %409, %411, %cst_145 {dimension_numbers = #tpu.dot_dimension_numbers<[1], [0], [0], [1], [0, 0, 1, 1], [], []>} : vector<1x16xf32>, vector<16x200xf32>, vector<1x200xf32> -> vector<1x200xf32>
    %413 = arith.addf %407, %412 : vector<1x200xf32>
    %414 = vector.extract_strided_slice %294 {offsets = [0, 4, 0, 0], sizes = [1, 1, 1, 16], strides = [1, 1, 1, 1]} : vector<1x5x5x16xf32> to vector<1x1x1x16xf32>
    %415 = vector.shape_cast %414 : vector<1x1x1x16xf32> to vector<1x16xf32>
    %c20 = arith.constant 20 : index
    %c0_146 = arith.constant 0 : index
    %c0_147 = arith.constant 0 : index
    %416 = vector.load %arg6[%c20, %c0_146, %c0_147] : memref<25x16x200xf32, #tpu.memory_space<vmem>>, vector<1x16x200xf32>
    %417 = vector.shape_cast %416 : vector<1x16x200xf32> to vector<16x200xf32>
    %cst_148 = arith.constant dense<0.000000e+00> : vector<1x200xf32>
    %418 = tpu.matmul %415, %417, %cst_148 {dimension_numbers = #tpu.dot_dimension_numbers<[1], [0], [0], [1], [0, 0, 1, 1], [], []>} : vector<1x16xf32>, vector<16x200xf32>, vector<1x200xf32> -> vector<1x200xf32>
    %419 = arith.addf %413, %418 : vector<1x200xf32>
    %420 = vector.extract_strided_slice %294 {offsets = [0, 4, 1, 0], sizes = [1, 1, 1, 16], strides = [1, 1, 1, 1]} : vector<1x5x5x16xf32> to vector<1x1x1x16xf32>
    %421 = vector.shape_cast %420 : vector<1x1x1x16xf32> to vector<1x16xf32>
    %c21 = arith.constant 21 : index
    %c0_149 = arith.constant 0 : index
    %c0_150 = arith.constant 0 : index
    %422 = vector.load %arg6[%c21, %c0_149, %c0_150] : memref<25x16x200xf32, #tpu.memory_space<vmem>>, vector<1x16x200xf32>
    %423 = vector.shape_cast %422 : vector<1x16x200xf32> to vector<16x200xf32>
    %cst_151 = arith.constant dense<0.000000e+00> : vector<1x200xf32>
    %424 = tpu.matmul %421, %423, %cst_151 {dimension_numbers = #tpu.dot_dimension_numbers<[1], [0], [0], [1], [0, 0, 1, 1], [], []>} : vector<1x16xf32>, vector<16x200xf32>, vector<1x200xf32> -> vector<1x200xf32>
    %425 = arith.addf %419, %424 : vector<1x200xf32>
    %426 = vector.extract_strided_slice %294 {offsets = [0, 4, 2, 0], sizes = [1, 1, 1, 16], strides = [1, 1, 1, 1]} : vector<1x5x5x16xf32> to vector<1x1x1x16xf32>
    %427 = vector.shape_cast %426 : vector<1x1x1x16xf32> to vector<1x16xf32>
    %c22 = arith.constant 22 : index
    %c0_152 = arith.constant 0 : index
    %c0_153 = arith.constant 0 : index
    %428 = vector.load %arg6[%c22, %c0_152, %c0_153] : memref<25x16x200xf32, #tpu.memory_space<vmem>>, vector<1x16x200xf32>
    %429 = vector.shape_cast %428 : vector<1x16x200xf32> to vector<16x200xf32>
    %cst_154 = arith.constant dense<0.000000e+00> : vector<1x200xf32>
    %430 = tpu.matmul %427, %429, %cst_154 {dimension_numbers = #tpu.dot_dimension_numbers<[1], [0], [0], [1], [0, 0, 1, 1], [], []>} : vector<1x16xf32>, vector<16x200xf32>, vector<1x200xf32> -> vector<1x200xf32>
    %431 = arith.addf %425, %430 : vector<1x200xf32>
    %432 = vector.extract_strided_slice %294 {offsets = [0, 4, 3, 0], sizes = [1, 1, 1, 16], strides = [1, 1, 1, 1]} : vector<1x5x5x16xf32> to vector<1x1x1x16xf32>
    %433 = vector.shape_cast %432 : vector<1x1x1x16xf32> to vector<1x16xf32>
    %c23 = arith.constant 23 : index
    %c0_155 = arith.constant 0 : index
    %c0_156 = arith.constant 0 : index
    %434 = vector.load %arg6[%c23, %c0_155, %c0_156] : memref<25x16x200xf32, #tpu.memory_space<vmem>>, vector<1x16x200xf32>
    %435 = vector.shape_cast %434 : vector<1x16x200xf32> to vector<16x200xf32>
    %cst_157 = arith.constant dense<0.000000e+00> : vector<1x200xf32>
    %436 = tpu.matmul %433, %435, %cst_157 {dimension_numbers = #tpu.dot_dimension_numbers<[1], [0], [0], [1], [0, 0, 1, 1], [], []>} : vector<1x16xf32>, vector<16x200xf32>, vector<1x200xf32> -> vector<1x200xf32>
    %437 = arith.addf %431, %436 : vector<1x200xf32>
    %438 = vector.extract_strided_slice %294 {offsets = [0, 4, 4, 0], sizes = [1, 1, 1, 16], strides = [1, 1, 1, 1]} : vector<1x5x5x16xf32> to vector<1x1x1x16xf32>
    %439 = vector.shape_cast %438 : vector<1x1x1x16xf32> to vector<1x16xf32>
    %c24 = arith.constant 24 : index
    %c0_158 = arith.constant 0 : index
    %c0_159 = arith.constant 0 : index
    %440 = vector.load %arg6[%c24, %c0_158, %c0_159] : memref<25x16x200xf32, #tpu.memory_space<vmem>>, vector<1x16x200xf32>
    %441 = vector.shape_cast %440 : vector<1x16x200xf32> to vector<16x200xf32>
    %cst_160 = arith.constant dense<0.000000e+00> : vector<1x200xf32>
    %442 = tpu.matmul %439, %441, %cst_160 {dimension_numbers = #tpu.dot_dimension_numbers<[1], [0], [0], [1], [0, 0, 1, 1], [], []>} : vector<1x16xf32>, vector<16x200xf32>, vector<1x200xf32> -> vector<1x200xf32>
    %443 = arith.addf %437, %442 : vector<1x200xf32>
    %c0_161 = arith.constant 0 : index
    %c0_162 = arith.constant 0 : index
    %444 = vector.load %arg7[%c0_161, %c0_162] : memref<1x200xf32, #tpu.memory_space<vmem>>, vector<1x200xf32>
    %445 = arith.addf %443, %444 : vector<1x200xf32>
    %cst_163 = arith.constant 0.000000e+00 : f32
    %446 = vector.broadcast %cst_163 : f32 to vector<1x200xf32>
    %447 = arith.maximumf %445, %446 : vector<1x200xf32>
    %c0_164 = arith.constant 0 : index
    %c0_165 = arith.constant 0 : index
    %448 = vector.load %arg8[%c0_164, %c0_165] : memref<200x84xf32, #tpu.memory_space<vmem>>, vector<200x84xf32>
    %cst_166 = arith.constant dense<0.000000e+00> : vector<1x84xf32>
    %449 = tpu.matmul %447, %448, %cst_166 {dimension_numbers = #tpu.dot_dimension_numbers<[1], [0], [0], [1], [0, 0, 1, 1], [], []>} : vector<1x200xf32>, vector<200x84xf32>, vector<1x84xf32> -> vector<1x84xf32>
    %c0_167 = arith.constant 0 : index
    %c0_168 = arith.constant 0 : index
    %450 = vector.load %arg9[%c0_167, %c0_168] : memref<1x84xf32, #tpu.memory_space<vmem>>, vector<1x84xf32>
    %451 = arith.addf %449, %450 : vector<1x84xf32>
    %cst_169 = arith.constant 0.000000e+00 : f32
    %452 = vector.broadcast %cst_169 : f32 to vector<1x84xf32>
    %453 = arith.maximumf %451, %452 : vector<1x84xf32>
    %c0_170 = arith.constant 0 : index
    %c0_171 = arith.constant 0 : index
    %454 = vector.load %arg10[%c0_170, %c0_171] : memref<84x10xf32, #tpu.memory_space<vmem>>, vector<84x10xf32>
    %cst_172 = arith.constant dense<0.000000e+00> : vector<1x10xf32>
    %455 = tpu.matmul %453, %454, %cst_172 {dimension_numbers = #tpu.dot_dimension_numbers<[1], [0], [0], [1], [0, 0, 1, 1], [], []>} : vector<1x84xf32>, vector<84x10xf32>, vector<1x10xf32> -> vector<1x10xf32>
    %c0_173 = arith.constant 0 : index
    %c0_174 = arith.constant 0 : index
    %456 = vector.load %arg11[%c0_173, %c0_174] : memref<1x10xf32, #tpu.memory_space<vmem>>, vector<1x10xf32>
    %457 = arith.addf %455, %456 : vector<1x10xf32>
    %c0_175 = arith.constant 0 : index
    %c0_176 = arith.constant 0 : index
    %c0_177 = arith.constant 0 : index
    %458 = vector.load %arg12[%c0_175, %c0_176, %c0_177] : memref<1x1x10xf32, #tpu.memory_space<vmem>>, vector<1x1x10xf32>
    %459 = vector.shape_cast %458 : vector<1x1x10xf32> to vector<1x10xf32>
    %460 = vector.shape_cast %457 : vector<1x10xf32> to vector<1x1x10xf32>
    tpu.vector_store %arg12[%c0_175, %c0_176, %c0_177], %460 {strides = array<i32>} : memref<1x1x10xf32, #tpu.memory_space<vmem>>, vector<1x1x10xf32>,
    return
  }
  func.func @transform_0(%arg0: i32) -> (i32, i32, i32) {
    %c0_i32 = arith.constant 0 : i32
    %c0_i32_0 = arith.constant 0 : i32
    %c0_i32_1 = arith.constant 0 : i32
    return %c0_i32, %arg0, %c0_i32_0 : i32, i32, i32
  }
  func.func @transform_1(%arg0: i32) -> (i32, i32) {
    %c0_i32 = arith.constant 0 : i32
    %c0_i32_0 = arith.constant 0 : i32
    %c0_i32_1 = arith.constant 0 : i32
    return %c0_i32, %c0_i32_0 : i32, i32
  }
  func.func @transform_2(%arg0: i32) -> (i32, i32) {
    %c0_i32 = arith.constant 0 : i32
    %c0_i32_0 = arith.constant 0 : i32
    %c0_i32_1 = arith.constant 0 : i32
    return %c0_i32, %c0_i32_0 : i32, i32
  }
  func.func @transform_3(%arg0: i32) -> (i32, i32) {
    %c0_i32 = arith.constant 0 : i32
    %c0_i32_0 = arith.constant 0 : i32
    %c0_i32_1 = arith.constant 0 : i32
    return %c0_i32, %c0_i32_0 : i32, i32
  }
  func.func @transform_4(%arg0: i32) -> (i32, i32) {
    %c0_i32 = arith.constant 0 : i32
    %c0_i32_0 = arith.constant 0 : i32
    %c0_i32_1 = arith.constant 0 : i32
    return %c0_i32, %c0_i32_0 : i32, i32
  }
  func.func @transform_5(%arg0: i32) -> (i32, i32, i32) {
    %c0_i32 = arith.constant 0 : i32
    %c0_i32_0 = arith.constant 0 : i32
    %c0_i32_1 = arith.constant 0 : i32
    %c0_i32_2 = arith.constant 0 : i32
    return %c0_i32, %c0_i32_0, %c0_i32_1 : i32, i32, i32
  }
  func.func @transform_6(%arg0: i32) -> (i32, i32) {
    %c0_i32 = arith.constant 0 : i32
    %c0_i32_0 = arith.constant 0 : i32
    %c0_i32_1 = arith.constant 0 : i32
    return %c0_i32, %c0_i32_0 : i32, i32
  }
  func.func @transform_7(%arg0: i32) -> (i32, i32) {
    %c0_i32 = arith.constant 0 : i32
    %c0_i32_0 = arith.constant 0 : i32
    %c0_i32_1 = arith.constant 0 : i32
    return %c0_i32, %c0_i32_0 : i32, i32
  }
  func.func @transform_8(%arg0: i32) -> (i32, i32) {
    %c0_i32 = arith.constant 0 : i32
    %c0_i32_0 = arith.constant 0 : i32
    %c0_i32_1 = arith.constant 0 : i32
    return %c0_i32, %c0_i32_0 : i32, i32
  }
  func.func @transform_9(%arg0: i32) -> (i32, i32) {
    %c0_i32 = arith.constant 0 : i32
    %c0_i32_0 = arith.constant 0 : i32
    %c0_i32_1 = arith.constant 0 : i32
    return %c0_i32, %c0_i32_0 : i32, i32
  }
  func.func @transform_10(%arg0: i32) -> (i32, i32) {
    %c0_i32 = arith.constant 0 : i32
    %c0_i32_0 = arith.constant 0 : i32
    %c0_i32_1 = arith.constant 0 : i32
    return %c0_i32, %c0_i32_0 : i32, i32
  }
  func.func @transform_11(%arg0: i32) -> (i32, i32, i32) {
    %c0_i32 = arith.constant 0 : i32
    %c0_i32_0 = arith.constant 0 : i32
    %c0_i32_1 = arith.constant 0 : i32
    return %arg0, %c0_i32, %c0_i32_0 : i32, i32, i32
  }
}

</mosaic_0001>

<bundles_post_ra>
// kernel: net_forward.1
= control target key start
LH: loop header
LB: loop body
LE: loop exit
PB: predicated region body
PF: predicated region fallthrough
CT: control target
= control target key end

     0   :  { %s14818_s0 = inlined_call_operand.vmem [shape: f32[16,128,75], index: 0, kind: input, shape index: {}]   ;;  %s14819_s1 = inlined_call_operand.vmem [shape: f32[75,20], index: 1, kind: input, shape index: {}]   ;;  %s14820_s2 = inlined_call_operand.vmem [shape: f32[1,20], index: 2, kind: input, shape index: {}]   ;;  %s14821_s3 = inlined_call_operand.vmem [shape: f32[20,400], index: 3, kind: input, shape index: {}]   ;;  %s14822_s4 = inlined_call_operand.vmem [shape: f32[1,16], index: 4, kind: input, shape index: {}]   ;;  %s14823_s5 = inlined_call_operand.vmem [shape: f32[25,16,200], index: 5, kind: input, shape index: {}]   ;;  %s14824_s6 = inlined_call_operand.vmem [shape: f32[1,200], index: 6, kind: input, shape index: {}]   ;;  %s14825_s7 = inlined_call_operand.vmem [shape: f32[200,84], index: 7, kind: input, shape index: {}]   ;;  %s14826_s8 = inlined_call_operand.vmem [shape: f32[1,84], index: 8, kind: input, shape index: {}]   ;;  %s14827_s9 = inlined_call_operand.vmem [shape: f32[84,10], index: 9, kind: input, shape index: {}]   ;;  %s14828_s10 = inlined_call_operand.vmem [shape: f32[1,10], index: 10, kind: input, shape index: {}]   ;;  %s14829_s11 = inlined_call_operand.hbm [shape: f32[2,1,10], index: 11, kind: output, shape index: {}]  }
   0x1   :  { %14916 = sst [smem:[#allocation309_spill]] %s14818_s0 }
   0x2   :  { %14917 = sst [smem:[#allocation310_spill]] %s14819_s1 }
   0x3   :  { %14918 = sst [smem:[#allocation311_spill]] %s14820_s2 }
   0x4   :  { %14919 = sst [smem:[#allocation312_spill]] %s14821_s3 }
   0x5   :  { %16 = vsyncpa [#allocation4], 0 }
   0x6   :  { %18 = vsyncpa [#allocation4 + $0x1], 0  ;;  %s10765_s17 = smov 0   ;;  %s10767_s18 = smov 0  }
   0x7   :  { %s10769_s19 = smov 0   ;;  %s10771_s20 = smov 0  }
   0x8 LB: > { %s14830_s21 = sadd.s32 4294967295, %s10691_s20   ;;  %s8664_s22 = sadd.s32 4294967294, %s10691_s20   ;;  %s10691_s20 = sphi %s10771_s20, %s15588_s20   ;;  %s10687_s19 = sphi %s10769_s19, %s15587_s19   ;;  %s10683_s18 = sphi %s10767_s18, %s15586_s18   ;;  %s10679_s17 = sphi %s10765_s17, %s15585_s17  }
   0x9   : > { %s10788_s23 = sadd.s32 1, %s10691_s20   ;;  %s31_s24 = sadd.s32 1, %s10687_s19 }
   0xa   : > { %s28_s25 = ssub.s32 %s10691_s20, %s10788_s23  ;;  %p38_p0 = scmp.ne.s32.totalorder %s10687_s19, %s10683_s18 }
   0xb   : > { %p29_p1 = scmp.eq.s32.totalorder %s28_s25, 0  ;;  %p39_p2 = scmp.eq.s32.totalorder %s10691_s20, 0 }
   0xc   : > { %p278_p3 = scmp.eq.s32.totalorder %s14830_s21, 1  ;;  %p283_p4 = scmp.ne.s32.totalorder %s10683_s18, %s10679_s17 }
   0xd   : > { %s10801_s26 = scalar_select %p29_p1, %s10687_s19, %s31_s24  }
   0xe   : > { %p40_p5 = por %p39_p2, %p38_p0  ;;  %p10803_p6 = por %p278_p3, %p38_p0 }
   0xf   : > { %14920 = sst [smem:[#allocation6_spill]] %s10801_s26  ;;  %p284_p7 = scmp.eq.s32.totalorder %s8664_s22, 1 }
  0x10   : > { %p8666_p9 = scmp.ge.s32.totalorder %s10691_s20, 2 }
  0x11   : > { %p10807_p8 = por %p284_p7, %p283_p4 }
  0x12   : > { %330 = sbr.rel (%p8666_p9) target bundleno = 99 (0x63), region = 56 }
  0x19   : > { %333 = sbr.rel (!%p40_p5) target bundleno = 99 (0x63), region = 60  ;;  %s335_s29 = sand.u32 (%p40_p5), 1, %s10687_s19  }
  0x1a   : > { %s9145_s30 = sshll.u32 (%p40_p5), %s10691_s20, 6  ;;  %s8667_s12 = sshll.u32 (%p40_p5), %s335_s29, 10 }
  0x1b   : > { %s14923_s0 = sld [smem:[#allocation309_spill]] (%p40_p5)  ;;  %s10824_s16 = scalar_lea.vmem (%p40_p5), [#allocation2], %s8667_s12 }
  0x21   : > { %s10819_s15 = scalar_lea.vmem %s14923_s0, %s9145_s30 }
  0x22   : > { %v622_v0 = vld [vmem:[%s10819_s15] sm:$0xff]  ;;  %v624_v1 = vld [vmem:[%s10819_s15 + $0x8] sm:$0xff]  ;;  %v626_v2 = vld [vmem:[%s10819_s15 + $0x10] sm:$0xff] }
  0x23   : > { %623 = vst [vmem:[%s10824_s16] sm:$0xff] %v622_v0  ;;  %625 = vst [vmem:[%s10824_s16 + $0x8] sm:$0xff] %v624_v1  ;;  %v628_v3 = vld [vmem:[%s10819_s15 + $0x18] sm:$0xff]  ;;  %v630_v4 = vld [vmem:[%s10819_s15 + $0x20] sm:$0xff] }
  0x24   : > { %627 = vst [vmem:[%s10824_s16 + $0x10] sm:$0xff] %v626_v2  ;;  %v632_v5 = vld [vmem:[%s10819_s15 + $0x28] sm:$0xff]  ;;  %629 = vst [vmem:[%s10824_s16 + $0x18] sm:$0xff] %v628_v3  ;;  %v634_v6 = vld [vmem:[%s10819_s15 + $0x30] sm:$0xff] }
  0x25   : > { %631 = vst [vmem:[%s10824_s16 + $0x20] sm:$0xff] %v630_v4  ;;  %633 = vst [vmem:[%s10824_s16 + $0x28] sm:$0xff] %v632_v5  ;;  %v636_v7 = vld [vmem:[%s10819_s15 + $0x38] sm:$0xff]  ;;  %v638_v8 = vld [vmem:[%s10819_s15 + $0x80] sm:$0xff] }
  0x26   : > { %635 = vst [vmem:[%s10824_s16 + $0x30] sm:$0xff] %v634_v6  ;;  %637 = vst [vmem:[%s10824_s16 + $0x38] sm:$0xff] %v636_v7  ;;  %v640_v9 = vld [vmem:[%s10819_s15 + $0x88] sm:$0xff]  ;;  %v642_v10 = vld [vmem:[%s10819_s15 + $0x90] sm:$0xff] }
  0x27   : > { %639 = vst [vmem:[%s10824_s16 + $0x40] sm:$0xff] %v638_v8  ;;  %v644_v11 = vld [vmem:[%s10819_s15 + $0x98] sm:$0xff]  ;;  %641 = vst [vmem:[%s10824_s16 + $0x48] sm:$0xff] %v640_v9  ;;  %v646_v12 = vld [vmem:[%s10819_s15 + $0xa0] sm:$0xff] }
  0x28   : > { %643 = vst [vmem:[%s10824_s16 + $0x50] sm:$0xff] %v642_v10  ;;  %645 = vst [vmem:[%s10824_s16 + $0x58] sm:$0xff] %v644_v11  ;;  %v648_v13 = vld [vmem:[%s10819_s15 + $0xa8] sm:$0xff]  ;;  %v650_v14 = vld [vmem:[%s10819_s15 + $0xb0] sm:$0xff] }
  0x29   : > { %647 = vst [vmem:[%s10824_s16 + $0x60] sm:$0xff] %v646_v12  ;;  %649 = vst [vmem:[%s10824_s16 + $0x68] sm:$0xff] %v648_v13  ;;  %v652_v15 = vld [vmem:[%s10819_s15 + $0xb8] sm:$0xff]  ;;  %v654_v16 = vld [vmem:[%s10819_s15 + $0x100] sm:$0xff] }
  0x2a   : > { %651 = vst [vmem:[%s10824_s16 + $0x70] sm:$0xff] %v650_v14  ;;  %v656_v17 = vld [vmem:[%s10819_s15 + $0x108] sm:$0xff]  ;;  %653 = vst [vmem:[%s10824_s16 + $0x78] sm:$0xff] %v652_v15  ;;  %v658_v18 = vld [vmem:[%s10819_s15 + $0x110] sm:$0xff] }
  0x2b   : > { %655 = vst [vmem:[%s10824_s16 + $0x80] sm:$0xff] %v654_v16  ;;  %657 = vst [vmem:[%s10824_s16 + $0x88] sm:$0xff] %v656_v17  ;;  %v660_v19 = vld [vmem:[%s10819_s15 + $0x118] sm:$0xff]  ;;  %v662_v20 = vld [vmem:[%s10819_s15 + $0x120] sm:$0xff] }
  0x2c   : > { %659 = vst [vmem:[%s10824_s16 + $0x90] sm:$0xff] %v658_v18  ;;  %661 = vst [vmem:[%s10824_s16 + $0x98] sm:$0xff] %v660_v19  ;;  %v664_v21 = vld [vmem:[%s10819_s15 + $0x128] sm:$0xff]  ;;  %v666_v22 = vld [vmem:[%s10819_s15 + $0x130] sm:$0xff] }
  0x2d   : > { %663 = vst [vmem:[%s10824_s16 + $0xa0] sm:$0xff] %v662_v20  ;;  %v668_v23 = vld [vmem:[%s10819_s15 + $0x138] sm:$0xff]  ;;  %665 = vst [vmem:[%s10824_s16 + $0xa8] sm:$0xff] %v664_v21  ;;  %v670_v24 = vld [vmem:[%s10819_s15 + $0x180] sm:$0xff] }
  0x2e   : > { %667 = vst [vmem:[%s10824_s16 + $0xb0] sm:$0xff] %v666_v22  ;;  %669 = vst [vmem:[%s10824_s16 + $0xb8] sm:$0xff] %v668_v23  ;;  %v672_v25 = vld [vmem:[%s10819_s15 + $0x188] sm:$0xff]  ;;  %v674_v26 = vld [vmem:[%s10819_s15 + $0x190] sm:$0xff] }
  0x2f   : > { %671 = vst [vmem:[%s10824_s16 + $0xc0] sm:$0xff] %v670_v24  ;;  %673 = vst [vmem:[%s10824_s16 + $0xc8] sm:$0xff] %v672_v25  ;;  %v676_v27 = vld [vmem:[%s10819_s15 + $0x198] sm:$0xff]  ;;  %v678_v28 = vld [vmem:[%s10819_s15 + $0x1a0] sm:$0xff] }
  0x30   : > { %675 = vst [vmem:[%s10824_s16 + $0xd0] sm:$0xff] %v674_v26  ;;  %v680_v29 = vld [vmem:[%s10819_s15 + $0x1a8] sm:$0xff]  ;;  %677 = vst [vmem:[%s10824_s16 + $0xd8] sm:$0xff] %v676_v27  ;;  %v682_v30 = vld [vmem:[%s10819_s15 + $0x1b0] sm:$0xff] }
  0x31   : > { %679 = vst [vmem:[%s10824_s16 + $0xe0] sm:$0xff] %v678_v28  ;;  %681 = vst [vmem:[%s10824_s16 + $0xe8] sm:$0xff] %v680_v29  ;;  %v684_v31 = vld [vmem:[%s10819_s15 + $0x1b8] sm:$0xff]  ;;  %v686_v32 = vld [vmem:[%s10819_s15 + $0x200] sm:$0xff] }
  0x32   : > { %683 = vst [vmem:[%s10824_s16 + $0xf0] sm:$0xff] %v682_v30  ;;  %685 = vst [vmem:[%s10824_s16 + $0xf8] sm:$0xff] %v684_v31  ;;  %v688_v33 = vld [vmem:[%s10819_s15 + $0x208] sm:$0xff]  ;;  %v690_v34 = vld [vmem:[%s10819_s15 + $0x210] sm:$0xff] }
  0x33   : > { %687 = vst [vmem:[%s10824_s16 + $0x100] sm:$0xff] %v686_v32  ;;  %v692_v35 = vld [vmem:[%s10819_s15 + $0x218] sm:$0xff]  ;;  %689 = vst [vmem:[%s10824_s16 + $0x108] sm:$0xff] %v688_v33  ;;  %v694_v36 = vld [vmem:[%s10819_s15 + $0x220] sm:$0xff] }
  0x34   : > { %691 = vst [vmem:[%s10824_s16 + $0x110] sm:$0xff] %v690_v34  ;;  %693 = vst [vmem:[%s10824_s16 + $0x118] sm:$0xff] %v692_v35  ;;  %v696_v37 = vld [vmem:[%s10819_s15 + $0x228] sm:$0xff]  ;;  %v698_v38 = vld [vmem:[%s10819_s15 + $0x230] sm:$0xff] }
  0x35   : > { %695 = vst [vmem:[%s10824_s16 + $0x120] sm:$0xff] %v694_v36  ;;  %697 = vst [vmem:[%s10824_s16 + $0x128] sm:$0xff] %v696_v37  ;;  %v700_v39 = vld [vmem:[%s10819_s15 + $0x238] sm:$0xff]  ;;  %v702_v40 = vld [vmem:[%s10819_s15 + $0x280] sm:$0xff] }
  0x36   : > { %699 = vst [vmem:[%s10824_s16 + $0x130] sm:$0xff] %v698_v38  ;;  %v704_v41 = vld [vmem:[%s10819_s15 + $0x288] sm:$0xff]  ;;  %701 = vst [vmem:[%s10824_s16 + $0x138] sm:$0xff] %v700_v39  ;;  %v706_v42 = vld [vmem:[%s10819_s15 + $0x290] sm:$0xff] }
  0x37   : > { %703 = vst [vmem:[%s10824_s16 + $0x140] sm:$0xff] %v702_v40  ;;  %705 = vst [vmem:[%s10824_s16 + $0x148] sm:$0xff] %v704_v41  ;;  %v708_v43 = vld [vmem:[%s10819_s15 + $0x298] sm:$0xff]  ;;  %v710_v44 = vld [vmem:[%s10819_s15 + $0x2a0] sm:$0xff] }
  0x38   : > { %707 = vst [vmem:[%s10824_s16 + $0x150] sm:$0xff] %v706_v42  ;;  %709 = vst [vmem:[%s10824_s16 + $0x158] sm:$0xff] %v708_v43  ;;  %v712_v45 = vld [vmem:[%s10819_s15 + $0x2a8] sm:$0xff]  ;;  %v714_v46 = vld [vmem:[%s10819_s15 + $0x2b0] sm:$0xff] }
  0x39   : > { %711 = vst [vmem:[%s10824_s16 + $0x160] sm:$0xff] %v710_v44  ;;  %v716_v47 = vld [vmem:[%s10819_s15 + $0x2b8] sm:$0xff]  ;;  %713 = vst [vmem:[%s10824_s16 + $0x168] sm:$0xff] %v712_v45  ;;  %v718_v48 = vld [vmem:[%s10819_s15 + $0x300] sm:$0xff] }
  0x3a   : > { %715 = vst [vmem:[%s10824_s16 + $0x170] sm:$0xff] %v714_v46  ;;  %717 = vst [vmem:[%s10824_s16 + $0x178] sm:$0xff] %v716_v47  ;;  %v720_v49 = vld [vmem:[%s10819_s15 + $0x308] sm:$0xff]  ;;  %v722_v50 = vld [vmem:[%s10819_s15 + $0x310] sm:$0xff] }
  0x3b   : > { %719 = vst [vmem:[%s10824_s16 + $0x180] sm:$0xff] %v718_v48  ;;  %721 = vst [vmem:[%s10824_s16 + $0x188] sm:$0xff] %v720_v49  ;;  %v724_v51 = vld [vmem:[%s10819_s15 + $0x318] sm:$0xff]  ;;  %v726_v52 = vld [vmem:[%s10819_s15 + $0x320] sm:$0xff] }
  0x3c   : > { %723 = vst [vmem:[%s10824_s16 + $0x190] sm:$0xff] %v722_v50  ;;  %v728_v53 = vld [vmem:[%s10819_s15 + $0x328] sm:$0xff]  ;;  %725 = vst [vmem:[%s10824_s16 + $0x198] sm:$0xff] %v724_v51  ;;  %v730_v54 = vld [vmem:[%s10819_s15 + $0x330] sm:$0xff] }
  0x3d   : > { %727 = vst [vmem:[%s10824_s16 + $0x1a0] sm:$0xff] %v726_v52  ;;  %729 = vst [vmem:[%s10824_s16 + $0x1a8] sm:$0xff] %v728_v53  ;;  %v732_v55 = vld [vmem:[%s10819_s15 + $0x338] sm:$0xff]  ;;  %v734_v56 = vld [vmem:[%s10819_s15 + $0x380] sm:$0xff] }
  0x3e   : > { %731 = vst [vmem:[%s10824_s16 + $0x1b0] sm:$0xff] %v730_v54  ;;  %733 = vst [vmem:[%s10824_s16 + $0x1b8] sm:$0xff] %v732_v55  ;;  %v736_v57 = vld [vmem:[%s10819_s15 + $0x388] sm:$0xff]  ;;  %v738_v58 = vld [vmem:[%s10819_s15 + $0x390] sm:$0xff] }
  0x3f   : > { %735 = vst [vmem:[%s10824_s16 + $0x1c0] sm:$0xff] %v734_v56  ;;  %v740_v59 = vld [vmem:[%s10819_s15 + $0x398] sm:$0xff]  ;;  %737 = vst [vmem:[%s10824_s16 + $0x1c8] sm:$0xff] %v736_v57  ;;  %v742_v60 = vld [vmem:[%s10819_s15 + $0x3a0] sm:$0xff] }
  0x40   : > { %739 = vst [vmem:[%s10824_s16 + $0x1d0] sm:$0xff] %v738_v58  ;;  %741 = vst [vmem:[%s10824_s16 + $0x1d8] sm:$0xff] %v740_v59  ;;  %v744_v61 = vld [vmem:[%s10819_s15 + $0x3a8] sm:$0xff]  ;;  %v746_v62 = vld [vmem:[%s10819_s15 + $0x3b0] sm:$0xff] }
  0x41   : > { %743 = vst [vmem:[%s10824_s16 + $0x1e0] sm:$0xff] %v742_v60  ;;  %745 = vst [vmem:[%s10824_s16 + $0x1e8] sm:$0xff] %v744_v61  ;;  %v748_v63 = vld [vmem:[%s10819_s15 + $0x3b8] sm:$0xff]  ;;  %v750_v0 = vld [vmem:[%s10819_s15 + $0x400] sm:$0xff] }
  0x42   : > { %747 = vst [vmem:[%s10824_s16 + $0x1f0] sm:$0xff] %v746_v62  ;;  %v752_v1 = vld [vmem:[%s10819_s15 + $0x408] sm:$0xff]  ;;  %749 = vst [vmem:[%s10824_s16 + $0x1f8] sm:$0xff] %v748_v63  ;;  %v754_v2 = vld [vmem:[%s10819_s15 + $0x410] sm:$0xff] }
  0x43   : > { %751 = vst [vmem:[%s10824_s16 + $0x200] sm:$0xff] %v750_v0  ;;  %753 = vst [vmem:[%s10824_s16 + $0x208] sm:$0xff] %v752_v1  ;;  %v756_v3 = vld [vmem:[%s10819_s15 + $0x418] sm:$0xff]  ;;  %v758_v4 = vld [vmem:[%s10819_s15 + $0x420] sm:$0xff] }
  0x44   : > { %755 = vst [vmem:[%s10824_s16 + $0x210] sm:$0xff] %v754_v2  ;;  %757 = vst [vmem:[%s10824_s16 + $0x218] sm:$0xff] %v756_v3  ;;  %v760_v5 = vld [vmem:[%s10819_s15 + $0x428] sm:$0xff]  ;;  %v762_v6 = vld [vmem:[%s10819_s15 + $0x430] sm:$0xff] }
  0x45   : > { %759 = vst [vmem:[%s10824_s16 + $0x220] sm:$0xff] %v758_v4  ;;  %v764_v7 = vld [vmem:[%s10819_s15 + $0x438] sm:$0xff]  ;;  %761 = vst [vmem:[%s10824_s16 + $0x228] sm:$0xff] %v760_v5  ;;  %v766_v8 = vld [vmem:[%s10819_s15 + $0x480] sm:$0xff] }
  0x46   : > { %763 = vst [vmem:[%s10824_s16 + $0x230] sm:$0xff] %v762_v6  ;;  %765 = vst [vmem:[%s10824_s16 + $0x238] sm:$0xff] %v764_v7  ;;  %v768_v9 = vld [vmem:[%s10819_s15 + $0x488] sm:$0xff]  ;;  %v770_v10 = vld [vmem:[%s10819_s15 + $0x490] sm:$0xff] }
  0x47   : > { %767 = vst [vmem:[%s10824_s16 + $0x240] sm:$0xff] %v766_v8  ;;  %769 = vst [vmem:[%s10824_s16 + $0x248] sm:$0xff] %v768_v9  ;;  %v772_v11 = vld [vmem:[%s10819_s15 + $0x498] sm:$0xff]  ;;  %v774_v12 = vld [vmem:[%s10819_s15 + $0x4a0] sm:$0xff] }
  0x48   : > { %771 = vst [vmem:[%s10824_s16 + $0x250] sm:$0xff] %v770_v10  ;;  %v776_v13 = vld [vmem:[%s10819_s15 + $0x4a8] sm:$0xff]  ;;  %773 = vst [vmem:[%s10824_s16 + $0x258] sm:$0xff] %v772_v11  ;;  %v778_v14 = vld [vmem:[%s10819_s15 + $0x4b0] sm:$0xff] }
  0x49   : > { %775 = vst [vmem:[%s10824_s16 + $0x260] sm:$0xff] %v774_v12  ;;  %777 = vst [vmem:[%s10824_s16 + $0x268] sm:$0xff] %v776_v13  ;;  %v780_v15 = vld [vmem:[%s10819_s15 + $0x4b8] sm:$0xff]  ;;  %v782_v16 = vld [vmem:[%s10819_s15 + $0x500] sm:$0xff] }
  0x4a   : > { %779 = vst [vmem:[%s10824_s16 + $0x270] sm:$0xff] %v778_v14  ;;  %781 = vst [vmem:[%s10824_s16 + $0x278] sm:$0xff] %v780_v15  ;;  %v784_v17 = vld [vmem:[%s10819_s15 + $0x508] sm:$0xff]  ;;  %v786_v18 = vld [vmem:[%s10819_s15 + $0x510] sm:$0xff] }
  0x4b   : > { %783 = vst [vmem:[%s10824_s16 + $0x280] sm:$0xff] %v782_v16  ;;  %v788_v19 = vld [vmem:[%s10819_s15 + $0x518] sm:$0xff]  ;;  %785 = vst [vmem:[%s10824_s16 + $0x288] sm:$0xff] %v784_v17  ;;  %v790_v20 = vld [vmem:[%s10819_s15 + $0x520] sm:$0xff] }
  0x4c   : > { %787 = vst [vmem:[%s10824_s16 + $0x290] sm:$0xff] %v786_v18  ;;  %789 = vst [vmem:[%s10824_s16 + $0x298] sm:$0xff] %v788_v19  ;;  %v792_v21 = vld [vmem:[%s10819_s15 + $0x528] sm:$0xff]  ;;  %v794_v22 = vld [vmem:[%s10819_s15 + $0x530] sm:$0xff] }
  0x4d   : > { %791 = vst [vmem:[%s10824_s16 + $0x2a0] sm:$0xff] %v790_v20  ;;  %793 = vst [vmem:[%s10824_s16 + $0x2a8] sm:$0xff] %v792_v21  ;;  %v796_v23 = vld [vmem:[%s10819_s15 + $0x538] sm:$0xff]  ;;  %v798_v24 = vld [vmem:[%s10819_s15 + $0x580] sm:$0xff] }
  0x4e   : > { %795 = vst [vmem:[%s10824_s16 + $0x2b0] sm:$0xff] %v794_v22  ;;  %v800_v25 = vld [vmem:[%s10819_s15 + $0x588] sm:$0xff]  ;;  %797 = vst [vmem:[%s10824_s16 + $0x2b8] sm:$0xff] %v796_v23  ;;  %v802_v26 = vld [vmem:[%s10819_s15 + $0x590] sm:$0xff] }
  0x4f   : > { %799 = vst [vmem:[%s10824_s16 + $0x2c0] sm:$0xff] %v798_v24  ;;  %801 = vst [vmem:[%s10824_s16 + $0x2c8] sm:$0xff] %v800_v25  ;;  %v804_v27 = vld [vmem:[%s10819_s15 + $0x598] sm:$0xff]  ;;  %v806_v28 = vld [vmem:[%s10819_s15 + $0x5a0] sm:$0xff] }
  0x50   : > { %803 = vst [vmem:[%s10824_s16 + $0x2d0] sm:$0xff] %v802_v26  ;;  %805 = vst [vmem:[%s10824_s16 + $0x2d8] sm:$0xff] %v804_v27  ;;  %v808_v29 = vld [vmem:[%s10819_s15 + $0x5a8] sm:$0xff]  ;;  %v810_v30 = vld [vmem:[%s10819_s15 + $0x5b0] sm:$0xff] }
  0x51   : > { %807 = vst [vmem:[%s10824_s16 + $0x2e0] sm:$0xff] %v806_v28  ;;  %v812_v31 = vld [vmem:[%s10819_s15 + $0x5b8] sm:$0xff]  ;;  %809 = vst [vmem:[%s10824_s16 + $0x2e8] sm:$0xff] %v808_v29  ;;  %v814_v32 = vld [vmem:[%s10819_s15 + $0x600] sm:$0xff] }
  0x52   : > { %811 = vst [vmem:[%s10824_s16 + $0x2f0] sm:$0xff] %v810_v30  ;;  %813 = vst [vmem:[%s10824_s16 + $0x2f8] sm:$0xff] %v812_v31  ;;  %v816_v33 = vld [vmem:[%s10819_s15 + $0x608] sm:$0xff]  ;;  %v818_v34 = vld [vmem:[%s10819_s15 + $0x610] sm:$0xff] }
  0x53   : > { %815 = vst [vmem:[%s10824_s16 + $0x300] sm:$0xff] %v814_v32  ;;  %817 = vst [vmem:[%s10824_s16 + $0x308] sm:$0xff] %v816_v33  ;;  %v820_v35 = vld [vmem:[%s10819_s15 + $0x618] sm:$0xff]  ;;  %v822_v36 = vld [vmem:[%s10819_s15 + $0x620] sm:$0xff] }
  0x54   : > { %819 = vst [vmem:[%s10824_s16 + $0x310] sm:$0xff] %v818_v34  ;;  %v824_v37 = vld [vmem:[%s10819_s15 + $0x628] sm:$0xff]  ;;  %821 = vst [vmem:[%s10824_s16 + $0x318] sm:$0xff] %v820_v35  ;;  %v826_v38 = vld [vmem:[%s10819_s15 + $0x630] sm:$0xff] }
  0x55   : > { %823 = vst [vmem:[%s10824_s16 + $0x320] sm:$0xff] %v822_v36  ;;  %825 = vst [vmem:[%s10824_s16 + $0x328] sm:$0xff] %v824_v37  ;;  %v828_v39 = vld [vmem:[%s10819_s15 + $0x638] sm:$0xff]  ;;  %v830_v40 = vld [vmem:[%s10819_s15 + $0x680] sm:$0xff] }
  0x56   : > { %827 = vst [vmem:[%s10824_s16 + $0x330] sm:$0xff] %v826_v38  ;;  %829 = vst [vmem:[%s10824_s16 + $0x338] sm:$0xff] %v828_v39  ;;  %v832_v41 = vld [vmem:[%s10819_s15 + $0x688] sm:$0xff]  ;;  %v834_v42 = vld [vmem:[%s10819_s15 + $0x690] sm:$0xff] }
  0x57   : > { %831 = vst [vmem:[%s10824_s16 + $0x340] sm:$0xff] %v830_v40  ;;  %v836_v43 = vld [vmem:[%s10819_s15 + $0x698] sm:$0xff]  ;;  %833 = vst [vmem:[%s10824_s16 + $0x348] sm:$0xff] %v832_v41  ;;  %v838_v44 = vld [vmem:[%s10819_s15 + $0x6a0] sm:$0xff] }
  0x58   : > { %835 = vst [vmem:[%s10824_s16 + $0x350] sm:$0xff] %v834_v42  ;;  %837 = vst [vmem:[%s10824_s16 + $0x358] sm:$0xff] %v836_v43  ;;  %v840_v45 = vld [vmem:[%s10819_s15 + $0x6a8] sm:$0xff]  ;;  %v842_v46 = vld [vmem:[%s10819_s15 + $0x6b0] sm:$0xff] }
  0x59   : > { %839 = vst [vmem:[%s10824_s16 + $0x360] sm:$0xff] %v838_v44  ;;  %841 = vst [vmem:[%s10824_s16 + $0x368] sm:$0xff] %v840_v45  ;;  %v844_v47 = vld [vmem:[%s10819_s15 + $0x6b8] sm:$0xff]  ;;  %v846_v48 = vld [vmem:[%s10819_s15 + $0x700] sm:$0xff] }
  0x5a   : > { %843 = vst [vmem:[%s10824_s16 + $0x370] sm:$0xff] %v842_v46  ;;  %v848_v49 = vld [vmem:[%s10819_s15 + $0x708] sm:$0xff]  ;;  %845 = vst [vmem:[%s10824_s16 + $0x378] sm:$0xff] %v844_v47  ;;  %v850_v50 = vld [vmem:[%s10819_s15 + $0x710] sm:$0xff] }
  0x5b   : > { %847 = vst [vmem:[%s10824_s16 + $0x380] sm:$0xff] %v846_v48  ;;  %849 = vst [vmem:[%s10824_s16 + $0x388] sm:$0xff] %v848_v49  ;;  %v852_v51 = vld [vmem:[%s10819_s15 + $0x718] sm:$0xff]  ;;  %v854_v52 = vld [vmem:[%s10819_s15 + $0x720] sm:$0xff] }
  0x5c   : > { %851 = vst [vmem:[%s10824_s16 + $0x390] sm:$0xff] %v850_v50  ;;  %853 = vst [vmem:[%s10824_s16 + $0x398] sm:$0xff] %v852_v51  ;;  %v856_v53 = vld [vmem:[%s10819_s15 + $0x728] sm:$0xff]  ;;  %v858_v54 = vld [vmem:[%s10819_s15 + $0x730] sm:$0xff] }
  0x5d   : > { %855 = vst [vmem:[%s10824_s16 + $0x3a0] sm:$0xff] %v854_v52  ;;  %v860_v55 = vld [vmem:[%s10819_s15 + $0x738] sm:$0xff]  ;;  %857 = vst [vmem:[%s10824_s16 + $0x3a8] sm:$0xff] %v856_v53  ;;  %v862_v56 = vld [vmem:[%s10819_s15 + $0x780] sm:$0xff] }
  0x5e   : > { %859 = vst [vmem:[%s10824_s16 + $0x3b0] sm:$0xff] %v858_v54  ;;  %861 = vst [vmem:[%s10824_s16 + $0x3b8] sm:$0xff] %v860_v55  ;;  %v864_v57 = vld [vmem:[%s10819_s15 + $0x788] sm:$0xff]  ;;  %v866_v58 = vld [vmem:[%s10819_s15 + $0x790] sm:$0xff] }
  0x5f   : > { %863 = vst [vmem:[%s10824_s16 + $0x3c0] sm:$0xff] %v862_v56  ;;  %865 = vst [vmem:[%s10824_s16 + $0x3c8] sm:$0xff] %v864_v57  ;;  %v868_v59 = vld [vmem:[%s10819_s15 + $0x798] sm:$0xff]  ;;  %v870_v60 = vld [vmem:[%s10819_s15 + $0x7a0] sm:$0xff] }
  0x60   : > { %867 = vst [vmem:[%s10824_s16 + $0x3d0] sm:$0xff] %v866_v58  ;;  %v872_v61 = vld [vmem:[%s10819_s15 + $0x7a8] sm:$0xff]  ;;  %869 = vst [vmem:[%s10824_s16 + $0x3d8] sm:$0xff] %v868_v59  ;;  %v874_v62 = vld [vmem:[%s10819_s15 + $0x7b0] sm:$0xff] }
  0x61   : > { %871 = vst [vmem:[%s10824_s16 + $0x3e0] sm:$0xff] %v870_v60  ;;  %873 = vst [vmem:[%s10824_s16 + $0x3e8] sm:$0xff] %v872_v61  ;;  %v876_v63 = vld [vmem:[%s10819_s15 + $0x7b8] sm:$0xff] }
  0x62   : > { %875 = vst [vmem:[%s10824_s16 + $0x3f0] sm:$0xff] %v874_v62  ;;  %877 = vst [vmem:[%s10824_s16 + $0x3f8] sm:$0xff] %v876_v63 }
  0x63 PF: > { %p8670_p10 = scmp.ge.s32.totalorder %s10691_s20, 1  ;;  %p882_p11 = scmp.lt.s32.totalorder %s10691_s20, 3 }
  0x65   : > { %p883_p12 = pnand %p8670_p10, %p882_p11 }
  0x67   : > { %886 = sbr.rel (%p883_p12) target bundleno = 2581 (0xa15), region = 98 }
  0x6e   : > { %s14924_s1 = sld [smem:[#allocation310_spill]]  ;;  %s11091_s13 = sand.u32 1, %s10683_s18   ;;  %vm958_vm0 = vcmask 613376   ;;  %vm983_vm1 = vcmask 1042432   ;;  %vm10693_vm2 = vmmov 1   ;;  %vm1578_vm4 = vcmask 1043456  }
  0x6f   : > { %s8671_s16 = sshll.u32 %s11091_s13, 10  ;;  %vm11145_vm3 = vmpackc.low %vm983_vm1, %vm10693_vm2  ;;  %s14927_s3 = sld [smem:[#allocation312_spill]]  ;;  %vm1553_vm5 = vcmask 162816   ;;  %vm6372_vm6 = vcmask 130048   ;;  %vm8424_vm7 = vcmask 588800   ;;  %vm10703_vm8 = vmmov 0  }
  0x70   : > { %s11109_s30 = scalar_lea.vmem [#allocation2], %s8671_s16  ;;  %s14928_s2 = sld [smem:[#allocation311_spill]]  ;;  %vm8511_vm9 = vcmask 687104   ;;  %vm8588_vm10 = vcmask 73728  }
  0x71   : > { %v950_v8 = vld [vmem:[%s11109_s30] sm:$0xff]  ;;  %v951_v18 = vld [vmem:[%s11109_s30 + $0x8] sm:$0xff]  ;;  %v952_v20 = vld [vmem:[%s11109_s30 + $0x10] sm:$0xff]  ;;  %s14902_s15 = smov 96   ;;  %s14904_s16 = smov 112  }
  0x72   : > { %v8681_v9 = vld [vmem:[%s11109_s30 + $0x40] sm:$0xff]  ;;  %9466 = vmatprep.mubr.msk.f32.mxu0 %vm958_vm0, %v950_v8  ;;  %v8682_v19 = vld [vmem:[%s11109_s30 + $0x48] sm:$0xff]  ;;  %v8683_v21 = vld [vmem:[%s11109_s30 + $0x50] sm:$0xff]  ;;  %s14831_s22 = smov 64   ;;  %s14900_s24 = smov 80  }
  0x73   : > { %9498 = vmatprep.mubr.msk.f32.mxu1 %vm958_vm0, %v8681_v9  ;;  %v953_v22 = vld [vmem:[%s11109_s30 + $0x18] sm:$0xff]  ;;  %v954_v24 = vld [vmem:[%s11109_s30 + $0x20] sm:$0xff]  ;;  %v955_v26 = vld [vmem:[%s11109_s30 + $0x28] sm:$0xff]  ;;  %s14835_s25 = smov 48   ;;  %s14837_s29 = smov 16  }
  0x74   : > { %v928_v0 = vld [vmem:[%s14924_s1] sm:$0xff]  ;;  %v929_v1 = vld [vmem:[%s14924_s1 + $0x8] sm:$0xff]  ;;  %v930_v2 = vld [vmem:[%s14924_s1 + $0x10] sm:$0xff]  ;;  %s14833_s12 = smov 32   ;;  %s15333_s21 = smov 80  }
  0x75   : > { %v11093_v3 = vpack.c.bf16 %v929_v1, %v928_v0  ;;  %v931_v4 = vld [vmem:[%s14924_s1 + $0x18] sm:$0xff]  ;;  %v932_v6 = vld [vmem:[%s14924_s1 + $0x20] sm:$0xff]  ;;  %v933_v7 = vld [vmem:[%s14924_s1 + $0x28] sm:$0xff]  ;;  %v14839_v0 = vmov 0.0  }
  0x76   : > { %v11099_v5 = vpack.c.bf16 %v931_v4, %v930_v2  ;;  %v11117_v10 = vpack.c.bf16 %v933_v7, %v932_v6  ;;  %v934_v11 = vld [vmem:[%s14924_s1 + $0x30] sm:$0xff]  ;;  %v935_v12 = vld [vmem:[%s14924_s1 + $0x38] sm:$0xff]  ;;  %v936_v14 = vld [vmem:[%s14924_s1 + $0x40] sm:$0xff] }
  0x77   : > { %9984 = vmatprep.subr.bf16.mxu0 %v11093_v3  ;;  %10006 = vmatprep.subr.bf16.mxu1 %v11093_v3  ;;  %v11131_v13 = vpack.c.bf16 %v935_v12, %v934_v11  ;;  %v937_v15 = vld [vmem:[%s14924_s1 + $0x48] sm:$0x7]  ;;  %v8684_v23 = vld [vmem:[%s11109_s30 + $0x58] sm:$0xff]  ;;  %v8685_v25 = vld [vmem:[%s11109_s30 + $0x60] sm:$0xff] }
  0x78   : > { %9986 = vmatpush3.bf16.msra.mxu0 %v11093_v3  ;;  %10008 = vmatpush3.bf16.msra.mxu1 %v11093_v3  ;;  %v11143_v16 = vpack.c.bf16 %v937_v15, %v936_v14  ;;  %v8686_v27 = vld [vmem:[%s11109_s30 + $0x68] sm:$0xff]  ;;  %v956_v28 = vld [vmem:[%s11109_s30 + $0x30] sm:$0xff]  ;;  %v957_v30 = vld [vmem:[%s11109_s30 + $0x38] sm:$0xff] }
  0x79   : > { %9988 = vmatprep.subr.bf16.mxu0 %v11099_v5  ;;  %10010 = vmatprep.subr.bf16.mxu1 %v11099_v5  ;;  %v8687_v29 = vld [vmem:[%s11109_s30 + $0x70] sm:$0xff]  ;;  %v8688_v31 = vld [vmem:[%s11109_s30 + $0x78] sm:$0xff]  ;;  %v8698_v32 = vld [vmem:[%s11109_s30 + $0x80] sm:$0xff] }
  0x7a   : > { %v8715_v33 = vld [vmem:[%s11109_s30 + $0xc0] sm:$0xff]  ;;  %v8699_v34 = vld [vmem:[%s11109_s30 + $0x88] sm:$0xff]  ;;  %v8700_v36 = vld [vmem:[%s11109_s30 + $0x90] sm:$0xff] }
  0x7b   : > { %v8716_v35 = vld [vmem:[%s11109_s30 + $0xc8] sm:$0xff]  ;;  %v8717_v37 = vld [vmem:[%s11109_s30 + $0xd0] sm:$0xff]  ;;  %v8701_v38 = vld [vmem:[%s11109_s30 + $0x98] sm:$0xff] }
  0x7c   : > { %9990 = vmatpush3.bf16.msra.mxu0 %v11099_v5  ;;  %10012 = vmatpush3.bf16.msra.mxu1 %v11099_v5  ;;  %v8718_v39 = vld [vmem:[%s11109_s30 + $0xd8] sm:$0xff]  ;;  %v8702_v40 = vld [vmem:[%s11109_s30 + $0xa0] sm:$0xff]  ;;  %v8703_v42 = vld [vmem:[%s11109_s30 + $0xa8] sm:$0xff] }
  0x7d   : > { %9992 = vmatprep.subr.bf16.mxu0 %v11117_v10  ;;  %10014 = vmatprep.subr.bf16.mxu1 %v11117_v10  ;;  %v8719_v41 = vld [vmem:[%s11109_s30 + $0xe0] sm:$0xff]  ;;  %v8720_v43 = vld [vmem:[%s11109_s30 + $0xe8] sm:$0xff]  ;;  %v8704_v44 = vld [vmem:[%s11109_s30 + $0xb0] sm:$0xff] }
  0x7e   : > { %v8721_v45 = vld [vmem:[%s11109_s30 + $0xf0] sm:$0xff]  ;;  %v8705_v46 = vld [vmem:[%s11109_s30 + $0xb8] sm:$0xff]  ;;  %v939_v48 = vld [vmem:[%s14927_s3 + $0x8] sm:$0xff] }
  0x7f   : > { %v8722_v47 = vld [vmem:[%s11109_s30 + $0xf8] sm:$0xff]  ;;  %v943_v49 = vld [vmem:[%s14927_s3 + $0x28] sm:$0xff]  ;;  %v938_v50 = vld [vmem:[%s14927_s3] sm:$0xff] }
  0x80   : > { %9994 = vmatpush3.bf16.msra.mxu0 %v11117_v10  ;;  %10016 = vmatpush3.bf16.msra.mxu1 %v11117_v10  ;;  %v11260_v51 = vpack.c.bf16 %v943_v49, %v939_v48  ;;  %v942_v52 = vld [vmem:[%s14927_s3 + $0x20] sm:$0xff]  ;;  %v941_v54 = vld [vmem:[%s14927_s3 + $0x18] sm:$0xff]  ;;  %v940_v57 = vld [vmem:[%s14927_s3 + $0x10] sm:$0xff] }
  0x81   : > { %9996 = vmatprep.subr.bf16.mxu0 %v11131_v13  ;;  %10018 = vmatprep.subr.bf16.mxu1 %v11131_v13  ;;  %v11265_v53 = vpack.c.bf16 %v942_v52, %v938_v50  ;;  %v945_v55 = vld [vmem:[%s14927_s3 + $0x38] sm:$0xff]  ;;  %v944_v58 = vld [vmem:[%s14927_s3 + $0x30] sm:$0xff]  ;;  %v11290_v60 = vld [vmem:[%s14927_s3 + $0x48] sm:$0xf] }
  0x82   : > { %v11275_v56 = vpack.c.bf16 %v945_v55, %v941_v54  ;;  %v11283_v59 = vpack.c.bf16 %v944_v58, %v940_v57  ;;  %v11295_v61 = vld [vmem:[%s14927_s3 + $0x58] sm:$0xf]  ;;  %v11302_v62 = vld [vmem:[%s14927_s3 + $0x40] sm:$0xf]  ;;  %v11309_v63 = vld [vmem:[%s14927_s3 + $0x50] sm:$0xf] }
  0x84   : > { %9998 = vmatpush3.bf16.msra.mxu0 %v11131_v13  ;;  %10020 = vmatpush3.bf16.msra.mxu1 %v11131_v13 }
  0x85   : > { %10001 = vmatprep.subr.msk.bf16.mxu0 %vm11145_vm3, %v11143_v16  ;;  %10023 = vmatprep.subr.msk.bf16.mxu1 %vm11145_vm3, %v11143_v16 }
  0x88   : > { %10004 = vmatpush3.bf16.msk.msra.mxu0 %vm11145_vm3, %v11143_v16  ;;  %10026 = vmatpush3.bf16.msk.msra.mxu1 %vm11145_vm3, %v11143_v16 }
  0x89   : > { %10028 = vmatprep.subr.bf16.mxu0 %v11093_v3  ;;  %10050 = vmatprep.subr.bf16.mxu1 %v11093_v3 }
  0x8b   : > { %9467 = vmatmul.mubr.msk.f32.vlgmr.msra.gmra.mrb[0].mxu0 %vm958_vm0, %v951_v18  ;;  %9499 = vmatmul.mubr.msk.f32.vlgmr.msra.gmra.mrb[0].mxu1 %vm958_vm0, %v8682_v19 }
  0x8c   : > { %10030 = vmatpush3.bf16.msra.mxu0 %v11093_v3  ;;  %10052 = vmatpush3.bf16.msra.mxu1 %v11093_v3 }
  0x8d   : > { %10032 = vmatprep.subr.bf16.mxu0 %v11099_v5  ;;  %10054 = vmatprep.subr.bf16.mxu1 %v11099_v5 }
  0x8e   : > { %9469 = vmatprep.mubr.msk.f32.mxu0 %vm958_vm0, %v952_v20  ;;  %9501 = vmatprep.mubr.msk.f32.mxu1 %vm958_vm0, %v8683_v21 }
  0x8f   : > { %9470 = vmatmul.mubr.msk.f32.gmra.mrb[2].mxu0 %vm958_vm0, %v953_v22  ;;  %9502 = vmatmul.mubr.msk.f32.gmra.mrb[2].mxu1 %vm958_vm0, %v8684_v23 }
  0x90   : > { %10034 = vmatpush3.bf16.msra.mxu0 %v11099_v5  ;;  %10056 = vmatpush3.bf16.msra.mxu1 %v11099_v5 }
  0x91   : > { %10036 = vmatprep.subr.bf16.mxu0 %v11117_v10  ;;  %10058 = vmatprep.subr.bf16.mxu1 %v11117_v10 }
  0x92   : > { %9472 = vmatprep.mubr.msk.f32.mxu0 %vm958_vm0, %v954_v24  ;;  %9504 = vmatprep.mubr.msk.f32.mxu1 %vm958_vm0, %v8685_v25 }
  0x93   : > { %9473 = vmatmul.mubr.msk.f32.gmra.mrb[4].mxu0 %vm958_vm0, %v955_v26  ;;  %9505 = vmatmul.mubr.msk.f32.gmra.mrb[4].mxu1 %vm958_vm0, %v8686_v27 }
  0x94   : > { %10038 = vmatpush3.bf16.msra.mxu0 %v11117_v10  ;;  %10060 = vmatpush3.bf16.msra.mxu1 %v11117_v10 }
  0x95   : > { %10040 = vmatprep.subr.bf16.mxu0 %v11131_v13  ;;  %10062 = vmatprep.subr.bf16.mxu1 %v11131_v13 }
  0x96   : > { %9475 = vmatprep.mubr.msk.f32.mxu0 %vm958_vm0, %v956_v28  ;;  %9507 = vmatprep.mubr.msk.f32.mxu1 %vm958_vm0, %v8687_v29 }
  0x97   : > { %9476 = vmatmul.mubr.msk.f32.gmra.mrb[6].mxu0 %vm958_vm0, %v957_v30  ;;  %9508 = vmatmul.mubr.msk.f32.gmra.mrb[6].mxu1 %vm958_vm0, %v8688_v31 }
  0x98   : > { %10042 = vmatpush3.bf16.msra.mxu0 %v11131_v13  ;;  %10064 = vmatpush3.bf16.msra.mxu1 %v11131_v13 }
  0x99   : > { %10045 = vmatprep.subr.msk.bf16.mxu0 %vm11145_vm3, %v11143_v16  ;;  %10067 = vmatprep.subr.msk.bf16.mxu1 %vm11145_vm3, %v11143_v16 }
  0x9a   : > { %9530 = vmatprep.mubr.msk.f32.mxu0 %vm958_vm0, %v8698_v32  ;;  %9562 = vmatprep.mubr.msk.f32.mxu1 %vm958_vm0, %v8715_v33 }
  0x9c   : > { %10048 = vmatpush3.bf16.msk.msra.mxu0 %vm11145_vm3, %v11143_v16  ;;  %10070 = vmatpush3.bf16.msk.msra.mxu1 %vm11145_vm3, %v11143_v16 }
  0x9d   : > { %10072 = vmatprep.subr.bf16.mxu0 %v11260_v51  ;;  %10076 = vmatprep.subr.bf16.mxu1 %v11275_v56 }
  0x9f   : > { %9531 = vmatmul.mubr.msk.f32.vlgmr.msra.gmra.mrb[8].mxu0 %vm958_vm0, %v8699_v34  ;;  %9563 = vmatmul.mubr.msk.f32.vlgmr.msra.gmra.mrb[8].mxu1 %vm958_vm0, %v8716_v35 }
  0xa0   : > { %9533 = vmatprep.mubr.msk.f32.mxu0 %vm958_vm0, %v8700_v36  ;;  %9565 = vmatprep.mubr.msk.f32.mxu1 %vm958_vm0, %v8717_v37 }
  0xa1   : > { %10074 = vmatpush1.bf16.msra.mxu0 %v11265_v53  ;;  %10078 = vmatpush1.bf16.msra.mxu1 %v11283_v59 }
  0xa2   : > { %8733 = vmatprep.subr.msk.mxu0 %vm1578_vm4, %v11290_v60  ;;  %8743 = vmatprep.subr.msk.mxu1 %vm1578_vm4, %v11295_v61 }
  0xa3   : > { %9534 = vmatmul.mubr.msk.f32.gmra.mrb[10].mxu0 %vm958_vm0, %v8701_v38  ;;  %9566 = vmatmul.mubr.msk.f32.gmra.mrb[10].mxu1 %vm958_vm0, %v8718_v39  ;;  %v11322_v38 = vld [vmem:[%s14928_s2] ss:$0 sm:$0xff] }
  0xa4   : > { %9536 = vmatprep.mubr.msk.f32.mxu0 %vm958_vm0, %v8702_v40  ;;  %9568 = vmatprep.mubr.msk.f32.mxu1 %vm958_vm0, %v8719_v41 }
  0xa5   : > { %8734 = vmatpush1.msk.msra.mxu0 %vm1578_vm4, %v11302_v62  ;;  %8744 = vmatpush1.msk.msra.mxu1 %vm1578_vm4, %v11309_v63 }
  0xa6   : > { %10080 = vmatprep.subr.bf16.mxu0 %v11093_v3  ;;  %10102 = vmatprep.subr.bf16.mxu1 %v11093_v3 }
  0xa7   : > { %9537 = vmatmul.mubr.msk.f32.gmra.mrb[12].mxu0 %vm958_vm0, %v8703_v42  ;;  %9569 = vmatmul.mubr.msk.f32.gmra.mrb[12].mxu1 %vm958_vm0, %v8720_v43 }
  0xa8   : > { %9539 = vmatprep.mubr.msk.f32.mxu0 %vm958_vm0, %v8704_v44  ;;  %9571 = vmatprep.mubr.msk.f32.mxu1 %vm958_vm0, %v8721_v45 }
  0xab   : > { %9540 = vmatmul.mubr.msk.f32.gmra.mrb[14].mxu0 %vm958_vm0, %v8705_v46  ;;  %9572 = vmatmul.mubr.msk.f32.gmra.mrb[14].mxu1 %vm958_vm0, %v8722_v47 }
  0xac   : > { %1655 = vmatprep.mubr.f32.mxu0 %v14839_v0  ;;  %1764 = vmatprep.mubr.f32.mxu1 %v14839_v0 }
 0x15e   : > { %v9468_v1 = vpop.f32.mrb[0].mxu0  ;;  %v9500_v2 = vpop.f32.mrb[0].mxu1 }
 0x15f   : > { %v1231_v4 = vmax.f32 %v9468_v1, %v9500_v2  ;;  %v1053_v6 = vpop.f32.mrb[1].mxu0  ;;  %v1191_v7 = vpop.f32.mrb[1].mxu1 }
 0x160   : > { %v1230_v8 = vmax.f32 %v1053_v6, %v1191_v7 }
 0x162   : > { %v9471_v9 = vpop.f32.mrb[2].mxu0  ;;  %v9503_v11 = vpop.f32.mrb[2].mxu1 }
 0x163   : > { %v1233_v12 = vmax.f32 %v9471_v9, %v9503_v11  ;;  %v1063_v14 = vpop.f32.mrb[3].mxu0  ;;  %v1201_v15 = vpop.f32.mrb[3].mxu1 }
 0x164   : > { %v1232_v18 = vmax.f32 %v1063_v14, %v1201_v15 }
 0x166   : > { %v9474_v19 = vpop.f32.mrb[4].mxu0  ;;  %v9506_v20 = vpop.f32.mrb[4].mxu1 }
 0x167   : > { %v1235_v21 = vmax.f32 %v9474_v19, %v9506_v20  ;;  %v1073_v22 = vpop.f32.mrb[5].mxu0  ;;  %v1211_v23 = vpop.f32.mrb[5].mxu1 }
 0x168   : > { %v1234_v24 = vmax.f32 %v1073_v22, %v1211_v23 }
 0x16a   : > { %v9477_v25 = vpop.f32.mrb[6].mxu0  ;;  %v9509_v26 = vpop.f32.mrb[6].mxu1 }
 0x16b   : > { %v1237_v27 = vmax.f32 %v9477_v25, %v9509_v26  ;;  %v1083_v28 = vpop.f32.mrb[7].mxu0  ;;  %v1221_v29 = vpop.f32.mrb[7].mxu1 }
 0x16c   : > { %v1236_v30 = vmax.f32 %v1083_v28, %v1221_v29 }
 0x172   : > { %v9532_v31 = vpop.f32.mrb[8].mxu0  ;;  %v9564_v32 = vpop.f32.mrb[8].mxu1 }
 0x173   : > { %v1377_v33 = vmax.f32 %v1231_v4, %v9532_v31  ;;  %v1337_v34 = vpop.f32.mrb[9].mxu0  ;;  %v1483_v35 = vpop.f32.mrb[9].mxu1  ;;  %v8753_v31 = vld [vmem:[%s11109_s30 + $0x100] sm:$0xff] }
 0x174   : > { %v1376_v36 = vmax.f32 %v1230_v8, %v1337_v34  ;;  %v8771_v34 = vld [vmem:[%s11109_s30 + $0x148] sm:$0xff] }
 0x175   : > { %v1523_v37 = vmax.f32 %v1377_v33, %v9564_v32  ;;  %v8770_v32 = vld [vmem:[%s11109_s30 + $0x140] sm:$0xff]  ;;  %v8754_v33 = vld [vmem:[%s11109_s30 + $0x108] sm:$0xff] }
 0x176   : > { %v1522_v39 = vmax.f32 %v1376_v36, %v1483_v35  ;;  %v9535_v40 = vpop.f32.mrb[10].mxu0  ;;  %v9567_v41 = vpop.f32.mrb[10].mxu1  ;;  %v8755_v35 = vld [vmem:[%s11109_s30 + $0x110] sm:$0xff] }
 0x177   : > { %v1379_v42 = vmax.f32 %v1233_v12, %v9535_v40  ;;  %v1347_v43 = vpop.f32.mrb[11].mxu0  ;;  %v1493_v44 = vpop.f32.mrb[11].mxu1  ;;  %v1538_v48 = vadd.f32 %v11322_v38, %v1523_v37  ;;  %v8772_v36 = vld [vmem:[%s11109_s30 + $0x150] sm:$0xff]  ;;  %v8756_v37 = vld [vmem:[%s11109_s30 + $0x118] sm:$0xff]  ;;  %v8757_v40 = vld [vmem:[%s11109_s30 + $0x120] sm:$0xff] }
 0x178   : > { %v1537_v45 = vadd.f32 %v11322_v38, %v1522_v39  ;;  %v1378_v46 = vmax.f32 %v1232_v18, %v1347_v43  ;;  %v8773_v39 = vld [vmem:[%s11109_s30 + $0x158] sm:$0xff]  ;;  %v8775_v43 = vld [vmem:[%s11109_s30 + $0x168] sm:$0xff] }
 0x179   : > { %v1525_v47 = vmax.f32 %v1379_v42, %v9567_v41  ;;  %v1546_v4 = vmax.f32 %v1538_v48, 0.0  ;;  %v8774_v41 = vld [vmem:[%s11109_s30 + $0x160] sm:$0xff]  ;;  %v8758_v42 = vld [vmem:[%s11109_s30 + $0x128] sm:$0xff] }
 0x17a   : > { %v1545_v49 = vmax.f32 %v1537_v45, 0.0  ;;  %v1524_v50 = vmax.f32 %v1378_v46, %v1493_v44  ;;  %v9538_v52 = vpop.f32.mrb[12].mxu0  ;;  %v9570_v54 = vpop.f32.mrb[12].mxu1  ;;  %v8759_v44 = vld [vmem:[%s11109_s30 + $0x130] sm:$0xff]  ;;  %v8760_v46 = vld [vmem:[%s11109_s30 + $0x138] sm:$0xff]  ;;  %v8787_v48 = vld [vmem:[%s11109_s30 + $0x180] sm:$0xff] }
 0x17b   : > { %v1381_v55 = vmax.f32 %v1235_v21, %v9538_v52  ;;  %v1357_v57 = vpop.f32.mrb[13].mxu0  ;;  %v1503_v58 = vpop.f32.mrb[13].mxu1  ;;  %v1540_v19 = vadd.f32 %v11322_v38, %v1525_v47  ;;  %v8776_v45 = vld [vmem:[%s11109_s30 + $0x170] sm:$0xff]  ;;  %v8777_v47 = vld [vmem:[%s11109_s30 + $0x178] sm:$0xff]  ;;  %v8805_v52 = vld [vmem:[%s11109_s30 + $0x1c8] sm:$0xff] }
 0x17c   : > { %v1380_v1 = vmax.f32 %v1234_v24, %v1357_v57  ;;  %8735 = vmatmul.mubr.msk.f32.vlgmr.msra.gmra.mrb[16].mxu0 %vm1553_vm5, %v1545_v49  ;;  %8745 = vmatmul.mubr.msk.f32.vlgmr.msra.gmra.mrb[16].mxu1 %vm1553_vm5, %v1545_v49  ;;  %v1539_v6 = vadd.f32 %v11322_v38, %v1524_v50  ;;  %v8804_v49 = vld [vmem:[%s11109_s30 + $0x1c0] sm:$0xff]  ;;  %v8788_v50 = vld [vmem:[%s11109_s30 + $0x188] sm:$0xff]  ;;  %v8790_v57 = vld [vmem:[%s11109_s30 + $0x198] sm:$0xff] }
 0x17d   : > { %v1527_v2 = vmax.f32 %v1381_v55, %v9570_v54  ;;  %10082 = vmatpush3.bf16.msra.mxu0 %v11093_v3  ;;  %10104 = vmatpush3.bf16.msra.mxu1 %v11093_v3  ;;  %v1548_v22 = vmax.f32 %v1540_v19, 0.0  ;;  %v8789_v54 = vld [vmem:[%s11109_s30 + $0x190] sm:$0xff] }
 0x17e   : > { %v1526_v7 = vmax.f32 %v1380_v1, %v1503_v58  ;;  %v9541_v8 = vpop.f32.mrb[14].mxu0  ;;  %1660 = vmatprep.mubr.f32.mxu0 %v14839_v0  ;;  %1768 = vmatprep.mubr.f32.mxu1 %v14839_v0  ;;  %v9573_v9 = vpop.f32.mrb[14].mxu1  ;;  %v1547_v20 = vmax.f32 %v1539_v6, 0.0  ;;  %v8806_v55 = vld [vmem:[%s11109_s30 + $0x1d0] sm:$0xff]  ;;  %v8807_v58 = vld [vmem:[%s11109_s30 + $0x1d8] sm:$0xff]  ;;  %v8791_v1 = vld [vmem:[%s11109_s30 + $0x1a0] sm:$0xff] }
 0x17f   : > { %v1383_v11 = vmax.f32 %v1237_v27, %v9541_v8  ;;  %v1367_v12 = vpop.f32.mrb[15].mxu0  ;;  %v1513_v14 = vpop.f32.mrb[15].mxu1  ;;  %10084 = vmatprep.subr.bf16.mxu0 %v11099_v5  ;;  %10106 = vmatprep.subr.bf16.mxu1 %v11099_v5  ;;  %v1542_v24 = vadd.f32 %v11322_v38, %v1527_v2  ;;  %v8808_v2 = vld [vmem:[%s11109_s30 + $0x1e0] sm:$0xff]  ;;  %v8809_v6 = vld [vmem:[%s11109_s30 + $0x1e8] sm:$0xff]  ;;  %v8810_v8 = vld [vmem:[%s11109_s30 + $0x1f0] sm:$0xff] }
 0x180   : > { %v1382_v15 = vmax.f32 %v1236_v30, %v1367_v12  ;;  %8736 = vmatmul.mubr.msk.f32.gmra.mrb[18].mxu0 %vm1553_vm5, %v1546_v4  ;;  %8746 = vmatmul.mubr.msk.f32.gmra.mrb[18].mxu1 %vm1553_vm5, %v1546_v4  ;;  %v1541_v23 = vadd.f32 %v11322_v38, %v1526_v7  ;;  %v8792_v4 = vld [vmem:[%s11109_s30 + $0x1a8] sm:$0xff]  ;;  %v8793_v7 = vld [vmem:[%s11109_s30 + $0x1b0] sm:$0xff] }
 0x181   : > { %v1529_v18 = vmax.f32 %v1383_v11, %v9573_v9  ;;  %1666 = vmatprep.mubr.f32.mxu0 %v14839_v0  ;;  %1772 = vmatprep.mubr.f32.mxu1 %v14839_v0  ;;  %v1550_v26 = vmax.f32 %v1542_v24, 0.0 }
 0x182   : > { %v1528_v21 = vmax.f32 %v1382_v15, %v1513_v14  ;;  %10086 = vmatpush3.bf16.msra.mxu0 %v11099_v5  ;;  %10108 = vmatpush3.bf16.msra.mxu1 %v11099_v5  ;;  %v1549_v25 = vmax.f32 %v1541_v23, 0.0 }
 0x183   : > { %10088 = vmatprep.subr.bf16.mxu0 %v11117_v10  ;;  %10110 = vmatprep.subr.bf16.mxu1 %v11117_v10  ;;  %v1544_v28 = vadd.f32 %v11322_v38, %v1529_v18 }
 0x184   : > { %8737 = vmatmul.mubr.msk.f32.gmra.mrb[20].mxu0 %vm1553_vm5, %v1547_v20  ;;  %8747 = vmatmul.mubr.msk.f32.gmra.mrb[20].mxu1 %vm1553_vm5, %v1547_v20  ;;  %v1543_v27 = vadd.f32 %v11322_v38, %v1528_v21 }
 0x185   : > { %1672 = vmatprep.mubr.f32.mxu0 %v14839_v0  ;;  %1778 = vmatprep.mubr.f32.mxu1 %v14839_v0  ;;  %v1552_v30 = vmax.f32 %v1544_v28, 0.0 }
 0x186   : > { %10090 = vmatpush3.bf16.msra.mxu0 %v11117_v10  ;;  %10112 = vmatpush3.bf16.msra.mxu1 %v11117_v10  ;;  %v1551_v29 = vmax.f32 %v1543_v27, 0.0 }
 0x187   : > { %10092 = vmatprep.subr.bf16.mxu0 %v11131_v13  ;;  %10114 = vmatprep.subr.bf16.mxu1 %v11131_v13 }
 0x188   : > { %8738 = vmatmul.mubr.msk.f32.gmra.mrb[22].mxu0 %vm1553_vm5, %v1548_v22  ;;  %8748 = vmatmul.mubr.msk.f32.gmra.mrb[22].mxu1 %vm1553_vm5, %v1548_v22 }
 0x189   : > { %1678 = vmatprep.mubr.f32.mxu0 %v14839_v0  ;;  %1784 = vmatprep.mubr.f32.mxu1 %v14839_v0 }
 0x18a   : > { %10094 = vmatpush3.bf16.msra.mxu0 %v11131_v13  ;;  %10116 = vmatpush3.bf16.msra.mxu1 %v11131_v13 }
 0x18b   : > { %10097 = vmatprep.subr.msk.bf16.mxu0 %vm11145_vm3, %v11143_v16  ;;  %10119 = vmatprep.subr.msk.bf16.mxu1 %vm11145_vm3, %v11143_v16 }
 0x18c   : > { %8739 = vmatmul.mubr.msk.f32.gmra.mrb[24].mxu0 %vm1553_vm5, %v1549_v25  ;;  %8749 = vmatmul.mubr.msk.f32.gmra.mrb[24].mxu1 %vm1553_vm5, %v1549_v25 }
 0x18d   : > { %1684 = vmatprep.mubr.f32.mxu0 %v14839_v0  ;;  %1790 = vmatprep.mubr.f32.mxu1 %v14839_v0 }
 0x18e   : > { %10100 = vmatpush3.bf16.msk.msra.mxu0 %vm11145_vm3, %v11143_v16  ;;  %10122 = vmatpush3.bf16.msk.msra.mxu1 %vm11145_vm3, %v11143_v16 }
 0x18f   : > { %10124 = vmatprep.subr.bf16.mxu0 %v11093_v3  ;;  %10146 = vmatprep.subr.bf16.mxu1 %v11093_v3 }
 0x190   : > { %8740 = vmatmul.mubr.msk.f32.gmra.mrb[26].mxu0 %vm1553_vm5, %v1550_v26  ;;  %8750 = vmatmul.mubr.msk.f32.gmra.mrb[26].mxu1 %vm1553_vm5, %v1550_v26 }
 0x191   : > { %1690 = vmatprep.mubr.f32.mxu0 %v14839_v0  ;;  %1796 = vmatprep.mubr.f32.mxu1 %v14839_v0 }
 0x194   : > { %8741 = vmatmul.mubr.msk.f32.gmra.mrb[28].mxu0 %vm1553_vm5, %v1551_v29  ;;  %8751 = vmatmul.mubr.msk.f32.gmra.mrb[28].mxu1 %vm1553_vm5, %v1551_v29 }
 0x195   : > { %1695 = vmatprep.mubr.f32.mxu0 %v14839_v0  ;;  %1802 = vmatprep.mubr.f32.mxu1 %v14839_v0 }
 0x198   : > { %8742 = vmatmul.mubr.msk.f32.gmra.mrb[30].mxu0 %vm1553_vm5, %v1552_v30  ;;  %8752 = vmatmul.mubr.msk.f32.gmra.mrb[30].mxu1 %vm1553_vm5, %v1552_v30 }
 0x199   : > { %9594 = vmatprep.mubr.msk.f32.mxu0 %vm958_vm0, %v8753_v31  ;;  %9626 = vmatprep.mubr.msk.f32.mxu1 %vm958_vm0, %v8770_v32 }
 0x19c   : > { %9595 = vmatmul.mubr.msk.f32.vlgmr.msra.gmra.mrb[32].mxu0 %vm958_vm0, %v8754_v33  ;;  %9627 = vmatmul.mubr.msk.f32.vlgmr.msra.gmra.mrb[32].mxu1 %vm958_vm0, %v8771_v34 }
 0x19d   : > { %10126 = vmatpush3.bf16.msra.mxu0 %v11093_v3  ;;  %10148 = vmatpush3.bf16.msra.mxu1 %v11093_v3 }
 0x19e   : > { %10128 = vmatprep.subr.bf16.mxu0 %v11099_v5  ;;  %10150 = vmatprep.subr.bf16.mxu1 %v11099_v5 }
 0x19f   : > { %9597 = vmatprep.mubr.msk.f32.mxu0 %vm958_vm0, %v8755_v35  ;;  %9629 = vmatprep.mubr.msk.f32.mxu1 %vm958_vm0, %v8772_v36 }
 0x1a0   : > { %9598 = vmatmul.mubr.msk.f32.gmra.mrb[34].mxu0 %vm958_vm0, %v8756_v37  ;;  %9630 = vmatmul.mubr.msk.f32.gmra.mrb[34].mxu1 %vm958_vm0, %v8773_v39 }
 0x1a1   : > { %10130 = vmatpush3.bf16.msra.mxu0 %v11099_v5  ;;  %10152 = vmatpush3.bf16.msra.mxu1 %v11099_v5 }
 0x1a2   : > { %10132 = vmatprep.subr.bf16.mxu0 %v11117_v10  ;;  %10154 = vmatprep.subr.bf16.mxu1 %v11117_v10 }
 0x1a3   : > { %9600 = vmatprep.mubr.msk.f32.mxu0 %vm958_vm0, %v8757_v40  ;;  %9632 = vmatprep.mubr.msk.f32.mxu1 %vm958_vm0, %v8774_v41 }
 0x1a4   : > { %9601 = vmatmul.mubr.msk.f32.gmra.mrb[36].mxu0 %vm958_vm0, %v8758_v42  ;;  %9633 = vmatmul.mubr.msk.f32.gmra.mrb[36].mxu1 %vm958_vm0, %v8775_v43 }
 0x1a5   : > { %10134 = vmatpush3.bf16.msra.mxu0 %v11117_v10  ;;  %10156 = vmatpush3.bf16.msra.mxu1 %v11117_v10 }
 0x1a6   : > { %10136 = vmatprep.subr.bf16.mxu0 %v11131_v13  ;;  %10158 = vmatprep.subr.bf16.mxu1 %v11131_v13 }
 0x1a7   : > { %9603 = vmatprep.mubr.msk.f32.mxu0 %vm958_vm0, %v8759_v44  ;;  %9635 = vmatprep.mubr.msk.f32.mxu1 %vm958_vm0, %v8776_v45 }
 0x1a8   : > { %9604 = vmatmul.mubr.msk.f32.gmra.mrb[38].mxu0 %vm958_vm0, %v8760_v46  ;;  %9636 = vmatmul.mubr.msk.f32.gmra.mrb[38].mxu1 %vm958_vm0, %v8777_v47 }
 0x1a9   : > { %10138 = vmatpush3.bf16.msra.mxu0 %v11131_v13  ;;  %10160 = vmatpush3.bf16.msra.mxu1 %v11131_v13 }
 0x1aa   : > { %10141 = vmatprep.subr.msk.bf16.mxu0 %vm11145_vm3, %v11143_v16  ;;  %10163 = vmatprep.subr.msk.bf16.mxu1 %vm11145_vm3, %v11143_v16 }
 0x1ab   : > { %9658 = vmatprep.mubr.msk.f32.mxu0 %vm958_vm0, %v8787_v48  ;;  %9690 = vmatprep.mubr.msk.f32.mxu1 %vm958_vm0, %v8804_v49 }
 0x1ad   : > { %10144 = vmatpush3.bf16.msk.msra.mxu0 %vm11145_vm3, %v11143_v16  ;;  %10166 = vmatpush3.bf16.msk.msra.mxu1 %vm11145_vm3, %v11143_v16 }
 0x1ae   : > { %10168 = vmatprep.subr.bf16.mxu0 %v11260_v51  ;;  %10172 = vmatprep.subr.bf16.mxu1 %v11275_v56 }
 0x1b0   : > { %9659 = vmatmul.mubr.msk.f32.vlgmr.msra.gmra.mrb[40].mxu0 %vm958_vm0, %v8788_v50  ;;  %9691 = vmatmul.mubr.msk.f32.vlgmr.msra.gmra.mrb[40].mxu1 %vm958_vm0, %v8805_v52 }
 0x1b1   : > { %9661 = vmatprep.mubr.msk.f32.mxu0 %vm958_vm0, %v8789_v54  ;;  %9693 = vmatprep.mubr.msk.f32.mxu1 %vm958_vm0, %v8806_v55 }
 0x1b2   : > { %10170 = vmatpush1.bf16.msra.mxu0 %v11265_v53  ;;  %10174 = vmatpush1.bf16.msra.mxu1 %v11283_v59 }
 0x1b3   : > { %8821 = vmatprep.subr.msk.mxu0 %vm1578_vm4, %v11290_v60  ;;  %8831 = vmatprep.subr.msk.mxu1 %vm1578_vm4, %v11295_v61  ;;  %v8794_v60 = vld [vmem:[%s11109_s30 + $0x1b8] sm:$0xff] }
 0x1b4   : > { %9662 = vmatmul.mubr.msk.f32.gmra.mrb[42].mxu0 %vm958_vm0, %v8790_v57  ;;  %9694 = vmatmul.mubr.msk.f32.gmra.mrb[42].mxu1 %vm958_vm0, %v8807_v58  ;;  %v8811_v61 = vld [vmem:[%s11109_s30 + $0x1f8] sm:$0xff] }
 0x1b5   : > { %9664 = vmatprep.mubr.msk.f32.mxu0 %vm958_vm0, %v8791_v1  ;;  %9696 = vmatprep.mubr.msk.f32.mxu1 %vm958_vm0, %v8808_v2 }
 0x1b6   : > { %8822 = vmatpush1.msk.msra.mxu0 %vm1578_vm4, %v11302_v62  ;;  %8832 = vmatpush1.msk.msra.mxu1 %vm1578_vm4, %v11309_v63 }
 0x1b7   : > { %10176 = vmatprep.subr.bf16.mxu0 %v11093_v3  ;;  %10198 = vmatprep.subr.bf16.mxu1 %v11093_v3 }
 0x1b8   : > { %9665 = vmatmul.mubr.msk.f32.gmra.mrb[44].mxu0 %vm958_vm0, %v8792_v4  ;;  %9697 = vmatmul.mubr.msk.f32.gmra.mrb[44].mxu1 %vm958_vm0, %v8809_v6 }
 0x1b9   : > { %9667 = vmatprep.mubr.msk.f32.mxu0 %vm958_vm0, %v8793_v7  ;;  %9699 = vmatprep.mubr.msk.f32.mxu1 %vm958_vm0, %v8810_v8 }
 0x1bc   : > { %9668 = vmatmul.mubr.msk.f32.gmra.mrb[46].mxu0 %vm958_vm0, %v8794_v60  ;;  %9700 = vmatmul.mubr.msk.f32.gmra.mrb[46].mxu1 %vm958_vm0, %v8811_v61 }
 0x1bd   : > { %2487 = vmatprep.mubr.f32.mxu0 %v14839_v0  ;;  %2596 = vmatprep.mubr.f32.mxu1 %v14839_v0 }
 0x24f   : > { %v11496_v62 = vpop.f32.mrb[16].mxu0  ;;  %v1766_v63 = vpop.f32.mrb[16].mxu1 }
 0x250   : > { %v1659_v9 = vpop.f32.mrb[17].mxu0  ;;  %v1767_v11 = vpop.f32.mrb[17].mxu1  ;;  %v4333_v12 = vrot.slane %v11496_v62, 1  ;;  %v4383_v18 = vrot.slane %v11496_v62, 2 }
 0x252   : > { %4338 = vrot.lane.b32.xlu1 %v4333_v12, %s14902_s15  ;;  %4889 = vrot.lane.b32.xlu0 %v4333_v12, %s14904_s16 }
 0x253   : > { %v11501_v14 = vpop.f32.mrb[18].mxu0  ;;  %v1770_v15 = vpop.f32.mrb[18].mxu1 }
 0x254   : > { %v1664_v19 = vpop.f32.mrb[19].mxu0  ;;  %v1771_v20 = vpop.f32.mrb[19].mxu1  ;;  %v4334_v27 = vrot.slane %v11501_v14, 1  ;;  %v4384_v34 = vrot.slane %v11501_v14, 2 }
 0x255   : > { %v11541_v37 = vrot.slane %v1664_v19, 2  ;;  %v4583_v43 = vrot.slane %v1664_v19, 1 }
 0x256   : > { %4388 = vrot.lane.b32.xlu1 %v4383_v18, %s14831_s22  ;;  %4929 = vrot.lane.b32.xlu0 %v4383_v18, %s14900_s24 }
 0x257   : > { %v11506_v21 = vpop.f32.mrb[20].mxu0  ;;  %v1774_v22 = vpop.f32.mrb[20].mxu1  ;;  %14934 = vst [vmem:[#allocation12_spill] sm:$0xff] %v11541_v37 }
 0x258   : > { %v11508_v23 = vpop.f32.mrb[21].mxu0  ;;  %v11510_v24 = vpop.f32.mrb[21].mxu1  ;;  %v11565_v4 = vrot.slane %v1774_v22, 1  ;;  %v5335_v9 = vrot.slane %v1774_v22, 2 }
 0x259   : > { %14929 = vst [vmem:[#allocation7_spill] sm:$0xff] %v11510_v24 }
 0x25a   : > { %5471 = vrot.lane.b32.xlu1 %v11501_v14, %s14835_s25  ;;  %4538 = vrot.lane.b32.xlu0 %v1664_v19, %s14902_s15  ;;  %14940 = vst [vmem:[#allocation18_spill] sm:$0xff] %v11565_v4 }
 0x25b   : > { %v11515_v25 = vpop.f32.mrb[22].mxu0  ;;  %v11517_v26 = vpop.f32.mrb[22].mxu1 }
 0x25c   : > { %14930 = vst [vmem:[#allocation8_spill] sm:$0xff] %v11515_v25  ;;  %v11520_v28 = vpop.f32.mrb[23].mxu0  ;;  %v11522_v29 = vpop.f32.mrb[23].mxu1 }
 0x25d   : > { %14931 = vst [vmem:[#allocation9_spill] sm:$0xff] %v11522_v29 }
 0x25e   : > { %5513 = vrot.lane.b32.xlu1 %v4334_v27, %s14837_s29  ;;  %5970 = vrot.lane.b32.xlu0 %v4334_v27, %s14833_s12 }
 0x25f   : > { %v11526_v30 = vpop.f32.mrb[24].mxu0  ;;  %v11528_v31 = vpop.f32.mrb[24].mxu1 }
 0x260   : > { %14932 = vst [vmem:[#allocation10_spill] sm:$0xff] %v11526_v30  ;;  %v11530_v32 = vpop.f32.mrb[25].mxu0  ;;  %v11532_v33 = vpop.f32.mrb[25].mxu1 }
 0x261   : > { %14933 = vst [vmem:[#allocation11_spill] sm:$0xff] %v11532_v33 }
 0x262   : > { %4891 = vrot.lane.b32.xlu1 %v4334_v27, %s14904_s16  ;;  %4390 = vrot.lane.b32.xlu0 %v4384_v34, %s14831_s22 }
 0x263   : > { %v11537_v35 = vpop.f32.mrb[26].mxu0  ;;  %v11539_v36 = vpop.f32.mrb[26].mxu1 }
 0x264   : > { %v11543_v39 = vpop.f32.mrb[27].mxu0  ;;  %v11545_v40 = vpop.f32.mrb[27].mxu1 }
 0x265   : > { %14935 = vst [vmem:[#allocation13_spill] sm:$0xff] %v11543_v39  ;;  %14936 = vst [vmem:[#allocation14_spill] sm:$0xff] %v11545_v40 }
 0x266   : > { %4340 = vrot.lane.b32.xlu1 %v4334_v27, %s14902_s15  ;;  %5543 = vrot.lane.b32.xlu0 %v11541_v37, %s14904_s16 }
 0x267   : > { %v1692_v41 = vpop.f32.mrb[28].mxu0  ;;  %v11550_v42 = vpop.f32.mrb[28].mxu1 }
 0x268   : > { %14937 = vst [vmem:[#allocation15_spill] sm:$0xff] %v11550_v42  ;;  %v11552_v44 = vpop.f32.mrb[29].mxu0  ;;  %v11554_v45 = vpop.f32.mrb[29].mxu1 }
 0x269   : > { %14938 = vst [vmem:[#allocation16_spill] sm:$0xff] %v11552_v44  ;;  %14939 = vst [vmem:[#allocation17_spill] sm:$0xff] %v11554_v45 }
 0x26a   : > { %4931 = vrot.lane.b32.xlu1 %v4384_v34, %s14900_s24  ;;  %5094 = vrot.lane.b32.xlu0 %v4583_v43, %s14900_s24 }
 0x26b   : > { %v1697_v46 = vpop.f32.mrb[30].mxu0  ;;  %v1804_v47 = vpop.f32.mrb[30].mxu1 }
 0x26c   : > { %v1698_v48 = vpop.f32.mrb[31].mxu0  ;;  %v1805_v49 = vpop.f32.mrb[31].mxu1  ;;  %v4335_v47 = vrot.slane %v11506_v21, 1 }
 0x26e   : > { %4588 = vrot.lane.b32.xlu1 %v4583_v43, %s14831_s22  ;;  %5134 = vrot.lane.b32.xlu0 %v11541_v37, %s14835_s25 }
 0x26f   : > { %v9596_v50 = vpop.f32.mrb[32].mxu0  ;;  %v9628_v52 = vpop.f32.mrb[32].mxu1 }
 0x270   : > { %v2084_v54 = vmax.f32 %v9596_v50, %v9628_v52  ;;  %v1906_v55 = vpop.f32.mrb[33].mxu0  ;;  %v2044_v57 = vpop.f32.mrb[33].mxu1 }
 0x271   : > { %v2083_v58 = vmax.f32 %v1906_v55, %v2044_v57 }
 0x272   : > { %4638 = vrot.lane.b32.xlu1 %v11541_v37, %s14833_s12  ;;  %4540 = vrot.lane.b32.xlu0 %v11508_v23, %s14902_s15 }
 0x273   : > { %v9599_v1 = vpop.f32.mrb[34].mxu0  ;;  %v9631_v2 = vpop.f32.mrb[34].mxu1 }
 0x274   : > { %v2086_v6 = vmax.f32 %v9599_v1, %v9631_v2  ;;  %v1916_v7 = vpop.f32.mrb[35].mxu0  ;;  %v2054_v8 = vpop.f32.mrb[35].mxu1 }
 0x275   : > { %v2085_v60 = vmax.f32 %v1916_v7, %v2054_v8 }
 0x276   : > { %4774 = vrot.lane.b32.xlu1 %v1774_v22, %s14831_s22  ;;  %5696 = vrot.lane.b32.xlu0 %v11565_v4, %s14904_s16 }
 0x277   : > { %v9602_v61 = vpop.f32.mrb[36].mxu0  ;;  %v9634_v63 = vpop.f32.mrb[36].mxu1 }
 0x278   : > { %v2088_v11 = vmax.f32 %v9602_v61, %v9634_v63  ;;  %v1926_v12 = vpop.f32.mrb[37].mxu0  ;;  %v2064_v15 = vpop.f32.mrb[37].mxu1 }
 0x279   : > { %v2087_v18 = vmax.f32 %v1926_v12, %v2064_v15 }
 0x27a   : > { %5473 = vrot.lane.b32.xlu1 %v11506_v21, %s14835_s25  ;;  %6193 = vrot.lane.b32.xlu0 %v5335_v9, %s14902_s15 }
 0x27b   : > { %v9605_v19 = vpop.f32.mrb[38].mxu0  ;;  %v9637_v20 = vpop.f32.mrb[38].mxu1 }
 0x27c   : > { %v2090_v27 = vmax.f32 %v9605_v19, %v9637_v20  ;;  %v1936_v34 = vpop.f32.mrb[39].mxu0  ;;  %v2074_v41 = vpop.f32.mrb[39].mxu1 }
 0x27d   : > { %v2089_v43 = vmax.f32 %v1936_v34, %v2074_v41 }
 0x27e   : > { %5295 = vrot.lane.b32.xlu0 %v11565_v4, %s14835_s25  ;;  %5671 = vrot.lane.b32.xlu1 %v11508_v23, %s14837_s29 }
 0x282   : > { %4824 = vrot.lane.b32.xlu0 %v11565_v4, %s14833_s12  ;;  %5736 = vrot.lane.b32.xlu1 %v5335_v9, %s14900_s24 }
 0x283   : > { %v9660_v22 = vpop.f32.mrb[40].mxu0  ;;  %v9692_v46 = vpop.f32.mrb[40].mxu1 }
 0x284   : > { %v2230_v48 = vmax.f32 %v2084_v54, %v9660_v22  ;;  %v2190_v49 = vpop.f32.mrb[41].mxu0  ;;  %v2336_v50 = vpop.f32.mrb[41].mxu1 }
 0x285   : > { %v2229_v52 = vmax.f32 %v2083_v58, %v2190_v49 }
 0x286   : > { %v2376_v55 = vmax.f32 %v2230_v48, %v9692_v46  ;;  %5340 = vrot.lane.b32.xlu0 %v5335_v9, %s14837_s29  ;;  %5515 = vrot.lane.b32.xlu1 %v4335_v47, %s14837_s29 }
 0x287   : > { %v2375_v57 = vmax.f32 %v2229_v52, %v2336_v50  ;;  %v9663_v1 = vpop.f32.mrb[42].mxu0  ;;  %v9695_v2 = vpop.f32.mrb[42].mxu1 }
 0x288   : > { %v2232_v7 = vmax.f32 %v2086_v6, %v9663_v1  ;;  %v2200_v8 = vpop.f32.mrb[43].mxu0  ;;  %v2346_v61 = vpop.f32.mrb[43].mxu1  ;;  %v2384_v54 = vadd.f32 %v11322_v38, %v2376_v55  ;;  %v4385_v6 = vrot.slane %v11506_v21, 2 }
 0x289   : > { %v2383_v63 = vadd.f32 %v11322_v38, %v2375_v57  ;;  %v2231_v12 = vmax.f32 %v2085_v60, %v2200_v8 }
 0x28a   : > { %v2378_v15 = vmax.f32 %v2232_v7, %v9695_v2  ;;  %5972 = vrot.lane.b32.xlu0 %v4335_v47, %s14833_s12  ;;  %4893 = vrot.lane.b32.xlu1 %v4335_v47, %s14904_s16  ;;  %v2392_v48 = vmax.f32 %v2384_v54, 0.0  ;;  %v4584_v2 = vrot.slane %v11508_v23, 1 }
 0x28b   : > { %v2391_v58 = vmax.f32 %v2383_v63, 0.0  ;;  %v2377_v9 = vmax.f32 %v2231_v12, %v2346_v61  ;;  %v9666_v19 = vpop.f32.mrb[44].mxu0  ;;  %v9698_v20 = vpop.f32.mrb[44].mxu1 }
 0x28c   : > { %v2234_v34 = vmax.f32 %v2088_v11, %v9666_v19  ;;  %v2210_v41 = vpop.f32.mrb[45].mxu0  ;;  %v2356_v22 = vpop.f32.mrb[45].mxu1  ;;  %v11654_v19 = vrot.slane %v11517_v26, 1 }
 0x28d   : > { %v2233_v46 = vmax.f32 %v2087_v18, %v2210_v41  ;;  %8823 = vmatmul.mubr.msk.f32.vlgmr.msra.gmra.mrb[48].mxu0 %vm1553_vm5, %v2391_v58  ;;  %8833 = vmatmul.mubr.msk.f32.vlgmr.msra.gmra.mrb[48].mxu1 %vm1553_vm5, %v2391_v58  ;;  %v2385_v49 = vadd.f32 %v11322_v38, %v2377_v9  ;;  %v8842_v41 = vld [vmem:[%s11109_s30 + $0x208] sm:$0xff] }
 0x28e   : > { %v2380_v60 = vmax.f32 %v2234_v34, %v9698_v20  ;;  %10178 = vmatpush3.bf16.msra.mxu0 %v11093_v3  ;;  %4933 = vrot.lane.b32.xlu0 %v4385_v6, %s14900_s24  ;;  %14942 = vst [vmem:[#allocation20_spill] sm:$0xff] %v11654_v19  ;;  %v5336_v20 = vrot.slane %v11517_v26, 2  ;;  %v8858_v34 = vld [vmem:[%s11109_s30 + $0x240] sm:$0xff] }
 0x28f   : > { %v2379_v50 = vmax.f32 %v2233_v46, %v2356_v22  ;;  %4342 = vrot.lane.b32.xlu1 %v4335_v47, %s14902_s15  ;;  %v9669_v11 = vpop.f32.mrb[46].mxu0  ;;  %10200 = vmatpush3.bf16.msra.mxu1 %v11093_v3  ;;  %v9701_v52 = vpop.f32.mrb[46].mxu1  ;;  %v2393_v47 = vmax.f32 %v2385_v49, 0.0  ;;  %v8859_v22 = vld [vmem:[%s11109_s30 + $0x248] sm:$0xff]  ;;  %v8843_v46 = vld [vmem:[%s11109_s30 + $0x210] sm:$0xff]  ;;  %v8861_v49 = vld [vmem:[%s11109_s30 + $0x258] sm:$0xff] }
 0x290   : > { %v2236_v18 = vmax.f32 %v2090_v27, %v9669_v11  ;;  %v2220_v55 = vpop.f32.mrb[47].mxu0  ;;  %2492 = vmatprep.mubr.f32.mxu0 %v14839_v0  ;;  %2600 = vmatprep.mubr.f32.mxu1 %v14839_v0  ;;  %v2366_v57 = vpop.f32.mrb[47].mxu1  ;;  %v2386_v27 = vadd.f32 %v11322_v38, %v2378_v15  ;;  %v2388_v63 = vadd.f32 %v11322_v38, %v2380_v60  ;;  %v8860_v60 = vld [vmem:[%s11109_s30 + $0x250] sm:$0xff]  ;;  %v8862_v11 = vld [vmem:[%s11109_s30 + $0x260] sm:$0xff] }
 0x291   : > { %v2235_v1 = vmax.f32 %v2089_v43, %v2220_v55  ;;  %8824 = vmatmul.mubr.msk.f32.gmra.mrb[50].mxu0 %vm1553_vm5, %v2392_v48  ;;  %8834 = vmatmul.mubr.msk.f32.gmra.mrb[50].mxu1 %vm1553_vm5, %v2392_v48  ;;  %v11606_v43 = vrot.slane %v11508_v23, 2  ;;  %v2387_v23 = vadd.f32 %v11322_v38, %v2379_v50  ;;  %v8844_v48 = vld [vmem:[%s11109_s30 + $0x218] sm:$0xff]  ;;  %v8845_v50 = vld [vmem:[%s11109_s30 + $0x220] sm:$0xff]  ;;  %v8847_v55 = vld [vmem:[%s11109_s30 + $0x230] sm:$0xff] }
 0x292   : > { %v2382_v7 = vmax.f32 %v2236_v18, %v9701_v52  ;;  %4392 = vrot.lane.b32.xlu0 %v4385_v6, %s14831_s22  ;;  %10180 = vmatprep.subr.bf16.mxu0 %v11099_v5  ;;  %v2394_v61 = vmax.f32 %v2386_v27, 0.0  ;;  %v2396_v15 = vmax.f32 %v2388_v63, 0.0  ;;  %v4336_v6 = vrot.slane %v11515_v25, 1  ;;  %v8846_v52 = vld [vmem:[%s11109_s30 + $0x228] sm:$0xff]  ;;  %v8865_v27 = vld [vmem:[%s11109_s30 + $0x278] sm:$0xff]  ;;  %v8877_v63 = vld [vmem:[%s11109_s30 + $0x290] sm:$0xff] }
 0x293   : > { %v2381_v8 = vmax.f32 %v2235_v1, %v2366_v57  ;;  %4590 = vrot.lane.b32.xlu1 %v4584_v2, %s14831_s22  ;;  %2498 = vmatprep.mubr.f32.mxu0 %v14839_v0  ;;  %14941 = vst [vmem:[#allocation19_spill] sm:$0xff] %v11606_v43  ;;  %v2395_v12 = vmax.f32 %v2387_v23, 0.0  ;;  %v8863_v18 = vld [vmem:[%s11109_s30 + $0x268] sm:$0xff]  ;;  %v8864_v57 = vld [vmem:[%s11109_s30 + $0x270] sm:$0xff]  ;;  %v4386_v1 = vrot.slane %v11515_v25, 2 }
 0x294   : > { %2604 = vmatprep.mubr.f32.mxu1 %v14839_v0  ;;  %10182 = vmatpush3.bf16.msra.mxu0 %v11099_v5  ;;  %v2390_v58 = vadd.f32 %v11322_v38, %v2382_v7  ;;  %v8848_v7 = vld [vmem:[%s11109_s30 + $0x238] sm:$0xff]  ;;  %v8893_v23 = vld [vmem:[%s11109_s30 + $0x2c8] sm:$0xff] }
 0x295   : > { %8825 = vmatmul.mubr.msk.f32.gmra.mrb[52].mxu0 %vm1553_vm5, %v2393_v47  ;;  %8835 = vmatmul.mubr.msk.f32.gmra.mrb[52].mxu1 %vm1553_vm5, %v2393_v47  ;;  %v2389_v54 = vadd.f32 %v11322_v38, %v2381_v8  ;;  %v11744_v47 = vrot.slane %v11520_v28, 2  ;;  %v8875_v8 = vld [vmem:[%s11109_s30 + $0x280] sm:$0xff] }
 0x296   : > { %10202 = vmatprep.subr.bf16.mxu1 %v11099_v5  ;;  %5545 = vrot.lane.b32.xlu0 %v11606_v43, %s14904_s16  ;;  %v2398_v38 = vmax.f32 %v2390_v58, 0.0  ;;  %v8879_v58 = vld [vmem:[%s11109_s30 + $0x2a0] sm:$0xff] }
 0x297   : > { %10204 = vmatpush3.bf16.msra.mxu1 %v11099_v5  ;;  %4640 = vrot.lane.b32.xlu1 %v11606_v43, %s14833_s12  ;;  %v2397_v9 = vmax.f32 %v2389_v54, 0.0  ;;  %14943 = vst [vmem:[#allocation21_spill] sm:$0xff] %v11744_v47  ;;  %v8895_v54 = vld [vmem:[%s11109_s30 + $0x2d8] sm:$0xff] }
 0x298   : > { %2504 = vmatprep.mubr.f32.mxu0 %v14839_v0  ;;  %2610 = vmatprep.mubr.f32.mxu1 %v14839_v0 }
 0x299   : > { %8826 = vmatmul.mubr.msk.f32.gmra.mrb[54].mxu0 %vm1553_vm5, %v2394_v61  ;;  %8836 = vmatmul.mubr.msk.f32.gmra.mrb[54].mxu1 %vm1553_vm5, %v2394_v61  ;;  %v8892_v61 = vld [vmem:[%s11109_s30 + $0x2c0] sm:$0xff] }
 0x29a   : > { %10184 = vmatprep.subr.bf16.mxu0 %v11117_v10  ;;  %5096 = vrot.lane.b32.xlu0 %v4584_v2, %s14900_s24  ;;  %v4585_v2 = vrot.slane %v11520_v28, 1 }
 0x29b   : > { %10186 = vmatpush3.bf16.msra.mxu0 %v11117_v10  ;;  %4776 = vrot.lane.b32.xlu1 %v11517_v26, %s14831_s22  ;;  %v8841_v26 = vld [vmem:[%s11109_s30 + $0x200] sm:$0xff] }
 0x29c   : > { %10206 = vmatprep.subr.bf16.mxu1 %v11117_v10  ;;  %2510 = vmatprep.mubr.f32.mxu0 %v14839_v0 }
 0x29d   : > { %2616 = vmatprep.mubr.f32.mxu1 %v14839_v0  ;;  %10208 = vmatpush3.bf16.msra.mxu1 %v11117_v10 }
 0x29e   : > { %8827 = vmatmul.mubr.msk.f32.gmra.mrb[56].mxu0 %vm1553_vm5, %v2395_v12  ;;  %8837 = vmatmul.mubr.msk.f32.gmra.mrb[56].mxu1 %vm1553_vm5, %v2395_v12  ;;  %v8894_v12 = vld [vmem:[%s11109_s30 + $0x2d0] sm:$0xff] }
 0x29f   : > { %5136 = vrot.lane.b32.xlu0 %v11606_v43, %s14835_s25  ;;  %5475 = vrot.lane.b32.xlu1 %v11515_v25, %s14835_s25 }
 0x2a0   : > { %2516 = vmatprep.mubr.f32.mxu0 %v14839_v0  ;;  %2622 = vmatprep.mubr.f32.mxu1 %v14839_v0 }
 0x2a1   : > { %10188 = vmatprep.subr.bf16.mxu0 %v11131_v13  ;;  %10210 = vmatprep.subr.bf16.mxu1 %v11131_v13 }
 0x2a2   : > { %8828 = vmatmul.mubr.msk.f32.gmra.mrb[58].mxu0 %vm1553_vm5, %v2396_v15  ;;  %8838 = vmatmul.mubr.msk.f32.gmra.mrb[58].mxu1 %vm1553_vm5, %v2396_v15  ;;  %v8878_v15 = vld [vmem:[%s11109_s30 + $0x298] sm:$0xff] }
 0x2a3   : > { %10190 = vmatpush3.bf16.msra.mxu0 %v11131_v13  ;;  %4542 = vrot.lane.b32.xlu0 %v11520_v28, %s14902_s15 }
 0x2a4   : > { %5673 = vrot.lane.b32.xlu1 %v11520_v28, %s14837_s29  ;;  %10212 = vmatpush3.bf16.msra.mxu1 %v11131_v13  ;;  %v8876_v28 = vld [vmem:[%s11109_s30 + $0x288] sm:$0xff] }
 0x2a5   : > { %2522 = vmatprep.mubr.f32.mxu0 %v14839_v0  ;;  %2628 = vmatprep.mubr.f32.mxu1 %v14839_v0 }
 0x2a6   : > { %8829 = vmatmul.mubr.msk.f32.gmra.mrb[60].mxu0 %vm1553_vm5, %v2397_v9  ;;  %8839 = vmatmul.mubr.msk.f32.gmra.mrb[60].mxu1 %vm1553_vm5, %v2397_v9  ;;  %v8896_v9 = vld [vmem:[%s11109_s30 + $0x2e0] sm:$0xff] }
 0x2a7   : > { %10193 = vmatprep.subr.msk.bf16.mxu0 %vm11145_vm3, %v11143_v16  ;;  %5698 = vrot.lane.b32.xlu0 %v11654_v19, %s14904_s16 }
 0x2a8   : > { %5738 = vrot.lane.b32.xlu1 %v5336_v20, %s14900_s24  ;;  %10196 = vmatpush3.bf16.msk.msra.mxu0 %vm11145_vm3, %v11143_v16 }
 0x2a9   : > { %2527 = vmatprep.mubr.f32.mxu0 %v14839_v0  ;;  %2634 = vmatprep.mubr.f32.mxu1 %v14839_v0 }
 0x2aa   : > { %10215 = vmatprep.subr.msk.bf16.mxu1 %vm11145_vm3, %v11143_v16  ;;  %8830 = vmatmul.mubr.msk.f32.gmra.mrb[62].mxu0 %vm1553_vm5, %v2398_v38 }
 0x2ab   : > { %8840 = vmatmul.mubr.msk.f32.gmra.mrb[62].mxu1 %vm1553_vm5, %v2398_v38  ;;  %6195 = vrot.lane.b32.xlu0 %v5336_v20, %s14902_s15  ;;  %v8897_v38 = vld [vmem:[%s11109_s30 + $0x2e8] sm:$0xff] }
 0x2ac   : > { %10218 = vmatpush3.bf16.msk.msra.mxu1 %vm11145_vm3, %v11143_v16  ;;  %5342 = vrot.lane.b32.xlu1 %v5336_v20, %s14837_s29  ;;  %v8880_v20 = vld [vmem:[%s11109_s30 + $0x2a8] sm:$0xff] }
 0x2ad   : > { %9722 = vmatprep.mubr.msk.f32.mxu0 %vm958_vm0, %v8841_v26  ;;  %9754 = vmatprep.mubr.msk.f32.mxu1 %vm958_vm0, %v8858_v34  ;;  %v8881_v26 = vld [vmem:[%s11109_s30 + $0x2b0] sm:$0xff] }
 0x2ae   : > { %10220 = vmatprep.subr.bf16.mxu0 %v11093_v3  ;;  %9723 = vmatmul.mubr.msk.f32.vlgmr.msra.gmra.mrb[64].mxu0 %vm958_vm0, %v8842_v41  ;;  %v8898_v34 = vld [vmem:[%s11109_s30 + $0x2f0] sm:$0xff]  ;;  %v8882_v41 = vld [vmem:[%s11109_s30 + $0x2b8] sm:$0xff] }
 0x2af   : > { %9755 = vmatmul.mubr.msk.f32.vlgmr.msra.gmra.mrb[64].mxu1 %vm958_vm0, %v8859_v22  ;;  %10222 = vmatpush3.bf16.msra.mxu0 %v11093_v3  ;;  %v8899_v22 = vld [vmem:[%s11109_s30 + $0x2f8] sm:$0xff] }
 0x2b0   : > { %10242 = vmatprep.subr.bf16.mxu1 %v11093_v3  ;;  %5297 = vrot.lane.b32.xlu0 %v11654_v19, %s14835_s25 }
 0x2b1   : > { %10244 = vmatpush3.bf16.msra.mxu1 %v11093_v3  ;;  %5517 = vrot.lane.b32.xlu1 %v4336_v6, %s14837_s29 }
 0x2b2   : > { %10224 = vmatprep.subr.bf16.mxu0 %v11099_v5  ;;  %10246 = vmatprep.subr.bf16.mxu1 %v11099_v5 }
 0x2b3   : > { %10226 = vmatpush3.bf16.msra.mxu0 %v11099_v5  ;;  %9725 = vmatprep.mubr.msk.f32.mxu0 %vm958_vm0, %v8843_v46  ;;  %v11811_v46 = vld [vmem:[%s14927_s3 + $0x48] sm:$0xf] }
 0x2b4   : > { %9757 = vmatprep.mubr.msk.f32.mxu1 %vm958_vm0, %v8860_v60  ;;  %4826 = vrot.lane.b32.xlu0 %v11654_v19, %s14833_s12  ;;  %v10621_v60 = vld [vmem:[%s14927_s3 + $0x58] sm:$0xf] }
 0x2b5   : > { %10248 = vmatpush3.bf16.msra.mxu1 %v11099_v5  ;;  %4895 = vrot.lane.b32.xlu1 %v4336_v6, %s14904_s16 }
 0x2b6   : > { %9726 = vmatmul.mubr.msk.f32.gmra.mrb[66].mxu0 %vm958_vm0, %v8844_v48  ;;  %9758 = vmatmul.mubr.msk.f32.gmra.mrb[66].mxu1 %vm958_vm0, %v8861_v49  ;;  %v5337_v48 = vrot.slane %v11528_v31, 2  ;;  %v11825_v49 = vld [vmem:[%s14927_s3 + $0x40] sm:$0xf] }
 0x2b7   : > { %10228 = vmatprep.subr.bf16.mxu0 %v11117_v10  ;;  %10250 = vmatprep.subr.bf16.mxu1 %v11117_v10 }
 0x2b8   : > { %10230 = vmatpush3.bf16.msra.mxu0 %v11117_v10  ;;  %9728 = vmatprep.mubr.msk.f32.mxu0 %vm958_vm0, %v8845_v50  ;;  %v10623_v50 = vld [vmem:[%s14927_s3 + $0x50] sm:$0xf] }
 0x2b9   : > { %9760 = vmatprep.mubr.msk.f32.mxu1 %vm958_vm0, %v8862_v11  ;;  %10252 = vmatpush3.bf16.msra.mxu1 %v11117_v10  ;;  %v11839_v11 = vrot.slane %v11528_v31, 1 }
 0x2ba   : > { %5974 = vrot.lane.b32.xlu0 %v4336_v6, %s14833_s12  ;;  %4344 = vrot.lane.b32.xlu1 %v4336_v6, %s14902_s15 }
 0x2bb   : > { %9729 = vmatmul.mubr.msk.f32.gmra.mrb[68].mxu0 %vm958_vm0, %v8846_v52  ;;  %9761 = vmatmul.mubr.msk.f32.gmra.mrb[68].mxu1 %vm958_vm0, %v8863_v18  ;;  %14944 = vst [vmem:[#allocation22_spill] sm:$0xff] %v11839_v11  ;;  %v4337_v18 = vrot.slane %v11526_v30, 1 }
 0x2bc   : > { %10232 = vmatprep.subr.bf16.mxu0 %v11131_v13  ;;  %10254 = vmatprep.subr.bf16.mxu1 %v11131_v13 }
 0x2bd   : > { %10234 = vmatpush3.bf16.msra.mxu0 %v11131_v13  ;;  %9731 = vmatprep.mubr.msk.f32.mxu0 %vm958_vm0, %v8847_v55 }
 0x2be   : > { %9763 = vmatprep.mubr.msk.f32.mxu1 %vm958_vm0, %v8864_v57  ;;  %10256 = vmatpush3.bf16.msra.mxu1 %v11131_v13  ;;  %v4586_v57 = vrot.slane %v11530_v32, 1 }
 0x2bf   : > { %4935 = vrot.lane.b32.xlu0 %v4386_v1, %s14900_s24  ;;  %4592 = vrot.lane.b32.xlu1 %v4585_v2, %s14831_s22 }
 0x2c0   : > { %9732 = vmatmul.mubr.msk.f32.gmra.mrb[70].mxu0 %vm958_vm0, %v8848_v7  ;;  %9764 = vmatmul.mubr.msk.f32.gmra.mrb[70].mxu1 %vm958_vm0, %v8865_v27  ;;  %v4387_v7 = vrot.slane %v11526_v30, 2 }
 0x2c1   : > { %10237 = vmatprep.subr.msk.bf16.mxu0 %vm11145_vm3, %v11143_v16  ;;  %10259 = vmatprep.subr.msk.bf16.mxu1 %vm11145_vm3, %v11143_v16 }
 0x2c2   : > { %10240 = vmatpush3.bf16.msk.msra.mxu0 %vm11145_vm3, %v11143_v16  ;;  %10262 = vmatpush3.bf16.msk.msra.mxu1 %vm11145_vm3, %v11143_v16 }
 0x2c3   : > { %4394 = vrot.lane.b32.xlu0 %v4386_v1, %s14831_s22  ;;  %4642 = vrot.lane.b32.xlu1 %v11744_v47, %s14833_s12  ;;  %s14951_s12 = smov 64  }
 0x2c4   : > { %9786 = vmatprep.mubr.msk.f32.mxu0 %vm958_vm0, %v8875_v8  ;;  %9818 = vmatprep.mubr.msk.f32.mxu1 %vm958_vm0, %v8892_v61  ;;  %v11802_v6 = vpop.permute.xlu1 %4338 }
 0x2c5   : > { %9787 = vmatmul.mubr.msk.f32.vlgmr.msra.gmra.mrb[72].mxu0 %vm958_vm0, %v8876_v28  ;;  %9819 = vmatmul.mubr.msk.f32.vlgmr.msra.gmra.mrb[72].mxu1 %vm958_vm0, %v8893_v23  ;;  %v11894_v28 = vrot.slane %v11539_v36, 1 }
 0x2c6   : > { %9789 = vmatprep.mubr.msk.f32.mxu0 %vm958_vm0, %v8877_v63  ;;  %9821 = vmatprep.mubr.msk.f32.mxu1 %vm958_vm0, %v8894_v12 }
 0x2c7   : > { %5547 = vrot.lane.b32.xlu0 %v11744_v47, %s14904_s16  ;;  %4778 = vrot.lane.b32.xlu1 %v11528_v31, %s14831_s22  ;;  %s14945_s22 = smov 16   ;;  %14954 = vst [vmem:[#allocation28_spill] sm:$0xff] %v11894_v28 }
 0x2c8   : > { %10264 = vmatprep.subr.bf16.mxu0 %v11260_v51  ;;  %10268 = vmatprep.subr.bf16.mxu1 %v11275_v56  ;;  %v11841_v52 = vpop.permute.xlu1 %4388 }
 0x2c9   : > { %9790 = vmatmul.mubr.msk.f32.gmra.mrb[74].mxu0 %vm958_vm0, %v8878_v15  ;;  %9822 = vmatmul.mubr.msk.f32.gmra.mrb[74].mxu1 %vm958_vm0, %v8895_v54  ;;  %v11912_v15 = vpop.permute.xlu0 %4889 }
 0x2ca   : > { %9792 = vmatprep.mubr.msk.f32.mxu0 %vm958_vm0, %v8879_v58  ;;  %9824 = vmatprep.mubr.msk.f32.mxu1 %vm958_vm0, %v8896_v9  ;;  %14959 = vst [vmem:[#allocation33_spill] sm:$0xff] %v11912_v15 }
 0x2cb   : > { %5098 = vrot.lane.b32.xlu0 %v4585_v2, %s14900_s24  ;;  %5477 = vrot.lane.b32.xlu1 %v11526_v30, %s14835_s25  ;;  %v11867_v2 = vrot.slane %v11530_v32, 2 }
 0x2cc   : > { %10266 = vmatpush1.bf16.msra.mxu0 %v11265_v53  ;;  %10270 = vmatpush1.bf16.msra.mxu1 %v11283_v59  ;;  %v11849_v55 = vpop.permute.xlu1 %5471 }
 0x2cd   : > { %9793 = vmatmul.mubr.msk.f32.gmra.mrb[76].mxu0 %vm958_vm0, %v8880_v20  ;;  %9825 = vmatmul.mubr.msk.f32.gmra.mrb[76].mxu1 %vm958_vm0, %v8897_v38  ;;  %14946 = vst [vmem:[#allocation23_spill] sm:$0xff] %v11849_v55  ;;  %14952 = vst [vmem:[#allocation26_spill] sm:$0xff] %v11867_v2  ;;  %v11916_v58 = vpop.permute.xlu0 %4929 }
 0x2ce   : > { %9795 = vmatprep.mubr.msk.f32.mxu0 %vm958_vm0, %v8881_v26  ;;  %9827 = vmatprep.mubr.msk.f32.mxu1 %vm958_vm0, %v8898_v34  ;;  %14961 = vst [vmem:[#allocation35_spill] sm:$0xff] %v11916_v58 }
 0x2cf   : > { %5138 = vrot.lane.b32.xlu0 %v11744_v47, %s14835_s25  ;;  %5675 = vrot.lane.b32.xlu1 %v11530_v32, %s14837_s29  ;;  %s14947_s25 = smov 48   ;;  %s14949_s29 = smov 32  }
 0x2d0   : > { %8909 = vmatprep.subr.msk.mxu0 %vm1578_vm4, %v11811_v46  ;;  %8919 = vmatprep.subr.msk.mxu1 %vm1578_vm4, %v10621_v60  ;;  %v11856_v31 = vpop.permute.xlu1 %5513 }
 0x2d1   : > { %9796 = vmatmul.mubr.msk.f32.gmra.mrb[78].mxu0 %vm958_vm0, %v8882_v41  ;;  %9828 = vmatmul.mubr.msk.f32.gmra.mrb[78].mxu1 %vm958_vm0, %v8899_v22  ;;  %14948 = vst [vmem:[#allocation24_spill] sm:$0xff] %v11856_v31  ;;  %v11920_v20 = vpop.permute.xlu0 %4538 }
 0x2d2   : > { %8910 = vmatpush1.msk.msra.mxu0 %vm1578_vm4, %v11825_v49  ;;  %8920 = vmatpush1.msk.msra.mxu1 %vm1578_vm4, %v10623_v50 }
 0x2d3   : > { %4544 = vrot.lane.b32.xlu0 %v11530_v32, %s14902_s15  ;;  %5740 = vrot.lane.b32.xlu1 %v5337_v48, %s14900_s24  ;;  %v5338_v32 = vrot.slane %v11539_v36, 2 }
 0x2d4   : > { %3319 = vmatprep.mubr.f32.mxu0 %v14839_v0  ;;  %3427 = vmatprep.mubr.f32.mxu1 %v14839_v0  ;;  %v11862_v1 = vpop.permute.xlu1 %4891 }
 0x2d5   : > { %10272 = vmatprep.subr.bf16.mxu0 %v11093_v3  ;;  %10294 = vmatprep.subr.bf16.mxu1 %v11093_v3  ;;  %14950 = vst [vmem:[#allocation25_spill] sm:$0xff] %v11862_v1  ;;  %v11924_v26 = vpop.permute.xlu0 %5970 }
 0x2d6   : > { %14964 = vst [vmem:[#allocation38_spill] sm:$0xff] %v11924_v26 }
 0x2d7   : > { %5700 = vrot.lane.b32.xlu0 %v11839_v11, %s14904_s16  ;;  %5344 = vrot.lane.b32.xlu1 %v5337_v48, %s14945_s22 }
 0x2d8   : > { %v11873_v27 = vpop.permute.xlu1 %4340 }
 0x2d9   : > { %v11928_v41 = vpop.permute.xlu0 %4390 }
 0x2db   : > { %6197 = vrot.lane.b32.xlu0 %v5337_v48, %s14902_s15  ;;  %5519 = vrot.lane.b32.xlu1 %v4337_v18, %s14945_s22 }
 0x2dc   : > { %v11878_v8 = vpop.permute.xlu1 %4931 }
 0x2dd   : > { %14953 = vst [vmem:[#allocation27_spill] sm:$0xff] %v11878_v8  ;;  %v11932_v60 = vpop.permute.xlu0 %5543 }
 0x2de   : > { %14966 = vst [vmem:[#allocation40_spill] sm:$0xff] %v11932_v60 }
 0x2df   : > { %5299 = vrot.lane.b32.xlu0 %v11839_v11, %s14947_s25  ;;  %4897 = vrot.lane.b32.xlu1 %v4337_v18, %s14904_s16 }
 0x2e0   : > { %v11888_v61 = vpop.permute.xlu1 %4588 }
 0x2e1   : > { %v11936_v50 = vpop.permute.xlu0 %5094 }
 0x2e2   : > { %14968 = vst [vmem:[#allocation42_spill] sm:$0xff] %v11936_v50 }
 0x2e3   : > { %4828 = vrot.lane.b32.xlu0 %v11839_v11, %s14949_s29  ;;  %4346 = vrot.lane.b32.xlu1 %v4337_v18, %s14902_s15 }
 0x2e4   : > { %v11896_v23 = vpop.permute.xlu1 %4638 }
 0x2e5   : > { %14955 = vst [vmem:[#allocation29_spill] sm:$0xff] %v11896_v23 }
 0x2e7   : > { %5976 = vrot.lane.b32.xlu0 %v4337_v18, %s14949_s29  ;;  %4594 = vrot.lane.b32.xlu1 %v4586_v57, %s14951_s12 }
 0x2e8   : > { %v11902_v63 = vpop.permute.xlu1 %4774 }
 0x2e9   : > { %14956 = vst [vmem:[#allocation30_spill] sm:$0xff] %v11902_v63 }
 0x2eb   : > { %4937 = vrot.lane.b32.xlu0 %v4387_v7, %s14900_s24  ;;  %4644 = vrot.lane.b32.xlu1 %v11867_v2, %s14949_s29 }
 0x2ec   : > { %v11906_v12 = vpop.permute.xlu1 %5473 }
 0x2ed   : > { %14957 = vst [vmem:[#allocation31_spill] sm:$0xff] %v11906_v12 }
 0x2ef   : > { %4396 = vrot.lane.b32.xlu0 %v4387_v7, %s14951_s12  ;;  %4780 = vrot.lane.b32.xlu1 %v11539_v36, %s14951_s12 }
 0x2f0   : > { %v11910_v36 = vpop.permute.xlu1 %5671 }
 0x2f1   : > { %14958 = vst [vmem:[#allocation32_spill] sm:$0xff] %v11910_v36 }
 0x2f3   : > { %5549 = vrot.lane.b32.xlu0 %v11867_v2, %s14904_s16  ;;  %5479 = vrot.lane.b32.xlu1 %v11537_v35, %s14947_s25 }
 0x2f4   : > { %v11914_v54 = vpop.permute.xlu1 %5736 }
 0x2f5   : > { %14960 = vst [vmem:[#allocation34_spill] sm:$0xff] %v11914_v54 }
 0x2f7   : > { %5100 = vrot.lane.b32.xlu0 %v4586_v57, %s14900_s24  ;;  %5677 = vrot.lane.b32.xlu1 %v11543_v39, %s14945_s22  ;;  %v11940_v57 = vpop.permute.xlu0 %5134 }
 0x2f8   : > { %v11918_v9 = vpop.permute.xlu1 %5515  ;;  %14970 = vst [vmem:[#allocation44_spill] sm:$0xff] %v11940_v57 }
 0x2f9   : > { %14962 = vst [vmem:[#allocation36_spill] sm:$0xff] %v11918_v9 }
 0x2fb   : > { %5140 = vrot.lane.b32.xlu0 %v11867_v2, %s14947_s25  ;;  %5742 = vrot.lane.b32.xlu1 %v5338_v32, %s14900_s24 }
 0x2fc   : > { %v11922_v38 = vpop.permute.xlu1 %4893 }
 0x2fd   : > { %14963 = vst [vmem:[#allocation37_spill] sm:$0xff] %v11922_v38 }
 0x2ff   : > { %5702 = vrot.lane.b32.xlu0 %v11894_v28, %s14904_s16  ;;  %5346 = vrot.lane.b32.xlu1 %v5338_v32, %s14945_s22 }
 0x301   : > { %v11926_v34 = vpop.permute.xlu1 %4342 }
 0x302   : > { %14965 = vst [vmem:[#allocation39_spill] sm:$0xff] %v11926_v34 }
 0x303   : > { %6199 = vrot.lane.b32.xlu0 %v5338_v32, %s14902_s15  ;;  %v11944_v32 = vpop.permute.xlu0 %4540 }
 0x305   : > { %v11930_v22 = vpop.permute.xlu1 %4590 }
 0x307   : > { %5301 = vrot.lane.b32.xlu0 %v11894_v28, %s14947_s25  ;;  %v11948_v45 = vpop.permute.xlu0 %5696 }
 0x308   : > { %14973 = vst [vmem:[#allocation47_spill] sm:$0xff] %v11948_v45 }
 0x309   : > { %v11934_v48 = vpop.permute.xlu1 %4640 }
 0x30a   : > { %14967 = vst [vmem:[#allocation41_spill] sm:$0xff] %v11934_v48 }
 0x30b   : > { %4830 = vrot.lane.b32.xlu0 %v11894_v28, %s14949_s29  ;;  %v11952_v33 = vpop.permute.xlu0 %6193 }
 0x30c   : > { %14975 = vst [vmem:[#allocation49_spill] sm:$0xff] %v11952_v33 }
 0x30d   : > { %v11938_v18 = vpop.permute.xlu1 %4776 }
 0x30e   : > { %14969 = vst [vmem:[#allocation43_spill] sm:$0xff] %v11938_v18 }
 0x30f   : > { %v11956_v28 = vpop.permute.xlu0 %5295 }
 0x310   : > { %14977 = vst [vmem:[#allocation51_spill] sm:$0xff] %v11956_v28 }
 0x311   : > { %v11942_v7 = vpop.permute.xlu1 %5475 }
 0x312   : > { %14971 = vst [vmem:[#allocation45_spill] sm:$0xff] %v11942_v7 }
 0x313   : > { %v11960_v18 = vpop.permute.xlu0 %4824 }
 0x314   : > { %14979 = vst [vmem:[#allocation53_spill] sm:$0xff] %v11960_v18 }
 0x316   : > { %v11946_v0 = vpop.permute.xlu1 %5673 }
 0x317   : > { %14972 = vst [vmem:[#allocation46_spill] sm:$0xff] %v11946_v0  ;;  %v11969_v8 = vpop.permute.xlu0 %5340 }
 0x318   : > { %14982 = vst [vmem:[#allocation56_spill] sm:$0xff] %v11969_v8 }
 0x31a   : > { %v11950_v40 = vpop.permute.xlu1 %5738 }
 0x31b   : > { %14974 = vst [vmem:[#allocation48_spill] sm:$0xff] %v11950_v40 }
 0x31e   : > { %v11954_v29 = vpop.permute.xlu1 %5342 }
 0x31f   : > { %14976 = vst [vmem:[#allocation50_spill] sm:$0xff] %v11954_v29 }
 0x323   : > { %v11958_v38 = vpop.permute.xlu1 %5517 }
 0x324   : > { %14978 = vst [vmem:[#allocation52_spill] sm:$0xff] %v11958_v38 }
 0x327   : > { %v11962_v24 = vpop.permute.xlu1 %4895 }
 0x328   : > { %14980 = vst [vmem:[#allocation54_spill] sm:$0xff] %v11962_v24 }
 0x32c   : > { %v11975_v24 = vpop.permute.xlu1 %4344 }
 0x32d   : > { %14984 = vst [vmem:[#allocation58_spill] sm:$0xff] %v11975_v24 }
 0x331   : > { %v11991_v2 = vpop.permute.xlu1 %4592 }
 0x332   : > { %14989 = vst [vmem:[#allocation63_spill] sm:$0xff] %v11991_v2 }
 0x335   : > { %v12009_v26 = vpop.permute.xlu1 %4642 }
 0x336   : > { %14994 = vst [vmem:[#allocation68_spill] sm:$0xff] %v12009_v26 }
 0x360   : > { %v11964_v63 = vpop.f32.mrb[48].mxu0  ;;  %v2598_v4 = vpop.f32.mrb[48].mxu1 }
 0x361   : > { %14981 = vst [vmem:[#allocation55_spill] sm:$0xff] %v11964_v63  ;;  %4308 = vrot.lane.b32.xlu0 %v11964_v63, %s14904_s16  ;;  %v4358_v40 = vrot.slane %v11964_v63, 1  ;;  %v2599_v11 = vpop.f32.mrb[49].mxu1  ;;  %v2491_v33 = vpop.f32.mrb[49].mxu0  ;;  %v4949_v29 = vrot.slane %v11964_v63, 2 }
 0x362   : > { %v11983_v11 = vpop.permute.xlu0 %5972 }
 0x363   : > { %4909 = vrot.lane.b32.xlu1 %v4358_v40, %s14902_s15  ;;  %14987 = vst [vmem:[#allocation61_spill] sm:$0xff] %v11983_v11 }
 0x364   : > { %v11973_v28 = vpop.f32.mrb[50].mxu0  ;;  %v2602_v18 = vpop.f32.mrb[50].mxu1 }
 0x365   : > { %14983 = vst [vmem:[#allocation57_spill] sm:$0xff] %v11973_v28  ;;  %4954 = vrot.lane.b32.xlu0 %v4949_v29, %s14951_s12  ;;  %v2603_v4 = vpop.f32.mrb[51].mxu1  ;;  %v2496_v1 = vpop.f32.mrb[51].mxu0  ;;  %v4359_v29 = vrot.slane %v11973_v28, 1 }
 0x366   : > { %v5154_v37 = vrot.slane %v2496_v1, 2  ;;  %v12016_v42 = vrot.slane %v2496_v1, 1 }
 0x367   : > { %4363 = vrot.lane.b32.xlu1 %v4358_v40, %s14900_s24 }
 0x368   : > { %v11979_v57 = vpop.f32.mrb[52].mxu0  ;;  %v11981_v33 = vpop.f32.mrb[52].mxu1  ;;  %14997 = vst [vmem:[#allocation71_spill] sm:$0xff] %v12016_v42 }
 0x369   : > { %14985 = vst [vmem:[#allocation59_spill] sm:$0xff] %v11979_v57  ;;  %14986 = vst [vmem:[#allocation60_spill] sm:$0xff] %v11981_v33  ;;  %5950 = vrot.lane.b32.xlu0 %v11973_v28, %s14947_s25  ;;  %v11987_v8 = vpop.f32.mrb[53].mxu1  ;;  %v11989_v18 = vpop.f32.mrb[53].mxu0 }
 0x36a   : > { %14988 = vst [vmem:[#allocation62_spill] sm:$0xff] %v11987_v8  ;;  %v12005_v8 = vpop.permute.xlu0 %4933 }
 0x36b   : > { %5492 = vrot.lane.b32.xlu1 %v11973_v28, %s14949_s29  ;;  %14993 = vst [vmem:[#allocation67_spill] sm:$0xff] %v12005_v8 }
 0x36c   : > { %v11996_v40 = vpop.f32.mrb[54].mxu0  ;;  %v11998_v4 = vpop.f32.mrb[54].mxu1 }
 0x36d   : > { %14990 = vst [vmem:[#allocation64_spill] sm:$0xff] %v11996_v40  ;;  %14991 = vst [vmem:[#allocation65_spill] sm:$0xff] %v11998_v4  ;;  %4365 = vrot.lane.b32.xlu0 %v4359_v29, %s14900_s24  ;;  %v12001_v50 = vpop.f32.mrb[55].mxu1  ;;  %v12003_v47 = vpop.f32.mrb[55].mxu0 }
 0x36e   : > { %14992 = vst [vmem:[#allocation66_spill] sm:$0xff] %v12001_v50  ;;  %v12023_v8 = vpop.permute.xlu0 %4392 }
 0x36f   : > { %4310 = vrot.lane.b32.xlu1 %v11973_v28, %s14904_s16  ;;  %14999 = vst [vmem:[#allocation73_spill] sm:$0xff] %v12023_v8 }
 0x371   : > { %6021 = vrot.lane.b32.xlu0 %v5154_v37, %s14904_s16  ;;  %v12012_v19 = vpop.f32.mrb[56].mxu0  ;;  %v12014_v58 = vpop.f32.mrb[56].mxu1 }
 0x372   : > { %14995 = vst [vmem:[#allocation69_spill] sm:$0xff] %v12012_v19  ;;  %14996 = vst [vmem:[#allocation70_spill] sm:$0xff] %v12014_v58  ;;  %v12018_v15 = vpop.f32.mrb[57].mxu1  ;;  %v12020_v50 = vpop.f32.mrb[57].mxu0 }
 0x373   : > { %14998 = vst [vmem:[#allocation72_spill] sm:$0xff] %v12018_v15  ;;  %5074 = vrot.lane.b32.xlu1 %v2496_v1, %s14902_s15  ;;  %v12036_v15 = vpop.permute.xlu1 %4778  ;;  %v12043_v7 = vpop.permute.xlu0 %5545 }
 0x374   : > { %15002 = vst [vmem:[#allocation76_spill] sm:$0xff] %v12036_v15  ;;  %15005 = vst [vmem:[#allocation79_spill] sm:$0xff] %v12043_v7 }
 0x375   : > { %v12025_v63 = vpop.f32.mrb[58].mxu0  ;;  %5114 = vrot.lane.b32.xlu0 %v12016_v42, %s14951_s12  ;;  %v12029_v43 = vpop.f32.mrb[58].mxu1 }
 0x376   : > { %15000 = vst [vmem:[#allocation74_spill] sm:$0xff] %v12029_v43  ;;  %v12031_v54 = vpop.f32.mrb[59].mxu0  ;;  %v12033_v11 = vpop.f32.mrb[59].mxu1 }
 0x377   : > { %15001 = vst [vmem:[#allocation75_spill] sm:$0xff] %v12033_v11  ;;  %4563 = vrot.lane.b32.xlu1 %v2496_v1, %s14900_s24  ;;  %v12050_v15 = vpop.permute.xlu1 %5477 }
 0x378   : > { %15007 = vst [vmem:[#allocation81_spill] sm:$0xff] %v12050_v15 }
 0x379   : > { %v2524_v38 = vpop.f32.mrb[60].mxu0  ;;  %5159 = vrot.lane.b32.xlu0 %v5154_v37, %s14949_s29  ;;  %v12039_v45 = vpop.f32.mrb[60].mxu1 }
 0x37a   : > { %15003 = vst [vmem:[#allocation77_spill] sm:$0xff] %v12039_v45  ;;  %v12041_v44 = vpop.f32.mrb[61].mxu0  ;;  %v12045_v30 = vpop.f32.mrb[61].mxu1 }
 0x37b   : > { %15004 = vst [vmem:[#allocation78_spill] sm:$0xff] %v12041_v44  ;;  %15006 = vst [vmem:[#allocation80_spill] sm:$0xff] %v12045_v30  ;;  %5991 = vrot.lane.b32.xlu1 %v4359_v29, %s14945_s22  ;;  %v12053_v37 = vpop.permute.xlu0 %5096  ;;  %v4950_v30 = vrot.slane %v11973_v28, 2 }
 0x37c   : > { %15008 = vst [vmem:[#allocation82_spill] sm:$0xff] %v12053_v37  ;;  %v6213_v37 = vrot.slane %v11981_v33, 2 }
 0x37d   : > { %v2529_v26 = vpop.f32.mrb[62].mxu0  ;;  %5275 = vrot.lane.b32.xlu0 %v11981_v33, %s14951_s12 }
 0x37e   : > { %v2636_v1 = vpop.f32.mrb[62].mxu1  ;;  %v2530_v11 = vpop.f32.mrb[63].mxu0 }
 0x37f   : > { %v2637_v38 = vpop.f32.mrb[63].mxu1  ;;  %4911 = vrot.lane.b32.xlu1 %v4359_v29, %s14902_s15  ;;  %v12060_v11 = vrot.slane %v11981_v33, 1  ;;  %v12066_v29 = vpop.permute.xlu0 %5136 }
 0x380   : > { %v12062_v38 = vpop.permute.xlu1 %5675  ;;  %15010 = vst [vmem:[#allocation84_spill] sm:$0xff] %v12066_v29 }
 0x381   : > { %v9724_v45 = vpop.f32.mrb[64].mxu0  ;;  %5952 = vrot.lane.b32.xlu0 %v11979_v57, %s14947_s25  ;;  %15009 = vst [vmem:[#allocation83_spill] sm:$0xff] %v12062_v38 }
 0x382   : > { %v9756_v44 = vpop.f32.mrb[64].mxu1  ;;  %v2738_v26 = vpop.f32.mrb[65].mxu0 }
 0x383   : > { %v2916_v0 = vmax.f32 %v9724_v45, %v9756_v44  ;;  %v2876_v2 = vpop.f32.mrb[65].mxu1  ;;  %4956 = vrot.lane.b32.xlu1 %v4950_v30, %s14951_s12  ;;  %v12076_v38 = vpop.permute.xlu0 %4542 }
 0x384   : > { %v2915_v1 = vmax.f32 %v2738_v26, %v2876_v2  ;;  %v12072_v2 = vpop.permute.xlu1 %5740  ;;  %15012 = vst [vmem:[#allocation86_spill] sm:$0xff] %v12076_v38 }
 0x385   : > { %6173 = vrot.lane.b32.xlu0 %v12060_v11, %s14904_s16  ;;  %15011 = vst [vmem:[#allocation85_spill] sm:$0xff] %v12072_v2 }
 0x387   : > { %4613 = vrot.lane.b32.xlu1 %v12016_v42, %s14947_s25 }
 0x389   : > { %v9727_v44 = vpop.f32.mrb[66].mxu0  ;;  %v9759_v45 = vpop.f32.mrb[66].mxu1  ;;  %6218 = vrot.lane.b32.xlu0 %v6213_v37, %s14900_s24 }
 0x38a   : > { %v2918_v30 = vmax.f32 %v9727_v44, %v9759_v45  ;;  %v2748_v28 = vpop.f32.mrb[67].mxu0  ;;  %v2886_v15 = vpop.f32.mrb[67].mxu1  ;;  %v12089_v45 = vrot.slane %v11979_v57, 1 }
 0x38b   : > { %v2917_v26 = vmax.f32 %v2748_v28, %v2886_v15  ;;  %4799 = vrot.lane.b32.xlu1 %v11981_v33, %s14947_s25  ;;  %v12082_v44 = vpop.permute.xlu1 %5344  ;;  %v12091_v33 = vpop.permute.xlu0 %5698 }
 0x38c   : > { %15013 = vst [vmem:[#allocation87_spill] sm:$0xff] %v12082_v44  ;;  %15014 = vst [vmem:[#allocation88_spill] sm:$0xff] %v12091_v33 }
 0x38d   : > { %5315 = vrot.lane.b32.xlu0 %v12060_v11, %s14949_s29 }
 0x38e   : > { %v9730_v29 = vpop.f32.mrb[68].mxu0  ;;  %v9762_v36 = vpop.f32.mrb[68].mxu1 }
 0x38f   : > { %v2920_v24 = vmax.f32 %v9730_v29, %v9762_v36  ;;  %v2758_v25 = vpop.f32.mrb[69].mxu0  ;;  %v2896_v7 = vpop.f32.mrb[69].mxu1  ;;  %5494 = vrot.lane.b32.xlu1 %v11979_v57, %s14949_s29 }
 0x390   : > { %v2919_v37 = vmax.f32 %v2758_v25, %v2896_v7  ;;  %v12095_v25 = vpop.permute.xlu1 %5519  ;;  %v5155_v7 = vrot.slane %v11989_v18, 2  ;;  %v12101_v33 = vpop.permute.xlu0 %6195 }
 0x391   : > { %4849 = vrot.lane.b32.xlu0 %v12060_v11, %s14945_s22  ;;  %15015 = vst [vmem:[#allocation89_spill] sm:$0xff] %v12095_v25  ;;  %15016 = vst [vmem:[#allocation90_spill] sm:$0xff] %v12101_v33 }
 0x393   : > { %v9733_v28 = vpop.f32.mrb[70].mxu0  ;;  %v9765_v15 = vpop.f32.mrb[70].mxu1  ;;  %4312 = vrot.lane.b32.xlu1 %v11979_v57, %s14904_s16 }
 0x394   : > { %v2922_v36 = vmax.f32 %v9733_v28, %v9765_v15  ;;  %v2768_v29 = vpop.f32.mrb[71].mxu0  ;;  %v2906_v2 = vpop.f32.mrb[71].mxu1 }
 0x395   : > { %v2921_v38 = vmax.f32 %v2768_v29, %v2906_v2  ;;  %4367 = vrot.lane.b32.xlu0 %v12089_v45, %s14900_s24  ;;  %v12106_v29 = vrot.slane %v11989_v18, 1 }
 0x397   : > { %6143 = vrot.lane.b32.xlu1 %v11989_v18, %s14945_s22  ;;  %15017 = vst [vmem:[#allocation91_spill] sm:$0xff] %v12106_v29 }
 0x398   : > { %v9788_v44 = vpop.f32.mrb[72].mxu0  ;;  %v9820_v60 = vpop.f32.mrb[72].mxu1 }
 0x399   : > { %v3062_v8 = vmax.f32 %v2916_v0, %v9788_v44  ;;  %v3022_v42 = vpop.f32.mrb[73].mxu0  ;;  %v3168_v28 = vpop.f32.mrb[73].mxu1  ;;  %6023 = vrot.lane.b32.xlu0 %v5155_v7, %s14904_s16 }
 0x39a   : > { %v3061_v15 = vmax.f32 %v2915_v1, %v3022_v42  ;;  %v12113_v42 = vld [vmem:[%s14928_s2] ss:$0 sm:$0xff]  ;;  %v12116_v1 = vpop.permute.xlu1 %4897 }
 0x39b   : > { %v3208_v2 = vmax.f32 %v3062_v8, %v9820_v60  ;;  %5076 = vrot.lane.b32.xlu1 %v11989_v18, %s14902_s15  ;;  %15018 = vst [vmem:[#allocation92_spill] sm:$0xff] %v12116_v1 }
 0x39c   : > { %v3207_v25 = vmax.f32 %v3061_v15, %v3168_v28  ;;  %v9791_v9 = vpop.f32.mrb[74].mxu0  ;;  %v9823_v31 = vpop.f32.mrb[74].mxu1 }
 0x39d   : > { %v3064_v39 = vmax.f32 %v2918_v30, %v9791_v9  ;;  %v3032_v23 = vpop.f32.mrb[75].mxu0  ;;  %v3178_v0 = vpop.f32.mrb[75].mxu1  ;;  %5116 = vrot.lane.b32.xlu0 %v12106_v29, %s14951_s12  ;;  %v3216_v9 = vadd.f32 %v12113_v42, %v3208_v2 }
 0x39e   : > { %v3215_v8 = vadd.f32 %v12113_v42, %v3207_v25  ;;  %v3063_v60 = vmax.f32 %v2917_v26, %v3032_v23  ;;  %v15020_v25 = vmov 0.0  }
 0x39f   : > { %v3210_v44 = vmax.f32 %v3064_v39, %v9823_v31  ;;  %4565 = vrot.lane.b32.xlu1 %v11989_v18, %s14900_s24  ;;  %v12124_v39 = vpop.permute.xlu0 %5297  ;;  %v3224_v23 = vmax.f32 %v3216_v9, 0.0 }
 0x3a0   : > { %v3223_v30 = vmax.f32 %v3215_v8, 0.0  ;;  %v3209_v28 = vmax.f32 %v3063_v60, %v3178_v0  ;;  %v9794_v15 = vpop.f32.mrb[76].mxu0  ;;  %v9826_v33 = vpop.f32.mrb[76].mxu1  ;;  %15019 = vst [vmem:[#allocation93_spill] sm:$0xff] %v12124_v39 }
 0x3a1   : > { %v3066_v55 = vmax.f32 %v2920_v24, %v9794_v15  ;;  %v3042_v12 = vpop.f32.mrb[77].mxu0  ;;  %v3188_v34 = vpop.f32.mrb[77].mxu1  ;;  %5161 = vrot.lane.b32.xlu0 %v5155_v7, %s14949_s29  ;;  %v12185_v15 = vrot.slane %v11998_v4, 1 }
 0x3a2   : > { %v3065_v48 = vmax.f32 %v2919_v37, %v3042_v12  ;;  %8911 = vmatmul.mubr.msk.f32.vlgmr.msra.gmra.mrb[80].mxu0 %vm1553_vm5, %v3223_v30  ;;  %8921 = vmatmul.mubr.msk.f32.vlgmr.msra.gmra.mrb[80].mxu1 %vm1553_vm5, %v3223_v30  ;;  %v3217_v18 = vadd.f32 %v12113_v42, %v3209_v28 }
 0x3a3   : > { %v3212_v31 = vmax.f32 %v3066_v55, %v9826_v33  ;;  %10274 = vmatpush3.bf16.msra.mxu0 %v11093_v3  ;;  %10296 = vmatpush3.bf16.msra.mxu1 %v11093_v3  ;;  %v3218_v33 = vadd.f32 %v12113_v42, %v3210_v44 }
 0x3a4   : > { %v3211_v24 = vmax.f32 %v3065_v48, %v3188_v34  ;;  %v9797_v26 = vpop.f32.mrb[78].mxu0  ;;  %3325 = vmatprep.mubr.f32.mxu0 %v15020_v25  ;;  %3431 = vmatprep.mubr.f32.mxu1 %v15020_v25  ;;  %v12131_v12 = vpop.f32.mrb[78].mxu1 }
 0x3a5   : > { %v3068_v37 = vmax.f32 %v2922_v36, %v9797_v26  ;;  %v3052_v7 = vpop.f32.mrb[79].mxu0  ;;  %v3198_v2 = vpop.f32.mrb[79].mxu1  ;;  %5716 = vrot.lane.b32.xlu1 %v12060_v11, %s14902_s15  ;;  %10276 = vmatprep.subr.bf16.mxu0 %v11099_v5  ;;  %v3225_v36 = vmax.f32 %v3217_v18, 0.0  ;;  %v3220_v44 = vadd.f32 %v12113_v42, %v3212_v31 }
 0x3a6   : > { %v3067_v55 = vmax.f32 %v2921_v38, %v3052_v7  ;;  %8912 = vmatmul.mubr.msk.f32.gmra.mrb[82].mxu0 %vm1553_vm5, %v3224_v23  ;;  %8922 = vmatmul.mubr.msk.f32.gmra.mrb[82].mxu1 %vm1553_vm5, %v3224_v23  ;;  %v12138_v34 = vpop.permute.xlu1 %4346  ;;  %v12152_v11 = vpop.permute.xlu0 %4826  ;;  %v3226_v38 = vmax.f32 %v3218_v33, 0.0  ;;  %v3219_v8 = vadd.f32 %v12113_v42, %v3211_v24  ;;  %v6214_v24 = vrot.slane %v11998_v4, 2 }
 0x3a7   : > { %15021 = vst [vmem:[#allocation94_spill] sm:$0xff] %v12138_v34  ;;  %v3214_v48 = vmax.f32 %v3068_v37, %v12131_v12  ;;  %3331 = vmatprep.mubr.f32.mxu0 %v15020_v25  ;;  %3436 = vmatprep.mubr.f32.mxu1 %v15020_v25  ;;  %15022 = vst [vmem:[#allocation95_spill] sm:$0xff] %v12152_v11  ;;  %v3228_v31 = vmax.f32 %v3220_v44, 0.0  ;;  %v5156_v44 = vrot.slane %v12003_v47, 2 }
 0x3a8   : > { %v3213_v0 = vmax.f32 %v3067_v55, %v3198_v2  ;;  %10278 = vmatpush3.bf16.msra.mxu0 %v11099_v5  ;;  %5277 = vrot.lane.b32.xlu0 %v11998_v4, %s14951_s12  ;;  %v3227_v9 = vmax.f32 %v3219_v8, 0.0  ;;  %v8929_v55 = vld [vmem:[%s11109_s30 + $0x300] sm:$0xff] }
 0x3a9   : > { %10298 = vmatprep.subr.bf16.mxu1 %v11099_v5  ;;  %5993 = vrot.lane.b32.xlu1 %v12089_v45, %s14945_s22  ;;  %v3222_v26 = vadd.f32 %v12113_v42, %v3214_v48  ;;  %v8946_v48 = vld [vmem:[%s11109_s30 + $0x340] sm:$0xff] }
 0x3aa   : > { %8913 = vmatmul.mubr.msk.f32.gmra.mrb[84].mxu0 %vm1553_vm5, %v3225_v36  ;;  %8923 = vmatmul.mubr.msk.f32.gmra.mrb[84].mxu1 %vm1553_vm5, %v3225_v36  ;;  %v12160_v60 = vpop.permute.xlu1 %4594  ;;  %v12172_v30 = vpop.permute.xlu0 %5974  ;;  %v3221_v23 = vadd.f32 %v12113_v42, %v3213_v0  ;;  %v8930_v36 = vld [vmem:[%s11109_s30 + $0x308] sm:$0xff]  ;;  %v12241_v0 = vrot.slane %v11996_v40, 1 }
 0x3ab   : > { %10300 = vmatpush3.bf16.msra.mxu1 %v11099_v5  ;;  %3337 = vmatprep.mubr.f32.mxu0 %v15020_v25  ;;  %15023 = vst [vmem:[#allocation96_spill] sm:$0xff] %v12160_v60  ;;  %15024 = vst [vmem:[#allocation97_spill] sm:$0xff] %v12172_v30  ;;  %v3230_v7 = vmax.f32 %v3222_v26, 0.0  ;;  %v12277_v26 = vrot.slane %v12003_v47, 1 }
 0x3ac   : > { %3442 = vmatprep.mubr.f32.mxu1 %v15020_v25  ;;  %4801 = vrot.lane.b32.xlu0 %v11998_v4, %s14947_s25  ;;  %v3229_v12 = vmax.f32 %v3221_v23, 0.0  ;;  %v8932_v23 = vld [vmem:[%s11109_s30 + $0x318] sm:$0xff] }
 0x3ad   : > { %10280 = vmatprep.subr.bf16.mxu0 %v11117_v10  ;;  %4913 = vrot.lane.b32.xlu1 %v12089_v45, %s14902_s15  ;;  %v4951_v45 = vrot.slane %v11979_v57, 2  ;;  %15033 = vst [vmem:[#allocation106_spill] sm:$0xff] %v12277_v26 }
 0x3ae   : > { %8914 = vmatmul.mubr.msk.f32.gmra.mrb[86].mxu0 %vm1553_vm5, %v3226_v38  ;;  %8924 = vmatmul.mubr.msk.f32.gmra.mrb[86].mxu1 %vm1553_vm5, %v3226_v38  ;;  %v12180_v28 = vpop.permute.xlu1 %4644  ;;  %v12195_v18 = vpop.permute.xlu0 %4935  ;;  %v8947_v38 = vld [vmem:[%s11109_s30 + $0x348] sm:$0xff] }
 0x3af   : > { %10282 = vmatpush3.bf16.msra.mxu0 %v11117_v10  ;;  %10302 = vmatprep.subr.bf16.mxu1 %v11117_v10  ;;  %15025 = vst [vmem:[#allocation98_spill] sm:$0xff] %v12180_v28  ;;  %15026 = vst [vmem:[#allocation99_spill] sm:$0xff] %v12195_v18 }
 0x3b0   : > { %3343 = vmatprep.mubr.f32.mxu0 %v15020_v25  ;;  %3448 = vmatprep.mubr.f32.mxu1 %v15020_v25 }
 0x3b1   : > { %10304 = vmatpush3.bf16.msra.mxu1 %v11117_v10  ;;  %5954 = vrot.lane.b32.xlu0 %v11996_v40, %s14947_s25 }
 0x3b2   : > { %8915 = vmatmul.mubr.msk.f32.gmra.mrb[88].mxu0 %vm1553_vm5, %v3227_v9  ;;  %8925 = vmatmul.mubr.msk.f32.gmra.mrb[88].mxu1 %vm1553_vm5, %v3227_v9  ;;  %v12204_v37 = vpop.permute.xlu1 %4780  ;;  %v12219_v2 = vpop.permute.xlu0 %4394  ;;  %v8931_v9 = vld [vmem:[%s11109_s30 + $0x310] sm:$0xff] }
 0x3b3   : > { %4958 = vrot.lane.b32.xlu1 %v4951_v45, %s14951_s12  ;;  %3349 = vmatprep.mubr.f32.mxu0 %v15020_v25  ;;  %15027 = vst [vmem:[#allocation100_spill] sm:$0xff] %v12204_v37  ;;  %15028 = vst [vmem:[#allocation101_spill] sm:$0xff] %v12219_v2 }
 0x3b4   : > { %3454 = vmatprep.mubr.f32.mxu1 %v15020_v25  ;;  %10284 = vmatprep.subr.bf16.mxu0 %v11131_v13 }
 0x3b5   : > { %6175 = vrot.lane.b32.xlu0 %v12185_v15, %s14904_s16  ;;  %10286 = vmatpush3.bf16.msra.mxu0 %v11131_v13 }
 0x3b6   : > { %8916 = vmatmul.mubr.msk.f32.gmra.mrb[90].mxu0 %vm1553_vm5, %v3228_v31  ;;  %8926 = vmatmul.mubr.msk.f32.gmra.mrb[90].mxu1 %vm1553_vm5, %v3228_v31  ;;  %v12230_v33 = vpop.permute.xlu1 %5479  ;;  %v12249_v8 = vpop.permute.xlu0 %5547  ;;  %v8948_v31 = vld [vmem:[%s11109_s30 + $0x350] sm:$0xff] }
 0x3b7   : > { %10306 = vmatprep.subr.bf16.mxu1 %v11131_v13  ;;  %4615 = vrot.lane.b32.xlu1 %v12106_v29, %s14947_s25  ;;  %15029 = vst [vmem:[#allocation102_spill] sm:$0xff] %v12230_v33  ;;  %15030 = vst [vmem:[#allocation103_spill] sm:$0xff] %v12249_v8 }
 0x3b8   : > { %10308 = vmatpush3.bf16.msra.mxu1 %v11131_v13  ;;  %3354 = vmatprep.mubr.f32.mxu0 %v15020_v25 }
 0x3b9   : > { %3460 = vmatprep.mubr.f32.mxu1 %v15020_v25  ;;  %6220 = vrot.lane.b32.xlu0 %v6214_v24, %s14900_s24  ;;  %v8949_v24 = vld [vmem:[%s11109_s30 + $0x358] sm:$0xff] }
 0x3ba   : > { %8917 = vmatmul.mubr.msk.f32.gmra.mrb[92].mxu0 %vm1553_vm5, %v3229_v12  ;;  %8927 = vmatmul.mubr.msk.f32.gmra.mrb[92].mxu1 %vm1553_vm5, %v3229_v12  ;;  %v12258_v45 = vpop.permute.xlu1 %5677  ;;  %v8933_v12 = vld [vmem:[%s11109_s30 + $0x320] sm:$0xff] }
 0x3bb   : > { %10289 = vmatprep.subr.msk.bf16.mxu0 %vm11145_vm3, %v11143_v16  ;;  %5496 = vrot.lane.b32.xlu1 %v11996_v40, %s14949_s29  ;;  %15031 = vst [vmem:[#allocation104_spill] sm:$0xff] %v12258_v45 }
 0x3bc   : > { %10292 = vmatpush3.bf16.msk.msra.mxu0 %vm11145_vm3, %v11143_v16  ;;  %3358 = vmatprep.mubr.f32.mxu0 %v15020_v25 }
 0x3bd   : > { %3466 = vmatprep.mubr.f32.mxu1 %v15020_v25  ;;  %10311 = vmatprep.subr.msk.bf16.mxu1 %vm11145_vm3, %v11143_v16 }
 0x3be   : > { %5317 = vrot.lane.b32.xlu0 %v12185_v15, %s14949_s29  ;;  %8918 = vmatmul.mubr.msk.f32.gmra.mrb[94].mxu0 %vm1553_vm5, %v3230_v7 }
 0x3bf   : > { %8928 = vmatmul.mubr.msk.f32.gmra.mrb[94].mxu1 %vm1553_vm5, %v3230_v7  ;;  %4314 = vrot.lane.b32.xlu1 %v11996_v40, %s14904_s16  ;;  %v8950_v7 = vld [vmem:[%s11109_s30 + $0x360] sm:$0xff] }
 0x3c0   : > { %10314 = vmatpush3.bf16.msk.msra.mxu1 %vm11145_vm3, %v11143_v16  ;;  %9850 = vmatprep.mubr.msk.f32.mxu0 %vm958_vm0, %v8929_v55  ;;  %v12283_v55 = vpop.permute.xlu1 %5742 }
 0x3c1   : > { %9882 = vmatprep.mubr.msk.f32.mxu1 %vm958_vm0, %v8946_v48  ;;  %10316 = vmatprep.subr.bf16.mxu0 %v11093_v3  ;;  %15034 = vst [vmem:[#allocation107_spill] sm:$0xff] %v12283_v55  ;;  %v8951_v48 = vld [vmem:[%s11109_s30 + $0x368] sm:$0xff] }
 0x3c2   : > { %4369 = vrot.lane.b32.xlu0 %v12241_v0, %s14900_s24  ;;  %9851 = vmatmul.mubr.msk.f32.vlgmr.msra.gmra.mrb[96].mxu0 %vm958_vm0, %v8930_v36  ;;  %v8935_v36 = vld [vmem:[%s11109_s30 + $0x330] sm:$0xff] }
 0x3c3   : > { %9883 = vmatmul.mubr.msk.f32.vlgmr.msra.gmra.mrb[96].mxu1 %vm958_vm0, %v8947_v38  ;;  %10318 = vmatpush3.bf16.msra.mxu0 %v11093_v3 }
 0x3c4   : > { %10338 = vmatprep.subr.bf16.mxu1 %v11093_v3  ;;  %6145 = vrot.lane.b32.xlu1 %v12003_v47, %s14945_s22 }
 0x3c5   : > { %10340 = vmatpush3.bf16.msra.mxu1 %v11093_v3  ;;  %10320 = vmatprep.subr.bf16.mxu0 %v11099_v5  ;;  %v12272_v3 = vpop.permute.xlu0 %5098 }
 0x3c6   : > { %6025 = vrot.lane.b32.xlu0 %v5156_v44, %s14904_s16  ;;  %10342 = vmatprep.subr.bf16.mxu1 %v11099_v5  ;;  %15032 = vst [vmem:[#allocation105_spill] sm:$0xff] %v12272_v3 }
 0x3c7   : > { %10322 = vmatpush3.bf16.msra.mxu0 %v11099_v5  ;;  %9853 = vmatprep.mubr.msk.f32.mxu0 %vm958_vm0, %v8931_v9  ;;  %v8952_v9 = vld [vmem:[%s11109_s30 + $0x370] sm:$0xff] }
 0x3c8   : > { %9885 = vmatprep.mubr.msk.f32.mxu1 %vm958_vm0, %v8948_v31  ;;  %5078 = vrot.lane.b32.xlu1 %v12003_v47, %s14902_s15  ;;  %v12306_v31 = vpop.permute.xlu1 %5346 }
 0x3c9   : > { %10344 = vmatpush3.bf16.msra.mxu1 %v11099_v5  ;;  %9854 = vmatmul.mubr.msk.f32.gmra.mrb[98].mxu0 %vm958_vm0, %v8932_v23  ;;  %v8934_v5 = vld [vmem:[%s11109_s30 + $0x328] sm:$0xff]  ;;  %v12298_v38 = vpop.permute.xlu0 %5138  ;;  %15036 = vst [vmem:[#allocation109_spill] sm:$0xff] %v12306_v31 }
 0x3ca   : > { %9886 = vmatmul.mubr.msk.f32.gmra.mrb[98].mxu1 %vm958_vm0, %v8949_v24  ;;  %10324 = vmatprep.subr.bf16.mxu0 %v11117_v10  ;;  %15035 = vst [vmem:[#allocation108_spill] sm:$0xff] %v12298_v38  ;;  %v8980_v24 = vld [vmem:[%s11109_s30 + $0x3c0] sm:$0xff] }
 0x3cb   : > { %5118 = vrot.lane.b32.xlu0 %v12277_v26, %s14951_s12  ;;  %10326 = vmatpush3.bf16.msra.mxu0 %v11117_v10 }
 0x3cc   : > { %10346 = vmatprep.subr.bf16.mxu1 %v11117_v10  ;;  %9856 = vmatprep.mubr.msk.f32.mxu0 %vm958_vm0, %v8933_v12 }
 0x3cd   : > { %9888 = vmatprep.mubr.msk.f32.mxu1 %vm958_vm0, %v8950_v7  ;;  %10348 = vmatpush3.bf16.msra.mxu1 %v11117_v10  ;;  %v8936_v10 = vld [vmem:[%s11109_s30 + $0x338] sm:$0xff]  ;;  %v12321_v23 = vpop.permute.xlu0 %4544  ;;  %v8965_v7 = vld [vmem:[%s11109_s30 + $0x390] sm:$0xff] }
 0x3ce   : > { %4567 = vrot.lane.b32.xlu1 %v12003_v47, %s14900_s24  ;;  %9857 = vmatmul.mubr.msk.f32.gmra.mrb[100].mxu0 %vm958_vm0, %v8934_v5  ;;  %v8953_v47 = vld [vmem:[%s11109_s30 + $0x378] sm:$0xff]  ;;  %15037 = vst [vmem:[#allocation110_spill] sm:$0xff] %v12321_v23  ;;  %v8981_v5 = vld [vmem:[%s11109_s30 + $0x3c8] sm:$0xff] }
 0x3cf   : > { %9889 = vmatmul.mubr.msk.f32.gmra.mrb[100].mxu1 %vm958_vm0, %v8951_v48  ;;  %10328 = vmatprep.subr.bf16.mxu0 %v11131_v13  ;;  %v8982_v48 = vld [vmem:[%s11109_s30 + $0x3d0] sm:$0xff] }
 0x3d0   : > { %5163 = vrot.lane.b32.xlu0 %v5156_v44, %s14949_s29  ;;  %10330 = vmatpush3.bf16.msra.mxu0 %v11131_v13  ;;  %v8963_v44 = vld [vmem:[%s11109_s30 + $0x380] sm:$0xff] }
 0x3d1   : > { %10350 = vmatprep.subr.bf16.mxu1 %v11131_v13  ;;  %9859 = vmatprep.mubr.msk.f32.mxu0 %vm958_vm0, %v8935_v36  ;;  %v8966_v36 = vld [vmem:[%s11109_s30 + $0x398] sm:$0xff]  ;;  %v12353_v17 = vpop.permute.xlu0 %5700 }
 0x3d2   : > { %9891 = vmatprep.mubr.msk.f32.mxu1 %vm958_vm0, %v8952_v9  ;;  %10352 = vmatpush3.bf16.msra.mxu1 %v11131_v13  ;;  %v8964_v13 = vld [vmem:[%s11109_s30 + $0x388] sm:$0xff]  ;;  %15039 = vst [vmem:[#allocation112_spill] sm:$0xff] %v12353_v17 }
 0x3d3   : > { %5718 = vrot.lane.b32.xlu1 %v12185_v15, %s14902_s15  ;;  %9860 = vmatmul.mubr.msk.f32.gmra.mrb[102].mxu0 %vm958_vm0, %v8936_v10  ;;  %v8984_v10 = vld [vmem:[%s11109_s30 + $0x3e0] sm:$0xff] }
 0x3d4   : > { %9892 = vmatmul.mubr.msk.f32.gmra.mrb[102].mxu1 %vm958_vm0, %v8953_v47  ;;  %10333 = vmatprep.subr.msk.bf16.mxu0 %vm11145_vm3, %v11143_v16  ;;  %v8968_v47 = vld [vmem:[%s11109_s30 + $0x3a8] sm:$0xff] }
 0x3d5   : > { %5279 = vrot.lane.b32.xlu0 %v12014_v58, %s14951_s12  ;;  %10336 = vmatpush3.bf16.msk.msra.mxu0 %vm11145_vm3, %v11143_v16  ;;  %v12330_v12 = vpop.permute.xlu1 %4909 }
 0x3d6   : > { %15038 = vst [vmem:[#allocation111_spill] sm:$0xff] %v12330_v12  ;;  %10355 = vmatprep.subr.msk.bf16.mxu1 %vm11145_vm3, %v11143_v16  ;;  %9914 = vmatprep.mubr.msk.f32.mxu0 %vm958_vm0, %v8963_v44  ;;  %v8969_v44 = vld [vmem:[%s11109_s30 + $0x3b0] sm:$0xff] }
 0x3d7   : > { %10358 = vmatpush3.bf16.msk.msra.mxu1 %vm11145_vm3, %v11143_v16  ;;  %4851 = vrot.lane.b32.xlu1 %v12185_v15, %s14945_s22  ;;  %v8967_v16 = vld [vmem:[%s11109_s30 + $0x3a0] sm:$0xff]  ;;  %v8983_v15 = vld [vmem:[%s11109_s30 + $0x3d8] sm:$0xff] }
 0x3d8   : > { %9915 = vmatmul.mubr.msk.f32.vlgmr.msra.gmra.mrb[104].mxu0 %vm958_vm0, %v8964_v13  ;;  %9946 = vmatprep.mubr.msk.f32.mxu1 %vm958_vm0, %v8980_v24  ;;  %v4846_v13 = vrot.slane %v12014_v58, 1  ;;  %v8985_v24 = vld [vmem:[%s11109_s30 + $0x3e8] sm:$0xff] }
 0x3d9   : > { %4803 = vrot.lane.b32.xlu0 %v12014_v58, %s14947_s25  ;;  %9917 = vmatprep.mubr.msk.f32.mxu0 %vm958_vm0, %v8965_v7  ;;  %v12359_v9 = vpop.permute.xlu1 %4363  ;;  %v8986_v7 = vld [vmem:[%s11109_s30 + $0x3f0] sm:$0xff] }
 0x3da   : > { %9947 = vmatmul.mubr.msk.f32.vlgmr.msra.gmra.mrb[104].mxu1 %vm958_vm0, %v8981_v5  ;;  %10518 = vmatprep.subr.bf16.mxu1 %v11260_v51  ;;  %v12380_v5 = vpop.permute.xlu0 %6197 }
 0x3db   : > { %5995 = vrot.lane.b32.xlu1 %v12241_v0, %s14945_s22  ;;  %9949 = vmatprep.mubr.msk.f32.mxu1 %vm958_vm0, %v8982_v48  ;;  %15040 = vst [vmem:[#allocation113_spill] sm:$0xff] %v12380_v5 }
 0x3dc   : > { %9918 = vmatmul.mubr.msk.f32.gmra.mrb[106].mxu0 %vm958_vm0, %v8966_v36  ;;  %10520 = vmatpush1.bf16.msra.mxu1 %v11265_v53  ;;  %v6215_v36 = vrot.slane %v12014_v58, 2 }
 0x3dd   : > { %5956 = vrot.lane.b32.xlu0 %v12012_v19, %s14947_s25  ;;  %9920 = vmatprep.mubr.msk.f32.mxu0 %vm958_vm0, %v8967_v16  ;;  %v12386_v48 = vpop.permute.xlu1 %5492  ;;  %v8987_v16 = vld [vmem:[%s11109_s30 + $0x3f8] sm:$0xff] }
 0x3de   : > { %9950 = vmatmul.mubr.msk.f32.gmra.mrb[106].mxu1 %vm958_vm0, %v8983_v15  ;;  %10360 = vmatprep.subr.bf16.mxu0 %v11260_v51  ;;  %v4952_v51 = vrot.slane %v11996_v40, 2  ;;  %15041 = vst [vmem:[#allocation114_spill] sm:$0xff] %v12386_v48 }
 0x3df   : > { %4915 = vrot.lane.b32.xlu1 %v12241_v0, %s14902_s15  ;;  %9952 = vmatprep.mubr.msk.f32.mxu1 %vm958_vm0, %v8984_v10  ;;  %v8970_v0 = vld [vmem:[%s11109_s30 + $0x3b8] sm:$0xff]  ;;  %s15322_s30 = smov 96  }
 0x3e0   : > { %9921 = vmatmul.mubr.msk.f32.gmra.mrb[108].mxu0 %vm958_vm0, %v8968_v47  ;;  %10519 = vmatprep.subr.msk.mxu1 %vm1578_vm4, %v11811_v46  ;;  %v5157_v47 = vrot.slane %v12020_v50, 2 }
 0x3e1   : > { %6177 = vrot.lane.b32.xlu0 %v4846_v13, %s14904_s16  ;;  %9923 = vmatprep.mubr.msk.f32.mxu0 %vm958_vm0, %v8969_v44  ;;  %v12407_v15 = vpop.permute.xlu1 %4310 }
 0x3e2   : > { %9953 = vmatmul.mubr.msk.f32.gmra.mrb[108].mxu1 %vm958_vm0, %v8985_v24  ;;  %10362 = vmatpush1.bf16.msra.mxu0 %v11265_v53  ;;  %v12403_v53 = vpop.permute.xlu0 %5299  ;;  %v12432_v24 = vrot.slane %v12020_v50, 1 }
 0x3e3   : > { %4960 = vrot.lane.b32.xlu1 %v4952_v51, %s14951_s12  ;;  %9955 = vmatprep.mubr.msk.f32.mxu1 %vm958_vm0, %v8986_v7  ;;  %15042 = vst [vmem:[#allocation115_spill] sm:$0xff] %v12403_v53 }
 0x3e4   : > { %9924 = vmatmul.mubr.msk.f32.gmra.mrb[110].mxu0 %vm958_vm0, %v8970_v0  ;;  %10521 = vmatpush1.msk.msra.mxu1 %vm1578_vm4, %v11825_v49  ;;  %15046 = vst [vmem:[#allocation119_spill] sm:$0xff] %v12432_v24 }
 0x3e5   : > { %6222 = vrot.lane.b32.xlu0 %v6215_v36, %s14900_s24  ;;  %8997 = vmatprep.subr.msk.mxu0 %vm1578_vm4, %v11811_v46  ;;  %v4362_v46 = vrot.slane %v12012_v19, 1  ;;  %v12418_v10 = vpop.permute.xlu1 %5074 }
 0x3e6   : > { %9956 = vmatmul.mubr.msk.f32.gmra.mrb[110].mxu1 %vm958_vm0, %v8987_v16  ;;  %8998 = vmatpush1.msk.msra.mxu0 %vm1578_vm4, %v11825_v49  ;;  %v12416_v49 = vpop.permute.xlu0 %4828  ;;  %15044 = vst [vmem:[#allocation117_spill] sm:$0xff] %v12418_v10  ;;  %v4847_v16 = vrot.slane %v12029_v43, 1 }
 0x3e7   : > { %4617 = vrot.lane.b32.xlu1 %v12277_v26, %s14947_s25  ;;  %4157 = vmatprep.mubr.f32.mxu1 %v15020_v25  ;;  %15043 = vst [vmem:[#allocation116_spill] sm:$0xff] %v12416_v49 }
 0x3e8   : > { %4151 = vmatprep.mubr.f32.mxu0 %v15020_v25  ;;  %10364 = vmatprep.subr.bf16.mxu1 %v11275_v56 }
 0x3e9   : > { %5319 = vrot.lane.b32.xlu0 %v4846_v13, %s14949_s29  ;;  %v12427_v44 = vpop.permute.xlu1 %4563 }
 0x3ea   : > { %v12425_v56 = vpop.permute.xlu0 %5976 }
 0x3eb   : > { %5498 = vrot.lane.b32.xlu1 %v12012_v19, %s14949_s29  ;;  %15045 = vst [vmem:[#allocation118_spill] sm:$0xff] %v12425_v56 }
 0x3ed   : > { %4371 = vrot.lane.b32.xlu0 %v4362_v46, %s14900_s24  ;;  %v12440_v51 = vpop.permute.xlu1 %5991 }
 0x3ee   : > { %v12438_v7 = vpop.permute.xlu0 %4937  ;;  %15048 = vst [vmem:[#allocation121_spill] sm:$0xff] %v12440_v51 }
 0x3ef   : > { %4316 = vrot.lane.b32.xlu1 %v12012_v19, %s14904_s16  ;;  %15047 = vst [vmem:[#allocation120_spill] sm:$0xff] %v12438_v7 }
 0x3f1   : > { %6027 = vrot.lane.b32.xlu0 %v5157_v47, %s14904_s16  ;;  %v12449_v36 = vpop.permute.xlu1 %4911 }
 0x3f2   : > { %v12447_v0 = vpop.permute.xlu0 %4396  ;;  %15050 = vst [vmem:[#allocation123_spill] sm:$0xff] %v12449_v36 }
 0x3f3   : > { %6147 = vrot.lane.b32.xlu1 %v12020_v50, %s14945_s22  ;;  %15049 = vst [vmem:[#allocation122_spill] sm:$0xff] %v12447_v0 }
 0x3f5   : > { %5120 = vrot.lane.b32.xlu0 %v12432_v24, %s14951_s12  ;;  %v12458_v31 = vpop.permute.xlu1 %4956 }
 0x3f6   : > { %15052 = vst [vmem:[#allocation125_spill] sm:$0xff] %v12458_v31 }
 0x3f7   : > { %5080 = vrot.lane.b32.xlu1 %v12020_v50, %s14902_s15 }
 0x3f9   : > { %5165 = vrot.lane.b32.xlu0 %v5157_v47, %s14949_s29  ;;  %v12456_v47 = vpop.permute.xlu0 %5549  ;;  %v12466_v55 = vpop.permute.xlu1 %4613 }
 0x3fa   : > { %15051 = vst [vmem:[#allocation124_spill] sm:$0xff] %v12456_v47 }
 0x3fb   : > { %4569 = vrot.lane.b32.xlu1 %v12020_v50, %s14900_s24  ;;  %v6216_v50 = vrot.slane %v12029_v43, 2 }
 0x3fd   : > { %5281 = vrot.lane.b32.xlu0 %v12029_v43, %s14951_s12  ;;  %v12464_v37 = vpop.permute.xlu0 %5100  ;;  %v12474_v49 = vpop.permute.xlu1 %4799 }
 0x3fe   : > { %15053 = vst [vmem:[#allocation126_spill] sm:$0xff] %v12464_v37  ;;  %15055 = vst [vmem:[#allocation128_spill] sm:$0xff] %v12474_v49 }
 0x3ff   : > { %5720 = vrot.lane.b32.xlu1 %v4846_v13, %s14902_s15 }
 0x401   : > { %4805 = vrot.lane.b32.xlu0 %v12029_v43, %s14947_s25  ;;  %v12472_v53 = vpop.permute.xlu0 %5140  ;;  %v12480_v37 = vpop.permute.xlu1 %5494 }
 0x402   : > { %15054 = vst [vmem:[#allocation127_spill] sm:$0xff] %v12472_v53  ;;  %15057 = vst [vmem:[#allocation130_spill] sm:$0xff] %v12480_v37 }
 0x403   : > { %4853 = vrot.lane.b32.xlu1 %v4846_v13, %s14945_s22  ;;  %v4953_v13 = vrot.slane %v12012_v19, 2 }
 0x405   : > { %6179 = vrot.lane.b32.xlu0 %v4847_v16, %s14904_s16  ;;  %v12487_v17 = vpop.permute.xlu1 %4312 }
 0x407   : > { %5997 = vrot.lane.b32.xlu1 %v4362_v46, %s14945_s22 }
 0x409   : > { %6224 = vrot.lane.b32.xlu0 %v6216_v50, %s14900_s24  ;;  %v12478_v50 = vpop.permute.xlu0 %5702  ;;  %v12492_v53 = vpop.permute.xlu1 %6143 }
 0x40a   : > { %15056 = vst [vmem:[#allocation129_spill] sm:$0xff] %v12478_v50  ;;  %15060 = vst [vmem:[#allocation133_spill] sm:$0xff] %v12492_v53 }
 0x40b   : > { %4917 = vrot.lane.b32.xlu1 %v4362_v46, %s14902_s15 }
 0x40d   : > { %5321 = vrot.lane.b32.xlu0 %v4847_v16, %s14949_s29  ;;  %v12485_v46 = vpop.permute.xlu0 %6199  ;;  %v12496_v50 = vpop.permute.xlu1 %5076 }
 0x40e   : > { %15058 = vst [vmem:[#allocation131_spill] sm:$0xff] %v12485_v46  ;;  %15062 = vst [vmem:[#allocation135_spill] sm:$0xff] %v12496_v50 }
 0x40f   : > { %4962 = vrot.lane.b32.xlu1 %v4953_v13, %s14951_s12 }
 0x411   : > { %v12490_v13 = vpop.permute.xlu0 %5301  ;;  %v12500_v40 = vpop.permute.xlu1 %4565 }
 0x412   : > { %15059 = vst [vmem:[#allocation132_spill] sm:$0xff] %v12490_v13 }
 0x413   : > { %4619 = vrot.lane.b32.xlu1 %v12432_v24, %s14947_s25 }
 0x415   : > { %v12494_v18 = vpop.permute.xlu0 %4830 }
 0x416   : > { %15061 = vst [vmem:[#allocation134_spill] sm:$0xff] %v12494_v18 }
 0x417   : > { %6149 = vrot.lane.b32.xlu1 %v12031_v54, %s14945_s22  ;;  %v12504_v39 = vpop.permute.xlu1 %5716 }
 0x418   : > { %15064 = vst [vmem:[#allocation137_spill] sm:$0xff] %v12504_v39 }
 0x419   : > { %v12498_v38 = vpop.permute.xlu0 %4308 }
 0x41b   : > { %5722 = vrot.lane.b32.xlu1 %v4847_v16, %s14902_s15  ;;  %v12508_v46 = vpop.permute.xlu1 %5993 }
 0x41c   : > { %15066 = vst [vmem:[#allocation139_spill] sm:$0xff] %v12508_v46 }
 0x41d   : > { %v12502_v3 = vpop.permute.xlu0 %4954 }
 0x41e   : > { %15063 = vst [vmem:[#allocation136_spill] sm:$0xff] %v12502_v3 }
 0x41f   : > { %4855 = vrot.lane.b32.xlu1 %v4847_v16, %s14945_s22  ;;  %v12512_v13 = vpop.permute.xlu1 %4913 }
 0x420   : > { %15067 = vst [vmem:[#allocation140_spill] sm:$0xff] %v12512_v13 }
 0x421   : > { %v12506_v11 = vpop.permute.xlu0 %5950 }
 0x422   : > { %15065 = vst [vmem:[#allocation138_spill] sm:$0xff] %v12506_v11 }
 0x425   : > { %v12510_v16 = vpop.permute.xlu0 %4365  ;;  %v12516_v18 = vpop.permute.xlu1 %4958 }
 0x426   : > { %15069 = vst [vmem:[#allocation142_spill] sm:$0xff] %v12516_v18 }
 0x429   : > { %v12514_v57 = vpop.permute.xlu0 %6021  ;;  %v12520_v49 = vpop.permute.xlu1 %4615 }
 0x42a   : > { %15068 = vst [vmem:[#allocation141_spill] sm:$0xff] %v12514_v57 }
 0x42d   : > { %v12518_v50 = vpop.permute.xlu0 %5114  ;;  %v12524_v31 = vpop.permute.xlu1 %5496 }
 0x42e   : > { %15070 = vst [vmem:[#allocation143_spill] sm:$0xff] %v12518_v50  ;;  %15072 = vst [vmem:[#allocation145_spill] sm:$0xff] %v12524_v31 }
 0x431   : > { %v12522_v5 = vpop.permute.xlu0 %5159  ;;  %v12528_v36 = vpop.permute.xlu1 %4314 }
 0x432   : > { %15071 = vst [vmem:[#allocation144_spill] sm:$0xff] %v12522_v5  ;;  %15074 = vst [vmem:[#allocation147_spill] sm:$0xff] %v12528_v36 }
 0x435   : > { %v12526_v53 = vpop.permute.xlu0 %5275 }
 0x436   : > { %15073 = vst [vmem:[#allocation146_spill] sm:$0xff] %v12526_v53  ;;  %v12532_v10 = vpop.permute.xlu1 %6145 }
 0x437   : > { %15076 = vst [vmem:[#allocation149_spill] sm:$0xff] %v12532_v10 }
 0x439   : > { %v12530_v33 = vpop.permute.xlu0 %5952 }
 0x43a   : > { %15075 = vst [vmem:[#allocation148_spill] sm:$0xff] %v12530_v33  ;;  %v12536_v56 = vpop.permute.xlu1 %5078 }
 0x43b   : > { %15078 = vst [vmem:[#allocation151_spill] sm:$0xff] %v12536_v56 }
 0x43d   : > { %v12534_v13 = vpop.permute.xlu0 %6173 }
 0x43e   : > { %15077 = vst [vmem:[#allocation150_spill] sm:$0xff] %v12534_v13 }
 0x440   : > { %v12540_v50 = vpop.permute.xlu1 %4567 }
 0x441   : > { %v12538_v18 = vpop.permute.xlu0 %6218  ;;  %15080 = vst [vmem:[#allocation153_spill] sm:$0xff] %v12540_v50 }
 0x442   : > { %15079 = vst [vmem:[#allocation152_spill] sm:$0xff] %v12538_v18 }
 0x445   : > { %v12542_v43 = vpop.permute.xlu0 %5315  ;;  %v12544_v5 = vpop.permute.xlu1 %5718 }
 0x446   : > { %15081 = vst [vmem:[#allocation154_spill] sm:$0xff] %v12542_v43  ;;  %15082 = vst [vmem:[#allocation155_spill] sm:$0xff] %v12544_v5 }
 0x449   : > { %v12546_v57 = vpop.permute.xlu0 %4849  ;;  %v12555_v56 = vpop.permute.xlu1 %4851 }
 0x44a   : > { %15083 = vst [vmem:[#allocation156_spill] sm:$0xff] %v12546_v57  ;;  %15085 = vst [vmem:[#allocation158_spill] sm:$0xff] %v12555_v56 }
 0x44d   : > { %v12569_v47 = vpop.permute.xlu1 %5995 }
 0x44e   : > { %15088 = vst [vmem:[#allocation161_spill] sm:$0xff] %v12569_v47 }
 0x475   : > { %v12548_v53 = vpop.f32.mrb[80].mxu0  ;;  %v3429_v51 = vpop.f32.mrb[80].mxu1 }
 0x476   : > { %v4458_v45 = vrot.slane %v12548_v53, 1  ;;  %4413 = vrot.lane.b32.xlu1 %v12548_v53, %s14947_s25  ;;  %v12553_v13 = vpop.f32.mrb[81].mxu0  ;;  %v3430_v18 = vpop.f32.mrb[81].mxu1  ;;  %v5445_v5 = vrot.slane %v12548_v53, 2 }
 0x477   : > { %15084 = vst [vmem:[#allocation157_spill] sm:$0xff] %v12553_v13  ;;  %v12566_v51 = vpop.permute.xlu0 %4367 }
 0x478   : > { %5865 = vrot.lane.b32.xlu0 %v4458_v45, %s14904_s16  ;;  %15087 = vst [vmem:[#allocation160_spill] sm:$0xff] %v12566_v51 }
 0x479   : > { %v12558_v43 = vpop.f32.mrb[82].mxu0  ;;  %v12561_v57 = vpop.f32.mrb[82].mxu1 }
 0x47a   : > { %15086 = vst [vmem:[#allocation159_spill] sm:$0xff] %v12561_v57  ;;  %5405 = vrot.lane.b32.xlu1 %v4458_v45, %s14902_s15  ;;  %v12564_v30 = vpop.f32.mrb[83].mxu0  ;;  %v3435_v3 = vpop.f32.mrb[83].mxu1  ;;  %v5446_v33 = vrot.slane %v12558_v43, 2 }
 0x47b   : > { %v12581_v10 = vpop.permute.xlu0 %6023  ;;  %v12586_v3 = vrot.slane %v12558_v43, 1  ;;  %v12649_v34 = vrot.slane %v12564_v30, 2 }
 0x47c   : > { %5905 = vrot.lane.b32.xlu0 %v5445_v5, %s14900_s24  ;;  %15091 = vst [vmem:[#allocation164_spill] sm:$0xff] %v12581_v10 }
 0x47d   : > { %v12571_v18 = vpop.f32.mrb[84].mxu0  ;;  %v12573_v56 = vpop.f32.mrb[84].mxu1  ;;  %15106 = vst [vmem:[#allocation179_spill] sm:$0xff] %v12649_v34 }
 0x47e   : > { %15089 = vst [vmem:[#allocation162_spill] sm:$0xff] %v12571_v18  ;;  %5450 = vrot.lane.b32.xlu1 %v5445_v5, %s14951_s12  ;;  %v12576_v24 = vpop.f32.mrb[85].mxu0  ;;  %v12578_v11 = vpop.f32.mrb[85].mxu1  ;;  %v12675_v4 = vrot.slane %v12573_v56, 2 }
 0x47f   : > { %15090 = vst [vmem:[#allocation163_spill] sm:$0xff] %v12578_v11  ;;  %v12593_v5 = vpop.permute.xlu1 %4915  ;;  %v14865_v11 = vrot.slane %v12553_v13, 2  ;;  %v12609_v39 = vpop.permute.xlu0 %5116 }
 0x480   : > { %4994 = vrot.lane.b32.xlu0 %v4458_v45, %s14949_s29  ;;  %15093 = vst [vmem:[#allocation166_spill] sm:$0xff] %v12593_v5  ;;  %15096 = vst [vmem:[#allocation169_spill] sm:$0xff] %v12609_v39 }
 0x481   : > { %v12583_v12 = vpop.f32.mrb[86].mxu0  ;;  %v12588_v47 = vpop.f32.mrb[86].mxu1 }
 0x482   : > { %15092 = vst [vmem:[#allocation165_spill] sm:$0xff] %v12583_v12  ;;  %4463 = vrot.lane.b32.xlu1 %v4458_v45, %s14945_s22  ;;  %v12591_v58 = vpop.f32.mrb[87].mxu0  ;;  %v12595_v46 = vpop.f32.mrb[87].mxu1 }
 0x483   : > { %15094 = vst [vmem:[#allocation167_spill] sm:$0xff] %v12595_v46  ;;  %v12615_v46 = vpop.permute.xlu1 %4960 }
 0x484   : > { %5407 = vrot.lane.b32.xlu0 %v12586_v3, %s14902_s15  ;;  %15098 = vst [vmem:[#allocation171_spill] sm:$0xff] %v12615_v46 }
 0x485   : > { %v12600_v10 = vpop.f32.mrb[88].mxu0  ;;  %v12602_v8 = vpop.f32.mrb[88].mxu1 }
 0x486   : > { %15095 = vst [vmem:[#allocation168_spill] sm:$0xff] %v12600_v10  ;;  %4513 = vrot.lane.b32.xlu1 %v14865_v11, %s14904_s16  ;;  %v12607_v45 = vpop.f32.mrb[89].mxu0  ;;  %v12611_v5 = vpop.f32.mrb[89].mxu1 }
 0x487   : > { %15097 = vst [vmem:[#allocation170_spill] sm:$0xff] %v12611_v5  ;;  %v12627_v5 = vpop.permute.xlu0 %5161  ;;  %v12633_v46 = vpop.permute.xlu1 %4617 }
 0x488   : > { %5867 = vrot.lane.b32.xlu0 %v12586_v3, %s14904_s16  ;;  %15100 = vst [vmem:[#allocation173_spill] sm:$0xff] %v12627_v5  ;;  %15102 = vst [vmem:[#allocation175_spill] sm:$0xff] %v12633_v46 }
 0x489   : > { %v3351_v26 = vpop.f32.mrb[90].mxu0  ;;  %v12618_v31 = vpop.f32.mrb[90].mxu1 }
 0x48a   : > { %4415 = vrot.lane.b32.xlu1 %v12558_v43, %s14947_s25  ;;  %v12622_v11 = vpop.f32.mrb[91].mxu0  ;;  %v12624_v13 = vpop.f32.mrb[91].mxu1 }
 0x48b   : > { %15099 = vst [vmem:[#allocation172_spill] sm:$0xff] %v12624_v13  ;;  %v5603_v13 = vrot.slane %v12564_v30, 1  ;;  %v12646_v23 = vpop.permute.xlu1 %5498 }
 0x48c   : > { %5907 = vrot.lane.b32.xlu0 %v5446_v33, %s14900_s24  ;;  %15105 = vst [vmem:[#allocation178_spill] sm:$0xff] %v12646_v23 }
 0x48d   : > { %v3356_v39 = vpop.f32.mrb[92].mxu0  ;;  %v12629_v28 = vpop.f32.mrb[92].mxu1 }
 0x48e   : > { %15101 = vst [vmem:[#allocation174_spill] sm:$0xff] %v12629_v28  ;;  %5563 = vrot.lane.b32.xlu1 %v12564_v30, %s14902_s15  ;;  %v3357_v26 = vpop.f32.mrb[93].mxu0  ;;  %v12635_v0 = vpop.f32.mrb[93].mxu1 }
 0x48f   : > { %15103 = vst [vmem:[#allocation176_spill] sm:$0xff] %v12635_v0  ;;  %v12642_v28 = vpop.permute.xlu0 %5277  ;;  %v14869_v26 = vrot.slane %v12561_v57, 1 }
 0x490   : > { %4996 = vrot.lane.b32.xlu0 %v12586_v3, %s14949_s29  ;;  %15104 = vst [vmem:[#allocation177_spill] sm:$0xff] %v12642_v28  ;;  %v4744_v28 = vrot.slane %v12561_v57, 2 }
 0x491   : > { %v3360_v60 = vpop.f32.mrb[94].mxu0 }
 0x492   : > { %v3468_v7 = vpop.f32.mrb[94].mxu1  ;;  %4659 = vrot.lane.b32.xlu1 %v12564_v30, %s14945_s22  ;;  %v3361_v39 = vpop.f32.mrb[95].mxu0 }
 0x493   : > { %v3469_v5 = vpop.f32.mrb[95].mxu1  ;;  %v12657_v19 = vpop.permute.xlu0 %4801 }
 0x494   : > { %6061 = vrot.lane.b32.xlu0 %v5603_v13, %s14900_s24  ;;  %15107 = vst [vmem:[#allocation180_spill] sm:$0xff] %v12657_v19  ;;  %v12660_v30 = vpop.permute.xlu1 %4316 }
 0x495   : > { %v9852_v0 = vpop.f32.mrb[96].mxu0  ;;  %15108 = vst [vmem:[#allocation181_spill] sm:$0xff] %v12660_v30 }
 0x496   : > { %v9884_v60 = vpop.f32.mrb[96].mxu1  ;;  %4694 = vrot.lane.b32.xlu1 %v14869_v26, %s14904_s16  ;;  %v3570_v7 = vpop.f32.mrb[97].mxu0 }
 0x497   : > { %v3748_v39 = vmax.f32 %v9852_v0, %v9884_v60  ;;  %v3708_v5 = vpop.f32.mrb[97].mxu1  ;;  %v12665_v0 = vrot.slane %v12573_v56, 1  ;;  %v12668_v57 = vpop.permute.xlu0 %5954 }
 0x498   : > { %v3747_v1 = vmax.f32 %v3570_v7, %v3708_v5  ;;  %6101 = vrot.lane.b32.xlu0 %v12649_v34, %s14947_s25  ;;  %15110 = vst [vmem:[#allocation183_spill] sm:$0xff] %v12668_v57  ;;  %v12672_v19 = vpop.permute.xlu1 %6147 }
 0x499   : > { %15109 = vst [vmem:[#allocation182_spill] sm:$0xff] %v12665_v0  ;;  %15111 = vst [vmem:[#allocation184_spill] sm:$0xff] %v12672_v19 }
 0x49a   : > { %5230 = vrot.lane.b32.xlu1 %v4744_v28, %s14902_s15 }
 0x49c   : > { %v9855_v23 = vpop.f32.mrb[98].mxu0  ;;  %4417 = vrot.lane.b32.xlu0 %v12571_v18, %s14947_s25  ;;  %v12689_v29 = vpop.permute.xlu1 %5080 }
 0x49d   : > { %v9887_v26 = vpop.f32.mrb[98].mxu1  ;;  %v3580_v2 = vpop.f32.mrb[99].mxu0  ;;  %15113 = vst [vmem:[#allocation186_spill] sm:$0xff] %v12689_v29 }
 0x49e   : > { %v3750_v60 = vmax.f32 %v9855_v23, %v9887_v26  ;;  %v3718_v7 = vpop.f32.mrb[99].mxu1  ;;  %4749 = vrot.lane.b32.xlu1 %v4744_v28, %s14900_s24  ;;  %v12680_v28 = vpop.permute.xlu0 %6175 }
 0x49f   : > { %v3749_v5 = vmax.f32 %v3580_v2, %v3718_v7  ;;  %15112 = vst [vmem:[#allocation185_spill] sm:$0xff] %v12680_v28  ;;  %v12683_v2 = vrot.slane %v12571_v18, 1 }
 0x4a0   : > { %5799 = vrot.lane.b32.xlu0 %v12665_v0, %s14949_s29  ;;  %v12699_v29 = vpop.permute.xlu1 %4569 }
 0x4a1   : > { %v9858_v30 = vpop.f32.mrb[100].mxu0  ;;  %15115 = vst [vmem:[#allocation188_spill] sm:$0xff] %v12699_v29 }
 0x4a2   : > { %v9890_v46 = vpop.f32.mrb[100].mxu1  ;;  %v3590_v50 = vpop.f32.mrb[101].mxu0  ;;  %5452 = vrot.lane.b32.xlu1 %v5446_v33, %s14951_s12 }
 0x4a3   : > { %v3752_v23 = vmax.f32 %v9858_v30, %v9890_v46  ;;  %v3728_v26 = vpop.f32.mrb[101].mxu1 }
 0x4a4   : > { %v3751_v36 = vmax.f32 %v3590_v50, %v3728_v26  ;;  %6299 = vrot.lane.b32.xlu0 %v12675_v4, %s14945_s22 }
 0x4a6   : > { %v9861_v7 = vpop.f32.mrb[102].mxu0  ;;  %4465 = vrot.lane.b32.xlu1 %v12586_v3, %s14945_s22  ;;  %v12697_v3 = vpop.permute.xlu0 %6220 }
 0x4a7   : > { %v9893_v19 = vpop.f32.mrb[102].mxu1  ;;  %v12687_v57 = vpop.f32.mrb[103].mxu0  ;;  %15114 = vst [vmem:[#allocation187_spill] sm:$0xff] %v12697_v3 }
 0x4a8   : > { %v3754_v33 = vmax.f32 %v9861_v7, %v9893_v19  ;;  %v3738_v46 = vpop.f32.mrb[103].mxu1  ;;  %5409 = vrot.lane.b32.xlu0 %v12683_v2, %s14902_s15  ;;  %v14873_v19 = vrot.slane %v12571_v18, 2 }
 0x4a9   : > { %v3753_v50 = vmax.f32 %v12687_v57, %v3738_v46 }
 0x4aa   : > { %5608 = vrot.lane.b32.xlu1 %v5603_v13, %s14951_s12 }
 0x4ab   : > { %v9916_v30 = vpop.f32.mrb[104].mxu0 }
 0x4ac   : > { %v3894_v26 = vmax.f32 %v3748_v39, %v9916_v30  ;;  %v3854_v28 = vpop.f32.mrb[105].mxu0  ;;  %5869 = vrot.lane.b32.xlu0 %v12683_v2, %s14904_s16 }
 0x4ad   : > { %v3893_v51 = vmax.f32 %v3747_v1, %v3854_v28  ;;  %v9948_v48 = vpop.f32.mrb[104].mxu1 }
 0x4ae   : > { %v4040_v7 = vmax.f32 %v3894_v26, %v9948_v48  ;;  %v4000_v37 = vpop.f32.mrb[105].mxu1  ;;  %5650 = vrot.lane.b32.xlu1 %v12649_v34, %s14949_s29 }
 0x4af   : > { %v4039_v57 = vmax.f32 %v3893_v51, %v4000_v37  ;;  %v9919_v13 = vpop.f32.mrb[106].mxu0  ;;  %v12716_v37 = vpop.permute.xlu0 %5317 }
 0x4b0   : > { %v12705_v39 = vadd.f32 %v12113_v42, %v4040_v7  ;;  %v3896_v46 = vmax.f32 %v3750_v60, %v9919_v13  ;;  %v3864_v30 = vpop.f32.mrb[107].mxu0  ;;  %5454 = vrot.lane.b32.xlu0 %v14873_v19, %s14951_s12  ;;  %15116 = vst [vmem:[#allocation189_spill] sm:$0xff] %v12716_v37  ;;  %v12719_v13 = vpop.permute.xlu1 %5720 }
 0x4b1   : > { %v12711_v1 = vadd.f32 %v12113_v42, %v4039_v57  ;;  %v3895_v28 = vmax.f32 %v3749_v5, %v3864_v30  ;;  %v9951_v48 = vpop.f32.mrb[106].mxu1  ;;  %15117 = vst [vmem:[#allocation190_spill] sm:$0xff] %v12719_v13  ;;  %v15130_v13 = vrot.slane %v12571_v18, 2 }
 0x4b2   : > { %v14876_v26 = vmax.f32 %v12705_v39, 0.0  ;;  %v4042_v3 = vmax.f32 %v3896_v46, %v9951_v48  ;;  %v4010_v29 = vpop.f32.mrb[107].mxu1  ;;  %4515 = vrot.lane.b32.xlu1 %v12649_v34, %s14904_s16 }
 0x4b3   : > { %v14877_v51 = vmax.f32 %v12711_v1, 0.0  ;;  %v4041_v60 = vmax.f32 %v3895_v28, %v4010_v29  ;;  %v9922_v7 = vpop.f32.mrb[108].mxu0  ;;  %v14874_v29 = vrot.slane %v12576_v24, 1 }
 0x4b4   : > { %v3898_v19 = vmax.f32 %v3752_v23, %v9922_v7  ;;  %v3874_v57 = vpop.f32.mrb[109].mxu0  ;;  %9000 = vmatmul.mubr.msk.f32.vlgmr.msra.gmra.mrb[112].mxu1 %vm1553_vm5, %v14876_v26  ;;  %4998 = vrot.lane.b32.xlu0 %v12683_v2, %s14949_s29  ;;  %v12738_v48 = vadd.f32 %v12113_v42, %v4042_v3 }
 0x4b5   : > { %v12727_v5 = vadd.f32 %v12113_v42, %v4041_v60  ;;  %v3897_v46 = vmax.f32 %v3751_v36, %v3874_v57  ;;  %v9954_v30 = vpop.f32.mrb[108].mxu1  ;;  %8999 = vmatmul.mubr.msk.f32.vlgmr.msra.gmra.mrb[112].mxu0 %vm1553_vm5, %v14877_v51  ;;  %4163 = vmatprep.mubr.f32.mxu1 %v15020_v25  ;;  %v10625_v57 = vld [vmem:[%s14927_s3 + $0x58] sm:$0xf] }
 0x4b6   : > { %v4044_v23 = vmax.f32 %v3898_v19, %v9954_v30  ;;  %v4020_v28 = vpop.f32.mrb[109].mxu1  ;;  %5757 = vrot.lane.b32.xlu1 %v12573_v56, %s14951_s12  ;;  %10366 = vmatpush1.bf16.msra.mxu1 %v11283_v59  ;;  %v12749_v59 = vpop.permute.xlu0 %4369 }
 0x4b7   : > { %v14875_v36 = vmax.f32 %v12727_v5, 0.0  ;;  %v4043_v60 = vmax.f32 %v3897_v46, %v4020_v28  ;;  %v9925_v7 = vpop.f32.mrb[110].mxu0  ;;  %9007 = vmatprep.subr.msk.mxu1 %vm1578_vm4, %v10625_v57  ;;  %6439 = vmatprep.mubr.f32.mxu0 %v15020_v25  ;;  %15118 = vst [vmem:[#allocation191_spill] sm:$0xff] %v12749_v59  ;;  %v12754_v46 = vpop.permute.xlu1 %4853  ;;  %v12757_v28 = vrot.slane %v12576_v24, 2 }
 0x4b8   : > { %v3900_v19 = vmax.f32 %v3754_v33, %v9925_v7  ;;  %v3884_v30 = vpop.f32.mrb[111].mxu0  ;;  %6063 = vrot.lane.b32.xlu0 %v14874_v29, %s14900_s24  ;;  %15119 = vst [vmem:[#allocation192_spill] sm:$0xff] %v12754_v46  ;;  %v4058_v7 = vmax.f32 %v12738_v48, 0.0  ;;  %v10626_v29 = vld [vmem:[%s14927_s3 + $0x50] sm:$0xf] }
 0x4b9   : > { %v3899_v56 = vmax.f32 %v3753_v50, %v3884_v30  ;;  %v9957_v3 = vpop.f32.mrb[110].mxu1  ;;  %9001 = vmatmul.mubr.msk.f32.gmra.mrb[114].mxu1 %vm1553_vm5, %v14875_v36  ;;  %15120 = vst [vmem:[#allocation193_spill] sm:$0xff] %v12757_v28  ;;  %v12764_v50 = vadd.f32 %v12113_v42, %v4043_v60  ;;  %v12779_v60 = vadd.f32 %v12113_v42, %v4044_v23  ;;  %v10627_v23 = vld [vmem:[%s14928_s2] ss:$0 sm:$0xff]  ;;  %v12805_v36 = vrot.slane %v12583_v12, 1  ;;  %s10704_s2 = smov [#allocation3]  }
 0x4ba   : > { %v4046_v57 = vmax.f32 %v3900_v19, %v9957_v3  ;;  %v4030_v33 = vpop.f32.mrb[111].mxu1  ;;  %4169 = vmatprep.mubr.f32.mxu1 %v15020_v25  ;;  %5565 = vrot.lane.b32.xlu1 %v12576_v24, %s14902_s15  ;;  %v12776_v48 = vpop.permute.xlu0 %6025  ;;  %s10633_s3 = sshll.u32 %s10704_s2, 4  ;;  %s10634_s3 = int_to_ptr.vmem [resolvable:$false] %s10633_s3 }
 0x4bb   : > { %v4045_v30 = vmax.f32 %v3899_v56, %v4030_v33  ;;  %9008 = vmatpush1.msk.msra.mxu1 %vm1578_vm4, %v10626_v29  ;;  %15121 = vst [vmem:[#allocation194_spill] sm:$0xff] %v12776_v48  ;;  %v4059_v19 = vmax.f32 %v12764_v50, 0.0  ;;  %v12782_v56 = vpop.permute.xlu1 %5997  ;;  %v12788_v29 = vrot.slane %v12588_v47, 2  ;;  %v4060_v42 = vmax.f32 %v12779_v60, 0.0  ;;  %s10635_s26 = scalar_lea.vmem %s10634_s3, 32 }
 0x4bc   : > { %6103 = vrot.lane.b32.xlu0 %v12757_v28, %s14947_s25  ;;  %15122 = vst [vmem:[#allocation195_spill] sm:$0xff] %v12782_v56  ;;  %v4054_v60 = vadd.f32 %v10627_v23, %v4046_v57  ;;  %v14878_v57 = vrot.slane %v12583_v12, 2 }
 0x4bd   : > { %9002 = vmatmul.mubr.msk.f32.gmra.mrb[116].mxu1 %vm1553_vm5, %v4058_v7  ;;  %v4053_v3 = vadd.f32 %v10627_v23, %v4045_v30 }
 0x4be   : > { %4175 = vmatprep.mubr.f32.mxu1 %v15020_v25  ;;  %4661 = vrot.lane.b32.xlu1 %v12576_v24, %s14945_s22  ;;  %v12799_v33 = vpop.permute.xlu0 %5118  ;;  %v4062_v51 = vmax.f32 %v4054_v60, 0.0 }
 0x4bf   : > { %15123 = vst [vmem:[#allocation196_spill] sm:$0xff] %v12799_v33  ;;  %v12802_v50 = vpop.permute.xlu1 %4917  ;;  %v4061_v26 = vmax.f32 %v4053_v3, 0.0  ;;  %v15128_v3 = vmax.f32 %v12711_v1, 0.0 }
 0x4c0   : > { %4419 = vrot.lane.b32.xlu0 %v12583_v12, %s14947_s25  ;;  %15124 = vst [vmem:[#allocation197_spill] sm:$0xff] %v12802_v50 }
 0x4c1   : > { %9003 = vmatmul.mubr.msk.f32.gmra.mrb[118].mxu1 %vm1553_vm5, %v4059_v19 }
 0x4c2   : > { %4181 = vmatprep.mubr.f32.mxu1 %v15020_v25  ;;  %6258 = vrot.lane.b32.xlu1 %v12665_v0, %s14947_s25  ;;  %v12816_v30 = vpop.permute.xlu0 %5163 }
 0x4c3   : > { %15125 = vst [vmem:[#allocation198_spill] sm:$0xff] %v12816_v30  ;;  %v12818_v46 = vpop.permute.xlu1 %4962  ;;  %v5606_v30 = vrot.slane %v12607_v45, 1 }
 0x4c4   : > { %6301 = vrot.lane.b32.xlu0 %v12788_v29, %s14945_s22  ;;  %15126 = vst [vmem:[#allocation199_spill] sm:$0xff] %v12818_v46 }
 0x4c5   : > { %9004 = vmatmul.mubr.msk.f32.gmra.mrb[120].mxu1 %vm1553_vm5, %v4060_v42 }
 0x4c6   : > { %4186 = vmatprep.mubr.f32.mxu1 %v15020_v25  ;;  %4696 = vrot.lane.b32.xlu1 %v12665_v0, %s14904_s16  ;;  %v12830_v23 = vpop.permute.xlu0 %5279 }
 0x4c7   : > { %15127 = vst [vmem:[#allocation200_spill] sm:$0xff] %v12830_v23  ;;  %v12835_v60 = vpop.permute.xlu1 %4619 }
 0x4c8   : > { %5411 = vrot.lane.b32.xlu0 %v12805_v36, %s14902_s15  ;;  %15129 = vst [vmem:[#allocation201_spill] sm:$0xff] %v12835_v60 }
 0x4c9   : > { %9005 = vmatmul.mubr.msk.f32.gmra.mrb[122].mxu1 %vm1553_vm5, %v4061_v26 }
 0x4ca   : > { %4190 = vmatprep.mubr.f32.mxu1 %v15020_v25  ;;  %5232 = vrot.lane.b32.xlu1 %v12675_v4, %s14902_s15  ;;  %v12850_v1 = vpop.permute.xlu0 %4803 }
 0x4cb   : > { %15132 = vst [vmem:[#allocation202_spill] sm:$0xff] %v12850_v1 }
 0x4cc   : > { %5871 = vrot.lane.b32.xlu0 %v12805_v36, %s14904_s16 }
 0x4cd   : > { %9006 = vmatmul.mubr.msk.f32.gmra.mrb[124].mxu1 %vm1553_vm5, %v4062_v51 }
 0x4ce   : > { %4259 = vmatprep.mubr.f32.mxu1 %v15020_v25  ;;  %4751 = vrot.lane.b32.xlu1 %v12675_v4, %s14900_s24  ;;  %v15131_v4 = vmax.f32 %v12705_v39, 0.0  ;;  %v12861_v39 = vrot.slane %v12591_v58, 2 }
 0x4d0   : > { %5456 = vrot.lane.b32.xlu0 %v14878_v57, %s14951_s12  ;;  %v14879_v57 = vrot.slane %v12591_v58, 1  ;;  %15135 = vst [vmem:[#allocation204_spill] sm:$0xff] %v12861_v39 }
 0x4d1   : > { %9009 = vmatmul.mubr.msk.f32.vlgmr.msra.gmra.mrb[126].mxu1 %vm1553_vm5, %v15128_v3  ;;  %v12852_v3 = vpop.permute.xlu1 %6149 }
 0x4d2   : > { %4263 = vmatprep.mubr.f32.mxu1 %v15020_v25  ;;  %5909 = vrot.lane.b32.xlu1 %v15130_v13, %s14900_s24  ;;  %15133 = vst [vmem:[#allocation203_spill] sm:$0xff] %v12852_v3  ;;  %v15134_v13 = vmax.f32 %v12727_v5, 0.0  ;;  %v15148_v3 = vrot.slane %v12583_v12, 2 }
 0x4d4   : > { %5000 = vrot.lane.b32.xlu0 %v12805_v36, %s14949_s29 }
 0x4d5   : > { %9010 = vmatmul.mubr.msk.f32.gmra.mrb[128].mxu1 %vm1553_vm5, %v15131_v4  ;;  %v12869_v4 = vpop.permute.xlu0 %5956 }
 0x4d6   : > { %4268 = vmatprep.mubr.f32.mxu1 %v15020_v25  ;;  %4467 = vrot.lane.b32.xlu1 %v12683_v2, %s14945_s22  ;;  %v15136_v2 = vrot.slane %v12576_v24, 1  ;;  %15137 = vst [vmem:[#allocation205_spill] sm:$0xff] %v12869_v4  ;;  %v12881_v24 = vrot.slane %v12602_v8, 2 }
 0x4d8   : > { %6065 = vrot.lane.b32.xlu0 %v14879_v57, %s14900_s24  ;;  %v12872_v57 = vpop.permute.xlu1 %5722 }
 0x4d9   : > { %9011 = vmatmul.mubr.msk.f32.gmra.mrb[130].mxu1 %vm1553_vm5, %v15134_v13  ;;  %15138 = vst [vmem:[#allocation206_spill] sm:$0xff] %v12872_v57  ;;  %v12886_v5 = vpop.permute.xlu0 %6177  ;;  %v12894_v13 = vrot.slane %v12600_v10, 1 }
 0x4da   : > { %4274 = vmatprep.mubr.f32.mxu1 %v15020_v25  ;;  %5610 = vrot.lane.b32.xlu1 %v15136_v2, %s14951_s12  ;;  %15139 = vst [vmem:[#allocation207_spill] sm:$0xff] %v12886_v5 }
 0x4dc   : > { %6105 = vrot.lane.b32.xlu0 %v12861_v39, %s14947_s25 }
 0x4dd   : > { %9012 = vmatmul.mubr.msk.f32.gmra.mrb[132].mxu1 %vm1553_vm5, %v4058_v7  ;;  %v12888_v7 = vpop.permute.xlu1 %4855  ;;  %v12903_v2 = vpop.permute.xlu0 %6222 }
 0x4de   : > { %4280 = vmatprep.mubr.f32.mxu1 %v15020_v25  ;;  %5652 = vrot.lane.b32.xlu1 %v12757_v28, %s14949_s29  ;;  %15140 = vst [vmem:[#allocation208_spill] sm:$0xff] %v12888_v7  ;;  %15141 = vst [vmem:[#allocation209_spill] sm:$0xff] %v12903_v2  ;;  %v5449_v7 = vrot.slane %v12600_v10, 2 }
 0x4e0   : > { %4421 = vrot.lane.b32.xlu0 %v12600_v10, %s14947_s25 }
 0x4e1   : > { %9013 = vmatmul.mubr.msk.f32.gmra.mrb[134].mxu1 %vm1553_vm5, %v4059_v19  ;;  %v12917_v57 = vpop.permute.xlu0 %5319 }
 0x4e2   : > { %4286 = vmatprep.mubr.f32.mxu1 %v15020_v25  ;;  %4517 = vrot.lane.b32.xlu1 %v12757_v28, %s14904_s16  ;;  %15142 = vst [vmem:[#allocation210_spill] sm:$0xff] %v12917_v57  ;;  %v12940_v57 = vrot.slane %v12607_v45, 2  ;;  %v12951_v28 = vrot.slane %v12618_v31, 2 }
 0x4e4   : > { %6303 = vrot.lane.b32.xlu0 %v12881_v24, %s14945_s22  ;;  %15146 = vst [vmem:[#allocation214_spill] sm:$0xff] %v12951_v28 }
 0x4e5   : > { %9014 = vmatmul.mubr.msk.f32.gmra.mrb[136].mxu1 %vm1553_vm5, %v4060_v42 }
 0x4e6   : > { %4292 = vmatprep.mubr.f32.mxu1 %v15020_v25  ;;  %5759 = vrot.lane.b32.xlu1 %v12588_v47, %s14951_s12 }
 0x4e8   : > { %v12899_v19 = vpop.permute.xlu1 %4413  ;;  %5413 = vrot.lane.b32.xlu0 %v12894_v13, %s14902_s15 }
 0x4e9   : > { %9015 = vmatmul.mubr.msk.f32.gmra.mrb[138].mxu1 %vm1553_vm5, %v4061_v26  ;;  %v12920_v26 = vrot.slane %v12588_v47, 1 }
 0x4ea   : > { %4298 = vmatprep.mubr.f32.mxu1 %v15020_v25  ;;  %5567 = vrot.lane.b32.xlu1 %v12591_v58, %s14902_s15 }
 0x4eb   : > { %15143 = vst [vmem:[#allocation211_spill] sm:$0xff] %v12920_v26 }
 0x4ec   : > { %v12909_v42 = vpop.permute.xlu1 %5405  ;;  %5873 = vrot.lane.b32.xlu0 %v12894_v13, %s14904_s16 }
 0x4ed   : > { %9016 = vmatmul.mubr.msk.f32.gmra.mrb[140].mxu1 %vm1553_vm5, %v4062_v51  ;;  %v12931_v51 = vpop.permute.xlu0 %4371 }
 0x4ee   : > { %4663 = vrot.lane.b32.xlu1 %v12591_v58, %s14945_s22  ;;  %15144 = vst [vmem:[#allocation212_spill] sm:$0xff] %v12931_v51 }
 0x4f0   : > { %v12922_v23 = vpop.permute.xlu1 %5450  ;;  %5458 = vrot.lane.b32.xlu0 %v5449_v7, %s14951_s12 }
 0x4f1   : > { %v12944_v33 = vpop.permute.xlu0 %6027 }
 0x4f2   : > { %5801 = vrot.lane.b32.xlu1 %v12920_v26, %s14949_s29  ;;  %15145 = vst [vmem:[#allocation213_spill] sm:$0xff] %v12944_v33 }
 0x4f4   : > { %v12927_v1 = vpop.permute.xlu1 %4463  ;;  %5002 = vrot.lane.b32.xlu0 %v12894_v13, %s14949_s29 }
 0x4f5   : > { %v12959_v25 = vpop.permute.xlu0 %5120 }
 0x4f6   : > { %6260 = vrot.lane.b32.xlu1 %v12920_v26, %s14947_s25  ;;  %15147 = vst [vmem:[#allocation215_spill] sm:$0xff] %v12959_v25 }
 0x4f8   : > { %v12936_v47 = vpop.permute.xlu1 %4513  ;;  %6067 = vrot.lane.b32.xlu0 %v5606_v30, %s14900_s24 }
 0x4f9   : > { %v12968_v34 = vpop.permute.xlu0 %5165 }
 0x4fa   : > { %4698 = vrot.lane.b32.xlu1 %v12920_v26, %s14904_s16  ;;  %15149 = vst [vmem:[#allocation216_spill] sm:$0xff] %v12968_v34 }
 0x4fc   : > { %v12946_v37 = vpop.permute.xlu1 %4415  ;;  %6107 = vrot.lane.b32.xlu0 %v12940_v57, %s14947_s25 }
 0x4fd   : > { %v12976_v33 = vpop.permute.xlu0 %5281 }
 0x4fe   : > { %5234 = vrot.lane.b32.xlu1 %v12788_v29, %s14902_s15  ;;  %15152 = vst [vmem:[#allocation219_spill] sm:$0xff] %v12976_v33 }
 0x500   : > { %v12955_v0 = vpop.permute.xlu1 %5563  ;;  %6305 = vrot.lane.b32.xlu0 %v12951_v28, %s14945_s22 }
 0x502   : > { %4753 = vrot.lane.b32.xlu1 %v12788_v29, %s14900_s24  ;;  %v15153_v29 = vrot.slane %v12591_v58, 1 }
 0x504   : > { %v12963_v26 = vpop.permute.xlu1 %4659 }
 0x506   : > { %5911 = vrot.lane.b32.xlu1 %v15148_v3, %s14900_s24  ;;  %v12985_v3 = vpop.permute.xlu0 %4805 }
 0x507   : > { %15155 = vst [vmem:[#allocation221_spill] sm:$0xff] %v12985_v3  ;;  %v13008_v3 = vrot.slane %v12602_v8, 1 }
 0x508   : > { %v12970_v2 = vpop.permute.xlu1 %4694 }
 0x509   : > { %15150 = vst [vmem:[#allocation217_spill] sm:$0xff] %v12970_v2  ;;  %15160 = vst [vmem:[#allocation226_spill] sm:$0xff] %v13008_v3 }
 0x50a   : > { %4469 = vrot.lane.b32.xlu1 %v12805_v36, %s14945_s22 }
 0x50c   : > { %v12974_v5 = vpop.permute.xlu1 %5230 }
 0x50d   : > { %15151 = vst [vmem:[#allocation218_spill] sm:$0xff] %v12974_v5  ;;  %v12993_v5 = vpop.permute.xlu0 %6179 }
 0x50e   : > { %5612 = vrot.lane.b32.xlu1 %v15153_v29, %s14951_s12  ;;  %15156 = vst [vmem:[#allocation222_spill] sm:$0xff] %v12993_v5 }
 0x510   : > { %v12981_v25 = vpop.permute.xlu1 %4749 }
 0x511   : > { %15154 = vst [vmem:[#allocation220_spill] sm:$0xff] %v12981_v25  ;;  %v13001_v29 = vpop.permute.xlu0 %6224 }
 0x512   : > { %5654 = vrot.lane.b32.xlu1 %v12861_v39, %s14949_s29  ;;  %15158 = vst [vmem:[#allocation224_spill] sm:$0xff] %v13001_v29 }
 0x514   : > { %v12987_v34 = vpop.permute.xlu1 %5452 }
 0x515   : > { %v13012_v5 = vpop.permute.xlu0 %5321 }
 0x516   : > { %4519 = vrot.lane.b32.xlu1 %v12861_v39, %s14904_s16  ;;  %15161 = vst [vmem:[#allocation227_spill] sm:$0xff] %v13012_v5 }
 0x518   : > { %v12991_v36 = vpop.permute.xlu1 %4465 }
 0x519   : > { %v13018_v2 = vpop.permute.xlu0 %5865 }
 0x51a   : > { %5761 = vrot.lane.b32.xlu1 %v12602_v8, %s14951_s12  ;;  %15163 = vst [vmem:[#allocation229_spill] sm:$0xff] %v13018_v2 }
 0x51c   : > { %v12997_v58 = vpop.permute.xlu1 %5608 }
 0x51d   : > { %15157 = vst [vmem:[#allocation223_spill] sm:$0xff] %v12997_v58  ;;  %v13026_v8 = vpop.permute.xlu0 %5905 }
 0x51e   : > { %5569 = vrot.lane.b32.xlu1 %v12607_v45, %s14902_s15  ;;  %15165 = vst [vmem:[#allocation231_spill] sm:$0xff] %v13026_v8 }
 0x520   : > { %v13003_v33 = vpop.permute.xlu1 %5650 }
 0x521   : > { %15159 = vst [vmem:[#allocation225_spill] sm:$0xff] %v13003_v33  ;;  %v13034_v56 = vpop.permute.xlu0 %4994 }
 0x522   : > { %4665 = vrot.lane.b32.xlu1 %v12607_v45, %s14945_s22  ;;  %15167 = vst [vmem:[#allocation233_spill] sm:$0xff] %v13034_v56 }
 0x524   : > { %v13010_v39 = vpop.permute.xlu1 %4515 }
 0x525   : > { %v13041_v4 = vpop.permute.xlu0 %5407 }
 0x526   : > { %5803 = vrot.lane.b32.xlu1 %v13008_v3, %s14949_s29 }
 0x528   : > { %v13016_v25 = vpop.permute.xlu1 %5757 }
 0x529   : > { %15162 = vst [vmem:[#allocation228_spill] sm:$0xff] %v13016_v25  ;;  %v13048_v2 = vpop.permute.xlu0 %5867 }
 0x52a   : > { %6262 = vrot.lane.b32.xlu1 %v13008_v3, %s14947_s25  ;;  %15171 = vst [vmem:[#allocation237_spill] sm:$0xff] %v13048_v2 }
 0x52c   : > { %v13022_v29 = vpop.permute.xlu1 %5565 }
 0x52d   : > { %15164 = vst [vmem:[#allocation230_spill] sm:$0xff] %v13022_v29 }
 0x52e   : > { %4700 = vrot.lane.b32.xlu1 %v13008_v3, %s14904_s16 }
 0x530   : > { %v13028_v45 = vpop.permute.xlu1 %4661 }
 0x532   : > { %5236 = vrot.lane.b32.xlu1 %v12881_v24, %s14902_s15 }
 0x534   : > { %v13032_v5 = vpop.permute.xlu1 %6258 }
 0x535   : > { %15166 = vst [vmem:[#allocation232_spill] sm:$0xff] %v13032_v5 }
 0x536   : > { %4755 = vrot.lane.b32.xlu1 %v12881_v24, %s14900_s24  ;;  %v13056_v24 = vpop.permute.xlu0 %5907 }
 0x537   : > { %15173 = vst [vmem:[#allocation239_spill] sm:$0xff] %v13056_v24 }
 0x538   : > { %v13038_v48 = vpop.permute.xlu1 %4696 }
 0x539   : > { %15168 = vst [vmem:[#allocation234_spill] sm:$0xff] %v13038_v48 }
 0x53a   : > { %5913 = vrot.lane.b32.xlu1 %v5449_v7, %s14900_s24  ;;  %v13059_v7 = vrot.slane %v12618_v31, 1 }
 0x53c   : > { %v13043_v3 = vpop.permute.xlu1 %5232  ;;  %15174 = vst [vmem:[#allocation240_spill] sm:$0xff] %v13059_v7 }
 0x53d   : > { %15169 = vst [vmem:[#allocation235_spill] sm:$0xff] %v13043_v3 }
 0x53e   : > { %5614 = vrot.lane.b32.xlu1 %v5606_v30, %s14951_s12 }
 0x540   : > { %v13046_v8 = vpop.permute.xlu1 %4751 }
 0x541   : > { %15170 = vst [vmem:[#allocation236_spill] sm:$0xff] %v13046_v8  ;;  %v13067_v8 = vpop.permute.xlu0 %4996 }
 0x542   : > { %5656 = vrot.lane.b32.xlu1 %v12940_v57, %s14949_s29  ;;  %15177 = vst [vmem:[#allocation243_spill] sm:$0xff] %v13067_v8 }
 0x544   : > { %v13052_v5 = vpop.permute.xlu1 %5909 }
 0x545   : > { %15172 = vst [vmem:[#allocation238_spill] sm:$0xff] %v13052_v5  ;;  %v13073_v56 = vpop.permute.xlu0 %6061 }
 0x546   : > { %5763 = vrot.lane.b32.xlu1 %v12618_v31, %s14951_s12  ;;  %15179 = vst [vmem:[#allocation245_spill] sm:$0xff] %v13073_v56 }
 0x548   : > { %v13061_v3 = vpop.permute.xlu1 %4467 }
 0x549   : > { %15175 = vst [vmem:[#allocation241_spill] sm:$0xff] %v13061_v3  ;;  %v13077_v31 = vpop.permute.xlu0 %6101 }
 0x54a   : > { %5805 = vrot.lane.b32.xlu1 %v13059_v7, %s14949_s29  ;;  %15181 = vst [vmem:[#allocation247_spill] sm:$0xff] %v13077_v31 }
 0x54c   : > { %v13065_v30 = vpop.permute.xlu1 %5610 }
 0x54d   : > { %15176 = vst [vmem:[#allocation242_spill] sm:$0xff] %v13065_v30  ;;  %v13081_v25 = vpop.permute.xlu0 %4417 }
 0x54e   : > { %6264 = vrot.lane.b32.xlu1 %v13059_v7, %s14947_s25 }
 0x550   : > { %v13071_v48 = vpop.permute.xlu1 %5652 }
 0x551   : > { %15178 = vst [vmem:[#allocation244_spill] sm:$0xff] %v13071_v48  ;;  %v13085_v60 = vpop.permute.xlu0 %5799 }
 0x552   : > { %15184 = vst [vmem:[#allocation250_spill] sm:$0xff] %v13085_v60 }
 0x554   : > { %v13075_v5 = vpop.permute.xlu1 %4517 }
 0x555   : > { %15180 = vst [vmem:[#allocation246_spill] sm:$0xff] %v13075_v5  ;;  %v13089_v24 = vpop.permute.xlu0 %6299 }
 0x556   : > { %15186 = vst [vmem:[#allocation252_spill] sm:$0xff] %v13089_v24 }
 0x558   : > { %v13079_v12 = vpop.permute.xlu1 %5759 }
 0x559   : > { %15182 = vst [vmem:[#allocation248_spill] sm:$0xff] %v13079_v12  ;;  %v13093_v46 = vpop.permute.xlu0 %5409 }
 0x55a   : > { %15188 = vst [vmem:[#allocation254_spill] sm:$0xff] %v13093_v46 }
 0x55c   : > { %v13083_v28 = vpop.permute.xlu1 %5567 }
 0x55d   : > { %15183 = vst [vmem:[#allocation249_spill] sm:$0xff] %v13083_v28  ;;  %v13097_v10 = vpop.permute.xlu0 %5869 }
 0x55e   : > { %15190 = vst [vmem:[#allocation256_spill] sm:$0xff] %v13097_v10 }
 0x560   : > { %v13087_v8 = vpop.permute.xlu1 %4663 }
 0x561   : > { %15185 = vst [vmem:[#allocation251_spill] sm:$0xff] %v13087_v8  ;;  %v13101_v12 = vpop.permute.xlu0 %5454 }
 0x562   : > { %15192 = vst [vmem:[#allocation258_spill] sm:$0xff] %v13101_v12 }
 0x564   : > { %v13091_v7 = vpop.permute.xlu1 %5801 }
 0x565   : > { %15187 = vst [vmem:[#allocation253_spill] sm:$0xff] %v13091_v7  ;;  %v13105_v28 = vpop.permute.xlu0 %4998 }
 0x566   : > { %15194 = vst [vmem:[#allocation260_spill] sm:$0xff] %v13105_v28 }
 0x568   : > { %v13095_v56 = vpop.permute.xlu1 %6260 }
 0x569   : > { %15189 = vst [vmem:[#allocation255_spill] sm:$0xff] %v13095_v56 }
 0x56c   : > { %v13099_v31 = vpop.permute.xlu1 %4698 }
 0x56d   : > { %15191 = vst [vmem:[#allocation257_spill] sm:$0xff] %v13099_v31  ;;  %v13119_v31 = vpop.permute.xlu0 %6063 }
 0x56e   : > { %15198 = vst [vmem:[#allocation264_spill] sm:$0xff] %v13119_v31 }
 0x570   : > { %v13103_v51 = vpop.permute.xlu1 %5234 }
 0x571   : > { %15193 = vst [vmem:[#allocation259_spill] sm:$0xff] %v13103_v51  ;;  %v13133_v10 = vpop.permute.xlu0 %6103 }
 0x572   : > { %15200 = vst [vmem:[#allocation266_spill] sm:$0xff] %v13133_v10 }
 0x574   : > { %v13107_v60 = vpop.permute.xlu1 %4753 }
 0x575   : > { %15195 = vst [vmem:[#allocation261_spill] sm:$0xff] %v13107_v60  ;;  %v13151_v10 = vpop.permute.xlu0 %4419 }
 0x576   : > { %15202 = vst [vmem:[#allocation268_spill] sm:$0xff] %v13151_v10 }
 0x578   : > { %v13123_v51 = vpop.permute.xlu1 %5911 }
 0x579   : > { %15199 = vst [vmem:[#allocation265_spill] sm:$0xff] %v13123_v51  ;;  %v13164_v30 = vpop.permute.xlu0 %6301 }
 0x57a   : > { %15204 = vst [vmem:[#allocation270_spill] sm:$0xff] %v13164_v30 }
 0x57c   : > { %v13135_v12 = vpop.permute.xlu1 %4469 }
 0x57d   : > { %15201 = vst [vmem:[#allocation267_spill] sm:$0xff] %v13135_v12  ;;  %v13177_v30 = vpop.permute.xlu0 %5411 }
 0x57e   : > { %15206 = vst [vmem:[#allocation272_spill] sm:$0xff] %v13177_v30 }
 0x580   : > { %v13155_v50 = vpop.permute.xlu1 %5612 }
 0x581   : > { %15203 = vst [vmem:[#allocation269_spill] sm:$0xff] %v13155_v50 }
 0x584   : > { %v13166_v5 = vpop.permute.xlu1 %5654 }
 0x585   : > { %15205 = vst [vmem:[#allocation271_spill] sm:$0xff] %v13166_v5 }
 0x587   : > { %v13109_v2 = vpop.f32.mrb[112].mxu1 }
 0x588   : > { %15196 = vst [vmem:[#allocation262_spill] sm:$0xff] %v13109_v2  ;;  %4976 = vrot.lane.b32.xlu0 %v13109_v2, %s14947_s25  ;;  %5387 = vrot.lane.b32.xlu1 %v13109_v2, %s14904_s16  ;;  %v13115_v7 = vpop.f32.mrb[112].mxu0  ;;  %v13117_v24 = vpop.f32.mrb[113].mxu1  ;;  %v5015_v12 = vrot.slane %v13109_v2, 1 }
 0x589   : > { %15197 = vst [vmem:[#allocation263_spill] sm:$0xff] %v13115_v7  ;;  %v13121_v56 = vpop.f32.mrb[113].mxu0  ;;  %v5014_v48 = vrot.slane %v13115_v7, 1  ;;  %v13172_v33 = vrot.slane %v13117_v24, 1  ;;  %v13179_v3 = vpop.permute.xlu1 %4519 }
 0x58a   : > { %15207 = vst [vmem:[#allocation273_spill] sm:$0xff] %v13179_v3  ;;  %v5049_v3 = vrot.slane %v13121_v56, 2 }
 0x58c   : > { %4440 = vrot.lane.b32.xlu1 %v13109_v2, %s14949_s29  ;;  %v13127_v60 = vpop.f32.mrb[114].mxu1  ;;  %5385 = vrot.lane.b32.xlu0 %v13115_v7, %s14904_s16 }
 0x58d   : > { %v13131_v28 = vpop.f32.mrb[115].mxu1  ;;  %v13186_v58 = vpop.permute.xlu1 %5761 }
 0x58e   : > { %15209 = vst [vmem:[#allocation275_spill] sm:$0xff] %v13186_v58 }
 0x590   : > { %v13137_v46 = vpop.f32.mrb[116].mxu1  ;;  %4438 = vrot.lane.b32.xlu1 %v13115_v7, %s14949_s29  ;;  %4974 = vrot.lane.b32.xlu0 %v13115_v7, %s14947_s25 }
 0x591   : > { %v13143_v51 = vpop.f32.mrb[117].mxu1  ;;  %v13203_v58 = vpop.permute.xlu1 %5569 }
 0x592   : > { %15212 = vst [vmem:[#allocation278_spill] sm:$0xff] %v13203_v58  ;;  %v5050_v58 = vrot.slane %v13117_v24, 2 }
 0x594   : > { %v13145_v31 = vpop.f32.mrb[118].mxu1  ;;  %5583 = vrot.lane.b32.xlu1 %v13117_v24, %s14900_s24  ;;  %6041 = vrot.lane.b32.xlu0 %v13117_v24, %s14902_s15 }
 0x595   : > { %v13153_v18 = vpop.f32.mrb[119].mxu1 }
 0x598   : > { %v4183_v8 = vpop.f32.mrb[120].mxu1  ;;  %5887 = vrot.lane.b32.xlu1 %v5015_v12, %s14902_s15  ;;  %5180 = vrot.lane.b32.xlu0 %v13117_v24, %s14945_s22 }
 0x599   : > { %v13161_v59 = vpop.f32.mrb[121].mxu1  ;;  %v5926_v8 = vrot.slane %v13109_v2, 2  ;;  %v13184_v2 = vpop.permute.xlu0 %5871 }
 0x59a   : > { %15208 = vst [vmem:[#allocation274_spill] sm:$0xff] %v13184_v2 }
 0x59c   : > { %5427 = vrot.lane.b32.xlu0 %v5015_v12, %s14900_s24  ;;  %5425 = vrot.lane.b32.xlu1 %v5014_v48, %s14900_s24  ;;  %v4188_v50 = vpop.f32.mrb[122].mxu1 }
 0x59d   : > { %v4189_v10 = vpop.f32.mrb[123].mxu1 }
 0x5a0   : > { %5932 = vrot.lane.b32.xlu0 %v5926_v8, %s14951_s12  ;;  %5629 = vrot.lane.b32.xlu1 %v13172_v33, %s14947_s25  ;;  %v4192_v29 = vpop.f32.mrb[124].mxu1  ;;  %v5925_v8 = vrot.slane %v13115_v7, 2  ;;  %v13217_v7 = vpop.permute.xlu1 %4665 }
 0x5a1   : > { %v4193_v5 = vpop.f32.mrb[125].mxu1  ;;  %15215 = vst [vmem:[#allocation281_spill] sm:$0xff] %v13217_v7 }
 0x5a4   : > { %5021 = vrot.lane.b32.xlu0 %v5015_v12, %s14945_s22  ;;  %5389 = vrot.lane.b32.xlu1 %v13127_v60, %s14904_s16  ;;  %v4261_v10 = vpop.f32.mrb[126].mxu1  ;;  %v13237_v7 = vpop.permute.xlu1 %5803 }
 0x5a5   : > { %v4262_v50 = vpop.f32.mrb[127].mxu1  ;;  %v13199_v10 = vpop.permute.xlu0 %5456  ;;  %15221 = vst [vmem:[#allocation287_spill] sm:$0xff] %v13237_v7 }
 0x5a6   : > { %15210 = vst [vmem:[#allocation276_spill] sm:$0xff] %v13199_v10 }
 0x5a8   : > { %5885 = vrot.lane.b32.xlu0 %v5014_v48, %s14902_s15  ;;  %4978 = vrot.lane.b32.xlu1 %v13127_v60, %s14947_s25  ;;  %v13191_v29 = vpop.f32.mrb[128].mxu1 }
 0x5a9   : > { %v4267_v5 = vpop.f32.mrb[129].mxu1  ;;  %v13215_v30 = vpop.permute.xlu0 %5000 }
 0x5aa   : > { %15214 = vst [vmem:[#allocation280_spill] sm:$0xff] %v13215_v30 }
 0x5ac   : > { %5930 = vrot.lane.b32.xlu0 %v5925_v8, %s14951_s12  ;;  %4442 = vrot.lane.b32.xlu1 %v13127_v60, %s14949_s29  ;;  %v13197_v12 = vpop.f32.mrb[130].mxu1  ;;  %v13213_v8 = vrot.slane %v13131_v28, 1 }
 0x5ad   : > { %v13201_v50 = vpop.f32.mrb[131].mxu1 }
 0x5ae   : > { %15211 = vst [vmem:[#allocation277_spill] sm:$0xff] %v13201_v50 }
 0x5b0   : > { %5019 = vrot.lane.b32.xlu0 %v5014_v48, %s14945_s22  ;;  %5585 = vrot.lane.b32.xlu1 %v13131_v28, %s14900_s24  ;;  %v13208_v5 = vpop.f32.mrb[132].mxu1 }
 0x5b1   : > { %v13210_v2 = vpop.f32.mrb[133].mxu1 }
 0x5b2   : > { %15213 = vst [vmem:[#allocation279_spill] sm:$0xff] %v13210_v2  ;;  %v13233_v2 = vpop.permute.xlu0 %6065 }
 0x5b3   : > { %15219 = vst [vmem:[#allocation285_spill] sm:$0xff] %v13233_v2  ;;  %v5927_v2 = vrot.slane %v13127_v60, 2 }
 0x5b4   : > { %6081 = vrot.lane.b32.xlu0 %v13172_v33, %s14951_s12  ;;  %5631 = vrot.lane.b32.xlu1 %v13213_v8, %s14947_s25  ;;  %v13223_v48 = vpop.f32.mrb[134].mxu1 }
 0x5b5   : > { %15216 = vst [vmem:[#allocation282_spill] sm:$0xff] %v13223_v48  ;;  %v13225_v50 = vpop.f32.mrb[135].mxu1 }
 0x5b6   : > { %15217 = vst [vmem:[#allocation283_spill] sm:$0xff] %v13225_v50  ;;  %v13247_v48 = vpop.permute.xlu0 %6105 }
 0x5b7   : > { %15224 = vst [vmem:[#allocation290_spill] sm:$0xff] %v13247_v48  ;;  %v13263_v48 = vrot.slane %v13143_v51, 1 }
 0x5b8   : > { %6122 = vrot.lane.b32.xlu0 %v5050_v58, %s14949_s29  ;;  %5391 = vrot.lane.b32.xlu1 %v13137_v46, %s14904_s16  ;;  %v13231_v30 = vpop.f32.mrb[136].mxu1 }
 0x5b9   : > { %15218 = vst [vmem:[#allocation284_spill] sm:$0xff] %v13231_v30  ;;  %v13235_v10 = vpop.f32.mrb[137].mxu1  ;;  %v13249_v30 = vpop.permute.xlu1 %6262 }
 0x5ba   : > { %15220 = vst [vmem:[#allocation286_spill] sm:$0xff] %v13235_v10  ;;  %15225 = vst [vmem:[#allocation291_spill] sm:$0xff] %v13249_v30 }
 0x5bc   : > { %5056 = vrot.lane.b32.xlu0 %v5050_v58, %s14904_s16  ;;  %4980 = vrot.lane.b32.xlu1 %v13137_v46, %s14947_s25  ;;  %v13242_v50 = vpop.f32.mrb[138].mxu1 }
 0x5bd   : > { %15222 = vst [vmem:[#allocation288_spill] sm:$0xff] %v13242_v50  ;;  %v13244_v24 = vpop.f32.mrb[139].mxu1  ;;  %v13260_v10 = vpop.permute.xlu1 %4700 }
 0x5be   : > { %15223 = vst [vmem:[#allocation289_spill] sm:$0xff] %v13244_v24  ;;  %v13258_v24 = vpop.permute.xlu0 %4421  ;;  %15226 = vst [vmem:[#allocation292_spill] sm:$0xff] %v13260_v10 }
 0x5c0   : > { %4444 = vrot.lane.b32.xlu1 %v13137_v46, %s14949_s29  ;;  %5054 = vrot.lane.b32.xlu0 %v5049_v3, %s14904_s16  ;;  %v4300_v7 = vpop.f32.mrb[140].mxu1  ;;  %v5016_v3 = vrot.slane %v13127_v60, 1 }
 0x5c1   : > { %v4301_v58 = vpop.f32.mrb[141].mxu1 }
 0x5c2   : > { %v13270_v7 = vpop.permute.xlu0 %6303  ;;  %v13272_v58 = vpop.permute.xlu1 %5236 }
 0x5c3   : > { %15227 = vst [vmem:[#allocation293_spill] sm:$0xff] %v13270_v7  ;;  %15228 = vst [vmem:[#allocation294_spill] sm:$0xff] %v13272_v58 }
 0x5c4   : > { %5587 = vrot.lane.b32.xlu1 %v13143_v51, %s14900_s24  ;;  %6043 = vrot.lane.b32.xlu0 %v13131_v28, %s14902_s15 }
 0x5c6   : > { %v13280_v10 = vpop.permute.xlu0 %5413  ;;  %v13282_v30 = vpop.permute.xlu1 %4755 }
 0x5c7   : > { %15229 = vst [vmem:[#allocation295_spill] sm:$0xff] %v13280_v10  ;;  %15230 = vst [vmem:[#allocation296_spill] sm:$0xff] %v13282_v30  ;;  %v13296_v10 = vrot.slane %v13153_v18, 1 }
 0x5c8   : > { %5633 = vrot.lane.b32.xlu1 %v13263_v48, %s14947_s25  ;;  %5182 = vrot.lane.b32.xlu0 %v13131_v28, %s14945_s22 }
 0x5ca   : > { %v13288_v58 = vpop.permute.xlu0 %5873  ;;  %v13290_v7 = vpop.permute.xlu1 %5913 }
 0x5cb   : > { %15231 = vst [vmem:[#allocation297_spill] sm:$0xff] %v13288_v58  ;;  %15232 = vst [vmem:[#allocation298_spill] sm:$0xff] %v13290_v7  ;;  %v5051_v7 = vrot.slane %v13131_v28, 2 }
 0x5cc   : > { %5393 = vrot.lane.b32.xlu1 %v13145_v31, %s14904_s16  ;;  %5429 = vrot.lane.b32.xlu0 %v5016_v3, %s14900_s24 }
 0x5ce   : > { %v13302_v30 = vpop.permute.xlu0 %5458 }
 0x5cf   : > { %15233 = vst [vmem:[#allocation299_spill] sm:$0xff] %v13302_v30 }
 0x5d0   : > { %4982 = vrot.lane.b32.xlu1 %v13145_v31, %s14947_s25  ;;  %5889 = vrot.lane.b32.xlu0 %v5016_v3, %s14902_s15 }
 0x5d2   : > { %v13313_v58 = vpop.permute.xlu0 %5002 }
 0x5d3   : > { %15235 = vst [vmem:[#allocation301_spill] sm:$0xff] %v13313_v58  ;;  %v4324_v58 = vadd.f32 %v12407_v15, %v11501_v14  ;;  %v4323_v14 = vadd.f32 %v12498_v38, %v11496_v62 }
 0x5d4   : > { %4446 = vrot.lane.b32.xlu1 %v13145_v31, %s14949_s29  ;;  %5934 = vrot.lane.b32.xlu0 %v5927_v2, %s14951_s12  ;;  %v13304_v2 = vpop.permute.xlu1 %5614 }
 0x5d5   : > { %15234 = vst [vmem:[#allocation300_spill] sm:$0xff] %v13304_v2 }
 0x5d6   : > { %v13324_v28 = vpop.permute.xlu0 %6067 }
 0x5d7   : > { %15237 = vst [vmem:[#allocation303_spill] sm:$0xff] %v13324_v28  ;;  %v4354_v28 = vadd.f32 %v11873_v27, %v4324_v58  ;;  %v4353_v27 = vadd.f32 %v11802_v6, %v4323_v14  ;;  %v5990_v58 = vrot.slane %v12025_v63, 1 }
 0x5d8   : > { %5589 = vrot.lane.b32.xlu1 %v13153_v18, %s14900_s24  ;;  %5023 = vrot.lane.b32.xlu0 %v5016_v3, %s14945_s22  ;;  %v13311_v3 = vrot.slane %v13197_v12, 1  ;;  %v13315_v50 = vpop.permute.xlu1 %5656 }
 0x5d9   : > { %15236 = vst [vmem:[#allocation302_spill] sm:$0xff] %v13315_v50  ;;  %v4378_v38 = vadd.f32 %v12359_v9, %v4353_v27 }
 0x5da   : > { %v13335_v50 = vpop.permute.xlu0 %6107 }
 0x5db   : > { %15239 = vst [vmem:[#allocation305_spill] sm:$0xff] %v13335_v50  ;;  %v4379_v50 = vadd.f32 %v12510_v16, %v4354_v28 }
 0x5dc   : > { %5635 = vrot.lane.b32.xlu1 %v13296_v10, %s14947_s25  ;;  %6083 = vrot.lane.b32.xlu0 %v13213_v8, %s14951_s12  ;;  %v13326_v30 = vpop.permute.xlu1 %5763 }
 0x5dd   : > { %15238 = vst [vmem:[#allocation304_spill] sm:$0xff] %v13326_v30  ;;  %v14899_v30 = vrot.slane %v11537_v35, 1 }
 0x5de   : > { %v13350_v15 = vpop.permute.xlu0 %6305 }
 0x5df   : > { %15241 = vst [vmem:[#allocation307_spill] sm:$0xff] %v13350_v15  ;;  %v4404_v15 = vadd.f32 %v11928_v41, %v4379_v50 }
 0x5e0   : > { %6124 = vrot.lane.b32.xlu0 %v5051_v7, %s14949_s29  ;;  %5778 = vrot.lane.b32.xlu1 %v13197_v12, %s14947_s25  ;;  %v13337_v2 = vpop.permute.xlu1 %5805 }
 0x5e1   : > { %15240 = vst [vmem:[#allocation306_spill] sm:$0xff] %v13337_v2  ;;  %v5928_v2 = vrot.slane %v13137_v46, 2  ;;  %v4429_v16 = vadd.f32 %v12946_v37, %v4404_v15  ;;  %v5052_v37 = vrot.slane %v13143_v51, 2 }
 0x5e4   : > { %5058 = vrot.lane.b32.xlu0 %v5051_v7, %s14904_s16  ;;  %5820 = vrot.lane.b32.xlu1 %v13311_v3, %s14945_s22  ;;  %v5017_v7 = vrot.slane %v13137_v46, 1 }
 0x5e8   : > { %6045 = vrot.lane.b32.xlu0 %v13143_v51, %s14902_s15  ;;  %6278 = vrot.lane.b32.xlu1 %v13311_v3, %s14949_s29 }
 0x5ec   : > { %5184 = vrot.lane.b32.xlu0 %v13143_v51, %s14945_s22  ;;  %4471 = vrot.lane.b32.xlu1 %v12894_v13, %s14945_s22  ;;  %v13352_v13 = vpop.permute.xlu1 %6264 }
 0x5ed   : > { %15242 = vst [vmem:[#allocation308_spill] sm:$0xff] %v13352_v13  ;;  %v4403_v13 = vadd.f32 %v11841_v52, %v4378_v38  ;;  %v4488_v52 = vrot.slane %v13121_v56, 1 }
 0x5ef   : > { %v4428_v9 = vadd.f32 %v12899_v19, %v4403_v13 }
 0x5f0   : > { %5431 = vrot.lane.b32.xlu0 %v5017_v7, %s14900_s24  ;;  %5500 = vrot.lane.b32.xlu1 %v12025_v63, %s14949_s29 }
 0x5f4   : > { %5891 = vrot.lane.b32.xlu0 %v5017_v7, %s14902_s15  ;;  %5521 = vrot.lane.b32.xlu1 %v14899_v30, %s14945_s22 }
 0x5f8   : > { %5936 = vrot.lane.b32.xlu0 %v5928_v2, %s14951_s12  ;;  %4521 = vrot.lane.b32.xlu1 %v12940_v57, %s14904_s16 }
 0x5fa   : > { %v13361_v30 = vpop.permute.xlu0 %4976  ;;  %v5388_v62 = vpop.permute.xlu1 %5387 }
 0x5fc   : > { %5025 = vrot.lane.b32.xlu0 %v5017_v7, %s14945_s22  ;;  %5999 = vrot.lane.b32.xlu1 %v5990_v58, %s14945_s22 }
 0x5fe   : > { %v4441_v2 = vpop.permute.xlu1 %4440  ;;  %v5386_v28 = vpop.permute.xlu0 %5385 }
 0x5ff   : > { %v4454_v6 = vadd.f32 %v4441_v2, %v4429_v16 }
 0x600   : > { %6085 = vrot.lane.b32.xlu0 %v13263_v48, %s14951_s12  ;;  %5082 = vrot.lane.b32.xlu1 %v12031_v54, %s14902_s15 }
 0x601   : > { %v4479_v41 = vadd.f32 %v12991_v36, %v4454_v6 }
 0x602   : > { %v4439_v50 = vpop.permute.xlu1 %4438  ;;  %v13375_v7 = vpop.permute.xlu0 %4974 }
 0x603   : > { %v4499_v14 = vadd.f32 %v13172_v33, %v4479_v41  ;;  %v4453_v15 = vadd.f32 %v4439_v50, %v4428_v9  ;;  %v5401_v33 = vadd.f32 %v5388_v62, %v12558_v43  ;;  %v4325_v62 = vadd.f32 %v12487_v17, %v11506_v21  ;;  %v15243_v50 = vld [vmem:[#allocation41_spill] sm:$0xff] }
 0x604   : > { %6126 = vrot.lane.b32.xlu0 %v5052_v37, %s14949_s29  ;;  %4571 = vrot.lane.b32.xlu1 %v12031_v54, %s14900_s24 }
 0x605   : > { %v4529_v27 = vadd.f32 %v13010_v39, %v4499_v14  ;;  %v4478_v19 = vadd.f32 %v12927_v1, %v4453_v15  ;;  %v5400_v39 = vadd.f32 %v5386_v28, %v12548_v53  ;;  %v15244_v14 = vld [vmem:[#allocation39_spill] sm:$0xff] }
 0x606   : > { %v13385_v36 = vpop.permute.xlu1 %5583  ;;  %v13387_v13 = vpop.permute.xlu0 %6041  ;;  %v4355_v15 = vadd.f32 %v15244_v14, %v4325_v62  ;;  %v15259_v14 = vld [vmem:[#allocation40_spill] sm:$0xff] }
 0x607   : > { %v4554_v51 = vadd.f32 %v11944_v32, %v4529_v27  ;;  %v4498_v58 = vadd.f32 %v4488_v52, %v4478_v19  ;;  %v13402_v32 = vrot.slane %v13208_v5, 1  ;;  %v5420_v53 = vadd.f32 %v12909_v42, %v5400_v39  ;;  %v15245_v52 = vld [vmem:[#allocation31_spill] sm:$0xff] }
 0x608   : > { %5060 = vrot.lane.b32.xlu0 %v5052_v37, %s14904_s16  ;;  %6240 = vrot.lane.b32.xlu1 %v13208_v5, %s14951_s12  ;;  %v15246_v19 = vld [vmem:[#allocation23_spill] sm:$0xff] }
 0x609   : > { %v4579_v56 = vadd.f32 %v12500_v40, %v4554_v51  ;;  %v4528_v1 = vadd.f32 %v12936_v47, %v4498_v58  ;;  %v5421_v40 = vadd.f32 %v13041_v4, %v5401_v33  ;;  %v15247_v58 = vld [vmem:[#allocation29_spill] sm:$0xff]  ;;  %v15250_v33 = vld [vmem:[#allocation114_spill] sm:$0xff] }
 0x60a   : > { %v13397_v38 = vpop.permute.xlu1 %5887  ;;  %v13399_v16 = vpop.permute.xlu0 %5180 }
 0x60b   : > { %v4553_v2 = vadd.f32 %v11920_v20, %v4528_v1  ;;  %v4604_v6 = vadd.f32 %v11930_v22, %v4579_v56  ;;  %v15251_v1 = vld [vmem:[#allocation13_spill] sm:$0xff] }
 0x60c   : > { %6047 = vrot.lane.b32.xlu0 %v13153_v18, %s14902_s15  ;;  %5822 = vrot.lane.b32.xlu1 %v13402_v32, %s14945_s22 }
 0x60d   : > { %v4578_v43 = vadd.f32 %v12427_v44, %v4553_v2  ;;  %v4629_v47 = vadd.f32 %v12520_v49, %v4604_v6  ;;  %v14908_v2 = vrot.slane %v15251_v1, 1 }
 0x60e   : > { %v5428_v20 = vpop.permute.xlu0 %5427  ;;  %v5426_v28 = vpop.permute.xlu1 %5425 }
 0x60f   : > { %v5441_v22 = vadd.f32 %v5428_v20, %v5421_v40  ;;  %v5440_v9 = vadd.f32 %v5426_v28, %v5420_v53  ;;  %v4603_v41 = vadd.f32 %v11888_v61, %v4578_v43  ;;  %v4654_v37 = vadd.f32 %v15243_v50, %v4629_v47  ;;  %v15252_v40 = vld [vmem:[#allocation160_spill] sm:$0xff] }
 0x610   : > { %5186 = vrot.lane.b32.xlu0 %v13153_v18, %s14945_s22  ;;  %6280 = vrot.lane.b32.xlu1 %v13402_v32, %s14949_s29  ;;  %v13429_v61 = vrot.slane %v13145_v31, 1  ;;  %v4380_v53 = vadd.f32 %v15252_v40, %v4355_v15  ;;  %v15253_v47 = vld [vmem:[#allocation24_spill] sm:$0xff]  ;;  %v14907_v40 = vrot.slane %v12622_v11, 1 }
 0x611   : > { %v5466_v44 = vadd.f32 %v12987_v34, %v5441_v22  ;;  %v5465_v49 = vadd.f32 %v12922_v23, %v5440_v9  ;;  %v4628_v21 = vadd.f32 %v12466_v55, %v4603_v41  ;;  %v4675_v17 = vadd.f32 %v13028_v45, %v4654_v37  ;;  %v15249_v23 = vld [vmem:[#allocation130_spill] sm:$0xff]  ;;  %v15254_v20 = vld [vmem:[#allocation36_spill] sm:$0xff]  ;;  %v15255_v22 = vld [vmem:[#allocation71_spill] sm:$0xff] }
 0x612   : > { %v13426_v4 = vpop.permute.xlu0 %5932  ;;  %v5630_v42 = vpop.permute.xlu1 %5629  ;;  %v5929_v37 = vrot.slane %v13145_v31, 2 }
 0x613   : > { %v5487_v27 = vadd.f32 %v15245_v52, %v5466_v44  ;;  %v5486_v51 = vadd.f32 %v15246_v19, %v5465_v49  ;;  %v4653_v34 = vadd.f32 %v15247_v58, %v4628_v21  ;;  %v13440_v55 = vadd.f32 %v4675_v17, %v13197_v12  ;;  %v15257_v44 = vld [vmem:[#allocation91_spill] sm:$0xff]  ;;  %v15258_v21 = vld [vmem:[#allocation73_spill] sm:$0xff] }
 0x614   : > { %5433 = vrot.lane.b32.xlu0 %v13429_v61, %s14900_s24  ;;  %5571 = vrot.lane.b32.xlu1 %v12622_v11, %s14902_s15  ;;  %v4405_v17 = vadd.f32 %v15258_v21, %v4380_v53  ;;  %v13478_v58 = vrot.slane %v12031_v54, 1  ;;  %v15266_v21 = vld [vmem:[#allocation225_spill] sm:$0xff] }
 0x615   : > { %15248 = vst [vmem:[#allocation41_spill] sm:$0xff] %v13440_v55  ;;  %v5508_v45 = vadd.f32 %v15249_v23, %v5487_v27  ;;  %v5507_v56 = vadd.f32 %v15250_v33, %v5486_v51  ;;  %v4674_v39 = vadd.f32 %v12963_v26, %v4653_v34  ;;  %v15260_v34 = vld [vmem:[#allocation79_spill] sm:$0xff]  ;;  %v15299_v55 = vld [vmem:[#allocation110_spill] sm:$0xff] }
 0x616   : > { %v13446_v6 = vpop.permute.xlu0 %5021  ;;  %v13448_v43 = vpop.permute.xlu1 %5389  ;;  %v4430_v52 = vadd.f32 %v13081_v25, %v4405_v17  ;;  %v15261_v25 = vld [vmem:[#allocation223_spill] sm:$0xff] }
 0x617   : > { %v5528_v62 = vadd.f32 %v15253_v47, %v5507_v56  ;;  %v5529_v28 = vadd.f32 %v15254_v20, %v5508_v45  ;;  %v13459_v26 = vadd.f32 %v4674_v39, %v13191_v29  ;;  %v15263_v47 = vld [vmem:[#allocation230_spill] sm:$0xff] }
 0x618   : > { %5893 = vrot.lane.b32.xlu0 %v13429_v61, %s14902_s15  ;;  %4596 = vrot.lane.b32.xlu1 %v14908_v2, %s14951_s12  ;;  %v15294_v2 = vld [vmem:[#allocation162_spill] sm:$0xff] }
 0x619   : > { %v5538_v9 = vadd.f32 %v5528_v62, %v15255_v22  ;;  %v5539_v49 = vadd.f32 %v5529_v28, %v15257_v44  ;;  %v15264_v28 = vld [vmem:[#allocation8_spill] sm:$0xff]  ;;  %v15265_v22 = vld [vmem:[#allocation147_spill] sm:$0xff] }
 0x61a   : > { %v13462_v41 = vpop.permute.xlu0 %5885  ;;  %v13464_v50 = vpop.permute.xlu1 %4978 }
 0x61b   : > { %15256 = vst [vmem:[#allocation39_spill] sm:$0xff] %v13464_v50  ;;  %v5558_v15 = vadd.f32 %v15259_v14, %v5538_v9  ;;  %v5559_v23 = vadd.f32 %v15260_v34, %v5539_v49  ;;  %v4326_v9 = vadd.f32 %v15265_v22, %v15264_v28  ;;  %v15267_v14 = vld [vmem:[#allocation246_spill] sm:$0xff]  ;;  %v15274_v22 = vld [vmem:[#allocation244_spill] sm:$0xff]  ;;  %v15312_v50 = vld [vmem:[#allocation45_spill] sm:$0xff] }
 0x61c   : > { %5938 = vrot.lane.b32.xlu0 %v5929_v37, %s14951_s12  ;;  %5591 = vrot.lane.b32.xlu1 %v13161_v59, %s14900_s24 }
 0x61d   : > { %v5578_v27 = vadd.f32 %v12955_v0, %v5558_v15  ;;  %v15262_v0 = vld [vmem:[#allocation241_spill] sm:$0xff]  ;;  %v5579_v62 = vadd.f32 %v15263_v47, %v5559_v23  ;;  %v15269_v23 = vld [vmem:[#allocation58_spill] sm:$0xff]  ;;  %v15272_v47 = vld [vmem:[#allocation60_spill] sm:$0xff] }
 0x61e   : > { %v13475_v19 = vpop.permute.xlu0 %5930  ;;  %v4443_v51 = vpop.permute.xlu1 %4442 }
 0x61f   : > { %v5598_v45 = vadd.f32 %v13385_v36, %v5578_v27  ;;  %v4455_v33 = vadd.f32 %v4443_v51, %v4430_v52  ;;  %v14909_v36 = vrot.slane %v13153_v18, 2  ;;  %v13505_v52 = vrot.slane %v15251_v1, 2 }
 0x620   : > { %6087 = vrot.lane.b32.xlu0 %v13296_v10, %s14951_s12  ;;  %4621 = vrot.lane.b32.xlu1 %v13478_v58, %s14947_s25 }
 0x621   : > { %v5623_v56 = vadd.f32 %v15261_v25, %v5598_v45  ;;  %v4480_v39 = vadd.f32 %v15262_v0, %v4455_v33  ;;  %v4356_v45 = vadd.f32 %v15269_v23, %v4326_v9  ;;  %v15270_v33 = vld [vmem:[#allocation32_spill] sm:$0xff] }
 0x622   : > { %v13489_v53 = vpop.permute.xlu0 %5019  ;;  %v5586_v20 = vpop.permute.xlu1 %5585 }
 0x623   : > { %v5644_v37 = vadd.f32 %v5630_v42, %v5623_v56  ;;  %v4500_v44 = vadd.f32 %v13213_v8, %v4480_v39  ;;  %v5599_v49 = vadd.f32 %v5586_v20, %v5579_v62  ;;  %v4719_v42 = vrot.slane %v13191_v29, 1  ;;  %v15268_v8 = vld [vmem:[#allocation242_spill] sm:$0xff]  ;;  %v15273_v20 = vld [vmem:[#allocation153_spill] sm:$0xff] }
 0x624   : > { %6128 = vrot.lane.b32.xlu0 %v14909_v36, %s14949_s29  ;;  %5616 = vrot.lane.b32.xlu1 %v14907_v40, %s14951_s12  ;;  %v15271_v56 = vld [vmem:[#allocation86_spill] sm:$0xff]  ;;  %v5402_v36 = vadd.f32 %v13448_v43, %v15294_v2  ;;  %v15300_v2 = vld [vmem:[#allocation120_spill] sm:$0xff] }
 0x625   : > { %v5665_v17 = vadd.f32 %v15266_v21, %v5644_v37  ;;  %v4530_v15 = vadd.f32 %v15267_v14, %v4500_v44  ;;  %v5624_v51 = vadd.f32 %v15268_v8, %v5599_v49  ;;  %v14906_v49 = vrot.slane %v13161_v59, 1  ;;  %v15275_v21 = vld [vmem:[#allocation191_spill] sm:$0xff]  ;;  %v15277_v8 = vld [vmem:[#allocation46_spill] sm:$0xff] }
 0x626   : > { %v13508_v27 = vpop.permute.xlu0 %6081  ;;  %v5632_v34 = vpop.permute.xlu1 %5631  ;;  %v15276_v14 = vld [vmem:[#allocation63_spill] sm:$0xff] }
 0x627   : > { %v5686_v25 = vadd.f32 %v15270_v33, %v5665_v17  ;;  %v4555_v0 = vadd.f32 %v15271_v56, %v4530_v15  ;;  %v5645_v39 = vadd.f32 %v5632_v34, %v5624_v51  ;;  %v4381_v17 = vadd.f32 %v15275_v21, %v4356_v45  ;;  %v15278_v34 = vld [vmem:[#allocation175_spill] sm:$0xff] }
 0x628   : > { %5210 = vrot.lane.b32.xlu0 %v4719_v42, %s14904_s16  ;;  %4646 = vrot.lane.b32.xlu1 %v13505_v52, %s14949_s29  ;;  %v5250_v33 = vrot.slane %v13191_v29, 2  ;;  %s926_s16 = scalar_lea.vmem [#allocation3], %s11091_s13 }
 0x629   : > { %v13518_v62 = vadd.f32 %v5686_v25, %v15272_v47  ;;  %v4580_v28 = vadd.f32 %v15273_v20, %v4555_v0  ;;  %v5666_v37 = vadd.f32 %v15274_v22, %v5645_v39  ;;  %v15279_v25 = vld [vmem:[#allocation65_spill] sm:$0xff]  ;;  %v15284_v20 = vld [vmem:[#allocation68_spill] sm:$0xff] }
 0x62a   : > { %v13522_v44 = vpop.permute.xlu0 %6122  ;;  %v13524_v9 = vpop.permute.xlu1 %5391  ;;  %v15282_v39 = vld [vmem:[#allocation101_spill] sm:$0xff]  ;;  %v15285_v22 = vld [vmem:[#allocation268_spill] sm:$0xff] }
 0x62b   : > { %v4605_v15 = vadd.f32 %v15276_v14, %v4580_v28  ;;  %v5687_v51 = vadd.f32 %v15277_v8, %v5666_v37  ;;  %v4406_v47 = vadd.f32 %v15282_v39, %v4381_v17 }
 0x62c   : > { %4724 = vrot.lane.b32.xlu0 %v4719_v42, %s14902_s15  ;;  %5637 = vrot.lane.b32.xlu1 %v14906_v49, %s14947_s25  ;;  %v15283_v42 = vld [vmem:[#allocation282_spill] sm:$0xff] }
 0x62d   : > { %v4630_v23 = vadd.f32 %v15278_v34, %v4605_v15  ;;  %v13537_v56 = vadd.f32 %v5687_v51, %v15279_v25  ;;  %v4431_v37 = vadd.f32 %v15285_v22, %v4406_v47  ;;  %v13552_v14 = vrot.slane %v15283_v42, 1  ;;  %v15286_v15 = vld [vmem:[#allocation251_spill] sm:$0xff]  ;;  %v9021_v25 = vld [vmem:[%s14823_s5 + $0x38] sm:$0xff]  ;;  %v9020_v22 = vld [vmem:[%s14823_s5 + $0x30] sm:$0xff] }
 0x62e   : > { %v13539_v0 = vpop.permute.xlu0 %5056  ;;  %v13541_v45 = vpop.permute.xlu1 %4980  ;;  %v15288_v34 = vld [vmem:[#allocation267_spill] sm:$0xff] }
 0x62f   : > { %15280 = vst [vmem:[#allocation31_spill] sm:$0xff] %v13537_v56  ;;  %15281 = vst [vmem:[#allocation23_spill] sm:$0xff] %v13541_v45  ;;  %v4655_v28 = vadd.f32 %v15284_v20, %v4630_v23 }
 0x630   : > { %5255 = vrot.lane.b32.xlu0 %v5250_v33, %s14900_s24  ;;  %6242 = vrot.lane.b32.xlu1 %v15283_v42, %s14951_s12  ;;  %v9019_v33 = vld [vmem:[%s14823_s5 + $0x28] sm:$0xff]  ;;  %s15313_s24 = smov 112  }
 0x631   : > { %v4676_v8 = vadd.f32 %v15286_v15, %v4655_v28  ;;  %v10367_v20 = vpack.c.bf16 %v9021_v25, %v9019_v33  ;;  %v9018_v28 = vld [vmem:[%s14823_s5 + $0x20] sm:$0xff]  ;;  %v15293_v25 = vld [vmem:[#allocation197_spill] sm:$0xff] }
 0x632   : > { %v4445_v21 = vpop.permute.xlu1 %4444  ;;  %v13549_v29 = vpop.permute.xlu0 %5054  ;;  %v10369_v33 = vpack.c.bf16 %v9020_v22, %v9018_v28  ;;  %v15302_v22 = vld [vmem:[#allocation254_spill] sm:$0xff] }
 0x633   : > { %v4456_v51 = vadd.f32 %v4445_v21, %v4431_v37  ;;  %v13560_v17 = vadd.f32 %v4676_v8, %v13208_v5  ;;  %v15289_v37 = vld [vmem:[#allocation10_spill] sm:$0xff]  ;;  %v15290_v21 = vld [vmem:[#allocation181_spill] sm:$0xff]  ;;  %10368 = vmatprep.subr.bf16.mxu0 %v10367_v20 }
 0x634   : > { %6238 = vrot.lane.b32.xlu0 %v13197_v12, %s14951_s12  ;;  %5824 = vrot.lane.b32.xlu1 %v13552_v14, %s14945_s22  ;;  %v4327_v15 = vadd.f32 %v15290_v21, %v15289_v37  ;;  %v15291_v8 = vld [vmem:[#allocation69_spill] sm:$0xff] }
 0x635   : > { %15287 = vst [vmem:[#allocation29_spill] sm:$0xff] %v13560_v17  ;;  %v4481_v23 = vadd.f32 %v15288_v34, %v4456_v51  ;;  %v15292_v51 = vld [vmem:[#allocation92_spill] sm:$0xff]  ;;  %v15295_v17 = vld [vmem:[#allocation273_spill] sm:$0xff]  ;;  %10370 = vmatpush1.bf16.msra.mxu0 %v10369_v33 }
 0x636   : > { %v13569_v39 = vpop.permute.xlu1 %5587  ;;  %v13571_v47 = vpop.permute.xlu0 %6043  ;;  %v4908_v34 = vadd.f32 %v15292_v51, %v15291_v8  ;;  %v15298_v8 = vld [vmem:[#allocation237_spill] sm:$0xff] }
 0x637   : > { %v4501_v49 = vadd.f32 %v13263_v48, %v4481_v23  ;;  %v15296_v48 = vld [vmem:[#allocation94_spill] sm:$0xff] }
 0x638   : > { %5027 = vrot.lane.b32.xlu0 %v13429_v61, %s14945_s22  ;;  %6282 = vrot.lane.b32.xlu1 %v13552_v14, %s14949_s29  ;;  %v4928_v40 = vadd.f32 %v15293_v25, %v4908_v34  ;;  %v4357_v23 = vadd.f32 %v15296_v48, %v4327_v15  ;;  %v15297_v61 = vld [vmem:[#allocation262_spill] sm:$0xff]  ;;  %v5422_v34 = vadd.f32 %v15302_v22, %v5402_v36  ;;  %v6362_v15 = vld [vmem:[%s14823_s5 + $0x8] sm:$0xff]  ;;  %v15305_v36 = vrot.slane %v11537_v35, 1 }
 0x639   : > { %v4531_v45 = vadd.f32 %v15295_v17, %v4501_v49  ;;  %v5881_v51 = vadd.f32 %v15298_v8, %v15297_v61  ;;  %v15301_v17 = vld [vmem:[#allocation188_spill] sm:$0xff]  ;;  %v15308_v22 = vld [vmem:[#allocation239_spill] sm:$0xff]  ;;  %v15311_v35 = vld [vmem:[#allocation122_spill] sm:$0xff] }
 0x63a   : > { %v13592_v37 = vpop.permute.xlu1 %5633  ;;  %v13594_v21 = vpop.permute.xlu0 %5182  ;;  %v4948_v43 = vadd.f32 %v15300_v2, %v4928_v40  ;;  %v15303_v40 = vld [vmem:[#allocation212_spill] sm:$0xff]  ;;  %v15307_v2 = vld [vmem:[#allocation199_spill] sm:$0xff] }
 0x63b   : > { %v4556_v28 = vadd.f32 %v15299_v55, %v4531_v45  ;;  %v5901_v49 = vadd.f32 %v13397_v38, %v5881_v51  ;;  %v6364_v55 = vld [vmem:[%s14823_s5 + $0x18] sm:$0xff]  ;;  %v4382_v48 = vadd.f32 %v15303_v40, %v4357_v23  ;;  %v15304_v38 = vld [vmem:[#allocation168_spill] sm:$0xff] }
 0x63c   : > { %5958 = vrot.lane.b32.xlu0 %v12025_v63, %s14947_s25  ;;  %4667 = vrot.lane.b32.xlu1 %v12622_v11, %s14945_s22  ;;  %v14910_v63 = vrot.slane %v12622_v11, 2  ;;  %v10371_v25 = vpack.c.bf16 %v6364_v55, %v6362_v15  ;;  %v15306_v51 = vld [vmem:[#allocation96_spill] sm:$0xff]  ;;  %v15309_v55 = vld [vmem:[#allocation258_spill] sm:$0xff] }
 0x63d   : > { %v4581_v20 = vadd.f32 %v15301_v17, %v4556_v28  ;;  %v4973_v17 = vadd.f32 %v15307_v2, %v4948_v43  ;;  %v5921_v15 = vadd.f32 %v15308_v22, %v5901_v49  ;;  %v15314_v43 = vrot.slane %v13153_v18, 2  ;;  %v15315_v49 = vld [vmem:[#allocation16_spill] sm:$0xff] }
 0x63e   : > { %v5394_v45 = vpop.permute.xlu1 %5393  ;;  %v5430_v33 = vpop.permute.xlu0 %5429  ;;  %10372 = vmatprep.subr.bf16.mxu0 %v10371_v25 }
 0x63f   : > { %v13617_v61 = vadd.f32 %v5394_v45, %v15304_v38  ;;  %v5442_v8 = vadd.f32 %v5430_v33, %v5422_v34  ;;  %v4606_v28 = vadd.f32 %v15306_v51, %v4581_v20  ;;  %v15310_v34 = vld [vmem:[#allocation201_spill] sm:$0xff]  ;;  %v4407_v38 = vadd.f32 %v15311_v35, %v4382_v48  ;;  %v15316_v20 = vld [vmem:[#allocation98_spill] sm:$0xff]  ;;  %v15318_v48 = vld [vmem:[#allocation47_spill] sm:$0xff] }
 0x640   : > { %5978 = vrot.lane.b32.xlu0 %v15305_v36, %s14949_s29  ;;  %5658 = vrot.lane.b32.xlu1 %v14910_v63, %s14949_s29  ;;  %v5946_v36 = vadd.f32 %v13426_v4, %v5921_v15  ;;  %v15317_v51 = vld [vmem:[#allocation145_spill] sm:$0xff]  ;;  %v5711_v4 = vadd.f32 %v15318_v48, %v13518_v62  ;;  %v15320_v15 = vld [vmem:[#allocation148_spill] sm:$0xff]  ;;  %v15325_v62 = vld [vmem:[#allocation106_spill] sm:$0xff] }
 0x641   : > { %v5467_v23 = vadd.f32 %v15309_v55, %v5442_v8  ;;  %v4631_v33 = vadd.f32 %v15310_v34, %v4606_v28  ;;  %v4432_v8 = vadd.f32 %v13258_v24, %v4407_v38  ;;  %v15321_v55 = vld [vmem:[#allocation52_spill] sm:$0xff]  ;;  %v15331_v48 = vld [vmem:[#allocation34_spill] sm:$0xff] }
 0x642   : > { %v4983_v45 = vpop.permute.xlu1 %4982  ;;  %v13629_v40 = vpop.permute.xlu0 %5889  ;;  %v5966_v18 = vadd.f32 %v15320_v15, %v5946_v36  ;;  %v15323_v24 = vld [vmem:[#allocation240_spill] sm:$0xff]  ;;  %v15327_v36 = vld [vmem:[#allocation61_spill] sm:$0xff] }
 0x643   : > { %v5488_v63 = vadd.f32 %v15312_v50, %v5467_v23  ;;  %v13635_v56 = vadd.f32 %v4983_v45, %v4973_v17  ;;  %v4656_v25 = vadd.f32 %v15316_v20, %v4631_v33  ;;  %v15319_v17 = vld [vmem:[#allocation281_spill] sm:$0xff]  ;;  %v15328_v20 = vld [vmem:[#allocation103_spill] sm:$0xff] }
 0x644   : > { %5062 = vrot.lane.b32.xlu0 %v15314_v43, %s15313_s24  ;;  %5679 = vrot.lane.b32.xlu1 %v15315_v49, %s14945_s22  ;;  %v15326_v33 = vld [vmem:[#allocation137_spill] sm:$0xff]  ;;  %v5986_v49 = vadd.f32 %v15327_v36, %v5966_v18  ;;  %v15334_v18 = vrot.slane %v15251_v1, 1 }
 0x645   : > { %v5509_v28 = vadd.f32 %v15317_v51, %v5488_v63  ;;  %v4677_v22 = vadd.f32 %v15319_v17, %v4656_v25  ;;  %v5731_v35 = vadd.f32 %v15326_v33, %v5711_v4  ;;  %v15330_v51 = vld [vmem:[#allocation249_spill] sm:$0xff] }
 0x646   : > { %v4447_v2 = vpop.permute.xlu1 %4446  ;;  %v13647_v50 = vpop.permute.xlu0 %5934  ;;  %v15337_v33 = vld [vmem:[#allocation269_spill] sm:$0xff] }
 0x647   : > { %v5530_v23 = vadd.f32 %v15321_v55, %v5509_v28  ;;  %v4457_v45 = vadd.f32 %v4447_v2, %v4432_v8  ;;  %v13657_v63 = vadd.f32 %v4677_v22, %v15283_v42  ;;  %v15329_v8 = vld [vmem:[#allocation78_spill] sm:$0xff]  ;;  %v5751_v2 = vadd.f32 %v15331_v48, %v5731_v35  ;;  %v15332_v22 = vld [vmem:[#allocation139_spill] sm:$0xff] }
 0x648   : > { %4546 = vrot.lane.b32.xlu0 %v15251_v1, %s15322_s30  ;;  %4702 = vrot.lane.b32.xlu1 %v15323_v24, %s15313_s24  ;;  %v6007_v15 = vadd.f32 %v15332_v22, %v5986_v49  ;;  %v15339_v1 = vld [vmem:[#allocation250_spill] sm:$0xff]  ;;  %v15360_v24 = vld [vmem:[#allocation55_spill] sm:$0xff] }
 0x649   : > { %15324 = vst [vmem:[#allocation130_spill] sm:$0xff] %v13657_v63  ;;  %v5540_v34 = vadd.f32 %v5530_v23, %v15325_v62  ;;  %v15335_v23 = vld [vmem:[#allocation214_spill] sm:$0xff]  ;;  %v15336_v62 = vld [vmem:[#allocation228_spill] sm:$0xff]  ;;  %v15361_v63 = vld [vmem:[#allocation33_spill] sm:$0xff] }
 0x64a   : > { %v13661_v38 = vpop.permute.xlu1 %5589  ;;  %v13663_v43 = vpop.permute.xlu0 %5023 }
 0x64b   : > { %v5560_v25 = vadd.f32 %v15328_v20, %v5540_v34  ;;  %v5772_v34 = vadd.f32 %v15336_v62, %v5751_v2  ;;  %v15343_v62 = vld [vmem:[#allocation164_spill] sm:$0xff] }
 0x64c   : > { %5551 = vrot.lane.b32.xlu0 %v13505_v52, %s15313_s24  ;;  %6151 = vrot.lane.b32.xlu1 %v15329_v8, %s14945_s22 }
 0x64d   : > { %v5580_v28 = vadd.f32 %v15330_v51, %v5560_v25  ;;  %v15338_v25 = vld [vmem:[#allocation19_spill] sm:$0xff] }
 0x64e   : > { %v13673_v17 = vpop.permute.xlu1 %5635  ;;  %v6084_v4 = vpop.permute.xlu0 %6083  ;;  %v6017_v8 = vadd.f32 %v6007_v15, %v15338_v25 }
 0x64f   : > { %v5600_v55 = vadd.f32 %v13569_v39, %v5580_v28  ;;  %v15340_v28 = vld [vmem:[#allocation271_spill] sm:$0xff] }
 0x650   : > { %5102 = vrot.lane.b32.xlu0 %v15334_v18, %s15333_s21  ;;  %5238 = vrot.lane.b32.xlu1 %v15335_v23, %s15322_s30  ;;  %v6037_v15 = vadd.f32 %v15343_v62, %v6017_v8 }
 0x651   : > { %v5625_v36 = vadd.f32 %v15337_v33, %v5600_v55  ;;  %v15342_v55 = vld [vmem:[#allocation163_spill] sm:$0xff] }
 0x652   : > { %v6125_v20 = vpop.permute.xlu0 %6124  ;;  %v5779_v35 = vpop.permute.xlu1 %5778  ;;  %v5845_v18 = vrot.slane %v15342_v55, 2  ;;  %v15345_v33 = vld [vmem:[#allocation83_spill] sm:$0xff] }
 0x653   : > { %v5793_v51 = vadd.f32 %v5779_v35, %v5772_v34  ;;  %v5646_v49 = vadd.f32 %v13592_v37, %v5625_v36  ;;  %v15344_v37 = vld [vmem:[#allocation284_spill] sm:$0xff]  ;;  %v6057_v36 = vadd.f32 %v13571_v47, %v6037_v15  ;;  %v15349_v47 = vld [vmem:[#allocation165_spill] sm:$0xff] }
 0x654   : > { %5212 = vrot.lane.b32.xlu0 %v13311_v3, %s15313_s24  ;;  %4757 = vrot.lane.b32.xlu1 %v15335_v23, %s15333_s21  ;;  %v13710_v8 = vrot.slane %v15344_v37, 1 }
 0x655   : > { %v5814_v39 = vadd.f32 %v15339_v1, %v5793_v51  ;;  %v5667_v48 = vadd.f32 %v15340_v28, %v5646_v49  ;;  %v5251_v49 = vrot.slane %v13197_v12, 2  ;;  %v15347_v1 = vld [vmem:[#allocation70_spill] sm:$0xff]  ;;  %v15350_v28 = vld [vmem:[#allocation264_spill] sm:$0xff]  ;;  %v15352_v12 = vld [vmem:[#allocation263_spill] sm:$0xff] }
 0x656   : > { %v13692_v2 = vpop.permute.xlu0 %5058  ;;  %v5821_v22 = vpop.permute.xlu1 %5820  ;;  %15346 = vst [vmem:[#allocation13_spill] sm:$0xff] %v13710_v8 }
 0x657   : > { %15341 = vst [vmem:[#allocation114_spill] sm:$0xff] %v13692_v2  ;;  %v5835_v34 = vadd.f32 %v5821_v22, %v5814_v39  ;;  %v5688_v23 = vadd.f32 %v15345_v33, %v5667_v48  ;;  %v5403_v39 = vadd.f32 %v13524_v9, %v15349_v47  ;;  %v6077_v48 = vadd.f32 %v15350_v28, %v6057_v36  ;;  %v15355_v36 = vld [vmem:[#allocation256_spill] sm:$0xff] }
 0x658   : > { %4726 = vrot.lane.b32.xlu0 %v13311_v3, %s15322_s30  ;;  %6244 = vrot.lane.b32.xlu1 %v15344_v37, %s14951_s12  ;;  %v14911_v28 = vrot.slane %v12031_v54, 2 }
 0x659   : > { %v13702_v35 = vadd.f32 %v5845_v18, %v5835_v34  ;;  %v13713_v3 = vadd.f32 %v5688_v23, %v15347_v1  ;;  %v15353_v18 = vld [vmem:[#allocation229_spill] sm:$0xff]  ;;  %v6097_v15 = vadd.f32 %v6084_v4, %v6077_v48  ;;  %v15354_v23 = vld [vmem:[#allocation272_spill] sm:$0xff]  ;;  %v15357_v48 = vld [vmem:[#allocation266_spill] sm:$0xff] }
 0x65a   : > { %v13704_v25 = vpop.permute.xlu0 %6045  ;;  %v13706_v51 = vpop.permute.xlu1 %6278  ;;  %v5880_v62 = vadd.f32 %v15353_v18, %v15352_v12  ;;  %v5423_v9 = vadd.f32 %v15354_v23, %v5403_v39  ;;  %v15356_v4 = vld [vmem:[#allocation77_spill] sm:$0xff]  ;;  %v15359_v39 = vld [vmem:[#allocation276_spill] sm:$0xff] }
 0x65b   : > { %15348 = vst [vmem:[#allocation160_spill] sm:$0xff] %v13713_v3 }
 0x65c   : > { %5257 = vrot.lane.b32.xlu0 %v5251_v49, %s15333_s21  ;;  %5826 = vrot.lane.b32.xlu1 %v13710_v8, %s14945_s22  ;;  %v5900_v33 = vadd.f32 %v13462_v41, %v5880_v62  ;;  %v5882_v49 = vadd.f32 %v15355_v36, %v13127_v60  ;;  %v15358_v60 = vld [vmem:[#allocation231_spill] sm:$0xff] }
 0x65e   : > { %v13721_v22 = vpop.permute.xlu0 %5184  ;;  %v4472_v55 = vpop.permute.xlu1 %4471  ;;  %v5902_v18 = vadd.f32 %v13629_v40, %v5882_v49  ;;  %v5920_v41 = vadd.f32 %v15358_v60, %v5900_v33  ;;  %v15363_v49 = vld [vmem:[#allocation238_spill] sm:$0xff]  ;;  %v15365_v33 = vld [vmem:[#allocation111_spill] sm:$0xff] }
 0x65f   : > { %15351 = vst [vmem:[#allocation24_spill] sm:$0xff] %v13721_v22  ;;  %v4482_v34 = vadd.f32 %v4472_v55, %v4457_v45  ;;  %v13737_v45 = vrot.slane %v15356_v4, 1  ;;  %v6117_v55 = vadd.f32 %v15357_v48, %v6097_v15  ;;  %v4904_v15 = vadd.f32 %v15361_v63, %v15360_v24 }
 0x660   : > { %5780 = vrot.lane.b32.xlu0 %v13208_v5, %s14947_s25  ;;  %6284 = vrot.lane.b32.xlu1 %v13710_v8, %s14949_s29  ;;  %v5922_v48 = vadd.f32 %v15363_v49, %v5902_v18 }
 0x661   : > { %v4924_v60 = vadd.f32 %v15365_v33, %v4904_v15  ;;  %v4502_v22 = vadd.f32 %v13296_v10, %v4482_v34  ;;  %v15369_v10 = vld [vmem:[#allocation35_spill] sm:$0xff]  ;;  %v15370_v34 = vld [vmem:[#allocation138_spill] sm:$0xff] }
 0x662   : > { %v5432_v1 = vpop.permute.xlu0 %5431  ;;  %v13733_v47 = vpop.permute.xlu1 %5500  ;;  %v5947_v2 = vadd.f32 %v13647_v50, %v5922_v48  ;;  %v15371_v15 = vld [vmem:[#allocation119_spill] sm:$0xff]  ;;  %v15373_v50 = vld [vmem:[#allocation20_spill] sm:$0xff] }
 0x663   : > { %v5443_v12 = vadd.f32 %v5432_v1, %v5423_v9  ;;  %v6138_v9 = vadd.f32 %v6125_v20, %v6117_v55  ;;  %v15362_v1 = vld [vmem:[#allocation81_spill] sm:$0xff] }
 0x664   : > { %6029 = vrot.lane.b32.xlu0 %v14911_v28, %s15313_s24  ;;  %5724 = vrot.lane.b32.xlu1 %v13737_v45, %s15322_s30  ;;  %v15364_v28 = vld [vmem:[#allocation15_spill] sm:$0xff]  ;;  %v15367_v55 = vld [vmem:[#allocation149_spill] sm:$0xff] }
 0x665   : > { %v5468_v62 = vadd.f32 %v15359_v39, %v5443_v12  ;;  %v5945_v12 = vadd.f32 %v13475_v19, %v5920_v41  ;;  %v15366_v39 = vld [vmem:[#allocation178_spill] sm:$0xff]  ;;  %v13763_v24 = vrot.slane %v15364_v28, 2  ;;  %v6159_v18 = vadd.f32 %v15367_v55, %v6138_v9 }
 0x666   : > { %v5892_v23 = vpop.permute.xlu0 %5891  ;;  %v13748_v36 = vpop.permute.xlu1 %5521  ;;  %v4944_v19 = vadd.f32 %v15369_v10, %v4924_v60  ;;  %v15372_v9 = vld [vmem:[#allocation274_spill] sm:$0xff]  ;;  %v15376_v60 = vld [vmem:[#allocation136_spill] sm:$0xff] }
 0x667   : > { %v5489_v40 = vadd.f32 %v15362_v1, %v5468_v62  ;;  %v15368_v62 = vld [vmem:[#allocation89_spill] sm:$0xff]  ;;  %v5965_v41 = vadd.f32 %v15370_v34, %v5945_v12  ;;  %v5883_v33 = vadd.f32 %v15372_v9, %v13137_v46  ;;  %v6169_v48 = vadd.f32 %v6159_v18, %v15373_v50  ;;  %v15377_v46 = vld [vmem:[#allocation38_spill] sm:$0xff] }
 0x668   : > { %5122 = vrot.lane.b32.xlu0 %v13478_v58, %s14951_s12  ;;  %4782 = vrot.lane.b32.xlu1 %v15364_v28, %s14951_s12  ;;  %v4969_v12 = vadd.f32 %v15376_v60, %v4944_v19  ;;  %v15378_v10 = vld [vmem:[#allocation278_spill] sm:$0xff]  ;;  %v15382_v19 = vrot.slane %v12622_v11, 1 }
 0x669   : > { %v5510_v3 = vadd.f32 %v15366_v39, %v5489_v40  ;;  %v15374_v39 = vld [vmem:[#allocation124_spill] sm:$0xff]  ;;  %v5903_v55 = vadd.f32 %v5892_v23, %v5883_v33  ;;  %v15380_v33 = vld [vmem:[#allocation185_spill] sm:$0xff] }
 0x66a   : > { %v5937_v63 = vpop.permute.xlu0 %5936  ;;  %v4522_v20 = vpop.permute.xlu1 %4521  ;;  %v4989_v23 = vadd.f32 %v13375_v7, %v4969_v12  ;;  %v6189_v50 = vadd.f32 %v15380_v33, %v6169_v48  ;;  %v13810_v7 = vrot.slane %v15364_v28, 1  ;;  %v15386_v48 = vld [vmem:[#allocation233_spill] sm:$0xff] }
 0x66b   : > { %v5531_v1 = vadd.f32 %v15368_v62, %v5510_v3  ;;  %v13767_v49 = vadd.f32 %v4522_v20, %v4502_v22  ;;  %v15375_v62 = vld [vmem:[#allocation183_spill] sm:$0xff] }
 0x66c   : > { %6049 = vrot.lane.b32.xlu0 %v13161_v59, %s15322_s30  ;;  %5744 = vrot.lane.b32.xlu1 %v13763_v24, %s15333_s21  ;;  %v5967_v8 = vadd.f32 %v15375_v62, %v5947_v2 }
 0x66d   : > { %v5541_v40 = vadd.f32 %v5531_v1, %v15371_v15  ;;  %v5985_v1 = vadd.f32 %v15377_v46, %v5965_v41  ;;  %v15383_v41 = vld [vmem:[#allocation174_spill] sm:$0xff]  ;;  %v15385_v46 = vld [vmem:[#allocation300_spill] sm:$0xff] }
 0x66e   : > { %v13779_v3 = vpop.permute.xlu0 %5025  ;;  %v13781_v22 = vpop.permute.xlu1 %5999 }
 0x66f   : > { %v5561_v20 = vadd.f32 %v15374_v39, %v5541_v40  ;;  %v15379_v40 = vld [vmem:[#allocation265_spill] sm:$0xff] }
 0x670   : > { %5142 = vrot.lane.b32.xlu0 %v13505_v52, %s14947_s25  ;;  %4807 = vrot.lane.b32.xlu1 %v15356_v4, %s14947_s25  ;;  %v5923_v9 = vadd.f32 %v15379_v40, %v5903_v55  ;;  %v15381_v39 = vld [vmem:[#allocation97_spill] sm:$0xff] }
 0x671   : > { %v5581_v34 = vadd.f32 %v15378_v10, %v5561_v20  ;;  %v5987_v62 = vadd.f32 %v15381_v39, %v5967_v8  ;;  %v15384_v20 = vld [vmem:[#allocation121_spill] sm:$0xff]  ;;  %v5009_v8 = vadd.f32 %v15386_v48, %v4989_v23  ;;  %v15395_v48 = vld [vmem:[#allocation104_spill] sm:$0xff] }
 0x672   : > { %v13793_v15 = vpop.permute.xlu0 %6085  ;;  %v13795_v18 = vpop.permute.xlu1 %5082  ;;  %v6006_v60 = vadd.f32 %v15384_v20, %v5985_v1  ;;  %v5948_v12 = vadd.f32 %v5937_v63, %v5923_v9  ;;  %v15388_v39 = vld [vmem:[#allocation161_spill] sm:$0xff]  ;;  %v15389_v1 = vrot.slane %v12031_v54, 2 }
 0x673   : > { %v5601_v2 = vadd.f32 %v13661_v38, %v5581_v34  ;;  %v15387_v34 = vld [vmem:[#allocation90_spill] sm:$0xff]  ;;  %v5034_v28 = vadd.f32 %v13489_v53, %v5009_v8  ;;  %v15396_v54 = vld [vmem:[#allocation21_spill] sm:$0xff] }
 0x674   : > { %6069 = vrot.lane.b32.xlu0 %v15382_v19, %s15333_s21  ;;  %5765 = vrot.lane.b32.xlu1 %v15383_v41, %s14951_s12  ;;  %v6209_v40 = vadd.f32 %v15387_v34, %v6189_v50  ;;  %v6008_v19 = vadd.f32 %v15388_v39, %v5987_v62  ;;  %v15393_v50 = vld [vmem:[#allocation205_spill] sm:$0xff] }
 0x675   : > { %v5626_v10 = vadd.f32 %v15385_v46, %v5601_v2  ;;  %v15390_v2 = vld [vmem:[#allocation12_spill] sm:$0xff]  ;;  %v15391_v46 = vld [vmem:[#allocation302_spill] sm:$0xff]  ;;  %v15397_v53 = vld [vmem:[#allocation141_spill] sm:$0xff] }
 0x676   : > { %v13812_v38 = vpop.permute.xlu0 %6126  ;;  %v13814_v55 = vpop.permute.xlu1 %4571  ;;  %v6016_v20 = vadd.f32 %v6006_v60, %v15390_v2  ;;  %v6018_v39 = vadd.f32 %v6008_v19, %v15396_v54  ;;  %v15398_v8 = vld [vmem:[#allocation157_spill] sm:$0xff]  ;;  %v15402_v54 = vld [vmem:[#allocation194_spill] sm:$0xff] }
 0x677   : > { %v5647_v33 = vadd.f32 %v13673_v17, %v5626_v10  ;;  %v5968_v17 = vadd.f32 %v15393_v50, %v5948_v12  ;;  %v15394_v10 = vld [vmem:[#allocation187_spill] sm:$0xff] }
 0x678   : > { %5167 = vrot.lane.b32.xlu0 %v15389_v1, %s14949_s29  ;;  %4832 = vrot.lane.b32.xlu1 %v13810_v7, %s14949_s29  ;;  %v6234_v62 = vadd.f32 %v15394_v10, %v6209_v40  ;;  %v6036_v60 = vadd.f32 %v15397_v53, %v6016_v20  ;;  %v14914_v40 = vrot.slane %v15383_v41, 1  ;;  %v15401_v10 = vld [vmem:[#allocation118_spill] sm:$0xff]  ;;  %v15403_v20 = vld [vmem:[#allocation255_spill] sm:$0xff]  ;;  %v15404_v53 = vld [vmem:[#allocation117_spill] sm:$0xff] }
 0x679   : > { %v5668_v23 = vadd.f32 %v15391_v46, %v5647_v33  ;;  %v15399_v33 = vrot.slane %v15398_v8, 2  ;;  %v15400_v46 = vld [vmem:[#allocation74_spill] sm:$0xff]  ;;  %v15405_v8 = vld [vmem:[#allocation195_spill] sm:$0xff] }
 0x67a   : > { %v13828_v63 = vpop.permute.xlu0 %5060  ;;  %v6241_v9 = vpop.permute.xlu1 %6240 }
 0x67b   : > { %15392 = vst [vmem:[#allocation36_spill] sm:$0xff] %v13828_v63  ;;  %v5689_v34 = vadd.f32 %v15395_v48, %v5668_v23  ;;  %v5044_v1 = vadd.f32 %v5034_v28, %v15399_v33  ;;  %v6254_v2 = vadd.f32 %v6241_v9, %v6234_v62  ;;  %v5988_v48 = vadd.f32 %v15401_v10, %v5968_v17  ;;  %v15410_v10 = vld [vmem:[#allocation270_spill] sm:$0xff] }
 0x67c   : > { %5214 = vrot.lane.b32.xlu0 %v13402_v32, %s15313_s24  ;;  %4857 = vrot.lane.b32.xlu1 %v13737_v45, %s14945_s22  ;;  %v6038_v63 = vadd.f32 %v15402_v54, %v6018_v39  ;;  %v6056_v28 = vadd.f32 %v13387_v13, %v6036_v60  ;;  %v5252_v17 = vrot.slane %v13208_v5, 2  ;;  %v15407_v13 = vld [vmem:[#allocation279_spill] sm:$0xff] }
 0x67d   : > { %v13842_v12 = vadd.f32 %v5689_v34, %v15400_v46  ;;  %v5069_v19 = vadd.f32 %v13549_v29, %v5044_v1  ;;  %v6274_v9 = vadd.f32 %v15403_v20, %v6254_v2  ;;  %v6009_v33 = vadd.f32 %v15405_v8, %v5988_v48  ;;  %v15406_v1 = vld [vmem:[#allocation288_spill] sm:$0xff]  ;;  %v15408_v2 = vld [vmem:[#allocation245_spill] sm:$0xff] }
 0x67e   : > { %v6048_v23 = vpop.permute.xlu0 %6047  ;;  %v13845_v50 = vpop.permute.xlu1 %5822  ;;  %v6058_v62 = vadd.f32 %v13704_v25, %v6038_v63  ;;  %v6325_v60 = vrot.slane %v15407_v13, 2  ;;  %v6076_v46 = vadd.f32 %v15408_v2, %v6056_v28  ;;  %v15409_v25 = vld [vmem:[#allocation295_spill] sm:$0xff]  ;;  %v14915_v5 = vrot.slane %v15406_v1, 1 }
 0x67f   : > { %v5089_v39 = vadd.f32 %v15404_v53, %v5069_v19  ;;  %v5424_v63 = vadd.f32 %v15409_v25, %v13617_v61  ;;  %v15411_v19 = vld [vmem:[#allocation285_spill] sm:$0xff]  ;;  %v15413_v53 = vld [vmem:[#allocation26_spill] sm:$0xff]  ;;  %v15414_v61 = vrot.slane %v13161_v59, 1  ;;  %v15416_v25 = vld [vmem:[#allocation143_spill] sm:$0xff] }
 0x680   : > { %4728 = vrot.lane.b32.xlu0 %v13402_v32, %s15322_s30  ;;  %5807 = vrot.lane.b32.xlu1 %v14914_v40, %s14949_s29  ;;  %v6078_v20 = vadd.f32 %v15411_v19, %v6058_v62  ;;  %v6019_v8 = vadd.f32 %v6009_v33, %v15413_v53  ;;  %v6096_v62 = vadd.f32 %v13508_v27, %v6076_v46  ;;  %v15420_v27 = vld [vmem:[#allocation247_spill] sm:$0xff] }
 0x682   : > { %v13858_v34 = vpop.permute.xlu0 %5186  ;;  %v6281_v29 = vpop.permute.xlu1 %6280  ;;  %v6098_v28 = vadd.f32 %v13793_v15, %v6078_v20  ;;  %v15419_v20 = vld [vmem:[#allocation290_spill] sm:$0xff]  ;;  %v6116_v46 = vadd.f32 %v15420_v27, %v6096_v62  ;;  %v15422_v62 = vld [vmem:[#allocation303_spill] sm:$0xff]  ;;  %v15427_v27 = vld [vmem:[#allocation184_spill] sm:$0xff] }
 0x683   : > { %v6294_v32 = vadd.f32 %v6281_v29, %v6274_v9  ;;  %v15412_v29 = vld [vmem:[#allocation42_spill] sm:$0xff] }
 0x684   : > { %5259 = vrot.lane.b32.xlu0 %v5252_v17, %s15333_s21  ;;  %5786 = vrot.lane.b32.xlu1 %v15406_v1, %s14947_s25  ;;  %v5109_v17 = vadd.f32 %v15412_v29, %v5089_v39  ;;  %v6298_v39 = vrot.slane %v15383_v41, 2 }
 0x685   : > { %v6315_v54 = vadd.f32 %v15410_v10, %v6294_v32  ;;  %v15415_v32 = vld [vmem:[#allocation299_spill] sm:$0xff] }
 0x686   : > { %v5434_v48 = vpop.permute.xlu0 %5433  ;;  %v13873_v9 = vpop.permute.xlu1 %5571  ;;  %v5129_v15 = vadd.f32 %v15416_v25, %v5109_v17  ;;  %v15421_v17 = vld [vmem:[#allocation44_spill] sm:$0xff] }
 0x687   : > { %v13877_v40 = vadd.f32 %v6325_v60, %v6315_v54  ;;  %v5444_v13 = vadd.f32 %v5434_v48, %v5424_v63  ;;  %v15417_v63 = vld [vmem:[#allocation213_spill] sm:$0xff]  ;;  %v15418_v54 = vld [vmem:[#allocation102_spill] sm:$0xff]  ;;  %v6118_v48 = vadd.f32 %v15419_v20, %v6098_v28 }
 0x688   : > { %6089 = vrot.lane.b32.xlu0 %v15414_v61, %s14951_s12  ;;  %5828 = vrot.lane.b32.xlu1 %v14915_v5, %s14945_s22  ;;  %v6039_v10 = vadd.f32 %v15417_v63, %v6019_v8  ;;  %v5149_v8 = vadd.f32 %v15421_v17, %v5129_v15  ;;  %v15425_v15 = vld [vmem:[#allocation144_spill] sm:$0xff]  ;;  %v15447_v5 = vld [vmem:[#allocation209_spill] sm:$0xff] }
 0x689   : > { %v5469_v2 = vadd.f32 %v15415_v32, %v5444_v13  ;;  %v6139_v28 = vadd.f32 %v13812_v38, %v6118_v48  ;;  %v15428_v48 = vrot.slane %v12622_v11, 2  ;;  %v15433_v11 = vld [vmem:[#allocation18_spill] sm:$0xff] }
 0x68a   : > { %v13889_v33 = vpop.permute.xlu0 %5893  ;;  %v13891_v60 = vpop.permute.xlu1 %4596  ;;  %v6059_v29 = vadd.f32 %v6048_v23, %v6039_v10 }
 0x68b   : > { %v5490_v19 = vadd.f32 %v15418_v54, %v5469_v2  ;;  %v6137_v2 = vadd.f32 %v13522_v44, %v6116_v46  ;;  %v6160_v38 = vadd.f32 %v15427_v27, %v6139_v28  ;;  %v15429_v44 = vld [vmem:[#allocation133_spill] sm:$0xff]  ;;  %v15432_v28 = vld [vmem:[#allocation22_spill] sm:$0xff] }
 0x68c   : > { %5782 = vrot.lane.b32.xlu0 %v15283_v42, %s14947_s25  ;;  %6307 = vrot.lane.b32.xlu1 %v6298_v39, %s14945_s22  ;;  %v6079_v23 = vadd.f32 %v15422_v62, %v6059_v29  ;;  %v15423_v39 = vld [vmem:[#allocation57_spill] sm:$0xff] }
 0x68d   : > { %v5511_v53 = vadd.f32 %v13733_v47, %v5490_v19  ;;  %v15424_v47 = vld [vmem:[#allocation25_spill] sm:$0xff]  ;;  %v5174_v19 = vadd.f32 %v15425_v15, %v5149_v8  ;;  %v6158_v46 = vadd.f32 %v15429_v44, %v6137_v2 }
 0x68e   : > { %v13902_v13 = vpop.permute.xlu0 %5938  ;;  %v13904_v61 = vpop.permute.xlu1 %5591  ;;  %v4905_v25 = vadd.f32 %v15424_v47, %v15423_v39  ;;  %v15430_v29 = vld [vmem:[#allocation305_spill] sm:$0xff]  ;;  %v6121_v39 = vrot.slane %v13161_v59, 2  ;;  %v15431_v47 = vld [vmem:[#allocation27_spill] sm:$0xff] }
 0x68f   : > { %v13908_v32 = vadd.f32 %v13748_v36, %v5511_v53  ;;  %v15426_v36 = vld [vmem:[#allocation123_spill] sm:$0xff]  ;;  %v5195_v8 = vadd.f32 %v13399_v16, %v5174_v19  ;;  %v6168_v15 = vadd.f32 %v6158_v46, %v15433_v11  ;;  %v15436_v44 = vld [vmem:[#allocation125_spill] sm:$0xff]  ;;  %v15441_v11 = vld [vmem:[#allocation220_spill] sm:$0xff] }
 0x690   : > { %5188 = vrot.lane.b32.xlu0 %v13161_v59, %s14945_s22  ;;  %v4925_v20 = vadd.f32 %v15426_v36, %v4905_v25  ;;  %v15437_v16 = vld [vmem:[#allocation207_spill] sm:$0xff] }
 0x692   : > { %v6088_v63 = vpop.permute.xlu0 %6087  ;;  %v13917_v10 = vpop.permute.xlu1 %4621  ;;  %v4945_v25 = vadd.f32 %v15431_v47, %v4925_v20 }
 0x693   : > { %v6099_v54 = vadd.f32 %v6088_v63, %v6079_v23  ;;  %v6170_v63 = vadd.f32 %v6160_v38, %v15432_v28  ;;  %v15438_v38 = vld [vmem:[#allocation217_spill] sm:$0xff] }
 0x694   : > { %6109 = vrot.lane.b32.xlu0 %v15428_v48, %s14947_s25  ;;  %v4970_v59 = vadd.f32 %v15436_v44, %v4945_v25 }
 0x695   : > { %v6119_v53 = vadd.f32 %v15430_v29, %v6099_v54  ;;  %v15434_v54 = vld [vmem:[#allocation159_spill] sm:$0xff]  ;;  %v6190_v19 = vadd.f32 %v15437_v16, %v6170_v63  ;;  %v4709_v29 = vadd.f32 %v15438_v38, %v13459_v26  ;;  %v15442_v63 = vld [vmem:[#allocation218_spill] sm:$0xff] }
 0x696   : > { %v6129_v17 = vpop.permute.xlu0 %6128  ;;  %v13927_v62 = vpop.permute.xlu1 %5616  ;;  %v15435_v27 = vrot.slane %v15434_v54, 1  ;;  %v4990_v46 = vadd.f32 %v13361_v30, %v4970_v59  ;;  %v15444_v26 = vld [vmem:[#allocation243_spill] sm:$0xff]  ;;  %v15445_v30 = vld [vmem:[#allocation297_spill] sm:$0xff]  ;;  %v15446_v38 = vld [vmem:[#allocation30_spill] sm:$0xff] }
 0x697   : > { %v13930_v23 = vadd.f32 %v6129_v17, %v6119_v53  ;;  %v15439_v53 = vld [vmem:[#allocation150_spill] sm:$0xff]  ;;  %v5884_v59 = vadd.f32 %v15445_v30, %v13145_v31 }
 0x698   : > { %6130 = vrot.lane.b32.xlu0 %v6121_v39, %s14949_s29  ;;  %v5205_v48 = vadd.f32 %v5195_v8, %v15435_v27  ;;  %v6188_v17 = vadd.f32 %v15439_v53, %v6168_v15  ;;  %v15440_v8 = vld [vmem:[#allocation113_spill] sm:$0xff]  ;;  %v5010_v44 = vadd.f32 %v15444_v26, %v4990_v46  ;;  %v15449_v46 = vld [vmem:[#allocation146_spill] sm:$0xff] }
 0x699   : > { %v6210_v25 = vadd.f32 %v15440_v8, %v6190_v19  ;;  %v15443_v27 = vld [vmem:[#allocation49_spill] sm:$0xff] }
 0x69a   : > { %v5211_v2 = vpop.permute.xlu0 %5210  ;;  %v13937_v36 = vpop.permute.xlu1 %4646 }
 0x69b   : > { %v5225_v20 = vadd.f32 %v5211_v2, %v5205_v48  ;;  %v6208_v48 = vadd.f32 %v15443_v27, %v6188_v17  ;;  %v6235_v19 = vadd.f32 %v15447_v5, %v6210_v25  ;;  %v15448_v17 = vld [vmem:[#allocation128_spill] sm:$0xff]  ;;  %v15452_v5 = vld [vmem:[#allocation51_spill] sm:$0xff] }
 0x69c   : > { %5704 = vrot.lane.b32.xlu0 %v13810_v7, %s15313_s24 }
 0x69d   : > { %v5245_v2 = vadd.f32 %v15442_v63, %v5225_v20  ;;  %v5904_v20 = vadd.f32 %v13889_v33, %v5884_v59  ;;  %v15454_v33 = vld [vmem:[#allocation179_spill] sm:$0xff]  ;;  %v15455_v59 = vld [vmem:[#allocation301_spill] sm:$0xff] }
 0x69e   : > { %v4725_v39 = vpop.permute.xlu0 %4724  ;;  %v13949_v47 = vpop.permute.xlu1 %5637 }
 0x69f   : > { %v4739_v28 = vadd.f32 %v4725_v39, %v4709_v29  ;;  %v5035_v39 = vadd.f32 %v13446_v6, %v5010_v44  ;;  %v15451_v6 = vld [vmem:[#allocation53_spill] sm:$0xff] }
 0x6a0   : > { %5216 = vrot.lane.b32.xlu0 %v13552_v14, %s15313_s24 }
 0x6a1   : > { %v4764_v54 = vadd.f32 %v15441_v11, %v4739_v28  ;;  %v15450_v11 = vld [vmem:[#allocation152_spill] sm:$0xff]  ;;  %v5045_v30 = vadd.f32 %v5035_v39, %v15454_v33 }
 0x6a2   : > { %v5256_v15 = vpop.permute.xlu0 %5255  ;;  %v6243_v16 = vpop.permute.xlu1 %6242  ;;  %v6233_v63 = vadd.f32 %v15450_v11, %v6208_v48  ;;  %v5013_v48 = vadd.f32 %v15455_v59, %v13635_v56 }
 0x6a3   : > { %v4789_v29 = vadd.f32 %v15446_v38, %v4764_v54  ;;  %v5270_v53 = vadd.f32 %v5256_v15, %v5245_v2  ;;  %v6255_v27 = vadd.f32 %v6243_v16, %v6235_v19  ;;  %v5253_v54 = vrot.slane %v15283_v42, 2  ;;  %v15456_v16 = vld [vmem:[#allocation298_spill] sm:$0xff] }
 0x6a4   : > { %4730 = vrot.lane.b32.xlu0 %v13552_v14, %s15322_s30  ;;  %v15453_v14 = vld [vmem:[#allocation7_spill] sm:$0xff]  ;;  %v5924_v38 = vadd.f32 %v15456_v16, %v5904_v20  ;;  %v15458_v19 = vld [vmem:[#allocation154_spill] sm:$0xff]  ;;  %v5070_v11 = vadd.f32 %v13539_v0, %v5045_v30  ;;  %v15464_v0 = vld [vmem:[#allocation252_spill] sm:$0xff] }
 0x6a5   : > { %v4814_v28 = vadd.f32 %v15448_v17, %v4789_v29  ;;  %v5290_v8 = vadd.f32 %v15449_v46, %v5270_v53  ;;  %v4874_v15 = vrot.slane %v15453_v14, 2  ;;  %v15457_v29 = vld [vmem:[#allocation156_spill] sm:$0xff]  ;;  %v15460_v46 = vld [vmem:[#allocation62_spill] sm:$0xff]  ;;  %v15465_v16 = vld [vmem:[#allocation283_spill] sm:$0xff] }
 0x6a6   : > { %v6239_v31 = vpop.permute.xlu0 %6238  ;;  %v13969_v26 = vpop.permute.xlu1 %5824  ;;  %v15459_v17 = vld [vmem:[#allocation232_spill] sm:$0xff] }
 0x6a7   : > { %v4839_v2 = vadd.f32 %v15451_v6, %v4814_v28  ;;  %v5310_v25 = vadd.f32 %v15452_v5, %v5290_v8  ;;  %v6253_v44 = vadd.f32 %v6239_v31, %v6233_v63  ;;  %v5365_v8 = vrot.slane %v15460_v46, 2  ;;  %v15461_v31 = vld [vmem:[#allocation291_spill] sm:$0xff]  ;;  %v15462_v5 = vld [vmem:[#allocation56_spill] sm:$0xff] }
 0x6a8   : > { %5261 = vrot.lane.b32.xlu0 %v5253_v54, %s15333_s21  ;;  %v6275_v39 = vadd.f32 %v15461_v31, %v6255_v27  ;;  %v6326_v27 = vrot.slane %v15465_v16, 2 }
 0x6a9   : > { %v4864_v53 = vadd.f32 %v15457_v29, %v4839_v2  ;;  %v5330_v42 = vadd.f32 %v15458_v19, %v5310_v25  ;;  %v6273_v28 = vadd.f32 %v15459_v17, %v6253_v44  ;;  %v15463_v2 = vld [vmem:[#allocation277_spill] sm:$0xff]  ;;  %v5949_v44 = vadd.f32 %v13902_v13, %v5924_v38  ;;  %v15466_v29 = vld [vmem:[#allocation135_spill] sm:$0xff]  ;;  %v15468_v38 = vld [vmem:[#allocation82_spill] sm:$0xff] }
 0x6aa   : > { %v5028_v63 = vpop.permute.xlu0 %5027  ;;  %v6283_v6 = vpop.permute.xlu1 %6282  ;;  %v6324_v25 = vrot.slane %v15463_v2, 2 }
 0x6ab   : > { %v4884_v54 = vadd.f32 %v4874_v15, %v4864_v53  ;;  %v5355_v14 = vadd.f32 %v15462_v5, %v5330_v42  ;;  %v6293_v56 = vadd.f32 %v13706_v51, %v6273_v28  ;;  %v5038_v20 = vadd.f32 %v5028_v63, %v5013_v48  ;;  %v15467_v53 = vld [vmem:[#allocation293_spill] sm:$0xff]  ;;  %v6361_v5 = vld [vmem:[%s14823_s5] sm:$0xff] }
 0x6ac   : > { %v6295_v33 = vadd.f32 %v6283_v6, %v6275_v39  ;;  %5784 = vrot.lane.b32.xlu0 %v15344_v37, %s14947_s25  ;;  %v5090_v15 = vadd.f32 %v15466_v29, %v5070_v11  ;;  %v14007_v11 = vld [vmem:[%s14822_s4] ss:$0 sm:$0xff]  ;;  %v15471_v29 = vld [vmem:[#allocation37_spill] sm:$0xff] }
 0x6ad   : > { %v5375_v59 = vadd.f32 %v5365_v8, %v5355_v14  ;;  %v6314_v30 = vadd.f32 %v15464_v0, %v6293_v56  ;;  %v6363_v14 = vld [vmem:[%s14823_s5 + $0x10] sm:$0xff] }
 0x6ae   : > { %v6316_v19 = vadd.f32 %v15467_v53, %v6295_v33  ;;  %v5959_v42 = vpop.permute.xlu0 %5958  ;;  %v13996_v51 = vpop.permute.xlu1 %4667  ;;  %v5110_v8 = vadd.f32 %v15468_v38, %v5090_v15  ;;  %v15469_v56 = vld [vmem:[#allocation169_spill] sm:$0xff]  ;;  %v10373_v0 = vpack.c.bf16 %v6363_v14, %v6361_v5  ;;  %v15472_v53 = vld [vmem:[#allocation84_spill] sm:$0xff] }
 0x6af   : > { %v5380_v48 = vmax.f32 %v4884_v54, %v5375_v59  ;;  %v6334_v17 = vadd.f32 %v6324_v25, %v6314_v30  ;;  %v5969_v28 = vadd.f32 %v5959_v42, %v5949_v44  ;;  %v9025_v44 = vld [vmem:[%s14823_s5 + $0x48] sm:$0xff] }
 0x6b0   : > { %v13998_v46 = vadd.f32 %v6326_v27, %v6316_v19  ;;  %6181 = vrot.lane.b32.xlu0 %v13737_v45, %s15313_s24  ;;  %v5130_v33 = vadd.f32 %v15469_v56, %v5110_v8  ;;  %v15470_v27 = vld [vmem:[#allocation59_spill] sm:$0xff]  ;;  %v15474_v38 = vld [vmem:[#allocation140_spill] sm:$0xff] }
 0x6b1   : > { %v5860_v13 = vmax.f32 %v5380_v48, %v13702_v35  ;;  %v5048_v35 = vadd.f32 %v5038_v20, %v12940_v57  ;;  %v9027_v57 = vld [vmem:[%s14823_s5 + $0x58] sm:$0xff]  ;;  %v4906_v15 = vadd.f32 %v15471_v29, %v15470_v27 }
 0x6b2   : > { %v5979_v63 = vpop.permute.xlu0 %5978  ;;  %v14009_v31 = vpop.permute.xlu1 %5658  ;;  %v10375_v16 = vpack.c.bf16 %v9027_v57, %v9025_v44  ;;  %v5150_v19 = vadd.f32 %v15472_v53, %v5130_v33  ;;  %v15477_v33 = vld [vmem:[#allocation28_spill] sm:$0xff] }
 0x6b3   : > { %v6339_v39 = vmax.f32 %v5860_v13, %v6334_v17  ;;  %v14011_v6 = vadd.f32 %v5979_v63, %v5969_v28  ;;  %v15473_v17 = vld [vmem:[#allocation203_spill] sm:$0xff]  ;;  %v4926_v8 = vadd.f32 %v15474_v38, %v4906_v15 }
 0x6b4   : > { %5283 = vrot.lane.b32.xlu0 %v15356_v4, %s14951_s12  ;;  %v6161_v28 = vadd.f32 %v15473_v17, %v13930_v23  ;;  %v9026_v23 = vld [vmem:[%s14823_s5 + $0x50] sm:$0xff] }
 0x6b5   : > { %v6351_v54 = vadd.f32 %v14007_v11, %v6339_v39  ;;  %v5542_v39 = vadd.f32 %v13908_v32, %v13478_v58  ;;  %v9030_v58 = vld [vmem:[%s14823_s5 + $0x68] sm:$0xff]  ;;  %v9032_v32 = vld [vmem:[%s14823_s5 + $0x78] sm:$0xff] }
 0x6b6   : > { %v5063_v2 = vpop.permute.xlu0 %5062  ;;  %v14024_v25 = vpop.permute.xlu1 %5679  ;;  %v10379_v53 = vpack.c.bf16 %v9032_v32, %v9030_v58  ;;  %v15485_v58 = vld [vmem:[#allocation131_spill] sm:$0xff] }
 0x6b7   : > { %v14032_v20 = vmax.f32 %v6351_v54, 0.0  ;;  %v5073_v59 = vadd.f32 %v5063_v2, %v5048_v35  ;;  %v15475_v54 = vmov 0.0   ;;  %v15476_v35 = vld [vmem:[#allocation173_spill] sm:$0xff]  ;;  %v6171_v2 = vadd.f32 %v6161_v28, %v15477_v33 }
 0x6b8   : > { %6201 = vrot.lane.b32.xlu0 %v13763_v24, %s15322_s30  ;;  %v5175_v5 = vadd.f32 %v15476_v35, %v5150_v19 }
 0x6b9   : > { %v6371_v30 = vrot.slane %v14032_v20, 1  ;;  %v5093_v15 = vadd.f32 %v13795_v18, %v5073_v59  ;;  %v15482_v18 = vld [vmem:[#allocation88_spill] sm:$0xff] }
 0x6ba   : > { %v4547_v42 = vpop.permute.xlu0 %4546  ;;  %v14040_v48 = vpop.permute.xlu1 %4702  ;;  %v5196_v19 = vadd.f32 %v13594_v21, %v5175_v5  ;;  %v15481_v21 = vld [vmem:[#allocation31_spill] sm:$0xff] }
 0x6bb   : > { %v4557_v13 = vadd.f32 %v4547_v42, %v13767_v49  ;;  %9022 = vmatmul.mubr.msk.f32.vlgmr.msra.gmra.mrb[114].mxu0 %vm6372_vm6, %v6371_v30  ;;  %v9024_v49 = vld [vmem:[%s14823_s5 + $0x40] sm:$0xff]  ;;  %v5712_v59 = vadd.f32 %v15482_v18, %v15481_v21 }
 0x6bc   : > { %5303 = vrot.lane.b32.xlu0 %v13810_v7, %s14947_s25  ;;  %10374 = vmatpush1.bf16.msra.mxu0 %v10373_v0  ;;  %v15478_v0 = vld [vmem:[#allocation67_spill] sm:$0xff] }
 0x6bd   : > { %v4582_v63 = vadd.f32 %v13814_v55, %v4557_v13  ;;  %6512 = vmatprep.mubr.f32.mxu0 %v15475_v54  ;;  %10376 = vmatprep.subr.bf16.mxu0 %v10375_v16  ;;  %v6217_v55 = vrot.slane %v15356_v4, 2  ;;  %v4946_v30 = vadd.f32 %v15478_v0, %v4926_v8  ;;  %v10377_v16 = vpack.c.bf16 %v9026_v23, %v9024_v49  ;;  %v15484_v23 = vld [vmem:[#allocation182_spill] sm:$0xff]  ;;  %v15492_v21 = vld [vmem:[#allocation235_spill] sm:$0xff] }
 0x6be   : > { %v5552_v14 = vpop.permute.xlu0 %5551  ;;  %v14060_v56 = vpop.permute.xlu1 %6151  ;;  %v5206_v35 = vadd.f32 %v5196_v19, %v15484_v23  ;;  %v15489_v19 = vld [vmem:[#allocation260_spill] sm:$0xff]  ;;  %v15495_v23 = vld [vmem:[#allocation43_spill] sm:$0xff] }
 0x6bf   : > { %v4607_v44 = vadd.f32 %v13891_v60, %v4582_v63  ;;  %v5562_v57 = vadd.f32 %v5552_v14, %v5542_v39  ;;  %v9029_v63 = vld [vmem:[%s14823_s5 + $0x60] sm:$0xff]  ;;  %v9031_v39 = vld [vmem:[%s14823_s5 + $0x70] sm:$0xff] }
 0x6c0   : > { %6226 = vrot.lane.b32.xlu0 %v6217_v55, %s15333_s21 }
 0x6c1   : > { %v4632_v27 = vadd.f32 %v13917_v10, %v4607_v44  ;;  %v5582_v29 = vadd.f32 %v13873_v9, %v5562_v57  ;;  %v15479_v10 = vld [vmem:[#allocation222_spill] sm:$0xff]  ;;  %v10381_v44 = vpack.c.bf16 %v9031_v39, %v9029_v63  ;;  %v15486_v57 = vld [vmem:[#allocation155_spill] sm:$0xff] }
 0x6c2   : > { %v5103_v42 = vpop.permute.xlu0 %5102  ;;  %v14077_v17 = vpop.permute.xlu1 %5238  ;;  %v6191_v38 = vadd.f32 %v15479_v10, %v6171_v2  ;;  %v15480_v9 = vld [vmem:[#allocation142_spill] sm:$0xff]  ;;  %v5732_v0 = vadd.f32 %v15486_v57, %v5712_v59  ;;  %v15490_v10 = vld [vmem:[#allocation224_spill] sm:$0xff] }
 0x6c3   : > { %v4657_v60 = vadd.f32 %v13937_v36, %v4632_v27  ;;  %v5602_v28 = vadd.f32 %v13904_v61, %v5582_v29  ;;  %v14081_v13 = vadd.f32 %v5103_v42, %v5093_v15  ;;  %9023 = vmatmul.mubr.msk.f32.vlgmr.msra.gmra.mrb[114].mxu0 %vm6372_vm6, %v14032_v20  ;;  %v4971_v8 = vadd.f32 %v15480_v9, %v4946_v30  ;;  %v15487_v30 = vld [vmem:[#allocation41_spill] sm:$0xff] }
 0x6c4   : > { %5323 = vrot.lane.b32.xlu0 %v13737_v45, %s14949_s29  ;;  %10378 = vmatpush1.bf16.msra.mxu0 %v10377_v16  ;;  %v15483_v45 = vld [vmem:[#allocation39_spill] sm:$0xff]  ;;  %v6211_v32 = vadd.f32 %v15485_v58, %v6191_v38  ;;  %v15488_v16 = vld [vmem:[#allocation234_spill] sm:$0xff]  ;;  %v6524_v29 = vrot.slane %v14032_v20, 2  ;;  %v15496_v58 = vld [vmem:[#allocation193_spill] sm:$0xff] }
 0x6c5   : > { %v4678_v36 = vadd.f32 %v13996_v51, %v4657_v60  ;;  %v5627_v61 = vadd.f32 %v13927_v62, %v5602_v28  ;;  %6591 = vmatprep.mubr.f32.mxu0 %v15475_v54  ;;  %10380 = vmatprep.subr.bf16.mxu0 %v10379_v53  ;;  %v4991_v49 = vadd.f32 %v15483_v45, %v4971_v8  ;;  %v9035_v62 = vld [vmem:[%s14823_s5 + $0x88] sm:$0xff]  ;;  %v9037_v51 = vld [vmem:[%s14823_s5 + $0x98] sm:$0xff] }
 0x6c6   : > { %v5213_v5 = vpop.permute.xlu0 %5212  ;;  %v14102_v14 = vpop.permute.xlu1 %4757  ;;  %v4710_v27 = vadd.f32 %v15488_v16, %v15487_v30  ;;  %v10383_v15 = vpack.c.bf16 %v9037_v51, %v9035_v62  ;;  %v6236_v38 = vadd.f32 %v15490_v10, %v6211_v32  ;;  %v15491_v8 = vld [vmem:[#allocation13_spill] sm:$0xff]  ;;  %v9040_v62 = vld [vmem:[%s14823_s5 + $0xa8] sm:$0xff] }
 0x6c7   : > { %v14111_v55 = vadd.f32 %v4678_v36, %v15344_v37  ;;  %v5648_v33 = vadd.f32 %v13949_v47, %v5627_v61  ;;  %v5226_v2 = vadd.f32 %v5213_v5, %v5206_v35  ;;  %v5011_v42 = vadd.f32 %v15489_v19, %v4991_v49  ;;  %v15494_v36 = vld [vmem:[#allocation236_spill] sm:$0xff]  ;;  %v9042_v51 = vld [vmem:[%s14823_s5 + $0xb8] sm:$0xff]  ;;  %v15502_v10 = vld [vmem:[#allocation95_spill] sm:$0xff] }
 0x6c8   : > { %5348 = vrot.lane.b32.xlu0 %v13763_v24, %s14945_s22  ;;  %v15500_v16 = vld [vmem:[#allocation308_spill] sm:$0xff]  ;;  %v6010_v19 = vadd.f32 %v13781_v22, %v14011_v6  ;;  %v15506_v22 = vld [vmem:[#allocation158_spill] sm:$0xff]  ;;  %s8591_s22 = scalar_lea.sflag [#allocation4], %s11091_s13 }
 0x6c9   : > { %v5669_v53 = vadd.f32 %v14009_v31, %v5648_v33  ;;  %v5036_v9 = vadd.f32 %v13663_v43, %v5011_v42  ;;  %v5246_v18 = vadd.f32 %v15492_v21, %v5226_v2  ;;  %v15493_v31 = vld [vmem:[#allocation48_spill] sm:$0xff] }
 0x6ca   : > { %v4727_v60 = vpop.permute.xlu0 %4726  ;;  %v6245_v28 = vpop.permute.xlu1 %6244  ;;  %v5752_v59 = vadd.f32 %v15493_v31, %v5732_v0  ;;  %v9036_v43 = vld [vmem:[%s14823_s5 + $0x90] sm:$0xff] }
 0x6cb   : > { %v4740_v47 = vadd.f32 %v4727_v60, %v4710_v27  ;;  %9028 = vmatmul.mubr.msk.f32.vlgmr.msra.gmra.mrb[114].mxu0 %vm6372_vm6, %v6524_v29  ;;  %v5690_v24 = vadd.f32 %v14024_v25, %v5669_v53  ;;  %v6256_v63 = vadd.f32 %v6245_v28, %v6236_v38  ;;  %v9034_v25 = vld [vmem:[%s14823_s5 + $0x80] sm:$0xff]  ;;  %v5046_v32 = vadd.f32 %v5036_v9, %v15496_v58  ;;  %v15499_v0 = vld [vmem:[#allocation177_spill] sm:$0xff] }
 0x6cc   : > { %5218 = vrot.lane.b32.xlu0 %v15491_v8, %s15313_s24  ;;  %10382 = vmatpush1.bf16.msra.mxu0 %v10381_v44  ;;  %v10385_v2 = vpack.c.bf16 %v9036_v43, %v9034_v25  ;;  %v15498_v44 = vld [vmem:[#allocation180_spill] sm:$0xff]  ;;  %v6605_v29 = vrot.slane %v14032_v20, 3  ;;  %v5254_v28 = vrot.slane %v15344_v37, 2  ;;  %v15509_v43 = vld [vmem:[#allocation307_spill] sm:$0xff] }
 0x6cd   : > { %v4765_v61 = vadd.f32 %v15494_v36, %v4740_v47  ;;  %6672 = vmatprep.mubr.f32.mxu0 %v15475_v54  ;;  %10384 = vmatprep.subr.bf16.mxu0 %v10383_v15  ;;  %v14140_v39 = vadd.f32 %v5690_v24, %v15356_v4  ;;  %v15497_v4 = vld [vmem:[#allocation248_spill] sm:$0xff]  ;;  %v6276_v27 = vadd.f32 %v15500_v16, %v6256_v63  ;;  %v15501_v15 = vld [vmem:[#allocation114_spill] sm:$0xff]  ;;  %v15503_v24 = vld [vmem:[#allocation93_spill] sm:$0xff] }
 0x6ce   : > { %v5258_v45 = vpop.permute.xlu0 %5257  ;;  %v14142_v49 = vpop.permute.xlu1 %5826  ;;  %v5773_v33 = vadd.f32 %v15497_v4, %v5752_v59  ;;  %v5071_v53 = vadd.f32 %v15501_v15, %v5046_v32  ;;  %v10387_v47 = vpack.c.bf16 %v9042_v51, %v9040_v62  ;;  %v15505_v59 = vld [vmem:[#allocation286_spill] sm:$0xff]  ;;  %v15508_v63 = vld [vmem:[#allocation253_spill] sm:$0xff]  ;;  %v15511_v51 = vld [vmem:[#allocation167_spill] sm:$0xff] }
 0x6cf   : > { %v4790_v35 = vadd.f32 %v15495_v23, %v4765_v61  ;;  %v5271_v5 = vadd.f32 %v5258_v45, %v5246_v18  ;;  %v15504_v18 = vld [vmem:[#allocation9_spill] sm:$0xff]  ;;  %v6327_v36 = vrot.slane %v15505_v59, 2  ;;  %v9039_v23 = vld [vmem:[%s14823_s5 + $0xa0] sm:$0xff]  ;;  %v5846_v58 = vrot.slane %v15511_v51, 2 }
 0x6d0   : > { %4732 = vrot.lane.b32.xlu0 %v15491_v8, %s15322_s30  ;;  %v4875_v31 = vrot.slane %v15504_v18, 2  ;;  %v15507_v61 = vld [vmem:[#allocation189_spill] sm:$0xff]  ;;  %v15512_v32 = vld [vmem:[#allocation151_spill] sm:$0xff]  ;;  %v15518_v18 = vld [vmem:[#allocation196_spill] sm:$0xff]  ;;  %s8603_s30 = sshll.u32 %s926_s16, 4  ;;  %s14776_s30 = int_to_ptr.vmem [resolvable:$true] %s8603_s30 }
 0x6d1   : > { %v4815_v57 = vadd.f32 %v15498_v44, %v4790_v35  ;;  %v5291_v30 = vadd.f32 %v15499_v0, %v5271_v5  ;;  %v9041_v35 = vld [vmem:[%s14823_s5 + $0xb0] sm:$0xff]  ;;  %v15510_v5 = vld [vmem:[#allocation66_spill] sm:$0xff]  ;;  %v5091_v4 = vadd.f32 %v15512_v32, %v5071_v53  ;;  %v9045_v44 = vld [vmem:[%s14823_s5 + $0xc8] sm:$0xff]  ;;  %p10636_p2 = scmp.lt.s32.totalorder %s14776_s30, %s10634_s3 }
 0x6d2   : > { %v5781_v42 = vpop.permute.xlu0 %5780  ;;  %v6285_v60 = vpop.permute.xlu1 %6284  ;;  %v5366_v62 = vrot.slane %v15510_v5, 2  ;;  %v15513_v0 = vld [vmem:[#allocation50_spill] sm:$0xff]  ;;  %v10389_v53 = vpack.c.bf16 %v9041_v35, %v9039_v23  ;;  %v15521_v23 = vld [vmem:[#allocation108_spill] sm:$0xff] }
 0x6d3   : > { %v4840_v38 = vadd.f32 %v15502_v10, %v4815_v57  ;;  %v5311_v9 = vadd.f32 %v15503_v24, %v5291_v30  ;;  %v5794_v8 = vadd.f32 %v5781_v42, %v5773_v33  ;;  %v6296_v21 = vadd.f32 %v6285_v60, %v6276_v27  ;;  %9033 = vmatmul.mubr.msk.f32.vlgmr.msra.gmra.mrb[114].mxu0 %vm6372_vm6, %v6605_v29  ;;  %v9047_v57 = vld [vmem:[%s14823_s5 + $0xd8] sm:$0xff] }
 0x6d4   : > { %5263 = vrot.lane.b32.xlu0 %v5254_v28, %s15333_s21  ;;  %10386 = vmatpush1.bf16.msra.mxu0 %v10385_v2  ;;  %v6020_v33 = vadd.f32 %v6010_v19, %v13505_v52  ;;  %v15514_v52 = vrot.slane %v15383_v41, 1  ;;  %v6686_v60 = vrot.slane %v14032_v20, 4  ;;  %v10391_v28 = vpack.c.bf16 %v9047_v57, %v9045_v44  ;;  %v15515_v10 = vld [vmem:[#allocation105_spill] sm:$0xff]  ;;  %v9049_v57 = vld [vmem:[%s14823_s5 + $0xe0] sm:$0xff]  ;;  %s10629_s21 = scalar_lea.vmem %s14776_s30, 16 }
 0x6d5   : > { %v4865_v6 = vadd.f32 %v15506_v22, %v4840_v38  ;;  %v5331_v37 = vadd.f32 %v15507_v61, %v5311_v9  ;;  %v5815_v25 = vadd.f32 %v15508_v63, %v5794_v8  ;;  %v6317_v45 = vadd.f32 %v15509_v43, %v6296_v21  ;;  %6753 = vmatprep.mubr.f32.mxu0 %v15475_v54  ;;  %v15517_v8 = vld [vmem:[#allocation54_spill] sm:$0xff]  ;;  %v9046_v22 = vld [vmem:[%s14823_s5 + $0xd0] sm:$0xff]  ;;  %v9050_v63 = vld [vmem:[%s14823_s5 + $0xe8] sm:$0xff]  ;;  %p10630_p13 = scmp.ne.s32.totalorder %s14776_s30, %s10629_s21  ;;  %p10637_p3 = scmp.lt.s32.totalorder %s10635_s26, %s10629_s21 }
 0x6d6   : > { %v6030_v2 = vpop.permute.xlu0 %6029  ;;  %10388 = vmatprep.subr.bf16.mxu0 %v10387_v47  ;;  %v5111_v38 = vadd.f32 %v15515_v10, %v5091_v4  ;;  %v14229_v32 = vpop.permute.xlu1 %5724 }
 0x6d7   : > { %v5356_v30 = vadd.f32 %v15513_v0, %v5331_v37  ;;  %v4885_v16 = vadd.f32 %v4875_v31, %v4865_v6  ;;  %v5836_v27 = vadd.f32 %v13845_v50, %v5815_v25  ;;  %v14192_v29 = vadd.f32 %v6327_v36, %v6317_v45  ;;  %v15516_v50 = vld [vmem:[#allocation64_spill] sm:$0xff]  ;;  %v15519_v6 = vld [vmem:[#allocation166_spill] sm:$0xff]  ;;  %p10631_p0 = pnand %p10630_p13, %p10803_p6  ;;  %p10638_p4 = por %p10637_p3, %p10636_p2 }
 0x6d8   : > { %v6040_v15 = vadd.f32 %v6030_v2, %v6020_v33  ;;  %6266 = vrot.lane.b32.xlu0 %v15514_v52, %s14947_s25  ;;  %v4907_v20 = vadd.f32 %v15517_v8, %v15516_v50  ;;  %v5131_v31 = vadd.f32 %v15518_v18, %v5111_v38  ;;  %v15520_v37 = vrot.slane %v15406_v1, 1  ;;  %v15523_v33 = vld [vmem:[#allocation198_spill] sm:$0xff]  ;;  %v9051_v0 = vld [vmem:[%s14823_s5 + $0xf0] sm:$0xff]  ;;  %v15525_v52 = vld [vmem:[#allocation23_spill] sm:$0xff] }
 0x6d9   : > { %v5376_v19 = vadd.f32 %v5366_v62, %v5356_v30  ;;  %v5856_v42 = vadd.f32 %v5846_v58, %v5836_v27  ;;  %v15524_v30 = vld [vmem:[#allocation171_spill] sm:$0xff]  ;;  %v9056_v18 = vld [vmem:[%s14823_s5 + $0x110] sm:$0xff]  ;;  %p10632_p1 = pneg %p10631_p0 }
 0x6da   : > { %v5123_v47 = vpop.permute.xlu0 %5122  ;;  %v4927_v61 = vadd.f32 %v15519_v6, %v4907_v20  ;;  %v5151_v35 = vadd.f32 %v15521_v23, %v5131_v31  ;;  %v9055_v27 = vld [vmem:[%s14823_s5 + $0x108] sm:$0xff]  ;;  %v15529_v6 = vld [vmem:[#allocation29_spill] sm:$0xff] }
 0x6db   : > { %v5381_v24 = vmax.f32 %v4885_v16, %v5376_v19  ;;  %v5133_v9 = vadd.f32 %v5123_v47, %v14081_v13  ;;  %9038 = vmatmul.mubr.msk.f32.vlgmr.msra.gmra.mrb[114].mxu0 %vm6372_vm6, %v6686_v60  ;;  %v9044_v13 = vld [vmem:[%s14823_s5 + $0xc0] sm:$0xff]  ;;  %v14249_v19 = vpop.permute.xlu1 %4782  ;;  %v10397_v60 = vpack.c.bf16 %v9051_v0, %v9049_v57  ;;  %v15537_v0 = vld [vmem:[#allocation36_spill] sm:$0xff]  ;;  %p10639_p5 = pnand %p10638_p4, %p10632_p1 }
 0x6dc   : > { %6246 = vrot.lane.b32.xlu0 %v15406_v1, %s14951_s12  ;;  %10390 = vmatpush1.bf16.msra.mxu0 %v10389_v53  ;;  %v10393_v45 = vpack.c.bf16 %v9046_v22, %v9044_v13  ;;  %v15522_v1 = vld [vmem:[#allocation99_spill] sm:$0xff]  ;;  %v5176_v2 = vadd.f32 %v15523_v33, %v5151_v35  ;;  %v9062_v13 = vld [vmem:[%s14823_s5 + $0x138] sm:$0xff]  ;;  %s15583_s12 = sadd.s32 4294967295, %s10691_s20  }
 0x6dd   : > { %v5861_v41 = vmax.f32 %v5381_v24, %v5856_v42  ;;  %6834 = vmatprep.mubr.f32.mxu0 %v15475_v54  ;;  %10392 = vmatprep.subr.bf16.mxu0 %v10391_v28  ;;  %v4947_v58 = vadd.f32 %v15522_v1, %v4927_v61  ;;  %v15526_v28 = vld [vmem:[#allocation24_spill] sm:$0xff]  ;;  %v15528_v8 = vld [vmem:[#allocation211_spill] sm:$0xff]  ;;  %v15530_v61 = vld [vmem:[#allocation257_spill] sm:$0xff]  ;;  %s9142_s15 = sshll.u32 %s15583_s12, 4 }
 0x6de   : > { %v6050_v21 = vpop.permute.xlu0 %6049  ;;  %v5197_v47 = vadd.f32 %v15526_v28, %v5176_v2  ;;  %v15534_v1 = vld [vmem:[#allocation261_spill] sm:$0xff]  ;;  %v15536_v2 = vld [vmem:[#allocation190_spill] sm:$0xff]  ;;  %v9065_v28 = vld [vmem:[%s14823_s5 + $0x148] sm:$0xff]  ;;  %s14774_s0 = scalar_lea.hbm %s14829_s11, %s9142_s15 }
 0x6df   : > { %v6340_v59 = vmax.f32 %v5861_v41, %v13877_v40  ;;  %v6060_v36 = vadd.f32 %v6050_v21, %v6040_v15  ;;  %v9052_v40 = vld [vmem:[%s14823_s5 + $0xf8] sm:$0xff]  ;;  %v4972_v16 = vadd.f32 %v15524_v30, %v4947_v58  ;;  %v9054_v21 = vld [vmem:[%s14823_s5 + $0x100] sm:$0xff] }
 0x6e0   : > { %6286 = vrot.lane.b32.xlu0 %v15520_v37, %s14949_s29  ;;  %v10395_v51 = vpack.c.bf16 %v9052_v40, %v9050_v63  ;;  %v9057_v15 = vld [vmem:[%s14823_s5 + $0x118] sm:$0xff]  ;;  %v5207_v20 = vadd.f32 %v5197_v47, %v15528_v8  ;;  %v4711_v37 = vadd.f32 %v15530_v61, %v15529_v6  ;;  %v15531_v63 = vld [vmem:[#allocation160_spill] sm:$0xff]  ;;  %v15544_v6 = vld [vmem:[#allocation115_spill] sm:$0xff] }
 0x6e1   : > { %v6352_v25 = vadd.f32 %v14007_v11, %v6340_v59  ;;  %v4992_v53 = vadd.f32 %v15525_v52, %v4972_v16  ;;  %v10399_v24 = vpack.c.bf16 %v9057_v15, %v9055_v27  ;;  %v14266_v59 = vpop.permute.xlu1 %5744  ;;  %v15532_v40 = vld [vmem:[#allocation112_spill] sm:$0xff]  ;;  %v9059_v15 = vld [vmem:[%s14823_s5 + $0x120] sm:$0xff]  ;;  %v9067_v47 = vld [vmem:[%s14823_s5 + $0x158] sm:$0xff] }
 0x6e2   : > { %v5143_v43 = vpop.permute.xlu0 %5142  ;;  %v15538_v52 = vld [vmem:[#allocation76_spill] sm:$0xff] }
 0x6e3   : > { %v5153_v5 = vadd.f32 %v5143_v43, %v5133_v9  ;;  %v14226_v62 = vmax.f32 %v6352_v25, 0.0  ;;  %v15527_v9 = vld [vmem:[#allocation280_spill] sm:$0xff]  ;;  %v5713_v25 = vadd.f32 %v15532_v40, %v15531_v63 }
 0x6e4   : > { %v5012_v41 = vadd.f32 %v15527_v9, %v4992_v53  ;;  %v15540_v9 = vld [vmem:[#allocation200_spill] sm:$0xff] }
 0x6e5   : > { %9043 = vmatmul.mubr.msk.f32.vlgmr.msra.gmra.mrb[114].mxu0 %vm6372_vm6, %v14226_v62  ;;  %v6848_v38 = vrot.slane %v14226_v62, 1  ;;  %v6929_v23 = vrot.slane %v14226_v62, 2  ;;  %v5733_v57 = vadd.f32 %v15536_v2, %v5713_v25  ;;  %v14285_v16 = vpop.permute.xlu1 %4807  ;;  %v7010_v63 = vrot.slane %v14226_v62, 3  ;;  %v15545_v25 = vld [vmem:[#allocation11_spill] sm:$0xff] }
 0x6e6   : > { %v6070_v4 = vpop.permute.xlu0 %6069  ;;  %10394 = vmatpush1.bf16.msra.mxu0 %v10393_v45  ;;  %6915 = vmatprep.mubr.f32.mxu0 %v15475_v54  ;;  %v5037_v31 = vadd.f32 %v13779_v3, %v5012_v41  ;;  %v10401_v45 = vpack.c.bf16 %v9056_v18, %v9054_v21  ;;  %v9064_v2 = vld [vmem:[%s14823_s5 + $0x140] sm:$0xff] }
 0x6e7   : > { %v6080_v44 = vadd.f32 %v6070_v4, %v6060_v36  ;;  %10396 = vmatprep.subr.bf16.mxu0 %v10395_v51  ;;  %v9060_v36 = vld [vmem:[%s14823_s5 + $0x128] sm:$0xff] }
 0x6e8   : > { %v10403_v35 = vpack.c.bf16 %v9062_v13, %v9060_v36  ;;  %v15535_v4 = vld [vmem:[#allocation259_spill] sm:$0xff]  ;;  %v10407_v36 = vpack.c.bf16 %v9067_v47, %v9065_v28  ;;  %v15543_v13 = vld [vmem:[#allocation116_spill] sm:$0xff]  ;;  %v10702_v28 = vmov 0.0|0.0  }
 0x6e9   : > { %v14310_v40 = vpop.permute.xlu1 %5765  ;;  %10467 = vmatprep.subr.bf16.mxu1 %v10702_v28 }
 0x6ea   : > { %v5168_v42 = vpop.permute.xlu0 %5167 }
 0x6eb   : > { %v14252_v10 = vadd.f32 %v5168_v42, %v5153_v5  ;;  %v15533_v5 = vld [vmem:[#allocation204_spill] sm:$0xff] }
 0x6ec   : > { %v5047_v51 = vadd.f32 %v5037_v31, %v15533_v5  ;;  %v15548_v5 = vld [vmem:[#allocation275_spill] sm:$0xff] }
 0x6ed   : > { %9048 = vmatmul.mubr.msk.f32.vlgmr.msra.gmra.mrb[114].mxu0 %vm6372_vm6, %v6848_v38  ;;  %v15539_v38 = vld [vmem:[#allocation202_spill] sm:$0xff] }
 0x6ee   : > { %v5215_v50 = vpop.permute.xlu0 %5214  ;;  %10398 = vmatpush1.bf16.msra.mxu0 %v10397_v60  ;;  %6996 = vmatprep.mubr.f32.mxu0 %v15475_v54  ;;  %v5072_v30 = vadd.f32 %v15537_v0, %v5047_v51  ;;  %v9061_v60 = vld [vmem:[%s14823_s5 + $0x130] sm:$0xff]  ;;  %v9070_v0 = vld [vmem:[%s14823_s5 + $0x168] sm:$0xff] }
 0x6ef   : > { %10400 = vmatprep.subr.bf16.mxu0 %v10399_v24  ;;  %v5227_v22 = vadd.f32 %v5215_v50, %v5207_v20  ;;  %v15541_v50 = vld [vmem:[#allocation85_spill] sm:$0xff]  ;;  %v15542_v20 = vld [vmem:[#allocation186_spill] sm:$0xff]  ;;  %v10405_v31 = vpack.c.bf16 %v9061_v60, %v9059_v15  ;;  %v8399_v60 = vld [vmem:[%s14825_s7 + $0x8] sm:$0xff] }
 0x6f0   : > { %v5753_v8 = vadd.f32 %v15541_v50, %v5733_v57  ;;  %v5092_v21 = vadd.f32 %v15542_v20, %v5072_v30  ;;  %v9066_v57 = vld [vmem:[%s14823_s5 + $0x150] sm:$0xff]  ;;  %v15551_v30 = vld [vmem:[#allocation87_spill] sm:$0xff] }
 0x6f1   : > { %v5247_v33 = vadd.f32 %v15535_v4, %v5227_v22  ;;  %v15550_v4 = vld [vmem:[#allocation126_spill] sm:$0xff] }
 0x6f2   : > { %v4729_v43 = vpop.permute.xlu0 %4728  ;;  %v5774_v51 = vadd.f32 %v15548_v5, %v5753_v8  ;;  %v15553_v8 = vld [vmem:[#allocation170_spill] sm:$0xff] }
 0x6f3   : > { %v4741_v3 = vadd.f32 %v4729_v43, %v4711_v37  ;;  %v4876_v43 = vrot.slane %v15545_v25, 2  ;;  %v5847_v20 = vrot.slane %v15553_v8, 2  ;;  %v15557_v8 = vld [vmem:[#allocation129_spill] sm:$0xff] }
 0x6f5   : > { %v4766_v58 = vadd.f32 %v15534_v1, %v4741_v3  ;;  %9053 = vmatmul.mubr.msk.f32.vlgmr.msra.gmra.mrb[114].mxu0 %vm6372_vm6, %v6929_v23  ;;  %v15547_v23 = vld [vmem:[#allocation210_spill] sm:$0xff]  ;;  %v15549_v1 = vld [vmem:[#allocation72_spill] sm:$0xff] }
 0x6f6   : > { %v5260_v27 = vpop.permute.xlu0 %5259  ;;  %10402 = vmatpush1.bf16.msra.mxu0 %v10401_v45  ;;  %7077 = vmatprep.mubr.f32.mxu0 %v15475_v54  ;;  %v15546_v45 = vld [vmem:[#allocation192_spill] sm:$0xff] }
 0x6f7   : > { %v4791_v53 = vadd.f32 %v15538_v52, %v4766_v58  ;;  %v5272_v42 = vadd.f32 %v5260_v27, %v5247_v33  ;;  %10404 = vmatprep.subr.bf16.mxu0 %v10403_v35  ;;  %v5367_v58 = vrot.slane %v15549_v1, 2  ;;  %v5112_v33 = vadd.f32 %v15550_v4, %v5092_v21  ;;  %v15554_v21 = vld [vmem:[#allocation215_spill] sm:$0xff]  ;;  %v8404_v1 = vld [vmem:[%s14825_s7 + $0x30] sm:$0xff] }
 0x6f9   : > { %v4816_v24 = vadd.f32 %v15539_v38, %v4791_v53  ;;  %v5292_v41 = vadd.f32 %v15540_v9, %v5272_v42  ;;  %v9072_v53 = vld [vmem:[%s14823_s5 + $0x178] sm:$0xff]  ;;  %v8398_v42 = vld [vmem:[%s14825_s7] sm:$0xff]  ;;  %v8400_v38 = vld [vmem:[%s14825_s7 + $0x10] sm:$0xff] }
 0x6fa   : > { %v6090_v18 = vpop.permute.xlu0 %6089  ;;  %v10468_v47 = vpack.c.bf16 %v8399_v60, %v8398_v42  ;;  %v8407_v42 = vld [vmem:[%s14825_s7 + $0x48] sm:$0xff] }
 0x6fb   : > { %v4841_v22 = vadd.f32 %v15543_v13, %v4816_v24  ;;  %v5312_v61 = vadd.f32 %v15544_v6, %v5292_v41  ;;  %v14307_v37 = vadd.f32 %v6090_v18, %v6080_v44  ;;  %v8401_v24 = vld [vmem:[%s14825_s7 + $0x18] sm:$0xff]  ;;  %v15552_v41 = vld [vmem:[#allocation287_spill] sm:$0xff]  ;;  %v5132_v18 = vadd.f32 %v15554_v21, %v5112_v33  ;;  %v8408_v21 = vld [vmem:[%s14825_s7 + $0x50] sm:$0xff] }
 0x6fc   : > { %v10409_v13 = vpack.c.bf16 %v9066_v57, %v9064_v2  ;;  %10469 = vmatpush1.bf16.msra.mxu1 %v10468_v47  ;;  %v10471_v25 = vpack.c.bf16 %v8401_v24, %v8400_v38  ;;  %v9069_v33 = vld [vmem:[%s14823_s5 + $0x160] sm:$0xff]  ;;  %v9075_v57 = vld [vmem:[%s14823_s5 + $0x188] sm:$0xff] }
 0x6fd   : > { %v4866_v3 = vadd.f32 %v15546_v45, %v4841_v22  ;;  %v5332_v35 = vadd.f32 %v15547_v23, %v5312_v61  ;;  %9058 = vmatmul.mubr.msk.f32.vlgmr.msra.gmra.mrb[114].mxu0 %vm6372_vm6, %v7010_v63  ;;  %v10411_v22 = vpack.c.bf16 %v9072_v53, %v9070_v0  ;;  %v7091_v63 = vrot.slane %v14226_v62, 4  ;;  %10470 = vmatprep.subr.bf16.mxu1 %v10702_v28  ;;  %v8403_v45 = vld [vmem:[%s14825_s7 + $0x28] sm:$0xff]  ;;  %v9077_v0 = vld [vmem:[%s14823_s5 + $0x198] sm:$0xff]  ;;  %v8406_v53 = vld [vmem:[%s14825_s7 + $0x40] sm:$0xff] }
 0x6fe   : > { %v5783_v44 = vpop.permute.xlu0 %5782  ;;  %10406 = vmatpush1.bf16.msra.mxu0 %v10405_v31  ;;  %7158 = vmatprep.mubr.f32.mxu0 %v15475_v54  ;;  %v14349_v31 = vpop.permute.xlu1 %4832  ;;  %v10415_v47 = vpack.c.bf16 %v9077_v0, %v9075_v57 }
 0x6ff   : > { %v5357_v27 = vadd.f32 %v15551_v30, %v5332_v35  ;;  %v4886_v15 = vadd.f32 %v4876_v43, %v4866_v3  ;;  %v5795_v52 = vadd.f32 %v5783_v44, %v5774_v51  ;;  %10408 = vmatprep.subr.bf16.mxu0 %v10407_v36  ;;  %v8402_v43 = vld [vmem:[%s14825_s7 + $0x20] sm:$0xff]  ;;  %v9071_v44 = vld [vmem:[%s14823_s5 + $0x170] sm:$0xff] }
 0x700   : > { %10472 = vmatpush1.bf16.msra.mxu1 %v10471_v25  ;;  %v10474_v5 = vpack.c.bf16 %v8403_v45, %v8402_v43  ;;  %v15556_v30 = vld [vmem:[#allocation216_spill] sm:$0xff]  ;;  %v15559_v45 = vld [vmem:[#allocation130_spill] sm:$0xff] }
 0x701   : > { %v5377_v9 = vadd.f32 %v5367_v58, %v5357_v27  ;;  %v5816_v50 = vadd.f32 %v15552_v41, %v5795_v52  ;;  %10473 = vmatprep.subr.bf16.mxu1 %v10702_v28  ;;  %v8405_v58 = vld [vmem:[%s14825_s7 + $0x38] sm:$0xff]  ;;  %v10413_v52 = vpack.c.bf16 %v9071_v44, %v9069_v33 }
 0x702   : > { %v14351_v36 = vpop.permute.xlu0 %5188  ;;  %v14367_v51 = vpop.permute.xlu1 %4857 }
 0x703   : > { %v5382_v6 = vmax.f32 %v4886_v15, %v5377_v9  ;;  %v5837_v61 = vadd.f32 %v13969_v26, %v5816_v50  ;;  %v15555_v26 = vld [vmem:[#allocation127_spill] sm:$0xff]  ;;  %v10477_v15 = vpack.c.bf16 %v8405_v58, %v8404_v1  ;;  %v10480_v50 = vpack.c.bf16 %v8407_v42, %v8406_v53  ;;  %v8413_v53 = vld [vmem:[%s14825_s7 + $0x78] sm:$0xff] }
 0x704   : > { %v5152_v62 = vadd.f32 %v15555_v26, %v5132_v18  ;;  %10475 = vmatpush1.bf16.msra.mxu1 %v10474_v5  ;;  %v9074_v18 = vld [vmem:[%s14823_s5 + $0x180] sm:$0xff] }
 0x705   : > { %v5857_v3 = vadd.f32 %v5847_v20, %v5837_v61  ;;  %9063 = vmatmul.mubr.msk.f32.vlgmr.msra.gmra.mrb[114].mxu0 %vm6372_vm6, %v7091_v63  ;;  %10476 = vmatprep.subr.bf16.mxu1 %v10702_v28  ;;  %v5714_v20 = vadd.f32 %v15557_v8, %v13842_v12  ;;  %v15558_v61 = vld [vmem:[#allocation226_spill] sm:$0xff]  ;;  %v9085_v8 = vld [vmem:[%s14823_s5 + $0x1c8] sm:$0xff] }
 0x706   : > { %v14363_v23 = vpop.permute.xlu0 %6109  ;;  %10410 = vmatpush1.bf16.msra.mxu0 %v10409_v13  ;;  %7239 = vmatprep.mubr.f32.mxu0 %v15475_v54  ;;  %v5808_v38 = vpop.permute.xlu1 %5807  ;;  %v9076_v13 = vld [vmem:[%s14823_s5 + $0x190] sm:$0xff]  ;;  %v8410_v1 = vld [vmem:[%s14825_s7 + $0x60] sm:$0xff] }
 0x707   : > { %v5862_v35 = vmax.f32 %v5382_v6, %v5857_v3  ;;  %10412 = vmatprep.subr.bf16.mxu0 %v10411_v22  ;;  %v9080_v22 = vld [vmem:[%s14823_s5 + $0x1a8] sm:$0xff] }
 0x708   : > { %10478 = vmatpush1.bf16.msra.mxu1 %v10477_v15  ;;  %v15560_v3 = vld [vmem:[#allocation292_spill] sm:$0xff] }
 0x709   : > { %v6341_v4 = vmax.f32 %v5862_v35, %v13998_v46  ;;  %v5177_v46 = vadd.f32 %v15556_v30, %v5152_v62  ;;  %10479 = vmatprep.subr.bf16.mxu1 %v10702_v28  ;;  %v4712_v26 = vadd.f32 %v15560_v3, %v15559_v45  ;;  %v10417_v62 = vpack.c.bf16 %v9076_v13, %v9074_v18  ;;  %v15561_v35 = vld [vmem:[#allocation206_spill] sm:$0xff]  ;;  %v15566_v18 = vld [vmem:[#allocation100_spill] sm:$0xff]  ;;  %v15568_v3 = vld [vmem:[#allocation221_spill] sm:$0xff] }
 0x70a   : > { %v14383_v2 = vpop.permute.xlu0 %6130  ;;  %v5787_v43 = vpop.permute.xlu1 %5786  ;;  %v5734_v5 = vadd.f32 %v15561_v35, %v5714_v20  ;;  %v9087_v20 = vld [vmem:[%s14823_s5 + $0x1d8] sm:$0xff] }
 0x70b   : > { %v6353_v27 = vadd.f32 %v14007_v11, %v6341_v4  ;;  %v5198_v9 = vadd.f32 %v13858_v34, %v5177_v46  ;;  %v8409_v34 = vld [vmem:[%s14825_s7 + $0x58] sm:$0xff]  ;;  %v10423_v45 = vpack.c.bf16 %v9087_v20, %v9085_v8  ;;  %v15577_v20 = vld [vmem:[#allocation172_spill] sm:$0xff] }
 0x70c   : > { %10481 = vmatpush1.bf16.msra.mxu1 %v10480_v50  ;;  %v10483_v25 = vpack.c.bf16 %v8409_v34, %v8408_v21  ;;  %v9081_v50 = vld [vmem:[%s14823_s5 + $0x1b0] sm:$0xff] }
 0x70d   : > { %v14400_v60 = vmax.f32 %v6353_v27, 0.0  ;;  %v5208_v63 = vadd.f32 %v5198_v9, %v15558_v61  ;;  %10482 = vmatprep.subr.bf16.mxu1 %v10702_v28  ;;  %v15562_v27 = vld [vmem:[#allocation107_spill] sm:$0xff]  ;;  %v15564_v9 = vld [vmem:[#allocation294_spill] sm:$0xff] }
 0x70e   : > { %v5705_v24 = vpop.permute.xlu0 %5704  ;;  %v5754_v15 = vadd.f32 %v15562_v27, %v5734_v5  ;;  %v5829_v34 = vpop.permute.xlu1 %5828  ;;  %v8415_v61 = vld [vmem:[%s14825_s7 + $0x88] sm:$0xff]  ;;  %v15572_v27 = vld [vmem:[#allocation14_spill] sm:$0xff] }
 0x70f   : > { %v5715_v41 = vadd.f32 %v5705_v24, %v14140_v39  ;;  %9068 = vmatmul.mubr.msk.f32.vlgmr.msra.gmra.mrb[114].mxu0 %vm6372_vm6, %v14400_v60  ;;  %v7253_v33 = vrot.slane %v14400_v60, 1  ;;  %v7334_v5 = vrot.slane %v14400_v60, 2 }
 0x710   : > { %10414 = vmatpush1.bf16.msra.mxu0 %v10413_v52  ;;  %7320 = vmatprep.mubr.f32.mxu0 %v15475_v54  ;;  %v8412_v52 = vld [vmem:[%s14825_s7 + $0x70] sm:$0xff] }
 0x711   : > { %v5735_v39 = vadd.f32 %v14229_v32, %v5715_v41  ;;  %10416 = vmatprep.subr.bf16.mxu0 %v10415_v47  ;;  %v9082_v32 = vld [vmem:[%s14823_s5 + $0x1b8] sm:$0xff]  ;;  %10484 = vmatpush1.bf16.msra.mxu1 %v10483_v25  ;;  %v15563_v47 = vld [vmem:[#allocation296_spill] sm:$0xff] }
 0x712   : > { %v5217_v12 = vpop.permute.xlu0 %5216  ;;  %v10419_v44 = vpack.c.bf16 %v9082_v32, %v9080_v22  ;;  %10485 = vmatprep.subr.bf16.mxu1 %v10702_v28  ;;  %v10489_v32 = vpack.c.bf16 %v8413_v53, %v8412_v52  ;;  %v15574_v53 = vld [vmem:[#allocation227_spill] sm:$0xff] }
 0x713   : > { %v5755_v6 = vadd.f32 %v14266_v59, %v5735_v39  ;;  %v8411_v59 = vld [vmem:[%s14825_s7 + $0x68] sm:$0xff]  ;;  %v5228_v4 = vadd.f32 %v5217_v12, %v5208_v63 }
 0x714   : > { %v10486_v46 = vpack.c.bf16 %v8411_v59, %v8410_v1  ;;  %v15567_v63 = vld [vmem:[#allocation304_spill] sm:$0xff] }
 0x715   : > { %v5776_v58 = vadd.f32 %v14310_v40, %v5755_v6  ;;  %v9079_v40 = vld [vmem:[%s14823_s5 + $0x1a0] sm:$0xff]  ;;  %v5248_v41 = vadd.f32 %v15564_v9, %v5228_v4  ;;  %v5775_v25 = vadd.f32 %v15567_v63, %v5754_v15  ;;  %v4877_v15 = vrot.slane %v15572_v27, 2  ;;  %v8419_v63 = vld [vmem:[%s14825_s7 + $0xa8] sm:$0xff] }
 0x716   : > { %v4731_v57 = vpop.permute.xlu0 %4730  ;;  %10487 = vmatpush1.bf16.msra.mxu1 %v10486_v46  ;;  %v8414_v6 = vld [vmem:[%s14825_s7 + $0x80] sm:$0xff]  ;;  %v8417_v46 = vld [vmem:[%s14825_s7 + $0x98] sm:$0xff] }
 0x717   : > { %v5797_v0 = vadd.f32 %v5787_v43, %v5776_v58  ;;  %v4742_v30 = vadd.f32 %v4731_v57, %v4712_v26  ;;  %9073 = vmatmul.mubr.msk.f32.vlgmr.msra.gmra.mrb[114].mxu0 %vm6372_vm6, %v7253_v33  ;;  %v10421_v43 = vpack.c.bf16 %v9081_v50, %v9079_v40  ;;  %10488 = vmatprep.subr.bf16.mxu1 %v10702_v28  ;;  %v15570_v4 = vld [vmem:[#allocation134_spill] sm:$0xff]  ;;  %v15573_v40 = vld [vmem:[#allocation208_spill] sm:$0xff]  ;;  %v15576_v50 = vld [vmem:[#allocation75_spill] sm:$0xff] }
 0x718   : > { %10418 = vmatpush1.bf16.msra.mxu0 %v10417_v62  ;;  %7401 = vmatprep.mubr.f32.mxu0 %v15475_v54  ;;  %v15569_v62 = vld [vmem:[#allocation219_spill] sm:$0xff]  ;;  %v10492_v58 = vpack.c.bf16 %v8415_v61, %v8414_v6  ;;  %v5368_v8 = vrot.slane %v15576_v50, 2 }
 0x719   : > { %v5818_v42 = vadd.f32 %v5808_v38, %v5797_v0  ;;  %v4767_v24 = vadd.f32 %v15563_v47, %v4742_v30  ;;  %10420 = vmatprep.subr.bf16.mxu0 %v10419_v44  ;;  %v15565_v38 = vld [vmem:[#allocation176_spill] sm:$0xff]  ;;  %v15575_v47 = vld [vmem:[#allocation306_spill] sm:$0xff] }
 0x71a   : > { %v5849_v21 = vrot.slane %v15565_v38, 2  ;;  %v5262_v39 = vpop.permute.xlu0 %5261  ;;  %v15571_v44 = vld [vmem:[#allocation132_spill] sm:$0xff]  ;;  %10490 = vmatpush1.bf16.msra.mxu1 %v10489_v32  ;;  %v9084_v9 = vld [vmem:[%s14823_s5 + $0x1c0] sm:$0xff]  ;;  %v5848_v38 = vrot.slane %v15577_v20, 2  ;;  %v5199_v20 = vadd.f32 %v14351_v36, %v14252_v10  ;;  %v4713_v10 = vadd.f32 %v14040_v48, %v14111_v55 }
 0x71b   : > { %v4792_v13 = vadd.f32 %v15566_v18, %v4767_v24  ;;  %v5273_v12 = vadd.f32 %v5262_v39, %v5248_v41  ;;  %v5839_v22 = vadd.f32 %v5829_v34, %v5818_v42  ;;  %v8416_v30 = vld [vmem:[%s14825_s7 + $0x90] sm:$0xff]  ;;  %10491 = vmatprep.subr.bf16.mxu1 %v10702_v28  ;;  %v9090_v34 = vld [vmem:[%s14823_s5 + $0x1e8] sm:$0xff]  ;;  %v9092_v39 = vld [vmem:[%s14823_s5 + $0x1f8] sm:$0xff] }
 0x71c   : > { %v9086_v41 = vld [vmem:[%s14823_s5 + $0x1d0] sm:$0xff]  ;;  %v10495_v32 = vpack.c.bf16 %v8417_v46, %v8416_v30  ;;  %v8418_v61 = vld [vmem:[%s14825_s7 + $0xa0] sm:$0xff]  ;;  %v9105_v50 = vld [vmem:[%s14823_s5 + $0x248] sm:$0xff] }
 0x71d   : > { %v4817_v26 = vadd.f32 %v15568_v3, %v4792_v13  ;;  %v5293_v35 = vadd.f32 %v15569_v62, %v5273_v12  ;;  %v14480_v1 = vadd.f32 %v5849_v21, %v5839_v22  ;;  %v15578_v18 = vld [vmem:[#allocation109_spill] sm:$0xff]  ;;  %v10425_v6 = vpack.c.bf16 %v9086_v41, %v9084_v9 }
 0x71e   : > { %v5785_v59 = vpop.permute.xlu0 %5784  ;;  %10493 = vmatpush1.bf16.msra.mxu1 %v10492_v58  ;;  %v10427_v3 = vpack.c.bf16 %v9092_v39, %v9090_v34  ;;  %v10498_v62 = vpack.c.bf16 %v8419_v63, %v8418_v61  ;;  %v9101_v9 = vld [vmem:[%s14823_s5 + $0x230] sm:$0xff]  ;;  %v6120_v34 = vadd.f32 %v14363_v23, %v14307_v37  ;;  %v9104_v37 = vld [vmem:[%s14823_s5 + $0x240] sm:$0xff]  ;;  %v9112_v61 = vld [vmem:[%s14823_s5 + $0x278] sm:$0xff] }
 0x71f   : > { %v4842_v33 = vadd.f32 %v15570_v4, %v4817_v26  ;;  %v5313_v57 = vadd.f32 %v15571_v44, %v5293_v35  ;;  %v5796_v0 = vadd.f32 %v5785_v59, %v5775_v25  ;;  %9078 = vmatmul.mubr.msk.f32.vlgmr.msra.gmra.mrb[114].mxu0 %vm6372_vm6, %v7334_v5  ;;  %10494 = vmatprep.subr.bf16.mxu1 %v10702_v28  ;;  %v9089_v5 = vld [vmem:[%s14823_s5 + $0x1e0] sm:$0xff]  ;;  %v9091_v59 = vld [vmem:[%s14823_s5 + $0x1f0] sm:$0xff]  ;;  %v9095_v4 = vld [vmem:[%s14823_s5 + $0x208] sm:$0xff] }
 0x720   : > { %10422 = vmatpush1.bf16.msra.mxu0 %v10421_v43  ;;  %7482 = vmatprep.mubr.f32.mxu0 %v15475_v54  ;;  %v9106_v23 = vld [vmem:[%s14823_s5 + $0x250] sm:$0xff] }
 0x721   : > { %v4867_v52 = vadd.f32 %v15573_v40, %v4842_v33  ;;  %v5333_v42 = vadd.f32 %v15574_v53, %v5313_v57  ;;  %v5817_v24 = vadd.f32 %v15575_v47, %v5796_v0  ;;  %10424 = vmatprep.subr.bf16.mxu0 %v10423_v45  ;;  %v7415_v45 = vrot.slane %v14400_v60, 3  ;;  %v9097_v33 = vld [vmem:[%s14823_s5 + $0x218] sm:$0xff]  ;;  %v9100_v40 = vld [vmem:[%s14823_s5 + $0x228] sm:$0xff] }
 0x722   : > { %v14505_v21 = vpop.permute.xlu0 %6181  ;;  %10496 = vmatpush1.bf16.msra.mxu1 %v10495_v32  ;;  %v10429_v57 = vpack.c.bf16 %v9091_v59, %v9089_v5  ;;  %v7496_v0 = vrot.slane %v14400_v60, 4  ;;  %v10431_v30 = vpack.c.bf16 %v9097_v33, %v9095_v4  ;;  %v10441_v63 = vpack.c.bf16 %v9106_v23, %v9104_v37  ;;  %v9117_v4 = vld [vmem:[%s14823_s5 + $0x298] sm:$0xff]  ;;  %v9119_v37 = vld [vmem:[%s14823_s5 + $0x2a0] sm:$0xff] }
 0x723   : > { %v5358_v13 = vadd.f32 %v15578_v18, %v5333_v42  ;;  %v4887_v12 = vadd.f32 %v4877_v15, %v4867_v52  ;;  %v5838_v22 = vadd.f32 %v14142_v49, %v5817_v24  ;;  %10497 = vmatprep.subr.bf16.mxu1 %v10702_v28  ;;  %v9096_v15 = vld [vmem:[%s14823_s5 + $0x210] sm:$0xff]  ;;  %v9102_v52 = vld [vmem:[%s14823_s5 + $0x238] sm:$0xff]  ;;  %v9099_v24 = vld [vmem:[%s14823_s5 + $0x220] sm:$0xff] }
 0x724   : > { %v10435_v42 = vpack.c.bf16 %v9102_v52, %v9100_v40  ;;  %v9127_v23 = vld [vmem:[%s14823_s5 + $0x2d8] sm:$0xff] }
 0x725   : > { %v5378_v25 = vadd.f32 %v5368_v8, %v5358_v13  ;;  %v5858_v43 = vadd.f32 %v5848_v38, %v5838_v22  ;;  %v9107_v8 = vld [vmem:[%s14823_s5 + $0x258] sm:$0xff]  ;;  %v10437_v38 = vpack.c.bf16 %v9101_v9, %v9099_v24  ;;  %v15579_v22 = vld [vmem:[#allocation240_spill] sm:$0xff] }
 0x726   : > { %v14523_v26 = vpop.permute.xlu0 %5283  ;;  %10499 = vmatpush1.bf16.msra.mxu1 %v10498_v62  ;;  %v10439_v18 = vpack.c.bf16 %v9107_v8, %v9105_v50  ;;  %v5209_v32 = vadd.f32 %v5199_v20, %v15579_v22  ;;  %v9122_v50 = vld [vmem:[%s14823_s5 + $0x2b8] sm:$0xff] }
 0x727   : > { %v5383_v49 = vmax.f32 %v4887_v12, %v5378_v25  ;;  %9083 = vmatmul.mubr.msk.f32.vlgmr.msra.gmra.mrb[114].mxu0 %vm6372_vm6, %v7415_v45  ;;  %10500 = vmatprep.subr.bf16.mxu1 %v10702_v28  ;;  %v6141_v12 = vadd.f32 %v14383_v2, %v6120_v34 }
 0x728   : > { %10426 = vmatpush1.bf16.msra.mxu0 %v10425_v6  ;;  %7563 = vmatprep.mubr.f32.mxu0 %v15475_v54  ;;  %v9110_v6 = vld [vmem:[%s14823_s5 + $0x268] sm:$0xff] }
 0x729   : > { %v5863_v35 = vmax.f32 %v5383_v49, %v5858_v43  ;;  %10428 = vmatprep.subr.bf16.mxu0 %v10427_v3  ;;  %v6162_v48 = vadd.f32 %v14060_v56, %v6141_v12  ;;  %v10443_v3 = vpack.c.bf16 %v9112_v61, %v9110_v6  ;;  %v9109_v56 = vld [vmem:[%s14823_s5 + $0x260] sm:$0xff] }
 0x72a   : > { %v14534_v58 = vpop.permute.xlu0 %6201 }
 0x72b   : > { %v6342_v44 = vmax.f32 %v5863_v35, %v14192_v29  ;;  %v9094_v29 = vld [vmem:[%s14823_s5 + $0x200] sm:$0xff]  ;;  %v6172_v62 = vadd.f32 %v6162_v48, %v13810_v7  ;;  %v9111_v7 = vld [vmem:[%s14823_s5 + $0x270] sm:$0xff] }
 0x72c   : > { %v10433_v53 = vpack.c.bf16 %v9096_v15, %v9094_v29 }
 0x72d   : > { %v6354_v27 = vadd.f32 %v14007_v11, %v6342_v44  ;;  %v15580_v44 = vld [vmem:[#allocation17_spill] sm:$0xff] }
 0x72e   : > { %v14545_v46 = vpop.permute.xlu0 %5303 }
 0x72f   : > { %9088 = vmatmul.mubr.msk.f32.vlgmr.msra.gmra.mrb[114].mxu0 %vm6372_vm6, %v7496_v0  ;;  %v14564_v11 = vmax.f32 %v6354_v27, 0.0  ;;  %v10445_v0 = vpack.c.bf16 %v9111_v7, %v9109_v56  ;;  %v9135_v56 = vld [vmem:[%s14823_s5 + $0x308] sm:$0xff] }
 0x730   : > { %10430 = vmatpush1.bf16.msra.mxu0 %v10429_v57  ;;  %7644 = vmatprep.mubr.f32.mxu0 %v15475_v54  ;;  %v4878_v57 = vrot.slane %v15580_v44, 2  ;;  %v8421_v44 = vld [vmem:[%s14825_s7 + $0xb8] sm:$0xff] }
 0x731   : > { %10432 = vmatprep.subr.bf16.mxu0 %v10431_v30  ;;  %v7658_v39 = vrot.slane %v14564_v11, 1  ;;  %v7739_v45 = vrot.slane %v14564_v11, 2  ;;  %v7820_v40 = vrot.slane %v14564_v11, 3  ;;  %v7901_v22 = vrot.slane %v14564_v11, 4 }
 0x732   : > { %v14556_v60 = vpop.permute.xlu0 %6226 }
 0x736   : > { %v5324_v47 = vpop.permute.xlu0 %5323 }
 0x737   : > { %9093 = vmatmul.mubr.msk.f32.vlgmr.msra.gmra.mrb[114].mxu0 %vm6372_vm6, %v14564_v11  ;;  %v9125_v11 = vld [vmem:[%s14823_s5 + $0x2c8] sm:$0xff] }
 0x738   : > { %10434 = vmatpush1.bf16.msra.mxu0 %v10433_v53  ;;  %7725 = vmatprep.mubr.f32.mxu0 %v15475_v54  ;;  %v15581_v53 = vld [vmem:[#allocation80_spill] sm:$0xff] }
 0x739   : > { %10436 = vmatprep.subr.bf16.mxu0 %v10435_v42  ;;  %v5369_v42 = vrot.slane %v15581_v53, 2 }
 0x73a   : > { %v5349_v41 = vpop.permute.xlu0 %5348 }
 0x73e   : > { %v5219_v13 = vpop.permute.xlu0 %5218 }
 0x73f   : > { %9098 = vmatmul.mubr.msk.f32.vlgmr.msra.gmra.mrb[114].mxu0 %vm6372_vm6, %v7658_v39  ;;  %v5229_v36 = vadd.f32 %v5219_v13, %v5209_v32  ;;  %v6308_v39 = vpop.permute.xlu1 %6307 }
 0x740   : > { %10438 = vmatpush1.bf16.msra.mxu0 %v10437_v38  ;;  %7806 = vmatprep.mubr.f32.mxu0 %v15475_v54  ;;  %v15582_v38 = vld [vmem:[#allocation289_spill] sm:$0xff] }
 0x741   : > { %10440 = vmatprep.subr.bf16.mxu0 %v10439_v18  ;;  %v5249_v43 = vadd.f32 %v14077_v17, %v5229_v36  ;;  %v6192_v17 = vadd.f32 %v14505_v21, %v6172_v62  ;;  %v6328_v34 = vrot.slane %v15582_v38, 2  ;;  %v8504_v38 = vld [vmem:[%s14827_s9 + $0x28] sm:$0xff] }
 0x742   : > { %v4733_v2 = vpop.permute.xlu0 %4732 }
 0x743   : > { %v4743_v55 = vadd.f32 %v4733_v2, %v4713_v10  ;;  %v6212_v21 = vadd.f32 %v14534_v58, %v6192_v17  ;;  %v10628_v2 = vld [vmem:[%s14822_s4] ss:$0 sm:$0xff]  ;;  %v9137_v17 = vld [vmem:[%s14823_s5 + $0x318] sm:$0xff] }
 0x744   : > { %v10463_v7 = vpack.c.bf16 %v9137_v17, %v9135_v56 }
 0x745   : > { %v4768_v25 = vadd.f32 %v14102_v14, %v4743_v55  ;;  %v6237_v27 = vadd.f32 %v14556_v60, %v6212_v21  ;;  %v9116_v60 = vld [vmem:[%s14823_s5 + $0x290] sm:$0xff]  ;;  %v10455_v55 = vpack.c.bf16 %v9127_v23, %v9125_v11  ;;  %v8510_v23 = vld [vmem:[%s14828_s10] sm:$0x1] }
 0x746   : > { %v5264_v49 = vpop.permute.xlu0 %5263 }
 0x747   : > { %v4793_v35 = vadd.f32 %v14249_v19, %v4768_v25  ;;  %v5274_v5 = vadd.f32 %v5264_v49, %v5249_v43  ;;  %9103 = vmatmul.mubr.msk.f32.vlgmr.msra.gmra.mrb[114].mxu0 %vm6372_vm6, %v7739_v45  ;;  %v9115_v19 = vld [vmem:[%s14823_s5 + $0x288] sm:$0xff]  ;;  %v9126_v25 = vld [vmem:[%s14823_s5 + $0x2d0] sm:$0xff]  ;;  %v9132_v45 = vld [vmem:[%s14823_s5 + $0x2f8] sm:$0xff] }
 0x748   : > { %10442 = vmatpush1.bf16.msra.mxu0 %v10441_v63  ;;  %7887 = vmatprep.mubr.f32.mxu0 %v15475_v54  ;;  %v10447_v30 = vpack.c.bf16 %v9117_v4, %v9115_v19  ;;  %v9124_v63 = vld [vmem:[%s14823_s5 + $0x2c0] sm:$0xff]  ;;  %v9130_v43 = vld [vmem:[%s14823_s5 + $0x2e8] sm:$0xff]  ;;  %v9136_v4 = vld [vmem:[%s14823_s5 + $0x310] sm:$0xff] }
 0x749   : > { %v4818_v14 = vadd.f32 %v14285_v16, %v4793_v35  ;;  %v5294_v59 = vadd.f32 %v14523_v26, %v5274_v5  ;;  %10444 = vmatprep.subr.bf16.mxu0 %v10443_v3  ;;  %v10457_v3 = vpack.c.bf16 %v9126_v25, %v9124_v63  ;;  %v10459_v62 = vpack.c.bf16 %v9132_v45, %v9130_v43  ;;  %v9129_v35 = vld [vmem:[%s14823_s5 + $0x2e0] sm:$0xff]  ;;  %v9131_v5 = vld [vmem:[%s14823_s5 + $0x2f0] sm:$0xff] }
 0x74a   : > { %v6267_v33 = vpop.permute.xlu0 %6266  ;;  %v9134_v19 = vld [vmem:[%s14823_s5 + $0x300] sm:$0xff] }
 0x74b   : > { %v4843_v16 = vadd.f32 %v14349_v31, %v4818_v14  ;;  %v5314_v26 = vadd.f32 %v14545_v46, %v5294_v59  ;;  %v10461_v14 = vpack.c.bf16 %v9131_v5, %v9129_v35 }
 0x74d   : > { %v4868_v29 = vadd.f32 %v14367_v51, %v4843_v16  ;;  %v5334_v15 = vadd.f32 %v5324_v47, %v5314_v26  ;;  %v9114_v51 = vld [vmem:[%s14823_s5 + $0x280] sm:$0xff]  ;;  %v8420_v26 = vld [vmem:[%s14825_s7 + $0xb0] sm:$0xff] }
 0x74e   : > { %v6247_v52 = vpop.permute.xlu0 %6246  ;;  %v10449_v18 = vpack.c.bf16 %v9116_v60, %v9114_v51 }
 0x74f   : > { %v5359_v24 = vadd.f32 %v5349_v41, %v5334_v15  ;;  %v6257_v58 = vadd.f32 %v6247_v52, %v6237_v27  ;;  %9108 = vmatmul.mubr.msk.f32.vlgmr.msra.gmra.mrb[114].mxu0 %vm6372_vm6, %v7820_v40  ;;  %v4888_v31 = vadd.f32 %v4878_v57, %v4868_v29  ;;  %v9120_v41 = vld [vmem:[%s14823_s5 + $0x2a8] sm:$0xff]  ;;  %v10501_v57 = vpack.c.bf16 %v8421_v44, %v8420_v26  ;;  %v8382_v15 = vld [vmem:[%s14824_s6] sm:$0x3] }
 0x750   : > { %10446 = vmatpush1.bf16.msra.mxu0 %v10445_v0  ;;  %7968 = vmatprep.mubr.f32.mxu0 %v15475_v54  ;;  %v10451_v32 = vpack.c.bf16 %v9122_v50, %v9120_v41  ;;  %v8422_v0 = vld [vmem:[%s14825_s7 + $0xc0] sm:$0xff]  ;;  %v8501_v41 = vld [vmem:[%s14827_s9 + $0x10] sm:$0xff]  ;;  %v8502_v50 = vld [vmem:[%s14827_s9 + $0x18] sm:$0xff] }
 0x751   : > { %v5379_v46 = vadd.f32 %v5369_v42, %v5359_v24  ;;  %v6277_v9 = vadd.f32 %v6267_v33, %v6257_v58  ;;  %10448 = vmatprep.subr.bf16.mxu0 %v10447_v30  ;;  %v10465_v33 = vpack.c.bf16 %v9136_v4, %v9134_v19  ;;  %10502 = vmatpush1.bf16.msra.mxu1 %v10501_v57  ;;  %v8384_v30 = vlaneseq }
 0x752   : > { %v6287_v47 = vpop.permute.xlu0 %6286  ;;  %8476 = vmatprep.subr.mxu1 %v15475_v54 }
 0x753   : > { %v5384_v8 = vmax.f32 %v4888_v31, %v5379_v46  ;;  %v6297_v20 = vadd.f32 %v6287_v47, %v6277_v9  ;;  %v8385_v27 = vshrl.u32 %v8384_v30, 7  ;;  %v8499_v31 = vld [vmem:[%s14827_s9] sm:$0xff]  ;;  %v8500_v46 = vld [vmem:[%s14827_s9 + $0x8] sm:$0xff] }
 0x754   : > { %v10504_v60 = vpack.c.bf16 %v8500_v46, %v8499_v31 }
 0x755   : > { %v5864_v13 = vmax.f32 %v5384_v8, %v14480_v1  ;;  %v6318_v12 = vadd.f32 %v6308_v39, %v6297_v20  ;;  %v9121_v1 = vld [vmem:[%s14823_s5 + $0x2b0] sm:$0xff]  ;;  %8477 = vmatpush1.msra.mxu1 %v8422_v0  ;;  %v8386_v29 = vsub.s32 0, %v8385_v27  ;;  %v8390_v40 = vsub.s32 1, %v8385_v27  ;;  %v8503_v20 = vld [vmem:[%s14827_s9 + $0x20] sm:$0xff] }
 0x756   : > { %v10453_v61 = vpack.c.bf16 %v9121_v1, %v9119_v37  ;;  %10503 = vmatprep.subr.bf16.mxu1 %v10702_v28  ;;  %v10507_v8 = vpack.c.bf16 %v8502_v50, %v8501_v41  ;;  %v8505_v39 = vld [vmem:[%s14827_s9 + $0x30] sm:$0xff] }
 0x757   : > { %v6338_v10 = vadd.f32 %v6328_v34, %v6318_v12  ;;  %9113 = vmatmul.mubr.msk.f32.vlgmr.msra.gmra.mrb[114].mxu0 %vm6372_vm6, %v7901_v22  ;;  %v8387_v52 = vrot.slane %v8382_v15, %v8386_v29  ;;  %v8391_v53 = vrot.slane %v8382_v15, %v8390_v40  ;;  %v10510_v34 = vpack.c.bf16 %v8504_v38, %v8503_v20  ;;  %v8507_v12 = vld [vmem:[%s14827_s9 + $0x40] sm:$0xff]  ;;  %v8508_v22 = vld [vmem:[%s14827_s9 + $0x48] sm:$0xff] }
 0x758   : > { %10450 = vmatpush1.bf16.msra.mxu0 %v10449_v18  ;;  %8049 = vmatprep.mubr.f32.mxu0 %v15475_v54  ;;  %v8506_v18 = vld [vmem:[%s14827_s9 + $0x38] sm:$0xff] }
 0x759   : > { %v6343_v36 = vmax.f32 %v5864_v13, %v6338_v10  ;;  %10452 = vmatprep.subr.bf16.mxu0 %v10451_v32  ;;  %v10513_v13 = vpack.c.bf16 %v8506_v18, %v8505_v39  ;;  %v10516_v32 = vpack.c.bf16 %v8508_v22, %v8507_v12  ;;  %v8509_v10 = vld [vmem:[%s14827_s9 + $0x50] sm:$0xf] }
 0x75b   : > { %v6355_v6 = vadd.f32 %v10628_v2, %v6343_v36 }
 0x75d   : > { %v6360_v48 = vmax.f32 %v6355_v6, 0.0 }
 0x75f   : > { %9118 = vmatmul.mubr.msk.f32.vlgmr.msra.gmra.mrb[114].mxu0 %vm6372_vm6, %v6360_v48  ;;  %v8063_v49 = vrot.slane %v6360_v48, 1  ;;  %v8144_v59 = vrot.slane %v6360_v48, 2  ;;  %v8225_v21 = vrot.slane %v6360_v48, 3  ;;  %v8306_v16 = vrot.slane %v6360_v48, 4 }
 0x760   : > { %10454 = vmatpush1.bf16.msra.mxu0 %v10453_v61  ;;  %8130 = vmatprep.mubr.f32.mxu0 %v15475_v54 }
 0x761   : > { %10456 = vmatprep.subr.bf16.mxu0 %v10455_v55 }
 0x767   : > { %9123 = vmatmul.mubr.msk.f32.vlgmr.msra.gmra.mrb[114].mxu0 %vm6372_vm6, %v8063_v49 }
 0x768   : > { %10458 = vmatpush1.bf16.msra.mxu0 %v10457_v3  ;;  %8211 = vmatprep.mubr.f32.mxu0 %v15475_v54 }
 0x769   : > { %10460 = vmatprep.subr.bf16.mxu0 %v10459_v62 }
 0x76f   : > { %9128 = vmatmul.mubr.msk.f32.vlgmr.msra.gmra.mrb[114].mxu0 %vm6372_vm6, %v8144_v59 }
 0x770   : > { %10462 = vmatpush1.bf16.msra.mxu0 %v10461_v14  ;;  %8292 = vmatprep.mubr.f32.mxu0 %v15475_v54 }
 0x771   : > { %10464 = vmatprep.subr.bf16.mxu0 %v10463_v7 }
 0x777   : > { %9133 = vmatmul.mubr.msk.f32.vlgmr.msra.gmra.mrb[114].mxu0 %vm6372_vm6, %v8225_v21 }
 0x778   : > { %10466 = vmatpush1.bf16.msra.mxu0 %v10465_v33  ;;  %8373 = vmatprep.mubr.f32.mxu0 %v15475_v54 }
 0x77f   : > { %9138 = vmatmul.mubr.msk.f32.vlgmr.msra.gmra.mrb[114].mxu0 %vm6372_vm6, %v8306_v16 }
 0x852   : > { %v8375_v42 = vpop.f32.mrb[114].mxu0 }
 0x853   : > { %v8394_v24 = vadd.f32 %v8387_v52, %v8375_v42  ;;  %v8377_v58 = vpop.f32.mrb[115].mxu0 }
 0x854   : > { %v8395_v9 = vadd.f32 %v8391_v53, %v8377_v58 }
 0x855   : > { %v8396_v47 = vmax.f32 %v8394_v24, 0.0 }
 0x856   : > { %v8397_v51 = vmax.f32 %v8395_v9, 0.0 }
 0x858   : > { %9139 = vmatprep.mubr.msk.f32.mxu1 %vm8424_vm7, %v8397_v51 }
 0x859   : > { %8493 = vmatmul.mubr.f32.vlgmr.msra.gmra.mrb[142].mxu1 %v8396_v47 }
 0x85a   : > { %10505 = vmatpush3.bf16.msra.mxu1 %v10504_v60  ;;  %9980 = vmatprep.mubr.msk.f32.mxu1 %vm10703_vm8, %v15475_v54 }
 0x85b   : > { %10506 = vmatprep.subr.bf16.mxu1 %v10702_v28 }
 0x85e   : > { %10508 = vmatpush3.bf16.msra.mxu1 %v10507_v8 }
 0x85f   : > { %10509 = vmatprep.subr.bf16.mxu1 %v10702_v28 }
 0x862   : > { %10511 = vmatpush3.bf16.msra.mxu1 %v10510_v34 }
 0x863   : > { %10512 = vmatprep.subr.bf16.mxu1 %v10702_v28 }
 0x866   : > { %10514 = vmatpush3.bf16.msra.mxu1 %v10513_v13 }
 0x867   : > { %10515 = vmatprep.subr.bf16.mxu1 %v10702_v28  ;;  %v8423_v28 = vld [vmem:[%s14826_s8] sm:$0x1] }
 0x86a   : > { %10517 = vmatpush3.bf16.msra.mxu1 %v10516_v32 }
 0x86b   : > { %9978 = vmatprep.subr.mxu1 %v15475_v54 }
 0x86e   : > { %9979 = vmatpush3.msk.msra.mxu1 %vm1578_vm4, %v8509_v10 }
 0x92c   : > { %v8494_v36 = vpop.f32.mrb[142].mxu1 }
 0x92d   : > { %v8495_v37 = vadd.f32 %v8494_v36, %v8423_v28  ;;  %v8496_v1 = vpop.f32.mrb[143].mxu1 }
 0x92f   : > { %v8498_v11 = vmax.f32 %v8495_v37, 0.0 }
 0x931   : > { %9981 = vmatmul.mubr.msk.f32.vlgmr.msra.gmra.mrb[144].mxu1 %vm8511_vm9, %v8498_v11 }
 0xa04   : > { %v8584_v54 = vpop.f32.mrb[144].mxu1 }
 0xa05   : > { %v8585_v2 = vadd.f32 %v8584_v54, %v8510_v23  ;;  %v9982_v6 = vpop.f32.mrb[145].mxu1 }
 0xa07   : > { %8589 = vst.msk [vmem:[%s926_s16] sm:$0x1] %vm8588_vm10, %v8585_v2 }
 0xa08   : > { %10642 = shalt.err (!%p10639_p5)
}
 0xa09   : > { %s10643_s13 = scalar_lea.hbm %s14774_s0, 16  ;;  %s10647_s1 = scalar_lea.hbm %s14829_s11, 32 }
 0xa0a   : > { %p10644_p7 = scmp.ne.s32.totalorder %s14774_s0, %s10643_s13  ;;  %p10648_p12 = scmp.lt.u32.totalorder %s14774_s0, %s14829_s11 }
 0xa0b   : > { %p10649_p13 = scmp.lt.u32.totalorder %s10647_s1, %s10643_s13  ;;  %p10651_p1 = scmp.lt.u32.totalorder %s10643_s13, %s14774_s0 }
 0xa0c   : > { %p10645_p10 = pnand %p10644_p7, %p10803_p6 }
 0xa0d   : > { %p10650_p0 = por %p10649_p13, %p10648_p12 }
 0xa0e   : > { %p10646_p11 = pneg %p10645_p10 }
 0xa0f   : > { %p10652_p2 = por %p10651_p1, %p10650_p0 }
 0xa11   : > { %p10653_p3 = pnand %p10652_p2, %p10646_p11 }
 0xa13   : > { %10656 = shalt.err (!%p10653_p3)
}
 0xa14   : > { %10570 = dma.vmem_to_hbm [thread:$0]  (%p10803_p6), %s14776_s30, 16, %s14774_s0, %s8591_s22  }
 0xa15 PF: > { %s8615_s16 = sand.u32 1, %s10679_s17   ;;  %p10573_p4 = pnand %p8666_p9, %p10807_p8 }
 0xa16   : > { %s8616_s14 = scalar_lea.sflag [#allocation4], %s8615_s16 }
 0xa17   : > { %10674 = dma.done.wait (!%p10573_p4), %s8616_s14, 16  }
 0xa18   : > { %10676 = vsyncadd (!%p10573_p4), %s8616_s14, 4294967280  ;;  %s15584_s29 = sld [smem:[#allocation6_spill]]  ;;  %p21_p5 = scmp.ge.s32.totalorder %s10788_s23, 4  }
 0xa19   : > { %s15585_s17 = smov %s10683_s18  ;;  %s15586_s18 = smov %s10687_s19 }
 0xa1a   : > { %s15588_s20 = smov %s10788_s23  ;;  %23 = sbr.rel (!%p21_p5) target bundleno = 8 (0x8), region = 181 }
 0xa1e   : > { %s15587_s19 = smov %s15584_s29 }
 0xa21   :  { %8620 = vsyncpa [#allocation4], 1 }
 0xa22   :  { %8622 = vsyncpa [#allocation4 + $0x1], 1 }

</bundles_post_ra>
